<compile_context>
chip_gen: v7x
topology: tpu7x:2x2x1
jax: 0.10.0
libtpu: 0.0.40
codegen_flags: <defaults>
</compile_context>

<pallas_src>
import jax
import jax.numpy as jnp
from jax.experimental import pallas as pl
from jax.experimental.pallas import tpu as pltpu

CPAD = 128      # conv output channels padded to lane width
FC_OUT_PAD = 512  # fc1 output padded 500 -> 512


# ----------------------------- kernels ------------------------------------ #

def _conv_relu_pool_kernel(p_ref, w_ref, b_ref, o_ref):
    """One tile of fused conv-matmul + 2x2 max-pool + bias + ReLU.

    p_ref: (4*R, K) bf16, rows grouped by pool offset [off0 | off1 | off2 | off3]
    w_ref: (K, CPAD) bf16   b_ref: (1, CPAD) f32   o_ref: (R, CPAD) bf16
    """
    r = o_ref.shape[0]
    # single MXU matmul with 4x M rows, f32 accumulation
    y = jnp.dot(p_ref[...], w_ref[...], preferred_element_type=jnp.float32)
    # 2x2 max-pool == max over the 4 contiguous offset groups (static sublane slices)
    m = jnp.maximum(jnp.maximum(y[0 * r:1 * r], y[1 * r:2 * r]),
                    jnp.maximum(y[2 * r:3 * r], y[3 * r:4 * r]))
    # bias hoisted out of the max (max(x+b, y+b) == max(x,y)+b), ReLU in f32
    o_ref[...] = jnp.maximum(m + b_ref[...], 0.0).astype(o_ref.dtype)


def _linear_relu_kernel(x_ref, w_ref, b_ref, o_ref):
    y = jnp.dot(x_ref[...], w_ref[...], preferred_element_type=jnp.float32)
    o_ref[...] = jnp.maximum(y + b_ref[...], 0.0).astype(o_ref.dtype)


# ----------------------------- wrappers ------------------------------------ #

def _images_per_tile(n, hw, target_rows=1024):
    """Largest divisor d of n with d*hw <= target_rows (>=1)."""
    d = 1
    for c in range(1, n + 1):
        if n % c == 0 and c * hw <= target_rows:
            d = c
    return d


def _row_tile(m, target=512):
    if m <= target:
        return m
    for t in range(target, 7, -1):
        if m % t == 0 and t % 8 == 0:
            return t
    return m


def conv_relu_pool(x_nhwc, w_mat, b):
    """Conv2d(3x3, pad=1) + ReLU + MaxPool2d(2,2), fused in one pallas_call.

    x_nhwc: (N, H, W, Cin) bf16; w_mat: (9*Cin, CPAD) bf16; b: (1, CPAD) f32.
    Returns (N, H//2, W//2, CPAD) bf16 (channels zero-padded beyond real cout).
    """
    N, H, W, C = x_nhwc.shape
    Ho, Wo = H // 2, W // 2
    K = 9 * C

    # im2col (pure data movement): (N, H, W, 9*Cin), tap-major (dy, dx) then Cin
    xp = jnp.pad(x_nhwc, ((0, 0), (1, 1), (1, 1), (0, 0)))
    taps = [xp[:, dy:dy + H, dx:dx + W, :] for dy in range(3) for dx in range(3)]
    patches = jnp.concatenate(taps, axis=-1)

    # Tile whole images so each row-tile holds its 4 pool-offset groups contiguously.
    npt = _images_per_tile(N, Ho * Wo)
    T = N // npt
    R = npt * Ho * Wo                     # output rows per tile (multiple of 8 here)
    pm = (patches.reshape(T, npt, Ho, 2, Wo, 2, K)
                 .transpose(0, 3, 5, 1, 2, 4, 6)      # (T, py, px, npt, Ho, Wo, K)
                 .reshape(T * 4 * R, K)
                 .astype(jnp.bfloat16))

    out = pl.pallas_call(
        _conv_relu_pool_kernel,
        out_shape=jax.ShapeDtypeStruct((T * R, CPAD), jnp.bfloat16),
        grid=(T,),
        in_specs=[
            pl.BlockSpec((4 * R, K), lambda i: (i, 0)),     # patch rows, tiled over M
            pl.BlockSpec((K, CPAD), lambda i: (0, 0)),      # weights: VMEM-resident
            pl.BlockSpec((1, CPAD), lambda i: (0, 0)),      # bias:    VMEM-resident
        ],
        out_specs=pl.BlockSpec((R, CPAD), lambda i: (i, 0)),
        compiler_params=pltpu.CompilerParams(dimension_semantics=("parallel",)),
    )(pm, w_mat, b)
    return out.reshape(N, Ho, Wo, CPAD)


def linear_relu(x, w, b):
    """ReLU(x @ w + b), row-tiled; x/w bf16, accumulate + output f32."""
    M, K = x.shape
    Nf = w.shape[1]
    tm = _row_tile(M)
    T = M // tm
    return pl.pallas_call(
        _linear_relu_kernel,
        out_shape=jax.ShapeDtypeStruct((M, Nf), jnp.float32),
        grid=(T,),
        in_specs=[
            pl.BlockSpec((tm, K), lambda i: (i, 0)),
            pl.BlockSpec((K, Nf), lambda i: (0, 0)),
            pl.BlockSpec((1, Nf), lambda i: (0, 0)),
        ],
        out_specs=pl.BlockSpec((tm, Nf), lambda i: (i, 0)),
        compiler_params=pltpu.CompilerParams(dimension_semantics=("parallel",)),
    )(x, w, b)


# ----------------------------- parameters ---------------------------------- #

def init_params(key):
    """Synthetic parameters with Net.__init__ shapes, converted to kernel layout."""
    ks = jax.random.split(key, 8)

    def conv_w(k, cout, cin):
        # PyTorch layout (cout, cin, 3, 3) -> im2col matrix (9*cin, cout) -> pad to 128 cols
        w = jax.random.normal(k, (cout, cin, 3, 3), jnp.float32) * 0.05
        wm = jnp.transpose(w, (2, 3, 1, 0)).reshape(9 * cin, cout)
        return jnp.pad(wm, ((0, 0), (0, CPAD - cout))).astype(jnp.bfloat16)

    def conv_b(k, cout):
        b = jax.random.normal(k, (cout,), jnp.float32) * 0.01
        return jnp.pad(b, (0, CPAD - cout)).reshape(1, CPAD)

    # fc1: PyTorch weight (500, 64*4*4) acting on the NCHW flatten x.view(-1, 64*4*4).
    # Fold the NHWC(+channel-pad-to-128) flatten permutation into the weight rows.
    wt = jax.random.normal(ks[6], (500, 64 * 4 * 4), jnp.float32) * 0.02
    h, w, c = jnp.meshgrid(jnp.arange(4), jnp.arange(4), jnp.arange(64), indexing="ij")
    dest = ((h * 4 + w) * CPAD + c).reshape(-1)   # row index in NHWC-padded flatten
    src = (c * 16 + h * 4 + w).reshape(-1)        # row index in PyTorch NCHW flatten
    w_nhwc = jnp.zeros((4 * 4 * CPAD, 500), jnp.float32).at[dest].set(wt.T[src])
    wf1 = jnp.pad(w_nhwc, ((0, 0), (0, FC_OUT_PAD - 500))).astype(jnp.bfloat16)
    bf1 = jnp.pad(jax.random.normal(ks[7], (500,), jnp.float32) * 0.01,
                  (0, FC_OUT_PAD - 500)).reshape(1, FC_OUT_PAD)

    return {
        "w1": conv_w(ks[0], 16, 3),  "b1": conv_b(ks[1], 16),
        "w2": conv_w(ks[2], 32, 16), "b2": conv_b(ks[3], 32),
        "w3": conv_w(ks[4], 64, 32), "b3": conv_b(ks[5], 64),
        "wf1": wf1, "bf1": bf1,
        # TODO(synk): fc2 (500 -> 3) is defined in __init__ but never used in forward().
    }


# ----------------------------- forward ------------------------------------- #

@jax.jit
def net_forward(x_nchw, params):
    # NCHW (PyTorch input convention) -> NHWC, bf16 MXU operands
    x = jnp.transpose(x_nchw, (0, 2, 3, 1)).astype(jnp.bfloat16)
    x = conv_relu_pool(x, params["w1"], params["b1"])            # (N, 16, 16, 128)
    x = conv_relu_pool(x[..., :16], params["w2"], params["b2"])  # (N,  8,  8, 128)
    x = conv_relu_pool(x[..., :32], params["w3"], params["b3"])  # (N,  4,  4, 128)
    # NHWC-padded flatten; the NCHW view(-1, 64*4*4) permutation is folded into wf1
    x = x.reshape(x.shape[0], 4 * 4 * CPAD)
    # dropout(p=0.25): identity in inference/eval mode
    y = linear_relu(x, params["wf1"], params["bf1"])             # (N, 512) f32
    # second dropout: identity in eval; fc2 is unused in forward()
    return y[:, :500]


if __name__ == "__main__":
    key = jax.random.PRNGKey(0)
    kx, kp = jax.random.split(key)
    # 32x32 spatial is forced by fc1 expecting 64*4*4 after three 2x2 pools.
    x = jax.random.normal(kx, (8, 3, 32, 32), jnp.float32)
    params = init_params(kp)
    out = net_forward(x, params)
    jax.block_until_ready(out)
    assert out.shape == (8, 500)
    print("KERNEL_OK")
</pallas_src>

<mosaic_0001>
module attributes {stable_mosaic.version = 11 : i64} {
  func.func @_conv_relu_pool_kernel(%arg0: i32, %arg1: memref<4096x27xbf16, #tpu.memory_space<vmem>>, %arg2: memref<27x128xbf16, #tpu.memory_space<vmem>>, %arg3: memref<1x128xf32, #tpu.memory_space<vmem>>, %arg4: memref<1024x128xbf16, #tpu.memory_space<vmem>>) attributes {dimension_semantics = [#tpu.dimension_semantics<parallel>], iteration_bounds = array<i64: 2>, scalar_prefetch = 0 : i64, scratch_operands = 0 : i64, tpu.core_type = #tpu.core_type<tc>, window_params = [{transform_indices = @transform_0, window_bounds = array<i64: 4096, 27>}, {pipeline_mode = #tpu.pipeline_mode<synchronous>, transform_indices = @transform_1, window_bounds = array<i64: 27, 128>}, {pipeline_mode = #tpu.pipeline_mode<synchronous>, transform_indices = @transform_2, window_bounds = array<i64: 1, 128>}, {transform_indices = @transform_3, window_bounds = array<i64: 1024, 128>}]} {
    %c0 = arith.constant 0 : index
    %c0_0 = arith.constant 0 : index
    %0 = vector.load %arg1[%c0, %c0_0] : memref<4096x27xbf16, #tpu.memory_space<vmem>>, vector<4096x27xbf16>
    %c0_1 = arith.constant 0 : index
    %c0_2 = arith.constant 0 : index
    %1 = vector.load %arg2[%c0_1, %c0_2] : memref<27x128xbf16, #tpu.memory_space<vmem>>, vector<27x128xbf16>
    %cst = arith.constant dense<0.000000e+00> : vector<4096x128xf32>
    %2 = tpu.matmul %0, %1, %cst {dimension_numbers = #tpu.dot_dimension_numbers<[1], [0], [0], [1], [0, 0, 1, 1], [], []>} : vector<4096x27xbf16>, vector<27x128xbf16>, vector<4096x128xf32> -> vector<4096x128xf32>
    %3 = vector.extract_strided_slice %2 {offsets = [0, 0], sizes = [1024, 128], strides = [1, 1]} : vector<4096x128xf32> to vector<1024x128xf32>
    %4 = vector.extract_strided_slice %2 {offsets = [1024, 0], sizes = [1024, 128], strides = [1, 1]} : vector<4096x128xf32> to vector<1024x128xf32>
    %5 = arith.maximumf %3, %4 : vector<1024x128xf32>
    %6 = vector.extract_strided_slice %2 {offsets = [2048, 0], sizes = [1024, 128], strides = [1, 1]} : vector<4096x128xf32> to vector<1024x128xf32>
    %7 = vector.extract_strided_slice %2 {offsets = [3072, 0], sizes = [1024, 128], strides = [1, 1]} : vector<4096x128xf32> to vector<1024x128xf32>
    %8 = arith.maximumf %6, %7 : vector<1024x128xf32>
    %9 = arith.maximumf %5, %8 : vector<1024x128xf32>
    %c0_3 = arith.constant 0 : index
    %c0_4 = arith.constant 0 : index
    %10 = vector.load %arg3[%c0_3, %c0_4] : memref<1x128xf32, #tpu.memory_space<vmem>>, vector<1x128xf32>
    %11 = vector.broadcast %10 : vector<1x128xf32> to vector<1024x128xf32>
    %12 = arith.addf %9, %11 : vector<1024x128xf32>
    %cst_5 = arith.constant 0.000000e+00 : f32
    %13 = vector.broadcast %cst_5 : f32 to vector<1024x128xf32>
    %14 = arith.maximumf %12, %13 : vector<1024x128xf32>
    %15 = arith.truncf %14 : vector<1024x128xf32> to vector<1024x128xbf16>
    %c0_6 = arith.constant 0 : index
    %c0_7 = arith.constant 0 : index
    %16 = vector.load %arg4[%c0_6, %c0_7] : memref<1024x128xbf16, #tpu.memory_space<vmem>>, vector<1024x128xbf16>
    tpu.vector_store %arg4[%c0_6, %c0_7], %15 {strides = array<i32>} : memref<1024x128xbf16, #tpu.memory_space<vmem>>, vector<1024x128xbf16>,
    return
  }
  func.func @transform_0(%arg0: i32) -> (i32, i32) {
    %c0_i32 = arith.constant 0 : i32
    %c0_i32_0 = arith.constant 0 : i32
    return %arg0, %c0_i32 : i32, i32
  }
  func.func @transform_1(%arg0: i32) -> (i32, i32) {
    %c0_i32 = arith.constant 0 : i32
    %c0_i32_0 = arith.constant 0 : i32
    %c0_i32_1 = arith.constant 0 : i32
    return %c0_i32, %c0_i32_0 : i32, i32
  }
  func.func @transform_2(%arg0: i32) -> (i32, i32) {
    %c0_i32 = arith.constant 0 : i32
    %c0_i32_0 = arith.constant 0 : i32
    %c0_i32_1 = arith.constant 0 : i32
    return %c0_i32, %c0_i32_0 : i32, i32
  }
  func.func @transform_3(%arg0: i32) -> (i32, i32) {
    %c0_i32 = arith.constant 0 : i32
    %c0_i32_0 = arith.constant 0 : i32
    return %arg0, %c0_i32 : i32, i32
  }
}

module attributes {stable_mosaic.version = 11 : i64} {
  func.func @_conv_relu_pool_kernel(%arg0: i32, %arg1: memref<2048x144xbf16, #tpu.memory_space<vmem>>, %arg2: memref<144x128xbf16, #tpu.memory_space<vmem>>, %arg3: memref<1x128xf32, #tpu.memory_space<vmem>>, %arg4: memref<512x128xbf16, #tpu.memory_space<vmem>>) attributes {dimension_semantics = [#tpu.dimension_semantics<parallel>], iteration_bounds = array<i64: 1>, scalar_prefetch = 0 : i64, scratch_operands = 0 : i64, tpu.core_type = #tpu.core_type<tc>, window_params = [{transform_indices = @transform_0, window_bounds = array<i64: 2048, 144>}, {pipeline_mode = #tpu.pipeline_mode<synchronous>, transform_indices = @transform_1, window_bounds = array<i64: 144, 128>}, {pipeline_mode = #tpu.pipeline_mode<synchronous>, transform_indices = @transform_2, window_bounds = array<i64: 1, 128>}, {transform_indices = @transform_3, window_bounds = array<i64: 512, 128>}]} {
    %c0 = arith.constant 0 : index
    %c0_0 = arith.constant 0 : index
    %0 = vector.load %arg1[%c0, %c0_0] : memref<2048x144xbf16, #tpu.memory_space<vmem>>, vector<2048x144xbf16>
    %c0_1 = arith.constant 0 : index
    %c0_2 = arith.constant 0 : index
    %1 = vector.load %arg2[%c0_1, %c0_2] : memref<144x128xbf16, #tpu.memory_space<vmem>>, vector<144x128xbf16>
    %cst = arith.constant dense<0.000000e+00> : vector<2048x128xf32>
    %2 = tpu.matmul %0, %1, %cst {dimension_numbers = #tpu.dot_dimension_numbers<[1], [0], [0], [1], [0, 0, 1, 1], [], []>} : vector<2048x144xbf16>, vector<144x128xbf16>, vector<2048x128xf32> -> vector<2048x128xf32>
    %3 = vector.extract_strided_slice %2 {offsets = [0, 0], sizes = [512, 128], strides = [1, 1]} : vector<2048x128xf32> to vector<512x128xf32>
    %4 = vector.extract_strided_slice %2 {offsets = [512, 0], sizes = [512, 128], strides = [1, 1]} : vector<2048x128xf32> to vector<512x128xf32>
    %5 = arith.maximumf %3, %4 : vector<512x128xf32>
    %6 = vector.extract_strided_slice %2 {offsets = [1024, 0], sizes = [512, 128], strides = [1, 1]} : vector<2048x128xf32> to vector<512x128xf32>
    %7 = vector.extract_strided_slice %2 {offsets = [1536, 0], sizes = [512, 128], strides = [1, 1]} : vector<2048x128xf32> to vector<512x128xf32>
    %8 = arith.maximumf %6, %7 : vector<512x128xf32>
    %9 = arith.maximumf %5, %8 : vector<512x128xf32>
    %c0_3 = arith.constant 0 : index
    %c0_4 = arith.constant 0 : index
    %10 = vector.load %arg3[%c0_3, %c0_4] : memref<1x128xf32, #tpu.memory_space<vmem>>, vector<1x128xf32>
    %11 = vector.broadcast %10 : vector<1x128xf32> to vector<512x128xf32>
    %12 = arith.addf %9, %11 : vector<512x128xf32>
    %cst_5 = arith.constant 0.000000e+00 : f32
    %13 = vector.broadcast %cst_5 : f32 to vector<512x128xf32>
    %14 = arith.maximumf %12, %13 : vector<512x128xf32>
    %15 = arith.truncf %14 : vector<512x128xf32> to vector<512x128xbf16>
    %c0_6 = arith.constant 0 : index
    %c0_7 = arith.constant 0 : index
    %16 = vector.load %arg4[%c0_6, %c0_7] : memref<512x128xbf16, #tpu.memory_space<vmem>>, vector<512x128xbf16>
    tpu.vector_store %arg4[%c0_6, %c0_7], %15 {strides = array<i32>} : memref<512x128xbf16, #tpu.memory_space<vmem>>, vector<512x128xbf16>,
    return
  }
  func.func @transform_0(%arg0: i32) -> (i32, i32) {
    %c0_i32 = arith.constant 0 : i32
    %c0_i32_0 = arith.constant 0 : i32
    return %arg0, %c0_i32 : i32, i32
  }
  func.func @transform_1(%arg0: i32) -> (i32, i32) {
    %c0_i32 = arith.constant 0 : i32
    %c0_i32_0 = arith.constant 0 : i32
    %c0_i32_1 = arith.constant 0 : i32
    return %c0_i32, %c0_i32_0 : i32, i32
  }
  func.func @transform_2(%arg0: i32) -> (i32, i32) {
    %c0_i32 = arith.constant 0 : i32
    %c0_i32_0 = arith.constant 0 : i32
    %c0_i32_1 = arith.constant 0 : i32
    return %c0_i32, %c0_i32_0 : i32, i32
  }
  func.func @transform_3(%arg0: i32) -> (i32, i32) {
    %c0_i32 = arith.constant 0 : i32
    %c0_i32_0 = arith.constant 0 : i32
    return %arg0, %c0_i32 : i32, i32
  }
}

module attributes {stable_mosaic.version = 11 : i64} {
  func.func @_conv_relu_pool_kernel(%arg0: i32, %arg1: memref<512x288xbf16, #tpu.memory_space<vmem>>, %arg2: memref<288x128xbf16, #tpu.memory_space<vmem>>, %arg3: memref<1x128xf32, #tpu.memory_space<vmem>>, %arg4: memref<128x128xbf16, #tpu.memory_space<vmem>>) attributes {dimension_semantics = [#tpu.dimension_semantics<parallel>], iteration_bounds = array<i64: 1>, scalar_prefetch = 0 : i64, scratch_operands = 0 : i64, tpu.core_type = #tpu.core_type<tc>, window_params = [{transform_indices = @transform_0, window_bounds = array<i64: 512, 288>}, {pipeline_mode = #tpu.pipeline_mode<synchronous>, transform_indices = @transform_1, window_bounds = array<i64: 288, 128>}, {pipeline_mode = #tpu.pipeline_mode<synchronous>, transform_indices = @transform_2, window_bounds = array<i64: 1, 128>}, {transform_indices = @transform_3, window_bounds = array<i64: 128, 128>}]} {
    %c0 = arith.constant 0 : index
    %c0_0 = arith.constant 0 : index
    %0 = vector.load %arg1[%c0, %c0_0] : memref<512x288xbf16, #tpu.memory_space<vmem>>, vector<512x288xbf16>
    %c0_1 = arith.constant 0 : index
    %c0_2 = arith.constant 0 : index
    %1 = vector.load %arg2[%c0_1, %c0_2] : memref<288x128xbf16, #tpu.memory_space<vmem>>, vector<288x128xbf16>
    %cst = arith.constant dense<0.000000e+00> : vector<512x128xf32>
    %2 = tpu.matmul %0, %1, %cst {dimension_numbers = #tpu.dot_dimension_numbers<[1], [0], [0], [1], [0, 0, 1, 1], [], []>} : vector<512x288xbf16>, vector<288x128xbf16>, vector<512x128xf32> -> vector<512x128xf32>
    %3 = vector.extract_strided_slice %2 {offsets = [0, 0], sizes = [128, 128], strides = [1, 1]} : vector<512x128xf32> to vector<128x128xf32>
    %4 = vector.extract_strided_slice %2 {offsets = [128, 0], sizes = [128, 128], strides = [1, 1]} : vector<512x128xf32> to vector<128x128xf32>
    %5 = arith.maximumf %3, %4 : vector<128x128xf32>
    %6 = vector.extract_strided_slice %2 {offsets = [256, 0], sizes = [128, 128], strides = [1, 1]} : vector<512x128xf32> to vector<128x128xf32>
    %7 = vector.extract_strided_slice %2 {offsets = [384, 0], sizes = [128, 128], strides = [1, 1]} : vector<512x128xf32> to vector<128x128xf32>
    %8 = arith.maximumf %6, %7 : vector<128x128xf32>
    %9 = arith.maximumf %5, %8 : vector<128x128xf32>
    %c0_3 = arith.constant 0 : index
    %c0_4 = arith.constant 0 : index
    %10 = vector.load %arg3[%c0_3, %c0_4] : memref<1x128xf32, #tpu.memory_space<vmem>>, vector<1x128xf32>
    %11 = vector.broadcast %10 : vector<1x128xf32> to vector<128x128xf32>
    %12 = arith.addf %9, %11 : vector<128x128xf32>
    %cst_5 = arith.constant 0.000000e+00 : f32
    %13 = vector.broadcast %cst_5 : f32 to vector<128x128xf32>
    %14 = arith.maximumf %12, %13 : vector<128x128xf32>
    %15 = arith.truncf %14 : vector<128x128xf32> to vector<128x128xbf16>
    %c0_6 = arith.constant 0 : index
    %c0_7 = arith.constant 0 : index
    %16 = vector.load %arg4[%c0_6, %c0_7] : memref<128x128xbf16, #tpu.memory_space<vmem>>, vector<128x128xbf16>
    tpu.vector_store %arg4[%c0_6, %c0_7], %15 {strides = array<i32>} : memref<128x128xbf16, #tpu.memory_space<vmem>>, vector<128x128xbf16>,
    return
  }
  func.func @transform_0(%arg0: i32) -> (i32, i32) {
    %c0_i32 = arith.constant 0 : i32
    %c0_i32_0 = arith.constant 0 : i32
    return %arg0, %c0_i32 : i32, i32
  }
  func.func @transform_1(%arg0: i32) -> (i32, i32) {
    %c0_i32 = arith.constant 0 : i32
    %c0_i32_0 = arith.constant 0 : i32
    %c0_i32_1 = arith.constant 0 : i32
    return %c0_i32, %c0_i32_0 : i32, i32
  }
  func.func @transform_2(%arg0: i32) -> (i32, i32) {
    %c0_i32 = arith.constant 0 : i32
    %c0_i32_0 = arith.constant 0 : i32
    %c0_i32_1 = arith.constant 0 : i32
    return %c0_i32, %c0_i32_0 : i32, i32
  }
  func.func @transform_3(%arg0: i32) -> (i32, i32) {
    %c0_i32 = arith.constant 0 : i32
    %c0_i32_0 = arith.constant 0 : i32
    return %arg0, %c0_i32 : i32, i32
  }
}

module attributes {stable_mosaic.version = 11 : i64} {
  func.func @_linear_relu_kernel(%arg0: i32, %arg1: memref<8x2048xbf16, #tpu.memory_space<vmem>>, %arg2: memref<2048x512xbf16, #tpu.memory_space<vmem>>, %arg3: memref<1x512xf32, #tpu.memory_space<vmem>>, %arg4: memref<8x512xf32, #tpu.memory_space<vmem>>) attributes {dimension_semantics = [#tpu.dimension_semantics<parallel>], iteration_bounds = array<i64: 1>, scalar_prefetch = 0 : i64, scratch_operands = 0 : i64, tpu.core_type = #tpu.core_type<tc>, window_params = [{transform_indices = @transform_0, window_bounds = array<i64: 8, 2048>}, {pipeline_mode = #tpu.pipeline_mode<synchronous>, transform_indices = @transform_1, window_bounds = array<i64: 2048, 512>}, {pipeline_mode = #tpu.pipeline_mode<synchronous>, transform_indices = @transform_2, window_bounds = array<i64: 1, 512>}, {transform_indices = @transform_3, window_bounds = array<i64: 8, 512>}]} {
    %c0 = arith.constant 0 : index
    %c0_0 = arith.constant 0 : index
    %0 = vector.load %arg1[%c0, %c0_0] : memref<8x2048xbf16, #tpu.memory_space<vmem>>, vector<8x2048xbf16>
    %c0_1 = arith.constant 0 : index
    %c0_2 = arith.constant 0 : index
    %1 = vector.load %arg2[%c0_1, %c0_2] : memref<2048x512xbf16, #tpu.memory_space<vmem>>, vector<2048x512xbf16>
    %cst = arith.constant dense<0.000000e+00> : vector<8x512xf32>
    %2 = tpu.matmul %0, %1, %cst {dimension_numbers = #tpu.dot_dimension_numbers<[1], [0], [0], [1], [0, 0, 1, 1], [], []>} : vector<8x2048xbf16>, vector<2048x512xbf16>, vector<8x512xf32> -> vector<8x512xf32>
    %c0_3 = arith.constant 0 : index
    %c0_4 = arith.constant 0 : index
    %3 = vector.load %arg3[%c0_3, %c0_4] : memref<1x512xf32, #tpu.memory_space<vmem>>, vector<1x512xf32>
    %4 = vector.broadcast %3 : vector<1x512xf32> to vector<8x512xf32>
    %5 = arith.addf %2, %4 : vector<8x512xf32>
    %cst_5 = arith.constant 0.000000e+00 : f32
    %6 = vector.broadcast %cst_5 : f32 to vector<8x512xf32>
    %7 = arith.maximumf %5, %6 : vector<8x512xf32>
    %c0_6 = arith.constant 0 : index
    %c0_7 = arith.constant 0 : index
    %8 = vector.load %arg4[%c0_6, %c0_7] : memref<8x512xf32, #tpu.memory_space<vmem>>, vector<8x512xf32>
    tpu.vector_store %arg4[%c0_6, %c0_7], %7 {strides = array<i32>} : memref<8x512xf32, #tpu.memory_space<vmem>>, vector<8x512xf32>,
    return
  }
  func.func @transform_0(%arg0: i32) -> (i32, i32) {
    %c0_i32 = arith.constant 0 : i32
    %c0_i32_0 = arith.constant 0 : i32
    return %arg0, %c0_i32 : i32, i32
  }
  func.func @transform_1(%arg0: i32) -> (i32, i32) {
    %c0_i32 = arith.constant 0 : i32
    %c0_i32_0 = arith.constant 0 : i32
    %c0_i32_1 = arith.constant 0 : i32
    return %c0_i32, %c0_i32_0 : i32, i32
  }
  func.func @transform_2(%arg0: i32) -> (i32, i32) {
    %c0_i32 = arith.constant 0 : i32
    %c0_i32_0 = arith.constant 0 : i32
    %c0_i32_1 = arith.constant 0 : i32
    return %c0_i32, %c0_i32_0 : i32, i32
  }
  func.func @transform_3(%arg0: i32) -> (i32, i32) {
    %c0_i32 = arith.constant 0 : i32
    %c0_i32_0 = arith.constant 0 : i32
    return %arg0, %c0_i32 : i32, i32
  }
}

</mosaic_0001>

<bundles_post_ra>
// kernel: net_forward.4
= control target key start
LH: loop header
LB: loop body
LE: loop exit
PB: predicated region body
PF: predicated region fallthrough
CT: control target
= control target key end

     0   :  { %s8423_s12 = smov 0   ;;  %s9939_s0 = inlined_call_operand.vmem [shape: bf16[8192,27], index: 0, kind: input, shape index: {}]   ;;  %s9940_s1 = inlined_call_operand.vmem [shape: bf16[27,128], index: 1, kind: input, shape index: {}]   ;;  %s9941_s2 = inlined_call_operand.vmem [shape: f32[1,128], index: 2, kind: input, shape index: {}]   ;;  %s9942_s3 = inlined_call_operand.vmem [shape: bf16[2048,128], index: 3, kind: output, shape index: {}]  }
   0x1 LB: > { %s6182_s13 = sadd.s32 4294967295, %s8400_s12   ;;  %p6186_p0 = scmp.ge.s32.totalorder %s8400_s12, 1  ;;  %s8400_s12 = sphi %s8423_s12, %s13_s12  }
   0x2   : > { %p138_p1 = scmp.lt.s32.totalorder %s8400_s12, 3 }
   0x4   : > { %p139_p2 = pnand %p6186_p0, %p138_p1 }
   0x6   : > { %142 = sbr.rel (%p139_p2) target bundleno = 753 (0x2f1), region = 32 }
   0xd   : > { %v8134_v0 = vld [vmem:[%s9940_s1] sm:$0xff]   ;;  %vm2751_vm0 = vcmask 1044480   ;;  %v8135_v1 = vld [vmem:[%s9940_s1 + $0x8] sm:$0x3f]   ;;  %vm2752_vm1 = vcmask 1045504   ;;  %s6187_s18 = sshll.u32 %s6182_s13, 9 }
   0xe   : > { %7605 = vmatprep.subr.bf16.mxu0 %v8134_v0  ;;  %8121 = vmatprep.subr.bf16.mxu1 %v8134_v0  ;;  %v8402_v2 = vmov 65535   ;;  %p163_p3 = scmp.lt.s32.totalorder %s6187_s18, 1023  ;;  %vm1982_vm2 = vcmask 220160   ;;  %s6189_s23 = sshll.u32 %s6182_s13, 7 }
   0xf   : > { %7606 = vmatpush3.bf16.msra.mxu0 %v8134_v0  ;;  %8123 = vmatpush3.bf16.msra.mxu1 %v8134_v0  ;;  %v2753_v3 = vsel %vm2751_vm0, 4294967295, %v8402_v2  ;;  %p169_p4 = scmp.lt.s32.totalorder %s6189_s23, 255 }
  0x10   : > { %v2754_v4 = vsel %vm2752_vm1, %v2753_v3, 0  ;;  %s10362_s18 = smov (!%p163_p3, %s6187_s18), 1023 }
  0x11   : > { %v2756_v5 = vand.u32 %v8135_v1, %v2754_v4  ;;  %s6188_s19 = sshll.u32 %s10362_s18, 2  ;;  %s10364_s23 = smov (!%p169_p4, %s6189_s23), 255 }
  0x12   : > { %s8442_s22 = scalar_lea.vmem %s9939_s0, %s6188_s19  ;;  %s6190_s26 = sshll.u32 %s10364_s23, 2 }
  0x13   : > { %7607 = vmatprep.subr.bf16.mxu0 %v2756_v5  ;;  %8122 = vmatprep.subr.bf16.mxu1 %v2756_v5  ;;  %v8136_v6 = vld [vmem:[%s8442_s22] sm:$0xff]   ;;  %v8138_v8 = vld [vmem:[%s8442_s22 + $0x8] sm:$0xff]   ;;  %v8140_v10 = vld [vmem:[%s8442_s22 + $0x10] sm:$0xff]   ;;  %s9472_s29 = scalar_lea.vmem %s9942_s3, %s6190_s26 }
  0x14   : > { %7608 = vmatpush3.bf16.msra.mxu0 %v2756_v5  ;;  %8124 = vmatpush3.bf16.msra.mxu1 %v2756_v5  ;;  %v8137_v7 = vld [vmem:[%s8442_s22 + $0x400] sm:$0xff]   ;;  %v8139_v9 = vld [vmem:[%s8442_s22 + $0x408] sm:$0xff]   ;;  %v8141_v11 = vld [vmem:[%s8442_s22 + $0x410] sm:$0xff]  }
  0x15   : > { %7609 = vmatprep.mubr.msk.bf16.mxu0 %vm1982_vm2, %v8136_v6  ;;  %7865 = vmatprep.mubr.msk.bf16.mxu1 %vm1982_vm2, %v8137_v7  ;;  %v8142_v12 = vld [vmem:[%s8442_s22 + $0x18] sm:$0xff]   ;;  %v8144_v14 = vld [vmem:[%s8442_s22 + $0x20] sm:$0xff]   ;;  %v8146_v16 = vld [vmem:[%s8442_s22 + $0x28] sm:$0xff]  }
  0x16   : > { %v8143_v13 = vld [vmem:[%s8442_s22 + $0x418] sm:$0xff]   ;;  %v8145_v15 = vld [vmem:[%s8442_s22 + $0x420] sm:$0xff]   ;;  %v8147_v17 = vld [vmem:[%s8442_s22 + $0x428] sm:$0xff]  }
  0x17   : > { %7610 = vmatmul.mubr.msk.bf16.vlgmr.msra.gmra.mrb[0].mxu0 %vm1982_vm2, %v8138_v8  ;;  %7866 = vmatmul.mubr.msk.bf16.vlgmr.msra.gmra.mrb[0].mxu1 %vm1982_vm2, %v8139_v9  ;;  %v8148_v18 = vld [vmem:[%s8442_s22 + $0x30] sm:$0xff]   ;;  %v8150_v20 = vld [vmem:[%s8442_s22 + $0x38] sm:$0xff]   ;;  %v8152_v22 = vld [vmem:[%s8442_s22 + $0x40] sm:$0xff]  }
  0x18   : > { %7613 = vmatprep.mubr.msk.bf16.mxu0 %vm1982_vm2, %v8140_v10  ;;  %7869 = vmatprep.mubr.msk.bf16.mxu1 %vm1982_vm2, %v8141_v11  ;;  %v8149_v19 = vld [vmem:[%s8442_s22 + $0x430] sm:$0xff]   ;;  %v8151_v21 = vld [vmem:[%s8442_s22 + $0x438] sm:$0xff]   ;;  %v8153_v23 = vld [vmem:[%s8442_s22 + $0x440] sm:$0xff]  }
  0x19   : > { %v8154_v24 = vld [vmem:[%s8442_s22 + $0x48] sm:$0xff]   ;;  %v8156_v26 = vld [vmem:[%s8442_s22 + $0x50] sm:$0xff]   ;;  %v8158_v28 = vld [vmem:[%s8442_s22 + $0x58] sm:$0xff]  }
  0x1a   : > { %v8155_v25 = vld [vmem:[%s8442_s22 + $0x448] sm:$0xff]   ;;  %v8157_v27 = vld [vmem:[%s8442_s22 + $0x450] sm:$0xff]   ;;  %v8159_v29 = vld [vmem:[%s8442_s22 + $0x458] sm:$0xff]  }
  0x1b   : > { %v8160_v30 = vld [vmem:[%s8442_s22 + $0x60] sm:$0xff]   ;;  %v8162_v32 = vld [vmem:[%s8442_s22 + $0x68] sm:$0xff]   ;;  %v8164_v34 = vld [vmem:[%s8442_s22 + $0x70] sm:$0xff]  }
  0x1c   : > { %v8161_v31 = vld [vmem:[%s8442_s22 + $0x460] sm:$0xff]   ;;  %v8163_v33 = vld [vmem:[%s8442_s22 + $0x468] sm:$0xff]   ;;  %v8165_v35 = vld [vmem:[%s8442_s22 + $0x470] sm:$0xff]  }
  0x1d   : > { %v8166_v36 = vld [vmem:[%s8442_s22 + $0x78] sm:$0xff]   ;;  %v8168_v38 = vld [vmem:[%s8442_s22 + $0x80] sm:$0xff]   ;;  %v8170_v40 = vld [vmem:[%s8442_s22 + $0x88] sm:$0xff]  }
  0x1e   : > { %v8167_v37 = vld [vmem:[%s8442_s22 + $0x478] sm:$0xff]   ;;  %v8169_v39 = vld [vmem:[%s8442_s22 + $0x480] sm:$0xff]   ;;  %v8171_v41 = vld [vmem:[%s8442_s22 + $0x488] sm:$0xff]  }
  0x1f   : > { %7614 = vmatmul.mubr.msk.bf16.gmra.mrb[4].mxu0 %vm1982_vm2, %v8142_v12  ;;  %7870 = vmatmul.mubr.msk.bf16.gmra.mrb[4].mxu1 %vm1982_vm2, %v8143_v13  ;;  %v8172_v42 = vld [vmem:[%s8442_s22 + $0x90] sm:$0xff]   ;;  %v8174_v44 = vld [vmem:[%s8442_s22 + $0x98] sm:$0xff]   ;;  %v8176_v46 = vld [vmem:[%s8442_s22 + $0xa0] sm:$0xff]  }
  0x20   : > { %7617 = vmatprep.mubr.msk.bf16.mxu0 %vm1982_vm2, %v8144_v14  ;;  %7873 = vmatprep.mubr.msk.bf16.mxu1 %vm1982_vm2, %v8145_v15  ;;  %v8173_v43 = vld [vmem:[%s8442_s22 + $0x490] sm:$0xff]   ;;  %v8175_v45 = vld [vmem:[%s8442_s22 + $0x498] sm:$0xff]   ;;  %v8177_v47 = vld [vmem:[%s8442_s22 + $0x4a0] sm:$0xff]  }
  0x21   : > { %v8178_v48 = vld [vmem:[%s8442_s22 + $0xa8] sm:$0xff]   ;;  %v8180_v50 = vld [vmem:[%s8442_s22 + $0xb0] sm:$0xff]   ;;  %v8182_v52 = vld [vmem:[%s8442_s22 + $0xb8] sm:$0xff]  }
  0x22   : > { %v8179_v49 = vld [vmem:[%s8442_s22 + $0x4a8] sm:$0xff]   ;;  %v8181_v51 = vld [vmem:[%s8442_s22 + $0x4b0] sm:$0xff]   ;;  %v8183_v53 = vld [vmem:[%s8442_s22 + $0x4b8] sm:$0xff]  }
  0x23   : > { %v8184_v54 = vld [vmem:[%s8442_s22 + $0xc0] sm:$0xff]   ;;  %v8186_v56 = vld [vmem:[%s8442_s22 + $0xc8] sm:$0xff]   ;;  %v8188_v58 = vld [vmem:[%s8442_s22 + $0xd0] sm:$0xff]  }
  0x24   : > { %v8185_v55 = vld [vmem:[%s8442_s22 + $0x4c0] sm:$0xff]   ;;  %v8187_v57 = vld [vmem:[%s8442_s22 + $0x4c8] sm:$0xff]   ;;  %v8189_v59 = vld [vmem:[%s8442_s22 + $0x4d0] sm:$0xff]  }
  0x25   : > { %v8190_v60 = vld [vmem:[%s8442_s22 + $0xd8] sm:$0xff]   ;;  %v8192_v62 = vld [vmem:[%s8442_s22 + $0xe0] sm:$0xff]   ;;  %v8194_v0 = vld [vmem:[%s8442_s22 + $0xe8] sm:$0xff]  }
  0x26   : > { %v8191_v61 = vld [vmem:[%s8442_s22 + $0x4d8] sm:$0xff]   ;;  %v8193_v63 = vld [vmem:[%s8442_s22 + $0x4e0] sm:$0xff]   ;;  %v8195_v1 = vld [vmem:[%s8442_s22 + $0x4e8] sm:$0xff]  }
  0x27   : > { %7618 = vmatmul.mubr.msk.bf16.gmra.mrb[8].mxu0 %vm1982_vm2, %v8146_v16  ;;  %7874 = vmatmul.mubr.msk.bf16.gmra.mrb[8].mxu1 %vm1982_vm2, %v8147_v17  ;;  %v8196_v2 = vld [vmem:[%s8442_s22 + $0xf0] sm:$0xff]   ;;  %v8198_v4 = vld [vmem:[%s8442_s22 + $0xf8] sm:$0xff]   ;;  %v8200_v6 = vld [vmem:[%s8442_s22 + $0x100] sm:$0xff]  }
  0x28   : > { %7621 = vmatprep.mubr.msk.bf16.mxu0 %vm1982_vm2, %v8148_v18  ;;  %7877 = vmatprep.mubr.msk.bf16.mxu1 %vm1982_vm2, %v8149_v19  ;;  %v8197_v3 = vld [vmem:[%s8442_s22 + $0x4f0] sm:$0xff]   ;;  %v8199_v5 = vld [vmem:[%s8442_s22 + $0x4f8] sm:$0xff]   ;;  %v8201_v7 = vld [vmem:[%s8442_s22 + $0x500] sm:$0xff]  }
  0x29   : > { %v8202_v8 = vld [vmem:[%s8442_s22 + $0x108] sm:$0xff]   ;;  %v8204_v10 = vld [vmem:[%s8442_s22 + $0x110] sm:$0xff]   ;;  %v8206_v12 = vld [vmem:[%s8442_s22 + $0x118] sm:$0xff]  }
  0x2a   : > { %v8203_v9 = vld [vmem:[%s8442_s22 + $0x508] sm:$0xff]   ;;  %v8205_v11 = vld [vmem:[%s8442_s22 + $0x510] sm:$0xff]   ;;  %v8207_v13 = vld [vmem:[%s8442_s22 + $0x518] sm:$0xff]  }
  0x2b   : > { %v8208_v14 = vld [vmem:[%s8442_s22 + $0x120] sm:$0xff]   ;;  %v8210_v16 = vld [vmem:[%s8442_s22 + $0x128] sm:$0xff]   ;;  %v8212_v18 = vld [vmem:[%s8442_s22 + $0x130] sm:$0xff]  }
  0x2c   : > { %v8209_v15 = vld [vmem:[%s8442_s22 + $0x520] sm:$0xff]   ;;  %v8211_v17 = vld [vmem:[%s8442_s22 + $0x528] sm:$0xff]   ;;  %v8213_v19 = vld [vmem:[%s8442_s22 + $0x530] sm:$0xff]  }
  0x2f   : > { %7622 = vmatmul.mubr.msk.bf16.gmra.mrb[12].mxu0 %vm1982_vm2, %v8150_v20  ;;  %7878 = vmatmul.mubr.msk.bf16.gmra.mrb[12].mxu1 %vm1982_vm2, %v8151_v21  ;;  %v8214_v20 = vld [vmem:[%s8442_s22 + $0x138] sm:$0xff]  }
  0x30   : > { %7625 = vmatprep.mubr.msk.bf16.mxu0 %vm1982_vm2, %v8152_v22  ;;  %7881 = vmatprep.mubr.msk.bf16.mxu1 %vm1982_vm2, %v8153_v23  ;;  %v8215_v21 = vld [vmem:[%s8442_s22 + $0x538] sm:$0xff]   ;;  %v8216_v22 = vld [vmem:[%s8442_s22 + $0x140] sm:$0xff]  }
  0x31   : > { %v8217_v23 = vld [vmem:[%s8442_s22 + $0x540] sm:$0xff]  }
  0x37   : > { %7626 = vmatmul.mubr.msk.bf16.gmra.mrb[16].mxu0 %vm1982_vm2, %v8154_v24  ;;  %7882 = vmatmul.mubr.msk.bf16.gmra.mrb[16].mxu1 %vm1982_vm2, %v8155_v25  ;;  %v8218_v24 = vld [vmem:[%s8442_s22 + $0x148] sm:$0xff]  }
  0x38   : > { %7629 = vmatprep.mubr.msk.bf16.mxu0 %vm1982_vm2, %v8156_v26  ;;  %7885 = vmatprep.mubr.msk.bf16.mxu1 %vm1982_vm2, %v8157_v27  ;;  %v8219_v25 = vld [vmem:[%s8442_s22 + $0x548] sm:$0xff]   ;;  %v8220_v26 = vld [vmem:[%s8442_s22 + $0x150] sm:$0xff]  }
  0x39   : > { %v8221_v27 = vld [vmem:[%s8442_s22 + $0x550] sm:$0xff]  }
  0x3f   : > { %7630 = vmatmul.mubr.msk.bf16.gmra.mrb[20].mxu0 %vm1982_vm2, %v8158_v28  ;;  %7886 = vmatmul.mubr.msk.bf16.gmra.mrb[20].mxu1 %vm1982_vm2, %v8159_v29  ;;  %v8222_v28 = vld [vmem:[%s8442_s22 + $0x158] sm:$0xff]  }
  0x40   : > { %7633 = vmatprep.mubr.msk.bf16.mxu0 %vm1982_vm2, %v8160_v30  ;;  %7889 = vmatprep.mubr.msk.bf16.mxu1 %vm1982_vm2, %v8161_v31  ;;  %v8223_v29 = vld [vmem:[%s8442_s22 + $0x558] sm:$0xff]   ;;  %v8224_v30 = vld [vmem:[%s8442_s22 + $0x160] sm:$0xff]  }
  0x41   : > { %v8225_v31 = vld [vmem:[%s8442_s22 + $0x560] sm:$0xff]  }
  0x47   : > { %7634 = vmatmul.mubr.msk.bf16.gmra.mrb[24].mxu0 %vm1982_vm2, %v8162_v32  ;;  %7890 = vmatmul.mubr.msk.bf16.gmra.mrb[24].mxu1 %vm1982_vm2, %v8163_v33  ;;  %v8226_v32 = vld [vmem:[%s8442_s22 + $0x168] sm:$0xff]  }
  0x48   : > { %7637 = vmatprep.mubr.msk.bf16.mxu0 %vm1982_vm2, %v8164_v34  ;;  %7893 = vmatprep.mubr.msk.bf16.mxu1 %vm1982_vm2, %v8165_v35  ;;  %v8227_v33 = vld [vmem:[%s8442_s22 + $0x568] sm:$0xff]   ;;  %v8228_v34 = vld [vmem:[%s8442_s22 + $0x170] sm:$0xff]  }
  0x49   : > { %v8229_v35 = vld [vmem:[%s8442_s22 + $0x570] sm:$0xff]  }
  0x4f   : > { %7638 = vmatmul.mubr.msk.bf16.gmra.mrb[28].mxu0 %vm1982_vm2, %v8166_v36  ;;  %7894 = vmatmul.mubr.msk.bf16.gmra.mrb[28].mxu1 %vm1982_vm2, %v8167_v37  ;;  %v8230_v36 = vld [vmem:[%s8442_s22 + $0x178] sm:$0xff]  }
  0x50   : > { %7641 = vmatprep.mubr.msk.bf16.mxu0 %vm1982_vm2, %v8168_v38  ;;  %7897 = vmatprep.mubr.msk.bf16.mxu1 %vm1982_vm2, %v8169_v39  ;;  %v8231_v37 = vld [vmem:[%s8442_s22 + $0x578] sm:$0xff]   ;;  %v8232_v38 = vld [vmem:[%s8442_s22 + $0x180] sm:$0xff]  }
  0x51   : > { %v8233_v39 = vld [vmem:[%s8442_s22 + $0x580] sm:$0xff]  }
  0x57   : > { %7642 = vmatmul.mubr.msk.bf16.gmra.mrb[32].mxu0 %vm1982_vm2, %v8170_v40  ;;  %7898 = vmatmul.mubr.msk.bf16.gmra.mrb[32].mxu1 %vm1982_vm2, %v8171_v41  ;;  %v8234_v40 = vld [vmem:[%s8442_s22 + $0x188] sm:$0xff]  }
  0x58   : > { %7645 = vmatprep.mubr.msk.bf16.mxu0 %vm1982_vm2, %v8172_v42  ;;  %7901 = vmatprep.mubr.msk.bf16.mxu1 %vm1982_vm2, %v8173_v43  ;;  %v8235_v41 = vld [vmem:[%s8442_s22 + $0x588] sm:$0xff]   ;;  %v8236_v42 = vld [vmem:[%s8442_s22 + $0x190] sm:$0xff]  }
  0x59   : > { %v8237_v43 = vld [vmem:[%s8442_s22 + $0x590] sm:$0xff]  }
  0x5f   : > { %7646 = vmatmul.mubr.msk.bf16.gmra.mrb[36].mxu0 %vm1982_vm2, %v8174_v44  ;;  %7902 = vmatmul.mubr.msk.bf16.gmra.mrb[36].mxu1 %vm1982_vm2, %v8175_v45  ;;  %v8238_v44 = vld [vmem:[%s8442_s22 + $0x198] sm:$0xff]  }
  0x60   : > { %7649 = vmatprep.mubr.msk.bf16.mxu0 %vm1982_vm2, %v8176_v46  ;;  %7905 = vmatprep.mubr.msk.bf16.mxu1 %vm1982_vm2, %v8177_v47  ;;  %v8239_v45 = vld [vmem:[%s8442_s22 + $0x598] sm:$0xff]   ;;  %v8240_v46 = vld [vmem:[%s8442_s22 + $0x1a0] sm:$0xff]  }
  0x61   : > { %v8241_v47 = vld [vmem:[%s8442_s22 + $0x5a0] sm:$0xff]  }
  0x67   : > { %7650 = vmatmul.mubr.msk.bf16.gmra.mrb[40].mxu0 %vm1982_vm2, %v8178_v48  ;;  %7906 = vmatmul.mubr.msk.bf16.gmra.mrb[40].mxu1 %vm1982_vm2, %v8179_v49  ;;  %v8242_v48 = vld [vmem:[%s8442_s22 + $0x1a8] sm:$0xff]  }
  0x68   : > { %7653 = vmatprep.mubr.msk.bf16.mxu0 %vm1982_vm2, %v8180_v50  ;;  %7909 = vmatprep.mubr.msk.bf16.mxu1 %vm1982_vm2, %v8181_v51  ;;  %v8243_v49 = vld [vmem:[%s8442_s22 + $0x5a8] sm:$0xff]   ;;  %v8244_v50 = vld [vmem:[%s8442_s22 + $0x1b0] sm:$0xff]  }
  0x69   : > { %v8245_v51 = vld [vmem:[%s8442_s22 + $0x5b0] sm:$0xff]  }
  0x6f   : > { %7654 = vmatmul.mubr.msk.bf16.gmra.mrb[44].mxu0 %vm1982_vm2, %v8182_v52  ;;  %7910 = vmatmul.mubr.msk.bf16.gmra.mrb[44].mxu1 %vm1982_vm2, %v8183_v53  ;;  %v8246_v52 = vld [vmem:[%s8442_s22 + $0x1b8] sm:$0xff]  }
  0x70   : > { %7657 = vmatprep.mubr.msk.bf16.mxu0 %vm1982_vm2, %v8184_v54  ;;  %7913 = vmatprep.mubr.msk.bf16.mxu1 %vm1982_vm2, %v8185_v55  ;;  %v8247_v54 = vld [vmem:[%s8442_s22 + $0x5b8] sm:$0xff]   ;;  %v8248_v55 = vld [vmem:[%s8442_s22 + $0x1c0] sm:$0xff]  }
  0x77   : > { %7658 = vmatmul.mubr.msk.bf16.gmra.mrb[48].mxu0 %vm1982_vm2, %v8186_v56  ;;  %7914 = vmatmul.mubr.msk.bf16.gmra.mrb[48].mxu1 %vm1982_vm2, %v8187_v57 }
  0x78   : > { %7661 = vmatprep.mubr.msk.bf16.mxu0 %vm1982_vm2, %v8188_v58  ;;  %7917 = vmatprep.mubr.msk.bf16.mxu1 %vm1982_vm2, %v8189_v59 }
  0x7f   : > { %7662 = vmatmul.mubr.msk.bf16.gmra.mrb[52].mxu0 %vm1982_vm2, %v8190_v60  ;;  %7918 = vmatmul.mubr.msk.bf16.gmra.mrb[52].mxu1 %vm1982_vm2, %v8191_v61 }
  0x80   : > { %7665 = vmatprep.mubr.msk.bf16.mxu0 %vm1982_vm2, %v8192_v62  ;;  %7921 = vmatprep.mubr.msk.bf16.mxu1 %vm1982_vm2, %v8193_v63  ;;  %v8249_v62 = vld [vmem:[%s8442_s22 + $0x5c0] sm:$0xff]  }
  0x87   : > { %7666 = vmatmul.mubr.msk.bf16.gmra.mrb[56].mxu0 %vm1982_vm2, %v8194_v0  ;;  %7922 = vmatmul.mubr.msk.bf16.gmra.mrb[56].mxu1 %vm1982_vm2, %v8195_v1  ;;  %v8250_v0 = vld [vmem:[%s8442_s22 + $0x1c8] sm:$0xff]  }
  0x88   : > { %7669 = vmatprep.mubr.msk.bf16.mxu0 %vm1982_vm2, %v8196_v2  ;;  %7925 = vmatprep.mubr.msk.bf16.mxu1 %vm1982_vm2, %v8197_v3  ;;  %v8251_v2 = vld [vmem:[%s8442_s22 + $0x5c8] sm:$0xff]   ;;  %v8252_v3 = vld [vmem:[%s8442_s22 + $0x1d0] sm:$0xff]  }
  0x8f   : > { %7670 = vmatmul.mubr.msk.bf16.gmra.mrb[60].mxu0 %vm1982_vm2, %v8198_v4  ;;  %7926 = vmatmul.mubr.msk.bf16.gmra.mrb[60].mxu1 %vm1982_vm2, %v8199_v5 }
  0x90   : > { %7673 = vmatprep.mubr.msk.bf16.mxu0 %vm1982_vm2, %v8200_v6  ;;  %7929 = vmatprep.mubr.msk.bf16.mxu1 %vm1982_vm2, %v8201_v7 }
  0x97   : > { %7674 = vmatmul.mubr.msk.bf16.gmra.mrb[64].mxu0 %vm1982_vm2, %v8202_v8  ;;  %7930 = vmatmul.mubr.msk.bf16.gmra.mrb[64].mxu1 %vm1982_vm2, %v8203_v9 }
  0x98   : > { %7677 = vmatprep.mubr.msk.bf16.mxu0 %vm1982_vm2, %v8204_v10  ;;  %7933 = vmatprep.mubr.msk.bf16.mxu1 %vm1982_vm2, %v8205_v11  ;;  %v8253_v10 = vld [vmem:[%s8442_s22 + $0x5d0] sm:$0xff]  }
  0x9f   : > { %7678 = vmatmul.mubr.msk.bf16.gmra.mrb[68].mxu0 %vm1982_vm2, %v8206_v12  ;;  %7934 = vmatmul.mubr.msk.bf16.gmra.mrb[68].mxu1 %vm1982_vm2, %v8207_v13  ;;  %v8254_v13 = vld [vmem:[%s8442_s22 + $0x1d8] sm:$0xff]  }
  0xa0   : > { %7681 = vmatprep.mubr.msk.bf16.mxu0 %vm1982_vm2, %v8208_v14  ;;  %7937 = vmatprep.mubr.msk.bf16.mxu1 %vm1982_vm2, %v8209_v15 }
  0xa7   : > { %7682 = vmatmul.mubr.msk.bf16.gmra.mrb[72].mxu0 %vm1982_vm2, %v8210_v16  ;;  %7938 = vmatmul.mubr.msk.bf16.gmra.mrb[72].mxu1 %vm1982_vm2, %v8211_v17 }
  0xa8   : > { %7685 = vmatprep.mubr.msk.bf16.mxu0 %vm1982_vm2, %v8212_v18  ;;  %7941 = vmatprep.mubr.msk.bf16.mxu1 %vm1982_vm2, %v8213_v19  ;;  %v8255_v18 = vld [vmem:[%s8442_s22 + $0x5d8] sm:$0xff]   ;;  %v8256_v19 = vld [vmem:[%s8442_s22 + $0x1e0] sm:$0xff]  }
  0xaf   : > { %7686 = vmatmul.mubr.msk.bf16.gmra.mrb[76].mxu0 %vm1982_vm2, %v8214_v20  ;;  %7942 = vmatmul.mubr.msk.bf16.gmra.mrb[76].mxu1 %vm1982_vm2, %v8215_v21 }
  0xb0   : > { %7689 = vmatprep.mubr.msk.bf16.mxu0 %vm1982_vm2, %v8216_v22  ;;  %7945 = vmatprep.mubr.msk.bf16.mxu1 %vm1982_vm2, %v8217_v23  ;;  %v8257_v22 = vld [vmem:[%s8442_s22 + $0x5e0] sm:$0xff]  }
  0xb7   : > { %7690 = vmatmul.mubr.msk.bf16.gmra.mrb[80].mxu0 %vm1982_vm2, %v8218_v24  ;;  %7946 = vmatmul.mubr.msk.bf16.gmra.mrb[80].mxu1 %vm1982_vm2, %v8219_v25 }
  0xb8   : > { %7693 = vmatprep.mubr.msk.bf16.mxu0 %vm1982_vm2, %v8220_v26  ;;  %7949 = vmatprep.mubr.msk.bf16.mxu1 %vm1982_vm2, %v8221_v27  ;;  %v8258_v27 = vld [vmem:[%s8442_s22 + $0x1e8] sm:$0xff]  }
  0xbf   : > { %7694 = vmatmul.mubr.msk.bf16.gmra.mrb[84].mxu0 %vm1982_vm2, %v8222_v28  ;;  %7950 = vmatmul.mubr.msk.bf16.gmra.mrb[84].mxu1 %vm1982_vm2, %v8223_v29 }
  0xc0   : > { %7697 = vmatprep.mubr.msk.bf16.mxu0 %vm1982_vm2, %v8224_v30  ;;  %7953 = vmatprep.mubr.msk.bf16.mxu1 %vm1982_vm2, %v8225_v31  ;;  %v8259_v30 = vld [vmem:[%s8442_s22 + $0x5e8] sm:$0xff]   ;;  %v8260_v31 = vld [vmem:[%s8442_s22 + $0x1f0] sm:$0xff]  }
  0xc7   : > { %7698 = vmatmul.mubr.msk.bf16.gmra.mrb[88].mxu0 %vm1982_vm2, %v8226_v32  ;;  %7954 = vmatmul.mubr.msk.bf16.gmra.mrb[88].mxu1 %vm1982_vm2, %v8227_v33 }
  0xc8   : > { %7701 = vmatprep.mubr.msk.bf16.mxu0 %vm1982_vm2, %v8228_v34  ;;  %7957 = vmatprep.mubr.msk.bf16.mxu1 %vm1982_vm2, %v8229_v35  ;;  %v8261_v34 = vld [vmem:[%s8442_s22 + $0x5f0] sm:$0xff]  }
  0xcf   : > { %7702 = vmatmul.mubr.msk.bf16.gmra.mrb[92].mxu0 %vm1982_vm2, %v8230_v36  ;;  %7958 = vmatmul.mubr.msk.bf16.gmra.mrb[92].mxu1 %vm1982_vm2, %v8231_v37 }
  0xd0   : > { %7705 = vmatprep.mubr.msk.bf16.mxu0 %vm1982_vm2, %v8232_v38  ;;  %7961 = vmatprep.mubr.msk.bf16.mxu1 %vm1982_vm2, %v8233_v39  ;;  %v8262_v39 = vld [vmem:[%s8442_s22 + $0x1f8] sm:$0xff]  }
  0xd7   : > { %7706 = vmatmul.mubr.msk.bf16.gmra.mrb[96].mxu0 %vm1982_vm2, %v8234_v40  ;;  %7962 = vmatmul.mubr.msk.bf16.gmra.mrb[96].mxu1 %vm1982_vm2, %v8235_v41 }
  0xd8   : > { %7709 = vmatprep.mubr.msk.bf16.mxu0 %vm1982_vm2, %v8236_v42  ;;  %7965 = vmatprep.mubr.msk.bf16.mxu1 %vm1982_vm2, %v8237_v43  ;;  %v8263_v42 = vld [vmem:[%s8442_s22 + $0x5f8] sm:$0xff]   ;;  %v8264_v43 = vld [vmem:[%s8442_s22 + $0x200] sm:$0xff]  }
  0xdf   : > { %7710 = vmatmul.mubr.msk.bf16.gmra.mrb[100].mxu0 %vm1982_vm2, %v8238_v44  ;;  %7966 = vmatmul.mubr.msk.bf16.gmra.mrb[100].mxu1 %vm1982_vm2, %v8239_v45 }
  0xe0   : > { %7713 = vmatprep.mubr.msk.bf16.mxu0 %vm1982_vm2, %v8240_v46  ;;  %7969 = vmatprep.mubr.msk.bf16.mxu1 %vm1982_vm2, %v8241_v47  ;;  %v8265_v46 = vld [vmem:[%s8442_s22 + $0x600] sm:$0xff]  }
  0xe7   : > { %7714 = vmatmul.mubr.msk.bf16.gmra.mrb[104].mxu0 %vm1982_vm2, %v8242_v48  ;;  %7970 = vmatmul.mubr.msk.bf16.gmra.mrb[104].mxu1 %vm1982_vm2, %v8243_v49 }
  0xe8   : > { %7717 = vmatprep.mubr.msk.bf16.mxu0 %vm1982_vm2, %v8244_v50  ;;  %7973 = vmatprep.mubr.msk.bf16.mxu1 %vm1982_vm2, %v8245_v51  ;;  %v8266_v51 = vld [vmem:[%s8442_s22 + $0x208] sm:$0xff]  }
  0xea   : > { %v8665_v53 = vpop.f32.mrb[0].mxu0  ;;  %v8669_v56 = vpop.f32.mrb[0].mxu1 }
  0xeb   : > { %v8671_v57 = vpop.f32.mrb[1].mxu0  ;;  %v8673_v58 = vpop.f32.mrb[1].mxu1 }
  0xec   : > { %v8675_v59 = vpop.f32.mrb[2].mxu0  ;;  %v8677_v60 = vpop.f32.mrb[2].mxu1 }
  0xed   : > { %v8679_v61 = vpop.f32.mrb[3].mxu0  ;;  %v8682_v63 = vpop.f32.mrb[3].mxu1 }
  0xef   : > { %7718 = vmatmul.mubr.msk.bf16.gmra.mrb[108].mxu0 %vm1982_vm2, %v8246_v52  ;;  %7974 = vmatmul.mubr.msk.bf16.gmra.mrb[108].mxu1 %vm1982_vm2, %v8247_v54 }
  0xf0   : > { %7721 = vmatprep.mubr.msk.bf16.mxu0 %vm1982_vm2, %v8248_v55  ;;  %7977 = vmatprep.mubr.msk.bf16.mxu1 %vm1982_vm2, %v8249_v62  ;;  %v8267_v55 = vld [vmem:[%s8442_s22 + $0x608] sm:$0xff]   ;;  %v8268_v62 = vld [vmem:[%s8442_s22 + $0x210] sm:$0xff]  }
  0xf2   : > { %v8689_v1 = vpop.f32.mrb[4].mxu0  ;;  %v8693_v4 = vpop.f32.mrb[4].mxu1 }
  0xf3   : > { %v8695_v5 = vpop.f32.mrb[5].mxu0  ;;  %v8697_v6 = vpop.f32.mrb[5].mxu1 }
  0xf4   : > { %v8699_v7 = vpop.f32.mrb[6].mxu0  ;;  %v8701_v8 = vpop.f32.mrb[6].mxu1 }
  0xf5   : > { %v8703_v9 = vpop.f32.mrb[7].mxu0  ;;  %v8706_v11 = vpop.f32.mrb[7].mxu1 }
  0xf7   : > { %7722 = vmatmul.mubr.msk.bf16.gmra.mrb[112].mxu0 %vm1982_vm2, %v8250_v0  ;;  %7978 = vmatmul.mubr.msk.bf16.gmra.mrb[112].mxu1 %vm1982_vm2, %v8251_v2 }
  0xf8   : > { %7725 = vmatprep.mubr.msk.bf16.mxu0 %vm1982_vm2, %v8252_v3  ;;  %7981 = vmatprep.mubr.msk.bf16.mxu1 %vm1982_vm2, %v8253_v10  ;;  %v8269_v3 = vld [vmem:[%s8442_s22 + $0x610] sm:$0xff]  }
  0xfa   : > { %v8712_v12 = vpop.f32.mrb[8].mxu0  ;;  %v8715_v14 = vpop.f32.mrb[8].mxu1 }
  0xfb   : > { %v8717_v15 = vpop.f32.mrb[9].mxu0  ;;  %v8719_v16 = vpop.f32.mrb[9].mxu1 }
  0xfc   : > { %v8721_v17 = vpop.f32.mrb[10].mxu0  ;;  %v8725_v20 = vpop.f32.mrb[10].mxu1 }
  0xfd   : > { %v8727_v21 = vpop.f32.mrb[11].mxu0  ;;  %v8730_v23 = vpop.f32.mrb[11].mxu1 }
  0xff   : > { %7726 = vmatmul.mubr.msk.bf16.gmra.mrb[116].mxu0 %vm1982_vm2, %v8254_v13  ;;  %7982 = vmatmul.mubr.msk.bf16.gmra.mrb[116].mxu1 %vm1982_vm2, %v8255_v18 }
 0x100   : > { %7729 = vmatprep.mubr.msk.bf16.mxu0 %vm1982_vm2, %v8256_v19  ;;  %7985 = vmatprep.mubr.msk.bf16.mxu1 %vm1982_vm2, %v8257_v22  ;;  %v8270_v22 = vld [vmem:[%s8442_s22 + $0x218] sm:$0xff]  }
 0x102   : > { %v8736_v24 = vpop.f32.mrb[12].mxu0  ;;  %v8738_v25 = vpop.f32.mrb[12].mxu1 }
 0x103   : > { %v8740_v26 = vpop.f32.mrb[13].mxu0  ;;  %v8743_v28 = vpop.f32.mrb[13].mxu1 }
 0x104   : > { %v8745_v29 = vpop.f32.mrb[14].mxu0  ;;  %v8749_v32 = vpop.f32.mrb[14].mxu1 }
 0x105   : > { %v8751_v33 = vpop.f32.mrb[15].mxu0  ;;  %v8754_v35 = vpop.f32.mrb[15].mxu1 }
 0x107   : > { %7730 = vmatmul.mubr.msk.bf16.gmra.mrb[120].mxu0 %vm1982_vm2, %v8258_v27  ;;  %7986 = vmatmul.mubr.msk.bf16.gmra.mrb[120].mxu1 %vm1982_vm2, %v8259_v30 }
 0x108   : > { %7733 = vmatprep.mubr.msk.bf16.mxu0 %vm1982_vm2, %v8260_v31  ;;  %7989 = vmatprep.mubr.msk.bf16.mxu1 %vm1982_vm2, %v8261_v34  ;;  %v8271_v31 = vld [vmem:[%s8442_s22 + $0x618] sm:$0xff]   ;;  %v8272_v34 = vld [vmem:[%s8442_s22 + $0x220] sm:$0xff]  }
 0x10a   : > { %v8760_v36 = vpop.f32.mrb[16].mxu0  ;;  %v8762_v37 = vpop.f32.mrb[16].mxu1 }
 0x10b   : > { %v8764_v38 = vpop.f32.mrb[17].mxu0  ;;  %v8767_v40 = vpop.f32.mrb[17].mxu1 }
 0x10c   : > { %v8769_v41 = vpop.f32.mrb[18].mxu0  ;;  %v8773_v44 = vpop.f32.mrb[18].mxu1 }
 0x10d   : > { %v8775_v45 = vpop.f32.mrb[19].mxu0  ;;  %v8778_v47 = vpop.f32.mrb[19].mxu1 }
 0x10f   : > { %7734 = vmatmul.mubr.msk.bf16.gmra.mrb[124].mxu0 %vm1982_vm2, %v8262_v39  ;;  %7990 = vmatmul.mubr.msk.bf16.gmra.mrb[124].mxu1 %vm1982_vm2, %v8263_v42 }
 0x110   : > { %7737 = vmatprep.mubr.msk.bf16.mxu0 %vm1982_vm2, %v8264_v43  ;;  %7993 = vmatprep.mubr.msk.bf16.mxu1 %vm1982_vm2, %v8265_v46  ;;  %v8273_v43 = vld [vmem:[%s8442_s22 + $0x620] sm:$0xff]  }
 0x112   : > { %v8784_v48 = vpop.f32.mrb[20].mxu0  ;;  %v8786_v49 = vpop.f32.mrb[20].mxu1 }
 0x113   : > { %v8788_v50 = vpop.f32.mrb[21].mxu0  ;;  %v8791_v52 = vpop.f32.mrb[21].mxu1 }
 0x114   : > { %v8793_v54 = vpop.f32.mrb[22].mxu0  ;;  %v8797_v0 = vpop.f32.mrb[22].mxu1 }
 0x115   : > { %v8799_v2 = vpop.f32.mrb[23].mxu0  ;;  %v8802_v10 = vpop.f32.mrb[23].mxu1 }
 0x116   : > { %9943 = vst [vmem:[#allocation2_spill] sm:$0xff] %v8802_v10 }
 0x117   : > { %7738 = vmatmul.mubr.msk.bf16.gmra.mrb[128].mxu0 %vm1982_vm2, %v8266_v51  ;;  %7994 = vmatmul.mubr.msk.bf16.gmra.mrb[128].mxu1 %vm1982_vm2, %v8267_v55 }
 0x118   : > { %7741 = vmatprep.mubr.msk.bf16.mxu0 %vm1982_vm2, %v8268_v62  ;;  %7997 = vmatprep.mubr.msk.bf16.mxu1 %vm1982_vm2, %v8269_v3  ;;  %v8274_v3 = vld [vmem:[%s8442_s22 + $0x228] sm:$0xff]  }
 0x11a   : > { %v8808_v13 = vpop.f32.mrb[24].mxu0  ;;  %v8810_v18 = vpop.f32.mrb[24].mxu1 }
 0x11b   : > { %9944 = vst [vmem:[#allocation3_spill] sm:$0xff] %v8808_v13  ;;  %9945 = vst [vmem:[#allocation4_spill] sm:$0xff] %v8810_v18  ;;  %v8812_v19 = vpop.f32.mrb[25].mxu0  ;;  %v8815_v27 = vpop.f32.mrb[25].mxu1  ;;  %v8377_v18 = vld [vmem:[%s8442_s22 + $0x7c0] sm:$0xff]  }
 0x11c   : > { %9946 = vst [vmem:[#allocation5_spill] sm:$0xff] %v8812_v19  ;;  %9947 = vst [vmem:[#allocation6_spill] sm:$0xff] %v8815_v27  ;;  %v8817_v30 = vpop.f32.mrb[26].mxu0  ;;  %v8821_v39 = vpop.f32.mrb[26].mxu1  ;;  %v8375_v27 = vld [vmem:[%s8442_s22 + $0x7b8] sm:$0xff]  }
 0x11d   : > { %9948 = vst [vmem:[#allocation7_spill] sm:$0xff] %v8817_v30  ;;  %9949 = vst [vmem:[#allocation8_spill] sm:$0xff] %v8821_v39  ;;  %v8823_v42 = vpop.f32.mrb[27].mxu0  ;;  %v8826_v46 = vpop.f32.mrb[27].mxu1 }
 0x11e   : > { %9950 = vst [vmem:[#allocation9_spill] sm:$0xff] %v8823_v42  ;;  %9951 = vst [vmem:[#allocation10_spill] sm:$0xff] %v8826_v46  ;;  %v8275_v46 = vld [vmem:[%s8442_s22 + $0x628] sm:$0xff]  }
 0x11f   : > { %7742 = vmatmul.mubr.msk.bf16.gmra.mrb[132].mxu0 %vm1982_vm2, %v8270_v22  ;;  %7998 = vmatmul.mubr.msk.bf16.gmra.mrb[132].mxu1 %vm1982_vm2, %v8271_v31  ;;  %v8276_v22 = vld [vmem:[%s8442_s22 + $0x230] sm:$0xff]  }
 0x120   : > { %7745 = vmatprep.mubr.msk.bf16.mxu0 %vm1982_vm2, %v8272_v34  ;;  %8001 = vmatprep.mubr.msk.bf16.mxu1 %vm1982_vm2, %v8273_v43  ;;  %v8277_v43 = vld [vmem:[%s8442_s22 + $0x630] sm:$0xff]  }
 0x122   : > { %v8832_v51 = vpop.f32.mrb[28].mxu0  ;;  %v8834_v55 = vpop.f32.mrb[28].mxu1 }
 0x123   : > { %9952 = vst [vmem:[#allocation11_spill] sm:$0xff] %v8832_v51  ;;  %9953 = vst [vmem:[#allocation12_spill] sm:$0xff] %v8834_v55  ;;  %v8836_v62 = vpop.f32.mrb[29].mxu0  ;;  %v8839_v42 = vpop.f32.mrb[29].mxu1 }
 0x124   : > { %9954 = vst [vmem:[#allocation13_spill] sm:$0xff] %v8836_v62  ;;  %9955 = vst [vmem:[#allocation14_spill] sm:$0xff] %v8839_v42  ;;  %v8841_v39 = vpop.f32.mrb[30].mxu0  ;;  %v8845_v31 = vpop.f32.mrb[30].mxu1 }
 0x125   : > { %9956 = vst [vmem:[#allocation15_spill] sm:$0xff] %v8841_v39  ;;  %9957 = vst [vmem:[#allocation16_spill] sm:$0xff] %v8845_v31  ;;  %v8847_v34 = vpop.f32.mrb[31].mxu0  ;;  %v8850_v51 = vpop.f32.mrb[31].mxu1  ;;  %v8278_v31 = vld [vmem:[%s8442_s22 + $0x238] sm:$0xff]  }
 0x126   : > { %9958 = vst [vmem:[#allocation17_spill] sm:$0xff] %v8847_v34  ;;  %9959 = vst [vmem:[#allocation18_spill] sm:$0xff] %v8850_v51  ;;  %v8279_v51 = vld [vmem:[%s8442_s22 + $0x638] sm:$0xff]  }
 0x127   : > { %7746 = vmatmul.mubr.msk.bf16.gmra.mrb[136].mxu0 %vm1982_vm2, %v8274_v3  ;;  %8002 = vmatmul.mubr.msk.bf16.gmra.mrb[136].mxu1 %vm1982_vm2, %v8275_v46  ;;  %v8280_v3 = vld [vmem:[%s8442_s22 + $0x240] sm:$0xff]  }
 0x128   : > { %7749 = vmatprep.mubr.msk.bf16.mxu0 %vm1982_vm2, %v8276_v22  ;;  %8005 = vmatprep.mubr.msk.bf16.mxu1 %vm1982_vm2, %v8277_v43  ;;  %v8281_v43 = vld [vmem:[%s8442_s22 + $0x640] sm:$0xff]  }
 0x12a   : > { %v8856_v39 = vpop.f32.mrb[32].mxu0  ;;  %v8858_v42 = vpop.f32.mrb[32].mxu1 }
 0x12b   : > { %9960 = vst [vmem:[#allocation19_spill] sm:$0xff] %v8856_v39  ;;  %9961 = vst [vmem:[#allocation20_spill] sm:$0xff] %v8858_v42  ;;  %v8860_v62 = vpop.f32.mrb[33].mxu0  ;;  %v8863_v34 = vpop.f32.mrb[33].mxu1 }
 0x12c   : > { %9962 = vst [vmem:[#allocation21_spill] sm:$0xff] %v8860_v62  ;;  %9963 = vst [vmem:[#allocation22_spill] sm:$0xff] %v8863_v34  ;;  %v8865_v55 = vpop.f32.mrb[34].mxu0  ;;  %v8869_v46 = vpop.f32.mrb[34].mxu1 }
 0x12d   : > { %9964 = vst [vmem:[#allocation23_spill] sm:$0xff] %v8865_v55  ;;  %9965 = vst [vmem:[#allocation24_spill] sm:$0xff] %v8869_v46  ;;  %v8871_v22 = vpop.f32.mrb[35].mxu0  ;;  %v8874_v39 = vpop.f32.mrb[35].mxu1  ;;  %v8282_v46 = vld [vmem:[%s8442_s22 + $0x248] sm:$0xff]  }
 0x12e   : > { %9966 = vst [vmem:[#allocation25_spill] sm:$0xff] %v8871_v22  ;;  %9967 = vst [vmem:[#allocation26_spill] sm:$0xff] %v8874_v39  ;;  %v8283_v39 = vld [vmem:[%s8442_s22 + $0x648] sm:$0xff]  }
 0x12f   : > { %7750 = vmatmul.mubr.msk.bf16.gmra.mrb[140].mxu0 %vm1982_vm2, %v8278_v31  ;;  %8006 = vmatmul.mubr.msk.bf16.gmra.mrb[140].mxu1 %vm1982_vm2, %v8279_v51  ;;  %v8284_v31 = vld [vmem:[%s8442_s22 + $0x250] sm:$0xff]  }
 0x130   : > { %7753 = vmatprep.mubr.msk.bf16.mxu0 %vm1982_vm2, %v8280_v3  ;;  %8009 = vmatprep.mubr.msk.bf16.mxu1 %vm1982_vm2, %v8281_v43  ;;  %v8285_v43 = vld [vmem:[%s8442_s22 + $0x650] sm:$0xff]  }
 0x132   : > { %v8880_v55 = vpop.f32.mrb[36].mxu0  ;;  %v8882_v34 = vpop.f32.mrb[36].mxu1 }
 0x133   : > { %9968 = vst [vmem:[#allocation27_spill] sm:$0xff] %v8880_v55  ;;  %9969 = vst [vmem:[#allocation28_spill] sm:$0xff] %v8882_v34  ;;  %v8884_v62 = vpop.f32.mrb[37].mxu0  ;;  %v8887_v22 = vpop.f32.mrb[37].mxu1 }
 0x134   : > { %9970 = vst [vmem:[#allocation29_spill] sm:$0xff] %v8884_v62  ;;  %9971 = vst [vmem:[#allocation30_spill] sm:$0xff] %v8887_v22  ;;  %v8889_v42 = vpop.f32.mrb[38].mxu0  ;;  %v8893_v51 = vpop.f32.mrb[38].mxu1 }
 0x135   : > { %9972 = vst [vmem:[#allocation31_spill] sm:$0xff] %v8889_v42  ;;  %9973 = vst [vmem:[#allocation32_spill] sm:$0xff] %v8893_v51  ;;  %v8895_v3 = vpop.f32.mrb[39].mxu0  ;;  %v8898_v55 = vpop.f32.mrb[39].mxu1  ;;  %v8286_v51 = vld [vmem:[%s8442_s22 + $0x258] sm:$0xff]  }
 0x136   : > { %9974 = vst [vmem:[#allocation33_spill] sm:$0xff] %v8895_v3  ;;  %9975 = vst [vmem:[#allocation34_spill] sm:$0xff] %v8898_v55  ;;  %v8287_v55 = vld [vmem:[%s8442_s22 + $0x658] sm:$0xff]  }
 0x137   : > { %7754 = vmatmul.mubr.msk.bf16.gmra.mrb[144].mxu0 %vm1982_vm2, %v8282_v46  ;;  %8010 = vmatmul.mubr.msk.bf16.gmra.mrb[144].mxu1 %vm1982_vm2, %v8283_v39  ;;  %v8288_v46 = vld [vmem:[%s8442_s22 + $0x260] sm:$0xff]  }
 0x138   : > { %7757 = vmatprep.mubr.msk.bf16.mxu0 %vm1982_vm2, %v8284_v31  ;;  %8013 = vmatprep.mubr.msk.bf16.mxu1 %vm1982_vm2, %v8285_v43  ;;  %v8289_v43 = vld [vmem:[%s8442_s22 + $0x660] sm:$0xff]  }
 0x13a   : > { %v8904_v42 = vpop.f32.mrb[40].mxu0  ;;  %v8906_v22 = vpop.f32.mrb[40].mxu1 }
 0x13b   : > { %9976 = vst [vmem:[#allocation35_spill] sm:$0xff] %v8904_v42  ;;  %9977 = vst [vmem:[#allocation36_spill] sm:$0xff] %v8906_v22  ;;  %v8908_v62 = vpop.f32.mrb[41].mxu0  ;;  %v8911_v3 = vpop.f32.mrb[41].mxu1 }
 0x13c   : > { %9978 = vst [vmem:[#allocation37_spill] sm:$0xff] %v8908_v62  ;;  %9979 = vst [vmem:[#allocation38_spill] sm:$0xff] %v8911_v3  ;;  %v8913_v34 = vpop.f32.mrb[42].mxu0  ;;  %v8917_v39 = vpop.f32.mrb[42].mxu1 }
 0x13d   : > { %9980 = vst [vmem:[#allocation39_spill] sm:$0xff] %v8913_v34  ;;  %9981 = vst [vmem:[#allocation40_spill] sm:$0xff] %v8917_v39  ;;  %v8919_v31 = vpop.f32.mrb[43].mxu0  ;;  %v8922_v42 = vpop.f32.mrb[43].mxu1  ;;  %v8290_v39 = vld [vmem:[%s8442_s22 + $0x268] sm:$0xff]  }
 0x13e   : > { %9982 = vst [vmem:[#allocation41_spill] sm:$0xff] %v8919_v31  ;;  %9983 = vst [vmem:[#allocation42_spill] sm:$0xff] %v8922_v42  ;;  %v8291_v42 = vld [vmem:[%s8442_s22 + $0x668] sm:$0xff]  }
 0x13f   : > { %7758 = vmatmul.mubr.msk.bf16.gmra.mrb[148].mxu0 %vm1982_vm2, %v8286_v51  ;;  %8014 = vmatmul.mubr.msk.bf16.gmra.mrb[148].mxu1 %vm1982_vm2, %v8287_v55  ;;  %v8292_v51 = vld [vmem:[%s8442_s22 + $0x270] sm:$0xff]  }
 0x140   : > { %7761 = vmatprep.mubr.msk.bf16.mxu0 %vm1982_vm2, %v8288_v46  ;;  %8017 = vmatprep.mubr.msk.bf16.mxu1 %vm1982_vm2, %v8289_v43  ;;  %v8293_v43 = vld [vmem:[%s8442_s22 + $0x670] sm:$0xff]  }
 0x142   : > { %v8928_v34 = vpop.f32.mrb[44].mxu0  ;;  %v8930_v3 = vpop.f32.mrb[44].mxu1 }
 0x143   : > { %9984 = vst [vmem:[#allocation43_spill] sm:$0xff] %v8928_v34  ;;  %9985 = vst [vmem:[#allocation44_spill] sm:$0xff] %v8930_v3  ;;  %v8932_v62 = vpop.f32.mrb[45].mxu0  ;;  %v8935_v31 = vpop.f32.mrb[45].mxu1 }
 0x144   : > { %9986 = vst [vmem:[#allocation45_spill] sm:$0xff] %v8932_v62  ;;  %9987 = vst [vmem:[#allocation46_spill] sm:$0xff] %v8935_v31  ;;  %v8937_v22 = vpop.f32.mrb[46].mxu0  ;;  %v8941_v55 = vpop.f32.mrb[46].mxu1 }
 0x145   : > { %9988 = vst [vmem:[#allocation47_spill] sm:$0xff] %v8937_v22  ;;  %9989 = vst [vmem:[#allocation48_spill] sm:$0xff] %v8941_v55  ;;  %v8943_v46 = vpop.f32.mrb[47].mxu0  ;;  %v8946_v34 = vpop.f32.mrb[47].mxu1  ;;  %v8294_v55 = vld [vmem:[%s8442_s22 + $0x278] sm:$0xff]  }
 0x146   : > { %9990 = vst [vmem:[#allocation49_spill] sm:$0xff] %v8943_v46  ;;  %9991 = vst [vmem:[#allocation50_spill] sm:$0xff] %v8946_v34  ;;  %v8295_v34 = vld [vmem:[%s8442_s22 + $0x678] sm:$0xff]  }
 0x147   : > { %7762 = vmatmul.mubr.msk.bf16.gmra.mrb[152].mxu0 %vm1982_vm2, %v8290_v39  ;;  %8018 = vmatmul.mubr.msk.bf16.gmra.mrb[152].mxu1 %vm1982_vm2, %v8291_v42  ;;  %v8296_v39 = vld [vmem:[%s8442_s22 + $0x280] sm:$0xff]  }
 0x148   : > { %7765 = vmatprep.mubr.msk.bf16.mxu0 %vm1982_vm2, %v8292_v51  ;;  %8021 = vmatprep.mubr.msk.bf16.mxu1 %vm1982_vm2, %v8293_v43  ;;  %v8297_v43 = vld [vmem:[%s8442_s22 + $0x680] sm:$0xff]  }
 0x14a   : > { %v8952_v22 = vpop.f32.mrb[48].mxu0  ;;  %v8954_v31 = vpop.f32.mrb[48].mxu1 }
 0x14b   : > { %9992 = vst [vmem:[#allocation51_spill] sm:$0xff] %v8952_v22  ;;  %9993 = vst [vmem:[#allocation52_spill] sm:$0xff] %v8954_v31  ;;  %v8956_v62 = vpop.f32.mrb[49].mxu0  ;;  %v8959_v46 = vpop.f32.mrb[49].mxu1 }
 0x14c   : > { %9994 = vst [vmem:[#allocation53_spill] sm:$0xff] %v8956_v62  ;;  %9995 = vst [vmem:[#allocation54_spill] sm:$0xff] %v8959_v46  ;;  %v8961_v3 = vpop.f32.mrb[50].mxu0  ;;  %v8965_v42 = vpop.f32.mrb[50].mxu1 }
 0x14d   : > { %9996 = vst [vmem:[#allocation55_spill] sm:$0xff] %v8961_v3  ;;  %9997 = vst [vmem:[#allocation56_spill] sm:$0xff] %v8965_v42  ;;  %v8967_v51 = vpop.f32.mrb[51].mxu0  ;;  %v8970_v22 = vpop.f32.mrb[51].mxu1  ;;  %v8298_v42 = vld [vmem:[%s8442_s22 + $0x288] sm:$0xff]  }
 0x14e   : > { %9998 = vst [vmem:[#allocation57_spill] sm:$0xff] %v8967_v51  ;;  %9999 = vst [vmem:[#allocation58_spill] sm:$0xff] %v8970_v22  ;;  %v8299_v22 = vld [vmem:[%s8442_s22 + $0x688] sm:$0xff]  }
 0x14f   : > { %7766 = vmatmul.mubr.msk.bf16.gmra.mrb[156].mxu0 %vm1982_vm2, %v8294_v55  ;;  %8022 = vmatmul.mubr.msk.bf16.gmra.mrb[156].mxu1 %vm1982_vm2, %v8295_v34  ;;  %v8300_v55 = vld [vmem:[%s8442_s22 + $0x290] sm:$0xff]  }
 0x150   : > { %7769 = vmatprep.mubr.msk.bf16.mxu0 %vm1982_vm2, %v8296_v39  ;;  %8025 = vmatprep.mubr.msk.bf16.mxu1 %vm1982_vm2, %v8297_v43  ;;  %v8301_v43 = vld [vmem:[%s8442_s22 + $0x690] sm:$0xff]  }
 0x152   : > { %v8976_v3 = vpop.f32.mrb[52].mxu0  ;;  %v8978_v46 = vpop.f32.mrb[52].mxu1 }
 0x153   : > { %10000 = vst [vmem:[#allocation59_spill] sm:$0xff] %v8976_v3  ;;  %10001 = vst [vmem:[#allocation60_spill] sm:$0xff] %v8978_v46  ;;  %v8980_v62 = vpop.f32.mrb[53].mxu0  ;;  %v8983_v51 = vpop.f32.mrb[53].mxu1 }
 0x154   : > { %10002 = vst [vmem:[#allocation61_spill] sm:$0xff] %v8980_v62  ;;  %10003 = vst [vmem:[#allocation62_spill] sm:$0xff] %v8983_v51  ;;  %v8985_v31 = vpop.f32.mrb[54].mxu0  ;;  %v8989_v34 = vpop.f32.mrb[54].mxu1 }
 0x155   : > { %10004 = vst [vmem:[#allocation63_spill] sm:$0xff] %v8985_v31  ;;  %10005 = vst [vmem:[#allocation64_spill] sm:$0xff] %v8989_v34  ;;  %v8991_v39 = vpop.f32.mrb[55].mxu0  ;;  %v8994_v3 = vpop.f32.mrb[55].mxu1  ;;  %v8302_v34 = vld [vmem:[%s8442_s22 + $0x298] sm:$0xff]  }
 0x156   : > { %10006 = vst [vmem:[#allocation65_spill] sm:$0xff] %v8991_v39  ;;  %10007 = vst [vmem:[#allocation66_spill] sm:$0xff] %v8994_v3  ;;  %v8303_v3 = vld [vmem:[%s8442_s22 + $0x698] sm:$0xff]  }
 0x157   : > { %7770 = vmatmul.mubr.msk.bf16.gmra.mrb[160].mxu0 %vm1982_vm2, %v8298_v42  ;;  %8026 = vmatmul.mubr.msk.bf16.gmra.mrb[160].mxu1 %vm1982_vm2, %v8299_v22  ;;  %v8304_v42 = vld [vmem:[%s8442_s22 + $0x2a0] sm:$0xff]  }
 0x158   : > { %7773 = vmatprep.mubr.msk.bf16.mxu0 %vm1982_vm2, %v8300_v55  ;;  %8029 = vmatprep.mubr.msk.bf16.mxu1 %vm1982_vm2, %v8301_v43  ;;  %v8305_v43 = vld [vmem:[%s8442_s22 + $0x6a0] sm:$0xff]  }
 0x15a   : > { %v9000_v31 = vpop.f32.mrb[56].mxu0  ;;  %v9002_v51 = vpop.f32.mrb[56].mxu1 }
 0x15b   : > { %10008 = vst [vmem:[#allocation67_spill] sm:$0xff] %v9000_v31  ;;  %10009 = vst [vmem:[#allocation68_spill] sm:$0xff] %v9002_v51  ;;  %v9004_v62 = vpop.f32.mrb[57].mxu0  ;;  %v9007_v39 = vpop.f32.mrb[57].mxu1 }
 0x15c   : > { %10010 = vst [vmem:[#allocation69_spill] sm:$0xff] %v9004_v62  ;;  %10011 = vst [vmem:[#allocation70_spill] sm:$0xff] %v9007_v39  ;;  %v9009_v46 = vpop.f32.mrb[58].mxu0  ;;  %v9013_v22 = vpop.f32.mrb[58].mxu1 }
 0x15d   : > { %10012 = vst [vmem:[#allocation71_spill] sm:$0xff] %v9009_v46  ;;  %10013 = vst [vmem:[#allocation72_spill] sm:$0xff] %v9013_v22  ;;  %v9015_v55 = vpop.f32.mrb[59].mxu0  ;;  %v9018_v31 = vpop.f32.mrb[59].mxu1  ;;  %v8306_v22 = vld [vmem:[%s8442_s22 + $0x2a8] sm:$0xff]  }
 0x15e   : > { %10014 = vst [vmem:[#allocation73_spill] sm:$0xff] %v9015_v55  ;;  %10015 = vst [vmem:[#allocation74_spill] sm:$0xff] %v9018_v31  ;;  %v8307_v31 = vld [vmem:[%s8442_s22 + $0x6a8] sm:$0xff]  }
 0x15f   : > { %7774 = vmatmul.mubr.msk.bf16.gmra.mrb[164].mxu0 %vm1982_vm2, %v8302_v34  ;;  %8030 = vmatmul.mubr.msk.bf16.gmra.mrb[164].mxu1 %vm1982_vm2, %v8303_v3  ;;  %v8308_v34 = vld [vmem:[%s8442_s22 + $0x2b0] sm:$0xff]  }
 0x160   : > { %7777 = vmatprep.mubr.msk.bf16.mxu0 %vm1982_vm2, %v8304_v42  ;;  %8033 = vmatprep.mubr.msk.bf16.mxu1 %vm1982_vm2, %v8305_v43  ;;  %v8309_v43 = vld [vmem:[%s8442_s22 + $0x6b0] sm:$0xff]  }
 0x162   : > { %v9024_v46 = vpop.f32.mrb[60].mxu0  ;;  %v9026_v39 = vpop.f32.mrb[60].mxu1 }
 0x163   : > { %10016 = vst [vmem:[#allocation75_spill] sm:$0xff] %v9024_v46  ;;  %10017 = vst [vmem:[#allocation76_spill] sm:$0xff] %v9026_v39  ;;  %v9028_v62 = vpop.f32.mrb[61].mxu0  ;;  %v9031_v55 = vpop.f32.mrb[61].mxu1 }
 0x164   : > { %10018 = vst [vmem:[#allocation77_spill] sm:$0xff] %v9028_v62  ;;  %10019 = vst [vmem:[#allocation78_spill] sm:$0xff] %v9031_v55  ;;  %v9033_v51 = vpop.f32.mrb[62].mxu0  ;;  %v9037_v3 = vpop.f32.mrb[62].mxu1 }
 0x165   : > { %10020 = vst [vmem:[#allocation79_spill] sm:$0xff] %v9033_v51  ;;  %10021 = vst [vmem:[#allocation80_spill] sm:$0xff] %v9037_v3  ;;  %v9039_v42 = vpop.f32.mrb[63].mxu0  ;;  %v9042_v46 = vpop.f32.mrb[63].mxu1  ;;  %v8310_v3 = vld [vmem:[%s8442_s22 + $0x2b8] sm:$0xff]  }
 0x166   : > { %10022 = vst [vmem:[#allocation81_spill] sm:$0xff] %v9039_v42  ;;  %10023 = vst [vmem:[#allocation82_spill] sm:$0xff] %v9042_v46  ;;  %v8311_v46 = vld [vmem:[%s8442_s22 + $0x6b8] sm:$0xff]  }
 0x167   : > { %7778 = vmatmul.mubr.msk.bf16.gmra.mrb[168].mxu0 %vm1982_vm2, %v8306_v22  ;;  %8034 = vmatmul.mubr.msk.bf16.gmra.mrb[168].mxu1 %vm1982_vm2, %v8307_v31  ;;  %v8312_v22 = vld [vmem:[%s8442_s22 + $0x2c0] sm:$0xff]  }
 0x168   : > { %7781 = vmatprep.mubr.msk.bf16.mxu0 %vm1982_vm2, %v8308_v34  ;;  %8037 = vmatprep.mubr.msk.bf16.mxu1 %vm1982_vm2, %v8309_v43  ;;  %v8313_v43 = vld [vmem:[%s8442_s22 + $0x6c0] sm:$0xff]  }
 0x16a   : > { %v9048_v51 = vpop.f32.mrb[64].mxu0  ;;  %v9050_v55 = vpop.f32.mrb[64].mxu1 }
 0x16b   : > { %10024 = vst [vmem:[#allocation83_spill] sm:$0xff] %v9048_v51  ;;  %10025 = vst [vmem:[#allocation84_spill] sm:$0xff] %v9050_v55  ;;  %v9052_v62 = vpop.f32.mrb[65].mxu0  ;;  %v9055_v42 = vpop.f32.mrb[65].mxu1 }
 0x16c   : > { %10026 = vst [vmem:[#allocation85_spill] sm:$0xff] %v9052_v62  ;;  %10027 = vst [vmem:[#allocation86_spill] sm:$0xff] %v9055_v42  ;;  %v9057_v39 = vpop.f32.mrb[66].mxu0  ;;  %v9061_v31 = vpop.f32.mrb[66].mxu1 }
 0x16d   : > { %10028 = vst [vmem:[#allocation87_spill] sm:$0xff] %v9057_v39  ;;  %10029 = vst [vmem:[#allocation88_spill] sm:$0xff] %v9061_v31  ;;  %v9063_v34 = vpop.f32.mrb[67].mxu0  ;;  %v9066_v51 = vpop.f32.mrb[67].mxu1  ;;  %v8314_v31 = vld [vmem:[%s8442_s22 + $0x2c8] sm:$0xff]  }
 0x16e   : > { %10030 = vst [vmem:[#allocation89_spill] sm:$0xff] %v9063_v34  ;;  %10031 = vst [vmem:[#allocation90_spill] sm:$0xff] %v9066_v51  ;;  %v8315_v51 = vld [vmem:[%s8442_s22 + $0x6c8] sm:$0xff]  }
 0x16f   : > { %7782 = vmatmul.mubr.msk.bf16.gmra.mrb[172].mxu0 %vm1982_vm2, %v8310_v3  ;;  %8038 = vmatmul.mubr.msk.bf16.gmra.mrb[172].mxu1 %vm1982_vm2, %v8311_v46  ;;  %v8316_v3 = vld [vmem:[%s8442_s22 + $0x2d0] sm:$0xff]  }
 0x170   : > { %7785 = vmatprep.mubr.msk.bf16.mxu0 %vm1982_vm2, %v8312_v22  ;;  %8041 = vmatprep.mubr.msk.bf16.mxu1 %vm1982_vm2, %v8313_v43  ;;  %v8317_v43 = vld [vmem:[%s8442_s22 + $0x6d0] sm:$0xff]  }
 0x172   : > { %v9072_v39 = vpop.f32.mrb[68].mxu0  ;;  %v9074_v42 = vpop.f32.mrb[68].mxu1 }
 0x173   : > { %10032 = vst [vmem:[#allocation91_spill] sm:$0xff] %v9072_v39  ;;  %10033 = vst [vmem:[#allocation92_spill] sm:$0xff] %v9074_v42  ;;  %v9076_v62 = vpop.f32.mrb[69].mxu0  ;;  %v9079_v34 = vpop.f32.mrb[69].mxu1 }
 0x174   : > { %10034 = vst [vmem:[#allocation93_spill] sm:$0xff] %v9076_v62  ;;  %10035 = vst [vmem:[#allocation94_spill] sm:$0xff] %v9079_v34  ;;  %v9081_v55 = vpop.f32.mrb[70].mxu0  ;;  %v9085_v46 = vpop.f32.mrb[70].mxu1 }
 0x175   : > { %10036 = vst [vmem:[#allocation95_spill] sm:$0xff] %v9081_v55  ;;  %10037 = vst [vmem:[#allocation96_spill] sm:$0xff] %v9085_v46  ;;  %v9087_v22 = vpop.f32.mrb[71].mxu0  ;;  %v9090_v39 = vpop.f32.mrb[71].mxu1  ;;  %v8318_v46 = vld [vmem:[%s8442_s22 + $0x2d8] sm:$0xff]  }
 0x176   : > { %10038 = vst [vmem:[#allocation97_spill] sm:$0xff] %v9087_v22  ;;  %10039 = vst [vmem:[#allocation98_spill] sm:$0xff] %v9090_v39  ;;  %v8319_v39 = vld [vmem:[%s8442_s22 + $0x6d8] sm:$0xff]  }
 0x177   : > { %7786 = vmatmul.mubr.msk.bf16.gmra.mrb[176].mxu0 %vm1982_vm2, %v8314_v31  ;;  %8042 = vmatmul.mubr.msk.bf16.gmra.mrb[176].mxu1 %vm1982_vm2, %v8315_v51  ;;  %v8320_v31 = vld [vmem:[%s8442_s22 + $0x2e0] sm:$0xff]  }
 0x178   : > { %7789 = vmatprep.mubr.msk.bf16.mxu0 %vm1982_vm2, %v8316_v3  ;;  %8045 = vmatprep.mubr.msk.bf16.mxu1 %vm1982_vm2, %v8317_v43  ;;  %v8321_v43 = vld [vmem:[%s8442_s22 + $0x6e0] sm:$0xff]  }
 0x17a   : > { %v9096_v55 = vpop.f32.mrb[72].mxu0  ;;  %v9098_v34 = vpop.f32.mrb[72].mxu1 }
 0x17b   : > { %10040 = vst [vmem:[#allocation99_spill] sm:$0xff] %v9096_v55  ;;  %10041 = vst [vmem:[#allocation100_spill] sm:$0xff] %v9098_v34  ;;  %v9100_v62 = vpop.f32.mrb[73].mxu0  ;;  %v9103_v22 = vpop.f32.mrb[73].mxu1 }
 0x17c   : > { %10042 = vst [vmem:[#allocation101_spill] sm:$0xff] %v9100_v62  ;;  %10043 = vst [vmem:[#allocation102_spill] sm:$0xff] %v9103_v22  ;;  %v9105_v42 = vpop.f32.mrb[74].mxu0  ;;  %v9109_v51 = vpop.f32.mrb[74].mxu1 }
 0x17d   : > { %10044 = vst [vmem:[#allocation103_spill] sm:$0xff] %v9105_v42  ;;  %10045 = vst [vmem:[#allocation104_spill] sm:$0xff] %v9109_v51  ;;  %v9111_v3 = vpop.f32.mrb[75].mxu0  ;;  %v9114_v55 = vpop.f32.mrb[75].mxu1  ;;  %v8322_v51 = vld [vmem:[%s8442_s22 + $0x2e8] sm:$0xff]  }
 0x17e   : > { %10046 = vst [vmem:[#allocation105_spill] sm:$0xff] %v9111_v3  ;;  %10047 = vst [vmem:[#allocation106_spill] sm:$0xff] %v9114_v55  ;;  %v8323_v55 = vld [vmem:[%s8442_s22 + $0x6e8] sm:$0xff]  }
 0x17f   : > { %7790 = vmatmul.mubr.msk.bf16.gmra.mrb[180].mxu0 %vm1982_vm2, %v8318_v46  ;;  %8046 = vmatmul.mubr.msk.bf16.gmra.mrb[180].mxu1 %vm1982_vm2, %v8319_v39  ;;  %v8324_v46 = vld [vmem:[%s8442_s22 + $0x2f0] sm:$0xff]  }
 0x180   : > { %7793 = vmatprep.mubr.msk.bf16.mxu0 %vm1982_vm2, %v8320_v31  ;;  %8049 = vmatprep.mubr.msk.bf16.mxu1 %vm1982_vm2, %v8321_v43  ;;  %v8325_v43 = vld [vmem:[%s8442_s22 + $0x6f0] sm:$0xff]  }
 0x182   : > { %v9120_v42 = vpop.f32.mrb[76].mxu0  ;;  %v9122_v22 = vpop.f32.mrb[76].mxu1 }
 0x183   : > { %10048 = vst [vmem:[#allocation107_spill] sm:$0xff] %v9120_v42  ;;  %10049 = vst [vmem:[#allocation108_spill] sm:$0xff] %v9122_v22  ;;  %v9124_v62 = vpop.f32.mrb[77].mxu0  ;;  %v9127_v3 = vpop.f32.mrb[77].mxu1 }
 0x184   : > { %10050 = vst [vmem:[#allocation109_spill] sm:$0xff] %v9124_v62  ;;  %10051 = vst [vmem:[#allocation110_spill] sm:$0xff] %v9127_v3  ;;  %v9129_v34 = vpop.f32.mrb[78].mxu0  ;;  %v9133_v39 = vpop.f32.mrb[78].mxu1 }
 0x185   : > { %10052 = vst [vmem:[#allocation111_spill] sm:$0xff] %v9129_v34  ;;  %10053 = vst [vmem:[#allocation112_spill] sm:$0xff] %v9133_v39  ;;  %v9135_v31 = vpop.f32.mrb[79].mxu0  ;;  %v9138_v42 = vpop.f32.mrb[79].mxu1  ;;  %v8326_v39 = vld [vmem:[%s8442_s22 + $0x2f8] sm:$0xff]  }
 0x186   : > { %10054 = vst [vmem:[#allocation113_spill] sm:$0xff] %v9135_v31  ;;  %10055 = vst [vmem:[#allocation114_spill] sm:$0xff] %v9138_v42  ;;  %v8327_v42 = vld [vmem:[%s8442_s22 + $0x6f8] sm:$0xff]  }
 0x187   : > { %7794 = vmatmul.mubr.msk.bf16.gmra.mrb[184].mxu0 %vm1982_vm2, %v8322_v51  ;;  %8050 = vmatmul.mubr.msk.bf16.gmra.mrb[184].mxu1 %vm1982_vm2, %v8323_v55  ;;  %v8328_v51 = vld [vmem:[%s8442_s22 + $0x300] sm:$0xff]  }
 0x188   : > { %7797 = vmatprep.mubr.msk.bf16.mxu0 %vm1982_vm2, %v8324_v46  ;;  %8053 = vmatprep.mubr.msk.bf16.mxu1 %vm1982_vm2, %v8325_v43  ;;  %v8329_v43 = vld [vmem:[%s8442_s22 + $0x700] sm:$0xff]  }
 0x18a   : > { %v9144_v34 = vpop.f32.mrb[80].mxu0  ;;  %v9146_v3 = vpop.f32.mrb[80].mxu1 }
 0x18b   : > { %10056 = vst [vmem:[#allocation115_spill] sm:$0xff] %v9144_v34  ;;  %10057 = vst [vmem:[#allocation116_spill] sm:$0xff] %v9146_v3  ;;  %v9148_v62 = vpop.f32.mrb[81].mxu0  ;;  %v9151_v31 = vpop.f32.mrb[81].mxu1 }
 0x18c   : > { %10058 = vst [vmem:[#allocation117_spill] sm:$0xff] %v9148_v62  ;;  %10059 = vst [vmem:[#allocation118_spill] sm:$0xff] %v9151_v31  ;;  %v9153_v22 = vpop.f32.mrb[82].mxu0  ;;  %v9157_v55 = vpop.f32.mrb[82].mxu1 }
 0x18d   : > { %10060 = vst [vmem:[#allocation119_spill] sm:$0xff] %v9153_v22  ;;  %10061 = vst [vmem:[#allocation120_spill] sm:$0xff] %v9157_v55  ;;  %v9159_v46 = vpop.f32.mrb[83].mxu0  ;;  %v9162_v34 = vpop.f32.mrb[83].mxu1  ;;  %v8330_v55 = vld [vmem:[%s8442_s22 + $0x308] sm:$0xff]  }
 0x18e   : > { %10062 = vst [vmem:[#allocation121_spill] sm:$0xff] %v9159_v46  ;;  %10063 = vst [vmem:[#allocation122_spill] sm:$0xff] %v9162_v34  ;;  %v8331_v34 = vld [vmem:[%s8442_s22 + $0x708] sm:$0xff]  }
 0x18f   : > { %7798 = vmatmul.mubr.msk.bf16.gmra.mrb[188].mxu0 %vm1982_vm2, %v8326_v39  ;;  %8054 = vmatmul.mubr.msk.bf16.gmra.mrb[188].mxu1 %vm1982_vm2, %v8327_v42  ;;  %v8332_v39 = vld [vmem:[%s8442_s22 + $0x310] sm:$0xff]  }
 0x190   : > { %7801 = vmatprep.mubr.msk.bf16.mxu0 %vm1982_vm2, %v8328_v51  ;;  %8057 = vmatprep.mubr.msk.bf16.mxu1 %vm1982_vm2, %v8329_v43  ;;  %v8333_v43 = vld [vmem:[%s8442_s22 + $0x710] sm:$0xff]  }
 0x192   : > { %v9168_v22 = vpop.f32.mrb[84].mxu0  ;;  %v9170_v31 = vpop.f32.mrb[84].mxu1 }
 0x193   : > { %10064 = vst [vmem:[#allocation123_spill] sm:$0xff] %v9168_v22  ;;  %10065 = vst [vmem:[#allocation124_spill] sm:$0xff] %v9170_v31  ;;  %v9172_v62 = vpop.f32.mrb[85].mxu0  ;;  %v9175_v46 = vpop.f32.mrb[85].mxu1 }
 0x194   : > { %10066 = vst [vmem:[#allocation125_spill] sm:$0xff] %v9172_v62  ;;  %10067 = vst [vmem:[#allocation126_spill] sm:$0xff] %v9175_v46  ;;  %v9177_v3 = vpop.f32.mrb[86].mxu0  ;;  %v9181_v42 = vpop.f32.mrb[86].mxu1 }
 0x195   : > { %10068 = vst [vmem:[#allocation127_spill] sm:$0xff] %v9177_v3  ;;  %10069 = vst [vmem:[#allocation128_spill] sm:$0xff] %v9181_v42  ;;  %v9183_v51 = vpop.f32.mrb[87].mxu0  ;;  %v9186_v22 = vpop.f32.mrb[87].mxu1  ;;  %v8334_v42 = vld [vmem:[%s8442_s22 + $0x318] sm:$0xff]  }
 0x196   : > { %10070 = vst [vmem:[#allocation129_spill] sm:$0xff] %v9183_v51  ;;  %10071 = vst [vmem:[#allocation130_spill] sm:$0xff] %v9186_v22  ;;  %v8335_v22 = vld [vmem:[%s8442_s22 + $0x718] sm:$0xff]  }
 0x197   : > { %7802 = vmatmul.mubr.msk.bf16.gmra.mrb[192].mxu0 %vm1982_vm2, %v8330_v55  ;;  %8058 = vmatmul.mubr.msk.bf16.gmra.mrb[192].mxu1 %vm1982_vm2, %v8331_v34  ;;  %v8336_v55 = vld [vmem:[%s8442_s22 + $0x320] sm:$0xff]  }
 0x198   : > { %7805 = vmatprep.mubr.msk.bf16.mxu0 %vm1982_vm2, %v8332_v39  ;;  %8061 = vmatprep.mubr.msk.bf16.mxu1 %vm1982_vm2, %v8333_v43  ;;  %v8337_v43 = vld [vmem:[%s8442_s22 + $0x720] sm:$0xff]  }
 0x19a   : > { %v9192_v3 = vpop.f32.mrb[88].mxu0  ;;  %v9194_v46 = vpop.f32.mrb[88].mxu1 }
 0x19b   : > { %10072 = vst [vmem:[#allocation131_spill] sm:$0xff] %v9192_v3  ;;  %10073 = vst [vmem:[#allocation132_spill] sm:$0xff] %v9194_v46  ;;  %v9196_v62 = vpop.f32.mrb[89].mxu0  ;;  %v9199_v51 = vpop.f32.mrb[89].mxu1 }
 0x19c   : > { %10074 = vst [vmem:[#allocation133_spill] sm:$0xff] %v9196_v62  ;;  %10075 = vst [vmem:[#allocation134_spill] sm:$0xff] %v9199_v51  ;;  %v9201_v31 = vpop.f32.mrb[90].mxu0  ;;  %v9205_v34 = vpop.f32.mrb[90].mxu1 }
 0x19d   : > { %10076 = vst [vmem:[#allocation135_spill] sm:$0xff] %v9201_v31  ;;  %10077 = vst [vmem:[#allocation136_spill] sm:$0xff] %v9205_v34  ;;  %v9207_v39 = vpop.f32.mrb[91].mxu0  ;;  %v9210_v3 = vpop.f32.mrb[91].mxu1  ;;  %v8338_v34 = vld [vmem:[%s8442_s22 + $0x328] sm:$0xff]  }
 0x19e   : > { %10078 = vst [vmem:[#allocation137_spill] sm:$0xff] %v9207_v39  ;;  %10079 = vst [vmem:[#allocation138_spill] sm:$0xff] %v9210_v3  ;;  %v8339_v3 = vld [vmem:[%s8442_s22 + $0x728] sm:$0xff]  }
 0x19f   : > { %7806 = vmatmul.mubr.msk.bf16.gmra.mrb[196].mxu0 %vm1982_vm2, %v8334_v42  ;;  %8062 = vmatmul.mubr.msk.bf16.gmra.mrb[196].mxu1 %vm1982_vm2, %v8335_v22  ;;  %v8340_v42 = vld [vmem:[%s8442_s22 + $0x330] sm:$0xff]  }
 0x1a0   : > { %7809 = vmatprep.mubr.msk.bf16.mxu0 %vm1982_vm2, %v8336_v55  ;;  %8065 = vmatprep.mubr.msk.bf16.mxu1 %vm1982_vm2, %v8337_v43  ;;  %v8341_v43 = vld [vmem:[%s8442_s22 + $0x730] sm:$0xff]  }
 0x1a2   : > { %v9216_v31 = vpop.f32.mrb[92].mxu0  ;;  %v9218_v51 = vpop.f32.mrb[92].mxu1 }
 0x1a3   : > { %10080 = vst [vmem:[#allocation139_spill] sm:$0xff] %v9216_v31  ;;  %10081 = vst [vmem:[#allocation140_spill] sm:$0xff] %v9218_v51  ;;  %v9220_v62 = vpop.f32.mrb[93].mxu0  ;;  %v9223_v39 = vpop.f32.mrb[93].mxu1 }
 0x1a4   : > { %10082 = vst [vmem:[#allocation141_spill] sm:$0xff] %v9220_v62  ;;  %10083 = vst [vmem:[#allocation142_spill] sm:$0xff] %v9223_v39  ;;  %v9225_v46 = vpop.f32.mrb[94].mxu0  ;;  %v9229_v22 = vpop.f32.mrb[94].mxu1 }
 0x1a5   : > { %10084 = vst [vmem:[#allocation143_spill] sm:$0xff] %v9225_v46  ;;  %10085 = vst [vmem:[#allocation144_spill] sm:$0xff] %v9229_v22  ;;  %v9231_v55 = vpop.f32.mrb[95].mxu0  ;;  %v9234_v31 = vpop.f32.mrb[95].mxu1  ;;  %v8342_v22 = vld [vmem:[%s8442_s22 + $0x338] sm:$0xff]  }
 0x1a6   : > { %10086 = vst [vmem:[#allocation145_spill] sm:$0xff] %v9231_v55  ;;  %10087 = vst [vmem:[#allocation146_spill] sm:$0xff] %v9234_v31  ;;  %v8343_v31 = vld [vmem:[%s8442_s22 + $0x738] sm:$0xff]  }
 0x1a7   : > { %7810 = vmatmul.mubr.msk.bf16.gmra.mrb[200].mxu0 %vm1982_vm2, %v8338_v34  ;;  %8066 = vmatmul.mubr.msk.bf16.gmra.mrb[200].mxu1 %vm1982_vm2, %v8339_v3  ;;  %v8344_v34 = vld [vmem:[%s8442_s22 + $0x340] sm:$0xff]  }
 0x1a8   : > { %7813 = vmatprep.mubr.msk.bf16.mxu0 %vm1982_vm2, %v8340_v42  ;;  %8069 = vmatprep.mubr.msk.bf16.mxu1 %vm1982_vm2, %v8341_v43  ;;  %v8345_v43 = vld [vmem:[%s8442_s22 + $0x740] sm:$0xff]  }
 0x1aa   : > { %v9240_v46 = vpop.f32.mrb[96].mxu0  ;;  %v9242_v39 = vpop.f32.mrb[96].mxu1 }
 0x1ab   : > { %10088 = vst [vmem:[#allocation147_spill] sm:$0xff] %v9240_v46  ;;  %10089 = vst [vmem:[#allocation148_spill] sm:$0xff] %v9242_v39  ;;  %v9244_v62 = vpop.f32.mrb[97].mxu0  ;;  %v9247_v55 = vpop.f32.mrb[97].mxu1 }
 0x1ac   : > { %10090 = vst [vmem:[#allocation149_spill] sm:$0xff] %v9244_v62  ;;  %10091 = vst [vmem:[#allocation150_spill] sm:$0xff] %v9247_v55  ;;  %v9249_v51 = vpop.f32.mrb[98].mxu0  ;;  %v9253_v3 = vpop.f32.mrb[98].mxu1 }
 0x1ad   : > { %10092 = vst [vmem:[#allocation151_spill] sm:$0xff] %v9249_v51  ;;  %10093 = vst [vmem:[#allocation152_spill] sm:$0xff] %v9253_v3  ;;  %v9255_v42 = vpop.f32.mrb[99].mxu0  ;;  %v9258_v46 = vpop.f32.mrb[99].mxu1  ;;  %v8346_v3 = vld [vmem:[%s8442_s22 + $0x348] sm:$0xff]  }
 0x1ae   : > { %10094 = vst [vmem:[#allocation153_spill] sm:$0xff] %v9255_v42  ;;  %10095 = vst [vmem:[#allocation154_spill] sm:$0xff] %v9258_v46  ;;  %v8347_v46 = vld [vmem:[%s8442_s22 + $0x748] sm:$0xff]  }
 0x1af   : > { %7814 = vmatmul.mubr.msk.bf16.gmra.mrb[204].mxu0 %vm1982_vm2, %v8342_v22  ;;  %8070 = vmatmul.mubr.msk.bf16.gmra.mrb[204].mxu1 %vm1982_vm2, %v8343_v31  ;;  %v8348_v22 = vld [vmem:[%s8442_s22 + $0x350] sm:$0xff]  }
 0x1b0   : > { %7817 = vmatprep.mubr.msk.bf16.mxu0 %vm1982_vm2, %v8344_v34  ;;  %8073 = vmatprep.mubr.msk.bf16.mxu1 %vm1982_vm2, %v8345_v43  ;;  %v8349_v43 = vld [vmem:[%s8442_s22 + $0x750] sm:$0xff]  }
 0x1b2   : > { %v9264_v51 = vpop.f32.mrb[100].mxu0  ;;  %v9266_v55 = vpop.f32.mrb[100].mxu1 }
 0x1b3   : > { %10096 = vst [vmem:[#allocation155_spill] sm:$0xff] %v9264_v51  ;;  %10097 = vst [vmem:[#allocation156_spill] sm:$0xff] %v9266_v55  ;;  %v9268_v62 = vpop.f32.mrb[101].mxu0  ;;  %v9271_v42 = vpop.f32.mrb[101].mxu1 }
 0x1b4   : > { %10098 = vst [vmem:[#allocation157_spill] sm:$0xff] %v9268_v62  ;;  %10099 = vst [vmem:[#allocation158_spill] sm:$0xff] %v9271_v42  ;;  %v9273_v39 = vpop.f32.mrb[102].mxu0  ;;  %v9277_v31 = vpop.f32.mrb[102].mxu1 }
 0x1b5   : > { %10100 = vst [vmem:[#allocation159_spill] sm:$0xff] %v9273_v39  ;;  %10101 = vst [vmem:[#allocation160_spill] sm:$0xff] %v9277_v31  ;;  %v9279_v34 = vpop.f32.mrb[103].mxu0  ;;  %v9282_v51 = vpop.f32.mrb[103].mxu1  ;;  %v8350_v31 = vld [vmem:[%s8442_s22 + $0x358] sm:$0xff]  }
 0x1b6   : > { %10102 = vst [vmem:[#allocation161_spill] sm:$0xff] %v9279_v34  ;;  %10103 = vst [vmem:[#allocation162_spill] sm:$0xff] %v9282_v51  ;;  %v8351_v51 = vld [vmem:[%s8442_s22 + $0x758] sm:$0xff]  }
 0x1b7   : > { %7818 = vmatmul.mubr.msk.bf16.gmra.mrb[208].mxu0 %vm1982_vm2, %v8346_v3  ;;  %8074 = vmatmul.mubr.msk.bf16.gmra.mrb[208].mxu1 %vm1982_vm2, %v8347_v46  ;;  %v8352_v3 = vld [vmem:[%s8442_s22 + $0x360] sm:$0xff]  }
 0x1b8   : > { %7821 = vmatprep.mubr.msk.bf16.mxu0 %vm1982_vm2, %v8348_v22  ;;  %8077 = vmatprep.mubr.msk.bf16.mxu1 %vm1982_vm2, %v8349_v43  ;;  %v8353_v43 = vld [vmem:[%s8442_s22 + $0x760] sm:$0xff]  }
 0x1ba   : > { %v9288_v39 = vpop.f32.mrb[104].mxu0  ;;  %v9290_v42 = vpop.f32.mrb[104].mxu1 }
 0x1bb   : > { %10104 = vst [vmem:[#allocation163_spill] sm:$0xff] %v9288_v39  ;;  %10105 = vst [vmem:[#allocation164_spill] sm:$0xff] %v9290_v42  ;;  %v9292_v62 = vpop.f32.mrb[105].mxu0  ;;  %v9295_v34 = vpop.f32.mrb[105].mxu1 }
 0x1bc   : > { %10106 = vst [vmem:[#allocation165_spill] sm:$0xff] %v9292_v62  ;;  %10107 = vst [vmem:[#allocation166_spill] sm:$0xff] %v9295_v34  ;;  %v9297_v55 = vpop.f32.mrb[106].mxu0  ;;  %v9301_v46 = vpop.f32.mrb[106].mxu1 }
 0x1bd   : > { %10108 = vst [vmem:[#allocation167_spill] sm:$0xff] %v9297_v55  ;;  %10109 = vst [vmem:[#allocation168_spill] sm:$0xff] %v9301_v46  ;;  %v9303_v22 = vpop.f32.mrb[107].mxu0  ;;  %v9306_v39 = vpop.f32.mrb[107].mxu1  ;;  %v8354_v46 = vld [vmem:[%s8442_s22 + $0x368] sm:$0xff]  }
 0x1be   : > { %10110 = vst [vmem:[#allocation169_spill] sm:$0xff] %v9303_v22  ;;  %10111 = vst [vmem:[#allocation170_spill] sm:$0xff] %v9306_v39  ;;  %v8355_v39 = vld [vmem:[%s8442_s22 + $0x768] sm:$0xff]  }
 0x1bf   : > { %7822 = vmatmul.mubr.msk.bf16.gmra.mrb[212].mxu0 %vm1982_vm2, %v8350_v31  ;;  %8078 = vmatmul.mubr.msk.bf16.gmra.mrb[212].mxu1 %vm1982_vm2, %v8351_v51  ;;  %v8356_v31 = vld [vmem:[%s8442_s22 + $0x370] sm:$0xff]  }
 0x1c0   : > { %7825 = vmatprep.mubr.msk.bf16.mxu0 %vm1982_vm2, %v8352_v3  ;;  %8081 = vmatprep.mubr.msk.bf16.mxu1 %vm1982_vm2, %v8353_v43  ;;  %v8357_v43 = vld [vmem:[%s8442_s22 + $0x770] sm:$0xff]  }
 0x1c2   : > { %v9312_v55 = vpop.f32.mrb[108].mxu0  ;;  %v9314_v34 = vpop.f32.mrb[108].mxu1 }
 0x1c3   : > { %10112 = vst [vmem:[#allocation171_spill] sm:$0xff] %v9312_v55  ;;  %10113 = vst [vmem:[#allocation172_spill] sm:$0xff] %v9314_v34  ;;  %v9316_v62 = vpop.f32.mrb[109].mxu0  ;;  %v9319_v22 = vpop.f32.mrb[109].mxu1 }
 0x1c4   : > { %10114 = vst [vmem:[#allocation173_spill] sm:$0xff] %v9316_v62  ;;  %10115 = vst [vmem:[#allocation174_spill] sm:$0xff] %v9319_v22  ;;  %v9321_v42 = vpop.f32.mrb[110].mxu0  ;;  %v9325_v51 = vpop.f32.mrb[110].mxu1 }
 0x1c5   : > { %10116 = vst [vmem:[#allocation175_spill] sm:$0xff] %v9321_v42  ;;  %10117 = vst [vmem:[#allocation176_spill] sm:$0xff] %v9325_v51  ;;  %v9327_v3 = vpop.f32.mrb[111].mxu0  ;;  %v9330_v55 = vpop.f32.mrb[111].mxu1  ;;  %v8358_v51 = vld [vmem:[%s8442_s22 + $0x378] sm:$0xff]  }
 0x1c6   : > { %10118 = vst [vmem:[#allocation177_spill] sm:$0xff] %v9327_v3  ;;  %10119 = vst [vmem:[#allocation178_spill] sm:$0xff] %v9330_v55  ;;  %v8359_v55 = vld [vmem:[%s8442_s22 + $0x778] sm:$0xff]  }
 0x1c7   : > { %7826 = vmatmul.mubr.msk.bf16.gmra.mrb[216].mxu0 %vm1982_vm2, %v8354_v46  ;;  %8082 = vmatmul.mubr.msk.bf16.gmra.mrb[216].mxu1 %vm1982_vm2, %v8355_v39  ;;  %v8360_v46 = vld [vmem:[%s8442_s22 + $0x380] sm:$0xff]  }
 0x1c8   : > { %7829 = vmatprep.mubr.msk.bf16.mxu0 %vm1982_vm2, %v8356_v31  ;;  %8085 = vmatprep.mubr.msk.bf16.mxu1 %vm1982_vm2, %v8357_v43  ;;  %v8361_v43 = vld [vmem:[%s8442_s22 + $0x780] sm:$0xff]  }
 0x1ca   : > { %v9336_v42 = vpop.f32.mrb[112].mxu0  ;;  %v9338_v22 = vpop.f32.mrb[112].mxu1 }
 0x1cb   : > { %10120 = vst [vmem:[#allocation179_spill] sm:$0xff] %v9336_v42  ;;  %10121 = vst [vmem:[#allocation180_spill] sm:$0xff] %v9338_v22  ;;  %v9340_v62 = vpop.f32.mrb[113].mxu0  ;;  %v9343_v3 = vpop.f32.mrb[113].mxu1 }
 0x1cc   : > { %10122 = vst [vmem:[#allocation181_spill] sm:$0xff] %v9340_v62  ;;  %10123 = vst [vmem:[#allocation182_spill] sm:$0xff] %v9343_v3  ;;  %v9345_v34 = vpop.f32.mrb[114].mxu0  ;;  %v9349_v39 = vpop.f32.mrb[114].mxu1 }
 0x1cd   : > { %10124 = vst [vmem:[#allocation183_spill] sm:$0xff] %v9345_v34  ;;  %10125 = vst [vmem:[#allocation184_spill] sm:$0xff] %v9349_v39  ;;  %v9351_v31 = vpop.f32.mrb[115].mxu0  ;;  %v9354_v42 = vpop.f32.mrb[115].mxu1  ;;  %v8362_v39 = vld [vmem:[%s8442_s22 + $0x388] sm:$0xff]  }
 0x1ce   : > { %10126 = vst [vmem:[#allocation185_spill] sm:$0xff] %v9351_v31  ;;  %10127 = vst [vmem:[#allocation186_spill] sm:$0xff] %v9354_v42  ;;  %v8363_v42 = vld [vmem:[%s8442_s22 + $0x788] sm:$0xff]  }
 0x1cf   : > { %7830 = vmatmul.mubr.msk.bf16.gmra.mrb[220].mxu0 %vm1982_vm2, %v8358_v51  ;;  %8086 = vmatmul.mubr.msk.bf16.gmra.mrb[220].mxu1 %vm1982_vm2, %v8359_v55  ;;  %v8364_v51 = vld [vmem:[%s8442_s22 + $0x390] sm:$0xff]  }
 0x1d0   : > { %7833 = vmatprep.mubr.msk.bf16.mxu0 %vm1982_vm2, %v8360_v46  ;;  %8089 = vmatprep.mubr.msk.bf16.mxu1 %vm1982_vm2, %v8361_v43  ;;  %v8365_v43 = vld [vmem:[%s8442_s22 + $0x790] sm:$0xff]  }
 0x1d2   : > { %v9360_v34 = vpop.f32.mrb[116].mxu0  ;;  %v9362_v3 = vpop.f32.mrb[116].mxu1 }
 0x1d3   : > { %10128 = vst [vmem:[#allocation187_spill] sm:$0xff] %v9360_v34  ;;  %10129 = vst [vmem:[#allocation188_spill] sm:$0xff] %v9362_v3  ;;  %v9364_v62 = vpop.f32.mrb[117].mxu0  ;;  %v9367_v31 = vpop.f32.mrb[117].mxu1 }
 0x1d4   : > { %10130 = vst [vmem:[#allocation189_spill] sm:$0xff] %v9364_v62  ;;  %10131 = vst [vmem:[#allocation190_spill] sm:$0xff] %v9367_v31  ;;  %v9369_v22 = vpop.f32.mrb[118].mxu0  ;;  %v9373_v55 = vpop.f32.mrb[118].mxu1 }
 0x1d5   : > { %10132 = vst [vmem:[#allocation191_spill] sm:$0xff] %v9369_v22  ;;  %10133 = vst [vmem:[#allocation192_spill] sm:$0xff] %v9373_v55  ;;  %v9375_v46 = vpop.f32.mrb[119].mxu0  ;;  %v9378_v34 = vpop.f32.mrb[119].mxu1  ;;  %v8366_v55 = vld [vmem:[%s8442_s22 + $0x398] sm:$0xff]  }
 0x1d6   : > { %10134 = vst [vmem:[#allocation193_spill] sm:$0xff] %v9375_v46  ;;  %10135 = vst [vmem:[#allocation194_spill] sm:$0xff] %v9378_v34  ;;  %v8367_v34 = vld [vmem:[%s8442_s22 + $0x798] sm:$0xff]  }
 0x1d7   : > { %7834 = vmatmul.mubr.msk.bf16.gmra.mrb[224].mxu0 %vm1982_vm2, %v8362_v39  ;;  %8090 = vmatmul.mubr.msk.bf16.gmra.mrb[224].mxu1 %vm1982_vm2, %v8363_v42  ;;  %v8368_v39 = vld [vmem:[%s8442_s22 + $0x3a0] sm:$0xff]  }
 0x1d8   : > { %7837 = vmatprep.mubr.msk.bf16.mxu0 %vm1982_vm2, %v8364_v51  ;;  %8093 = vmatprep.mubr.msk.bf16.mxu1 %vm1982_vm2, %v8365_v43  ;;  %v8369_v43 = vld [vmem:[%s8442_s22 + $0x7a0] sm:$0xff]  }
 0x1da   : > { %v9384_v22 = vpop.f32.mrb[120].mxu0  ;;  %v9386_v31 = vpop.f32.mrb[120].mxu1 }
 0x1db   : > { %10136 = vst [vmem:[#allocation195_spill] sm:$0xff] %v9384_v22  ;;  %10137 = vst [vmem:[#allocation196_spill] sm:$0xff] %v9386_v31  ;;  %v9388_v62 = vpop.f32.mrb[121].mxu0  ;;  %v9391_v46 = vpop.f32.mrb[121].mxu1 }
 0x1dc   : > { %10138 = vst [vmem:[#allocation197_spill] sm:$0xff] %v9388_v62  ;;  %10139 = vst [vmem:[#allocation198_spill] sm:$0xff] %v9391_v46  ;;  %v9393_v3 = vpop.f32.mrb[122].mxu0  ;;  %v9397_v42 = vpop.f32.mrb[122].mxu1 }
 0x1dd   : > { %10140 = vst [vmem:[#allocation199_spill] sm:$0xff] %v9393_v3  ;;  %10141 = vst [vmem:[#allocation200_spill] sm:$0xff] %v9397_v42  ;;  %v9399_v51 = vpop.f32.mrb[123].mxu0  ;;  %v9402_v22 = vpop.f32.mrb[123].mxu1 }
 0x1de   : > { %10142 = vst [vmem:[#allocation201_spill] sm:$0xff] %v9399_v51  ;;  %10143 = vst [vmem:[#allocation202_spill] sm:$0xff] %v9402_v22  ;;  %v8370_v51 = vld [vmem:[%s8442_s22 + $0x3a8] sm:$0xff]  }
 0x1df   : > { %7838 = vmatmul.mubr.msk.bf16.gmra.mrb[228].mxu0 %vm1982_vm2, %v8366_v55  ;;  %8094 = vmatmul.mubr.msk.bf16.gmra.mrb[228].mxu1 %vm1982_vm2, %v8367_v34  ;;  %v8371_v22 = vld [vmem:[%s8442_s22 + $0x7a8] sm:$0xff]   ;;  %v8372_v55 = vld [vmem:[%s8442_s22 + $0x3b0] sm:$0xff]  }
 0x1e0   : > { %7841 = vmatprep.mubr.msk.bf16.mxu0 %vm1982_vm2, %v8368_v39  ;;  %8097 = vmatprep.mubr.msk.bf16.mxu1 %vm1982_vm2, %v8369_v43  ;;  %v8373_v39 = vld [vmem:[%s8442_s22 + $0x7b0] sm:$0xff]  }
 0x1e2   : > { %v9408_v3 = vpop.f32.mrb[124].mxu0  ;;  %v9410_v46 = vpop.f32.mrb[124].mxu1 }
 0x1e3   : > { %10144 = vst [vmem:[#allocation203_spill] sm:$0xff] %v9408_v3  ;;  %10145 = vst [vmem:[#allocation204_spill] sm:$0xff] %v9410_v46  ;;  %v9412_v42 = vpop.f32.mrb[125].mxu0  ;;  %v9415_v62 = vpop.f32.mrb[125].mxu1 }
 0x1e4   : > { %10146 = vst [vmem:[#allocation205_spill] sm:$0xff] %v9412_v42  ;;  %10147 = vst [vmem:[#allocation206_spill] sm:$0xff] %v9415_v62  ;;  %v9417_v31 = vpop.f32.mrb[126].mxu0  ;;  %v9421_v34 = vpop.f32.mrb[126].mxu1 }
 0x1e5   : > { %10148 = vst [vmem:[#allocation207_spill] sm:$0xff] %v9417_v31  ;;  %10149 = vst [vmem:[#allocation208_spill] sm:$0xff] %v9421_v34  ;;  %v9423_v30 = vpop.f32.mrb[127].mxu0  ;;  %v9426_v43 = vpop.f32.mrb[127].mxu1 }
 0x1e6   : > { %10150 = vst [vmem:[#allocation209_spill] sm:$0xff] %v9423_v30  ;;  %10151 = vst [vmem:[#allocation210_spill] sm:$0xff] %v9426_v43  ;;  %v8374_v43 = vld [vmem:[%s8442_s22 + $0x3b8] sm:$0xff]  }
 0x1e7   : > { %7842 = vmatmul.mubr.msk.bf16.gmra.mrb[232].mxu0 %vm1982_vm2, %v8370_v51  ;;  %8098 = vmatmul.mubr.msk.bf16.gmra.mrb[232].mxu1 %vm1982_vm2, %v8371_v22  ;;  %v8376_v22 = vld [vmem:[%s8442_s22 + $0x3c0] sm:$0xff]  }
 0x1e8   : > { %7845 = vmatprep.mubr.msk.bf16.mxu0 %vm1982_vm2, %v8372_v55  ;;  %8101 = vmatprep.mubr.msk.bf16.mxu1 %vm1982_vm2, %v8373_v39  ;;  %v9443_v55 = vld [vmem:[%s9941_s2] ss:$0 sm:$0xff] }
 0x1ea   : > { %v7739_v31 = vpop.f32.mrb[128].mxu0  ;;  %v7995_v34 = vpop.f32.mrb[128].mxu1 }
 0x1eb   : > { %v4841_v30 = vmax.f32 %v8665_v53, %v7739_v31  ;;  %v3304_v62 = vpop.f32.mrb[129].mxu0  ;;  %v4969_v42 = vmax.f32 %v8669_v56, %v7995_v34  ;;  %v4328_v46 = vpop.f32.mrb[129].mxu1 }
 0x1ec   : > { %v4839_v51 = vmax.f32 %v8671_v57, %v3304_v62  ;;  %v7740_v3 = vpop.f32.mrb[130].mxu0  ;;  %v4967_v39 = vmax.f32 %v8673_v58, %v4328_v46  ;;  %v7996_v31 = vpop.f32.mrb[130].mxu1 }
 0x1ed   : > { %v4842_v53 = vmax.f32 %v8675_v59, %v7740_v3  ;;  %v3307_v19 = vpop.f32.mrb[131].mxu0  ;;  %v5097_v13 = vmax.f32 %v4841_v30, %v4969_v42  ;;  %v4970_v56 = vmax.f32 %v8677_v60, %v7996_v31  ;;  %v4331_v62 = vpop.f32.mrb[131].mxu1 }
 0x1ee   : > { %v4840_v57 = vmax.f32 %v8679_v61, %v3307_v19  ;;  %v5095_v34 = vmax.f32 %v4839_v51, %v4967_v39  ;;  %v4968_v10 = vmax.f32 %v8682_v63, %v4331_v62  ;;  %v8379_v39 = vld [vmem:[%s8442_s22 + $0x7c8] sm:$0xff]  }
 0x1ef   : > { %7846 = vmatmul.mubr.msk.bf16.gmra.mrb[236].mxu0 %vm1982_vm2, %v8374_v43  ;;  %v5232_v58 = vadd.f32 %v9443_v55, %v5097_v13  ;;  %v5098_v59 = vmax.f32 %v4842_v53, %v4970_v56  ;;  %8102 = vmatmul.mubr.msk.bf16.gmra.mrb[236].mxu1 %vm1982_vm2, %v8375_v27  ;;  %v8378_v27 = vld [vmem:[%s8442_s22 + $0x3c8] sm:$0xff]   ;;  %v8380_v53 = vld [vmem:[%s8442_s22 + $0x3d0] sm:$0xff]  }
 0x1f0   : > { %7849 = vmatprep.mubr.msk.bf16.mxu0 %vm1982_vm2, %v8376_v22  ;;  %v5230_v30 = vadd.f32 %v9443_v55, %v5095_v34  ;;  %v5096_v3 = vmax.f32 %v4840_v57, %v4968_v10  ;;  %8105 = vmatprep.mubr.msk.bf16.mxu1 %vm1982_vm2, %v8377_v18 }
 0x1f1   : > { %v5233_v60 = vadd.f32 %v9443_v55, %v5098_v59  ;;  %v5360_v42 = vmax.f32 %v5232_v58, 0.0 }
 0x1f2   : > { %v7743_v61 = vpop.f32.mrb[132].mxu0  ;;  %v5231_v63 = vadd.f32 %v9443_v55, %v5096_v3  ;;  %v7999_v19 = vpop.f32.mrb[132].mxu1  ;;  %v5358_v31 = vmax.f32 %v5230_v30, 0.0 }
 0x1f3   : > { %v4845_v13 = vmax.f32 %v8689_v1, %v7743_v61  ;;  %v3320_v46 = vpop.f32.mrb[133].mxu0  ;;  %v5361_v43 = vmax.f32 %v5233_v60, 0.0  ;;  %v4973_v10 = vmax.f32 %v8693_v4, %v7999_v19  ;;  %v4344_v18 = vpop.f32.mrb[133].mxu1 }
 0x1f4   : > { %v4843_v51 = vmax.f32 %v8695_v5, %v3320_v46  ;;  %v7744_v22 = vpop.f32.mrb[134].mxu0  ;;  %v5359_v1 = vmax.f32 %v5231_v63, 0.0  ;;  %v4971_v56 = vmax.f32 %v8697_v6, %v4344_v18  ;;  %v8000_v62 = vpop.f32.mrb[134].mxu1  ;;  %v8381_v5 = vld [vmem:[%s8442_s22 + $0x7d0] sm:$0xff]  }
 0x1f5   : > { %v4846_v57 = vmax.f32 %v8699_v7, %v7744_v22  ;;  %v3323_v4 = vpop.f32.mrb[135].mxu0  ;;  %v6972_v34 = vpack.c.bf16 %v5361_v43, %v5360_v42  ;;  %v5101_v58 = vmax.f32 %v4845_v13, %v4973_v10  ;;  %v4974_v59 = vmax.f32 %v8701_v8, %v8000_v62  ;;  %v4347_v3 = vpop.f32.mrb[135].mxu1  ;;  %v8382_v43 = vld [vmem:[%s8442_s22 + $0x3d8] sm:$0xff]  }
 0x1f6   : > { %v4844_v30 = vmax.f32 %v8703_v9, %v3323_v4  ;;  %v6967_v60 = vpack.c.bf16 %v5359_v1, %v5358_v31  ;;  %v5099_v61 = vmax.f32 %v4843_v51, %v4971_v56  ;;  %v4972_v19 = vmax.f32 %v8706_v11, %v4347_v3  ;;  %v8383_v31 = vld [vmem:[%s8442_s22 + $0x7d8] sm:$0xff]   ;;  %v8384_v1 = vld [vmem:[%s8442_s22 + $0x3e0] sm:$0xff]  }
 0x1f7   : > { %7850 = vmatmul.mubr.msk.bf16.gmra.mrb[240].mxu0 %vm1982_vm2, %v8378_v27  ;;  %7284 = vst [vmem:[%s9472_s29 + $0x8] sm:$0xff] %v6972_v34   ;;  %v5236_v6 = vadd.f32 %v9443_v55, %v5101_v58  ;;  %v5102_v7 = vmax.f32 %v4846_v57, %v4974_v59  ;;  %8106 = vmatmul.mubr.msk.bf16.gmra.mrb[240].mxu1 %vm1982_vm2, %v8379_v39  ;;  %v8385_v34 = vld [vmem:[%s8442_s22 + $0x7e0] sm:$0xff]  }
 0x1f8   : > { %7853 = vmatprep.mubr.msk.bf16.mxu0 %vm1982_vm2, %v8380_v53  ;;  %6968 = vst [vmem:[%s9472_s29] sm:$0xff] %v6967_v60   ;;  %v5234_v8 = vadd.f32 %v9443_v55, %v5099_v61  ;;  %v5100_v9 = vmax.f32 %v4844_v30, %v4972_v19  ;;  %8109 = vmatprep.mubr.msk.bf16.mxu1 %vm1982_vm2, %v8381_v5 }
 0x1f9   : > { %v5237_v11 = vadd.f32 %v9443_v55, %v5102_v7  ;;  %v5364_v10 = vmax.f32 %v5236_v6, 0.0 }
 0x1fa   : > { %v7747_v63 = vpop.f32.mrb[136].mxu0  ;;  %v5235_v13 = vadd.f32 %v9443_v55, %v5100_v9  ;;  %v8003_v27 = vpop.f32.mrb[136].mxu1  ;;  %v5362_v56 = vmax.f32 %v5234_v8, 0.0 }
 0x1fb   : > { %v4849_v46 = vmax.f32 %v8712_v12, %v7747_v63  ;;  %v3336_v42 = vpop.f32.mrb[137].mxu0  ;;  %v5365_v51 = vmax.f32 %v5237_v11, 0.0  ;;  %v4977_v18 = vmax.f32 %v8715_v14, %v8003_v27  ;;  %v4360_v39 = vpop.f32.mrb[137].mxu1  ;;  %v8386_v11 = vld [vmem:[%s8442_s22 + $0x3e8] sm:$0xff]  }
 0x1fc   : > { %v4847_v22 = vmax.f32 %v8717_v15, %v3336_v42  ;;  %v7748_v53 = vpop.f32.mrb[138].mxu0  ;;  %v5363_v57 = vmax.f32 %v5235_v13, 0.0  ;;  %v4975_v62 = vmax.f32 %v8719_v16, %v4360_v39  ;;  %v8004_v4 = vpop.f32.mrb[138].mxu1 }
 0x1fd   : > { %v4850_v12 = vmax.f32 %v8721_v17, %v7748_v53  ;;  %v3339_v5 = vpop.f32.mrb[139].mxu0  ;;  %v6982_v58 = vpack.c.bf16 %v5365_v51, %v5364_v10  ;;  %v5105_v59 = vmax.f32 %v4849_v46, %v4977_v18  ;;  %v4978_v14 = vmax.f32 %v8725_v20, %v8004_v4  ;;  %v4363_v30 = vpop.f32.mrb[139].mxu1  ;;  %v8387_v10 = vld [vmem:[%s8442_s22 + $0x7e8] sm:$0xff]   ;;  %v8388_v51 = vld [vmem:[%s8442_s22 + $0x3f0] sm:$0xff]  }
 0x1fe   : > { %v4848_v15 = vmax.f32 %v8727_v21, %v3339_v5  ;;  %v6977_v3 = vpack.c.bf16 %v5363_v57, %v5362_v56  ;;  %v5103_v60 = vmax.f32 %v4847_v22, %v4975_v62  ;;  %v4976_v61 = vmax.f32 %v8730_v23, %v4363_v30  ;;  %v8390_v30 = vld [vmem:[%s8442_s22 + $0x3f8] sm:$0xff]  }
 0x1ff   : > { %7854 = vmatmul.mubr.msk.bf16.gmra.mrb[244].mxu0 %vm1982_vm2, %v8382_v43  ;;  %7286 = vst [vmem:[%s9472_s29 + $0x18] sm:$0xff] %v6982_v58   ;;  %v5240_v16 = vadd.f32 %v9443_v55, %v5105_v59  ;;  %v5106_v17 = vmax.f32 %v4850_v12, %v4978_v14  ;;  %8110 = vmatmul.mubr.msk.bf16.gmra.mrb[244].mxu1 %vm1982_vm2, %v8383_v31 }
 0x200   : > { %7857 = vmatprep.mubr.msk.bf16.mxu0 %vm1982_vm2, %v8384_v1  ;;  %7285 = vst [vmem:[%s9472_s29 + $0x10] sm:$0xff] %v6977_v3   ;;  %v5238_v20 = vadd.f32 %v9443_v55, %v5103_v60  ;;  %v5104_v21 = vmax.f32 %v4848_v15, %v4976_v61  ;;  %8113 = vmatprep.mubr.msk.bf16.mxu1 %vm1982_vm2, %v8385_v34  ;;  %v8389_v1 = vld [vmem:[%s8442_s22 + $0x7f0] sm:$0xff]  }
 0x201   : > { %v5241_v23 = vadd.f32 %v9443_v55, %v5106_v17  ;;  %v5368_v63 = vmax.f32 %v5240_v16, 0.0 }
 0x202   : > { %v7751_v19 = vpop.f32.mrb[140].mxu0  ;;  %v5239_v6 = vadd.f32 %v9443_v55, %v5104_v21  ;;  %v8007_v8 = vpop.f32.mrb[140].mxu1  ;;  %v5366_v18 = vmax.f32 %v5238_v20, 0.0  ;;  %v8391_v21 = vld [vmem:[%s8442_s22 + $0x7f8] sm:$0xff]  }
 0x203   : > { %v4853_v7 = vmax.f32 %v8736_v24, %v7751_v19  ;;  %v3352_v9 = vpop.f32.mrb[141].mxu0  ;;  %v5369_v13 = vmax.f32 %v5241_v23, 0.0  ;;  %v4981_v46 = vmax.f32 %v8738_v25, %v8007_v8  ;;  %v4376_v42 = vpop.f32.mrb[141].mxu1 }
 0x204   : > { %v4851_v27 = vmax.f32 %v8740_v26, %v3352_v9  ;;  %v7752_v43 = vpop.f32.mrb[142].mxu0  ;;  %v5367_v22 = vmax.f32 %v5239_v6, 0.0  ;;  %v4979_v39 = vmax.f32 %v8743_v28, %v4376_v42  ;;  %v8008_v53 = vpop.f32.mrb[142].mxu1 }
 0x205   : > { %v4854_v24 = vmax.f32 %v8745_v29, %v7752_v43  ;;  %v3355_v31 = vpop.f32.mrb[143].mxu0  ;;  %v6992_v56 = vpack.c.bf16 %v5369_v13, %v5368_v63  ;;  %v5109_v57 = vmax.f32 %v4853_v7, %v4981_v46  ;;  %v4982_v25 = vmax.f32 %v8749_v32, %v8008_v53  ;;  %v4379_v62 = vpop.f32.mrb[143].mxu1 }
 0x206   : > { %v4852_v26 = vmax.f32 %v8751_v33, %v3355_v31  ;;  %v6987_v12 = vpack.c.bf16 %v5367_v22, %v5366_v18  ;;  %v5107_v4 = vmax.f32 %v4851_v27, %v4979_v39  ;;  %v4980_v5 = vmax.f32 %v8754_v35, %v4379_v62 }
 0x207   : > { %7858 = vmatmul.mubr.msk.bf16.gmra.mrb[248].mxu0 %vm1982_vm2, %v8386_v11  ;;  %7288 = vst [vmem:[%s9472_s29 + $0x28] sm:$0xff] %v6992_v56   ;;  %v5244_v28 = vadd.f32 %v9443_v55, %v5109_v57  ;;  %v5110_v29 = vmax.f32 %v4854_v24, %v4982_v25  ;;  %8114 = vmatmul.mubr.msk.bf16.gmra.mrb[248].mxu1 %vm1982_vm2, %v8387_v10 }
 0x208   : > { %7861 = vmatprep.mubr.msk.bf16.mxu0 %vm1982_vm2, %v8388_v51  ;;  %7287 = vst [vmem:[%s9472_s29 + $0x20] sm:$0xff] %v6987_v12   ;;  %v5242_v32 = vadd.f32 %v9443_v55, %v5107_v4  ;;  %v5108_v33 = vmax.f32 %v4852_v26, %v4980_v5  ;;  %8117 = vmatprep.mubr.msk.bf16.mxu1 %vm1982_vm2, %v8389_v1 }
 0x209   : > { %v5245_v35 = vadd.f32 %v9443_v55, %v5110_v29  ;;  %v5372_v3 = vmax.f32 %v5244_v28, 0.0 }
 0x20a   : > { %v7755_v34 = vpop.f32.mrb[144].mxu0  ;;  %v5243_v58 = vadd.f32 %v9443_v55, %v5108_v33  ;;  %v8011_v14 = vpop.f32.mrb[144].mxu1  ;;  %v5370_v23 = vmax.f32 %v5242_v32, 0.0  ;;  %v10152_v32 = vld [vmem:[#allocation2_spill] sm:$0xff] }
 0x20b   : > { %v4857_v59 = vmax.f32 %v8760_v36, %v7755_v34  ;;  %v3368_v15 = vpop.f32.mrb[145].mxu0  ;;  %v5373_v60 = vmax.f32 %v5245_v35, 0.0  ;;  %v4985_v61 = vmax.f32 %v8762_v37, %v8011_v14  ;;  %v4392_v17 = vpop.f32.mrb[145].mxu1  ;;  %v10153_v14 = vld [vmem:[#allocation3_spill] sm:$0xff] }
 0x20c   : > { %v4855_v16 = vmax.f32 %v8764_v38, %v3368_v15  ;;  %v7756_v20 = vpop.f32.mrb[146].mxu0  ;;  %v5371_v19 = vmax.f32 %v5243_v58, 0.0  ;;  %v4983_v6 = vmax.f32 %v8767_v40, %v4392_v17  ;;  %v8012_v36 = vpop.f32.mrb[146].mxu1  ;;  %v10155_v17 = vld [vmem:[#allocation5_spill] sm:$0xff] }
 0x20d   : > { %v4858_v7 = vmax.f32 %v8769_v41, %v7756_v20  ;;  %v3371_v8 = vpop.f32.mrb[147].mxu0  ;;  %v7002_v9 = vpack.c.bf16 %v5373_v60, %v5372_v3  ;;  %v5113_v11 = vmax.f32 %v4857_v59, %v4985_v61  ;;  %v4986_v63 = vmax.f32 %v8773_v44, %v8012_v36  ;;  %v4395_v38 = vpop.f32.mrb[147].mxu1  ;;  %v10154_v61 = vld [vmem:[#allocation4_spill] sm:$0xff] }
 0x20e   : > { %v4856_v37 = vmax.f32 %v8775_v45, %v3371_v8  ;;  %v6997_v13 = vpack.c.bf16 %v5371_v19, %v5370_v23  ;;  %v5111_v46 = vmax.f32 %v4855_v16, %v4983_v6  ;;  %v4984_v27 = vmax.f32 %v8778_v47, %v4395_v38  ;;  %v10157_v8 = vld [vmem:[#allocation7_spill] sm:$0xff] }
 0x20f   : > { %7862 = vmatmul.mubr.msk.bf16.gmra.mrb[252].mxu0 %vm1982_vm2, %v8390_v30  ;;  %7290 = vst [vmem:[%s9472_s29 + $0x38] sm:$0xff] %v7002_v9   ;;  %v5248_v40 = vadd.f32 %v9443_v55, %v5113_v11  ;;  %v5114_v41 = vmax.f32 %v4858_v7, %v4986_v63  ;;  %8118 = vmatmul.mubr.msk.bf16.gmra.mrb[252].mxu1 %vm1982_vm2, %v8391_v21  ;;  %v10156_v7 = vld [vmem:[#allocation6_spill] sm:$0xff] }
 0x210   : > { %7289 = vst [vmem:[%s9472_s29 + $0x30] sm:$0xff] %v6997_v13   ;;  %v5246_v42 = vadd.f32 %v9443_v55, %v5111_v46  ;;  %v5112_v43 = vmax.f32 %v4856_v37, %v4984_v27  ;;  %v10158_v13 = vld [vmem:[#allocation8_spill] sm:$0xff]  ;;  %v10159_v27 = vld [vmem:[#allocation9_spill] sm:$0xff] }
 0x211   : > { %v5249_v44 = vadd.f32 %v9443_v55, %v5114_v41  ;;  %v5376_v22 = vmax.f32 %v5248_v40, 0.0 }
 0x212   : > { %v7759_v45 = vpop.f32.mrb[148].mxu0  ;;  %v5247_v10 = vadd.f32 %v9443_v55, %v5112_v43  ;;  %v8015_v47 = vpop.f32.mrb[148].mxu1  ;;  %v5374_v56 = vmax.f32 %v5246_v42, 0.0 }
 0x213   : > { %v4861_v51 = vmax.f32 %v8784_v48, %v7759_v45  ;;  %v3384_v18 = vpop.f32.mrb[149].mxu0  ;;  %v5377_v39 = vmax.f32 %v5249_v44, 0.0  ;;  %v4989_v24 = vmax.f32 %v8786_v49, %v8015_v47  ;;  %v4408_v31 = vpop.f32.mrb[149].mxu1  ;;  %v10160_v44 = vld [vmem:[#allocation10_spill] sm:$0xff] }
 0x214   : > { %v4859_v53 = vmax.f32 %v8788_v50, %v3384_v18  ;;  %v7760_v1 = vpop.f32.mrb[150].mxu0  ;;  %v5375_v57 = vmax.f32 %v5247_v10, 0.0  ;;  %v4987_v25 = vmax.f32 %v8791_v52, %v4408_v31  ;;  %v8016_v62 = vpop.f32.mrb[150].mxu1 }
 0x215   : > { %v4862_v26 = vmax.f32 %v8793_v54, %v7760_v1  ;;  %v3387_v48 = vpop.f32.mrb[151].mxu0  ;;  %v7012_v12 = vpack.c.bf16 %v5377_v39, %v5376_v22  ;;  %v5117_v4 = vmax.f32 %v4861_v51, %v4989_v24  ;;  %v4990_v5 = vmax.f32 %v8797_v0, %v8016_v62  ;;  %v4411_v28 = vpop.f32.mrb[151].mxu1 }
 0x216   : > { %v4860_v49 = vmax.f32 %v8799_v2, %v3387_v48  ;;  %v7007_v50 = vpack.c.bf16 %v5375_v57, %v5374_v56  ;;  %v5115_v29 = vmax.f32 %v4859_v53, %v4987_v25  ;;  %v4988_v33 = vmax.f32 %v10152_v32, %v4411_v28  ;;  %v10161_v53 = vld [vmem:[#allocation11_spill] sm:$0xff]  ;;  %v10163_v48 = vld [vmem:[#allocation13_spill] sm:$0xff] }
 0x217   : > { %7292 = vst [vmem:[%s9472_s29 + $0x48] sm:$0xff] %v7012_v12   ;;  %v5252_v35 = vadd.f32 %v9443_v55, %v5117_v4  ;;  %v5118_v34 = vmax.f32 %v4862_v26, %v4990_v5  ;;  %v10162_v26 = vld [vmem:[#allocation12_spill] sm:$0xff]  ;;  %v10165_v32 = vld [vmem:[#allocation15_spill] sm:$0xff] }
 0x218   : > { %7291 = vst [vmem:[%s9472_s29 + $0x40] sm:$0xff] %v7007_v50   ;;  %v5250_v52 = vadd.f32 %v9443_v55, %v5115_v29  ;;  %v5116_v54 = vmax.f32 %v4860_v49, %v4988_v33  ;;  %v10164_v50 = vld [vmem:[#allocation14_spill] sm:$0xff] }
 0x219   : > { %v5253_v58 = vadd.f32 %v9443_v55, %v5118_v34  ;;  %v5380_v3 = vmax.f32 %v5252_v35, 0.0 }
 0x21a   : > { %v7763_v59 = vpop.f32.mrb[152].mxu0  ;;  %v5251_v0 = vadd.f32 %v9443_v55, %v5116_v54  ;;  %v8019_v15 = vpop.f32.mrb[152].mxu1  ;;  %v5378_v19 = vmax.f32 %v5250_v52, 0.0 }
 0x21b   : > { %v4865_v2 = vmax.f32 %v10153_v14, %v7763_v59  ;;  %v3400_v30 = vpop.f32.mrb[153].mxu0  ;;  %v5381_v60 = vmax.f32 %v5253_v58, 0.0  ;;  %v4993_v16 = vmax.f32 %v10154_v61, %v8019_v15  ;;  %v4424_v21 = vpop.f32.mrb[153].mxu1  ;;  %v10166_v58 = vld [vmem:[#allocation16_spill] sm:$0xff] }
 0x21c   : > { %v4863_v20 = vmax.f32 %v10155_v17, %v3400_v30  ;;  %v7764_v23 = vpop.f32.mrb[154].mxu0  ;;  %v5379_v6 = vmax.f32 %v5251_v0, 0.0  ;;  %v4991_v36 = vmax.f32 %v10156_v7, %v4424_v21  ;;  %v8020_v11 = vpop.f32.mrb[154].mxu1  ;;  %v10167_v0 = vld [vmem:[#allocation17_spill] sm:$0xff] }
 0x21d   : > { %v4866_v9 = vmax.f32 %v10157_v8, %v7764_v23  ;;  %v3403_v63 = vpop.f32.mrb[155].mxu0  ;;  %v7022_v37 = vpack.c.bf16 %v5381_v60, %v5380_v3  ;;  %v5121_v38 = vmax.f32 %v4865_v2, %v4993_v16  ;;  %v4994_v46 = vmax.f32 %v10158_v13, %v8020_v11  ;;  %v4427_v41 = vpop.f32.mrb[155].mxu1  ;;  %v10168_v3 = vld [vmem:[#allocation18_spill] sm:$0xff] }
 0x21e   : > { %v4864_v40 = vmax.f32 %v10159_v27, %v3403_v63  ;;  %v7017_v42 = vpack.c.bf16 %v5379_v6, %v5378_v19  ;;  %v5119_v43 = vmax.f32 %v4863_v20, %v4991_v36  ;;  %v4992_v45 = vmax.f32 %v10160_v44, %v4427_v41  ;;  %v10169_v6 = vld [vmem:[#allocation19_spill] sm:$0xff]  ;;  %v10170_v63 = vld [vmem:[#allocation20_spill] sm:$0xff] }
 0x21f   : > { %7294 = vst [vmem:[%s9472_s29 + $0x58] sm:$0xff] %v7022_v37   ;;  %v5256_v10 = vadd.f32 %v9443_v55, %v5121_v38  ;;  %v5122_v51 = vmax.f32 %v4866_v9, %v4994_v46  ;;  %v10171_v38 = vld [vmem:[#allocation21_spill] sm:$0xff]  ;;  %v10173_v44 = vld [vmem:[#allocation23_spill] sm:$0xff] }
 0x220   : > { %7293 = vst [vmem:[%s9472_s29 + $0x50] sm:$0xff] %v7017_v42   ;;  %v5254_v47 = vadd.f32 %v9443_v55, %v5119_v43  ;;  %v5120_v18 = vmax.f32 %v4864_v40, %v4992_v45  ;;  %v10172_v42 = vld [vmem:[#allocation22_spill] sm:$0xff] }
 0x221   : > { %v5257_v22 = vadd.f32 %v9443_v55, %v5122_v51  ;;  %v5384_v57 = vmax.f32 %v5256_v10, 0.0 }
 0x222   : > { %v7767_v39 = vpop.f32.mrb[156].mxu0  ;;  %v5255_v24 = vadd.f32 %v9443_v55, %v5120_v18  ;;  %v8023_v1 = vpop.f32.mrb[156].mxu1  ;;  %v5382_v49 = vmax.f32 %v5254_v47, 0.0 }
 0x223   : > { %v4869_v31 = vmax.f32 %v10161_v53, %v7767_v39  ;;  %v3416_v56 = vpop.f32.mrb[157].mxu0  ;;  %v5385_v25 = vmax.f32 %v5257_v22, 0.0  ;;  %v4997_v62 = vmax.f32 %v10162_v26, %v8023_v1  ;;  %v4440_v4 = vpop.f32.mrb[157].mxu1  ;;  %v10174_v22 = vld [vmem:[#allocation24_spill] sm:$0xff] }
 0x224   : > { %v4867_v12 = vmax.f32 %v10163_v48, %v3416_v56  ;;  %v7768_v5 = vpop.f32.mrb[158].mxu0  ;;  %v5383_v28 = vmax.f32 %v5255_v24, 0.0  ;;  %v4995_v29 = vmax.f32 %v10164_v50, %v4440_v4  ;;  %v8024_v35 = vpop.f32.mrb[158].mxu1  ;;  %v10175_v24 = vld [vmem:[#allocation25_spill] sm:$0xff] }
 0x225   : > { %v4870_v33 = vmax.f32 %v10165_v32, %v7768_v5  ;;  %v3419_v34 = vpop.f32.mrb[159].mxu0  ;;  %v7032_v52 = vpack.c.bf16 %v5385_v25, %v5384_v57  ;;  %v5125_v54 = vmax.f32 %v4869_v31, %v4997_v62  ;;  %v4998_v59 = vmax.f32 %v10166_v58, %v8024_v35  ;;  %v4443_v2 = vpop.f32.mrb[159].mxu1  ;;  %v10176_v57 = vld [vmem:[#allocation26_spill] sm:$0xff] }
 0x226   : > { %v4868_v14 = vmax.f32 %v10167_v0, %v3419_v34  ;;  %v7027_v15 = vpack.c.bf16 %v5383_v28, %v5382_v49  ;;  %v5123_v30 = vmax.f32 %v4867_v12, %v4995_v29  ;;  %v4996_v60 = vmax.f32 %v10168_v3, %v4443_v2  ;;  %v10177_v28 = vld [vmem:[#allocation27_spill] sm:$0xff]  ;;  %v10178_v34 = vld [vmem:[#allocation28_spill] sm:$0xff] }
 0x227   : > { %7296 = vst [vmem:[%s9472_s29 + $0x68] sm:$0xff] %v7032_v52   ;;  %v5260_v61 = vadd.f32 %v9443_v55, %v5125_v54  ;;  %v5126_v16 = vmax.f32 %v4870_v33, %v4998_v59  ;;  %v10179_v54 = vld [vmem:[#allocation29_spill] sm:$0xff]  ;;  %v10181_v3 = vld [vmem:[#allocation31_spill] sm:$0xff] }
 0x228   : > { %7295 = vst [vmem:[%s9472_s29 + $0x60] sm:$0xff] %v7027_v15   ;;  %v5258_v17 = vadd.f32 %v9443_v55, %v5123_v30  ;;  %v5124_v20 = vmax.f32 %v4868_v14, %v4996_v60  ;;  %v10180_v15 = vld [vmem:[#allocation30_spill] sm:$0xff] }
 0x229   : > { %v5261_v21 = vadd.f32 %v9443_v55, %v5126_v16  ;;  %v5388_v9 = vmax.f32 %v5260_v61, 0.0 }
 0x22a   : > { %v7771_v23 = vpop.f32.mrb[160].mxu0  ;;  %v5259_v19 = vadd.f32 %v9443_v55, %v5124_v20  ;;  %v8027_v36 = vpop.f32.mrb[160].mxu1  ;;  %v5386_v40 = vmax.f32 %v5258_v17, 0.0 }
 0x22b   : > { %v4873_v7 = vmax.f32 %v10169_v6, %v7771_v23  ;;  %v3432_v8 = vpop.f32.mrb[161].mxu0  ;;  %v5389_v11 = vmax.f32 %v5261_v21, 0.0  ;;  %v5001_v37 = vmax.f32 %v10170_v63, %v8027_v36  ;;  %v4456_v46 = vpop.f32.mrb[161].mxu1  ;;  %v10182_v21 = vld [vmem:[#allocation32_spill] sm:$0xff] }
 0x22c   : > { %v4871_v13 = vmax.f32 %v10171_v38, %v3432_v8  ;;  %v7772_v27 = vpop.f32.mrb[162].mxu0  ;;  %v5387_v41 = vmax.f32 %v5259_v19, 0.0  ;;  %v4999_v43 = vmax.f32 %v10172_v42, %v4456_v46  ;;  %v8028_v10 = vpop.f32.mrb[162].mxu1  ;;  %v10183_v19 = vld [vmem:[#allocation33_spill] sm:$0xff] }
 0x22d   : > { %v4874_v45 = vmax.f32 %v10173_v44, %v7772_v27  ;;  %v3435_v51 = vpop.f32.mrb[163].mxu0  ;;  %v7042_v47 = vpack.c.bf16 %v5389_v11, %v5388_v9  ;;  %v5129_v18 = vmax.f32 %v4873_v7, %v5001_v37  ;;  %v5002_v39 = vmax.f32 %v10174_v22, %v8028_v10  ;;  %v4459_v31 = vpop.f32.mrb[163].mxu1  ;;  %v10184_v9 = vld [vmem:[#allocation34_spill] sm:$0xff] }
 0x22e   : > { %v4872_v53 = vmax.f32 %v10175_v24, %v3435_v51  ;;  %v7037_v1 = vpack.c.bf16 %v5387_v41, %v5386_v40  ;;  %v5127_v56 = vmax.f32 %v4871_v13, %v4999_v43  ;;  %v5000_v25 = vmax.f32 %v10176_v57, %v4459_v31  ;;  %v10185_v41 = vld [vmem:[#allocation35_spill] sm:$0xff]  ;;  %v10186_v51 = vld [vmem:[#allocation36_spill] sm:$0xff] }
 0x22f   : > { %7298 = vst [vmem:[%s9472_s29 + $0x78] sm:$0xff] %v7042_v47   ;;  %v5264_v26 = vadd.f32 %v9443_v55, %v5129_v18  ;;  %v5130_v62 = vmax.f32 %v4874_v45, %v5002_v39  ;;  %v10187_v18 = vld [vmem:[#allocation37_spill] sm:$0xff]  ;;  %v10189_v57 = vld [vmem:[#allocation39_spill] sm:$0xff] }
 0x230   : > { %7297 = vst [vmem:[%s9472_s29 + $0x70] sm:$0xff] %v7037_v1   ;;  %v5262_v48 = vadd.f32 %v9443_v55, %v5127_v56  ;;  %v5128_v12 = vmax.f32 %v4872_v53, %v5000_v25  ;;  %v10188_v1 = vld [vmem:[#allocation38_spill] sm:$0xff] }
 0x231   : > { %v5265_v4 = vadd.f32 %v9443_v55, %v5130_v62  ;;  %v5392_v33 = vmax.f32 %v5264_v26, 0.0 }
 0x232   : > { %v7775_v5 = vpop.f32.mrb[164].mxu0  ;;  %v5263_v49 = vadd.f32 %v9443_v55, %v5128_v12  ;;  %v8031_v29 = vpop.f32.mrb[164].mxu1  ;;  %v5390_v14 = vmax.f32 %v5262_v48, 0.0 }
 0x233   : > { %v4877_v50 = vmax.f32 %v10177_v28, %v7775_v5  ;;  %v3448_v32 = vpop.f32.mrb[165].mxu0  ;;  %v5393_v35 = vmax.f32 %v5265_v4, 0.0  ;;  %v5005_v52 = vmax.f32 %v10178_v34, %v8031_v29  ;;  %v4472_v59 = vpop.f32.mrb[165].mxu1  ;;  %v10190_v4 = vld [vmem:[#allocation40_spill] sm:$0xff] }
 0x234   : > { %v4875_v58 = vmax.f32 %v10179_v54, %v3448_v32  ;;  %v7776_v0 = vpop.f32.mrb[166].mxu0  ;;  %v5391_v2 = vmax.f32 %v5263_v49, 0.0  ;;  %v5003_v30 = vmax.f32 %v10180_v15, %v4472_v59  ;;  %v8032_v61 = vpop.f32.mrb[166].mxu1  ;;  %v10191_v49 = vld [vmem:[#allocation41_spill] sm:$0xff] }
 0x235   : > { %v4878_v60 = vmax.f32 %v10181_v3, %v7776_v0  ;;  %v3451_v16 = vpop.f32.mrb[167].mxu0  ;;  %v7052_v17 = vpack.c.bf16 %v5393_v35, %v5392_v33  ;;  %v5133_v20 = vmax.f32 %v4877_v50, %v5005_v52  ;;  %v5006_v23 = vmax.f32 %v10182_v21, %v8032_v61  ;;  %v4475_v7 = vpop.f32.mrb[167].mxu1  ;;  %v10192_v33 = vld [vmem:[#allocation42_spill] sm:$0xff] }
 0x236   : > { %v4876_v6 = vmax.f32 %v10183_v19, %v3451_v16  ;;  %v7047_v36 = vpack.c.bf16 %v5391_v2, %v5390_v14  ;;  %v5131_v8 = vmax.f32 %v4875_v58, %v5003_v30  ;;  %v5004_v11 = vmax.f32 %v10184_v9, %v4475_v7  ;;  %v10193_v2 = vld [vmem:[#allocation43_spill] sm:$0xff]  ;;  %v10194_v16 = vld [vmem:[#allocation44_spill] sm:$0xff] }
 0x237   : > { %7300 = vst [vmem:[%s9472_s29 + $0x88] sm:$0xff] %v7052_v17   ;;  %v5268_v63 = vadd.f32 %v9443_v55, %v5133_v20  ;;  %v5134_v37 = vmax.f32 %v4878_v60, %v5006_v23  ;;  %v10195_v20 = vld [vmem:[#allocation45_spill] sm:$0xff]  ;;  %v10197_v9 = vld [vmem:[#allocation47_spill] sm:$0xff] }
 0x238   : > { %7299 = vst [vmem:[%s9472_s29 + $0x80] sm:$0xff] %v7047_v36   ;;  %v5266_v38 = vadd.f32 %v9443_v55, %v5131_v8  ;;  %v5132_v13 = vmax.f32 %v4876_v6, %v5004_v11  ;;  %v10196_v36 = vld [vmem:[#allocation46_spill] sm:$0xff] }
 0x239   : > { %v5269_v46 = vadd.f32 %v9443_v55, %v5134_v37  ;;  %v5396_v45 = vmax.f32 %v5268_v63, 0.0 }
 0x23a   : > { %v7779_v27 = vpop.f32.mrb[168].mxu0  ;;  %v5267_v40 = vadd.f32 %v9443_v55, %v5132_v13  ;;  %v8035_v43 = vpop.f32.mrb[168].mxu1  ;;  %v5394_v53 = vmax.f32 %v5266_v38, 0.0 }
 0x23b   : > { %v4881_v42 = vmax.f32 %v10185_v41, %v7779_v27  ;;  %v3464_v44 = vpop.f32.mrb[169].mxu0  ;;  %v5397_v10 = vmax.f32 %v5269_v46, 0.0  ;;  %v5009_v47 = vmax.f32 %v10186_v51, %v8035_v43  ;;  %v4488_v39 = vpop.f32.mrb[169].mxu1  ;;  %v10198_v46 = vld [vmem:[#allocation48_spill] sm:$0xff] }
 0x23c   : > { %v4879_v22 = vmax.f32 %v10187_v18, %v3464_v44  ;;  %v7780_v24 = vpop.f32.mrb[170].mxu0  ;;  %v5395_v31 = vmax.f32 %v5267_v40, 0.0  ;;  %v5007_v56 = vmax.f32 %v10188_v1, %v4488_v39  ;;  %v8036_v26 = vpop.f32.mrb[170].mxu1  ;;  %v10199_v40 = vld [vmem:[#allocation49_spill] sm:$0xff] }
 0x23d   : > { %v4882_v25 = vmax.f32 %v10189_v57, %v7780_v24  ;;  %v3467_v62 = vpop.f32.mrb[171].mxu0  ;;  %v7062_v48 = vpack.c.bf16 %v5397_v10, %v5396_v45  ;;  %v5137_v12 = vmax.f32 %v4881_v42, %v5009_v47  ;;  %v5010_v5 = vmax.f32 %v10190_v4, %v8036_v26  ;;  %v4491_v50 = vpop.f32.mrb[171].mxu1  ;;  %v10200_v45 = vld [vmem:[#allocation50_spill] sm:$0xff] }
 0x23e   : > { %v4880_v28 = vmax.f32 %v10191_v49, %v3467_v62  ;;  %v7057_v29 = vpack.c.bf16 %v5395_v31, %v5394_v53  ;;  %v5135_v32 = vmax.f32 %v4879_v22, %v5007_v56  ;;  %v5008_v35 = vmax.f32 %v10192_v33, %v4491_v50  ;;  %v10201_v31 = vld [vmem:[#allocation51_spill] sm:$0xff]  ;;  %v10202_v62 = vld [vmem:[#allocation52_spill] sm:$0xff] }
 0x23f   : > { %7302 = vst [vmem:[%s9472_s29 + $0x98] sm:$0xff] %v7062_v48   ;;  %v5272_v34 = vadd.f32 %v9443_v55, %v5137_v12  ;;  %v5138_v52 = vmax.f32 %v4882_v25, %v5010_v5  ;;  %v10203_v12 = vld [vmem:[#allocation53_spill] sm:$0xff]  ;;  %v10205_v33 = vld [vmem:[#allocation55_spill] sm:$0xff] }
 0x240   : > { %7301 = vst [vmem:[%s9472_s29 + $0x90] sm:$0xff] %v7057_v29   ;;  %v5270_v54 = vadd.f32 %v9443_v55, %v5135_v32  ;;  %v5136_v58 = vmax.f32 %v4880_v28, %v5008_v35  ;;  %v10204_v29 = vld [vmem:[#allocation54_spill] sm:$0xff] }
 0x241   : > { %v5273_v59 = vadd.f32 %v9443_v55, %v5138_v52  ;;  %v5400_v60 = vmax.f32 %v5272_v34, 0.0 }
 0x242   : > { %v7783_v0 = vpop.f32.mrb[172].mxu0  ;;  %v5271_v14 = vadd.f32 %v9443_v55, %v5136_v58  ;;  %v8039_v30 = vpop.f32.mrb[172].mxu1  ;;  %v5398_v6 = vmax.f32 %v5270_v54, 0.0 }
 0x243   : > { %v4885_v15 = vmax.f32 %v10193_v2, %v7783_v0  ;;  %v3480_v3 = vpop.f32.mrb[173].mxu0  ;;  %v5401_v61 = vmax.f32 %v5273_v59, 0.0  ;;  %v5013_v17 = vmax.f32 %v10194_v16, %v8039_v30  ;;  %v4504_v23 = vpop.f32.mrb[173].mxu1  ;;  %v10206_v59 = vld [vmem:[#allocation56_spill] sm:$0xff] }
 0x244   : > { %v4883_v21 = vmax.f32 %v10195_v20, %v3480_v3  ;;  %v7784_v19 = vpop.f32.mrb[174].mxu0  ;;  %v5399_v7 = vmax.f32 %v5271_v14, 0.0  ;;  %v5011_v8 = vmax.f32 %v10196_v36, %v4504_v23  ;;  %v8040_v63 = vpop.f32.mrb[174].mxu1  ;;  %v10207_v14 = vld [vmem:[#allocation57_spill] sm:$0xff] }
 0x245   : > { %v4886_v11 = vmax.f32 %v10197_v9, %v7784_v19  ;;  %v3483_v37 = vpop.f32.mrb[175].mxu0  ;;  %v7072_v38 = vpack.c.bf16 %v5401_v61, %v5400_v60  ;;  %v5141_v13 = vmax.f32 %v4885_v15, %v5013_v17  ;;  %v5014_v27 = vmax.f32 %v10198_v46, %v8040_v63  ;;  %v4507_v42 = vpop.f32.mrb[175].mxu1  ;;  %v10208_v60 = vld [vmem:[#allocation58_spill] sm:$0xff] }
 0x246   : > { %v4884_v41 = vmax.f32 %v10199_v40, %v3483_v37  ;;  %v7067_v43 = vpack.c.bf16 %v5399_v7, %v5398_v6  ;;  %v5139_v44 = vmax.f32 %v4883_v21, %v5011_v8  ;;  %v5012_v10 = vmax.f32 %v10200_v45, %v4507_v42  ;;  %v10209_v7 = vld [vmem:[#allocation59_spill] sm:$0xff]  ;;  %v10210_v37 = vld [vmem:[#allocation60_spill] sm:$0xff] }
 0x247   : > { %7304 = vst [vmem:[%s9472_s29 + $0xa8] sm:$0xff] %v7072_v38   ;;  %v5276_v51 = vadd.f32 %v9443_v55, %v5141_v13  ;;  %v5142_v47 = vmax.f32 %v4886_v11, %v5014_v27  ;;  %v10211_v13 = vld [vmem:[#allocation61_spill] sm:$0xff]  ;;  %v10213_v45 = vld [vmem:[#allocation63_spill] sm:$0xff] }
 0x248   : > { %7303 = vst [vmem:[%s9472_s29 + $0xa0] sm:$0xff] %v7067_v43   ;;  %v5274_v18 = vadd.f32 %v9443_v55, %v5139_v44  ;;  %v5140_v22 = vmax.f32 %v4884_v41, %v5012_v10  ;;  %v10212_v43 = vld [vmem:[#allocation62_spill] sm:$0xff] }
 0x249   : > { %v5277_v39 = vadd.f32 %v9443_v55, %v5142_v47  ;;  %v5404_v25 = vmax.f32 %v5276_v51, 0.0 }
 0x24a   : > { %v7787_v24 = vpop.f32.mrb[176].mxu0  ;;  %v5275_v53 = vadd.f32 %v9443_v55, %v5140_v22  ;;  %v8043_v56 = vpop.f32.mrb[176].mxu1  ;;  %v5402_v28 = vmax.f32 %v5274_v18, 0.0 }
 0x24b   : > { %v4889_v1 = vmax.f32 %v10201_v31, %v7787_v24  ;;  %v3496_v57 = vpop.f32.mrb[177].mxu0  ;;  %v5405_v26 = vmax.f32 %v5277_v39, 0.0  ;;  %v5017_v48 = vmax.f32 %v10202_v62, %v8043_v56  ;;  %v4520_v5 = vpop.f32.mrb[177].mxu1  ;;  %v10214_v39 = vld [vmem:[#allocation64_spill] sm:$0xff] }
 0x24c   : > { %v4887_v4 = vmax.f32 %v10203_v12, %v3496_v57  ;;  %v7788_v49 = vpop.f32.mrb[178].mxu0  ;;  %v5403_v50 = vmax.f32 %v5275_v53, 0.0  ;;  %v5015_v32 = vmax.f32 %v10204_v29, %v4520_v5  ;;  %v8044_v34 = vpop.f32.mrb[178].mxu1  ;;  %v10215_v53 = vld [vmem:[#allocation65_spill] sm:$0xff] }
 0x24d   : > { %v4890_v35 = vmax.f32 %v10205_v33, %v7788_v49  ;;  %v3499_v52 = vpop.f32.mrb[179].mxu0  ;;  %v7082_v54 = vpack.c.bf16 %v5405_v26, %v5404_v25  ;;  %v5145_v58 = vmax.f32 %v4889_v1, %v5017_v48  ;;  %v5018_v0 = vmax.f32 %v10206_v59, %v8044_v34  ;;  %v4523_v15 = vpop.f32.mrb[179].mxu1  ;;  %v10216_v25 = vld [vmem:[#allocation66_spill] sm:$0xff] }
 0x24e   : > { %v4888_v2 = vmax.f32 %v10207_v14, %v3499_v52  ;;  %v7077_v30 = vpack.c.bf16 %v5403_v50, %v5402_v28  ;;  %v5143_v3 = vmax.f32 %v4887_v4, %v5015_v32  ;;  %v5016_v61 = vmax.f32 %v10208_v60, %v4523_v15  ;;  %v10217_v50 = vld [vmem:[#allocation67_spill] sm:$0xff]  ;;  %v10218_v52 = vld [vmem:[#allocation68_spill] sm:$0xff] }
 0x24f   : > { %7306 = vst [vmem:[%s9472_s29 + $0xb8] sm:$0xff] %v7082_v54   ;;  %v5280_v16 = vadd.f32 %v9443_v55, %v5145_v58  ;;  %v5146_v17 = vmax.f32 %v4890_v35, %v5018_v0  ;;  %v10219_v58 = vld [vmem:[#allocation69_spill] sm:$0xff]  ;;  %v10221_v60 = vld [vmem:[#allocation71_spill] sm:$0xff] }
 0x250   : > { %7305 = vst [vmem:[%s9472_s29 + $0xb0] sm:$0xff] %v7077_v30   ;;  %v5278_v20 = vadd.f32 %v9443_v55, %v5143_v3  ;;  %v5144_v21 = vmax.f32 %v4888_v2, %v5016_v61  ;;  %v10220_v30 = vld [vmem:[#allocation70_spill] sm:$0xff] }
 0x251   : > { %v5281_v23 = vadd.f32 %v9443_v55, %v5146_v17  ;;  %v5408_v11 = vmax.f32 %v5280_v16, 0.0 }
 0x252   : > { %v7791_v19 = vpop.f32.mrb[180].mxu0  ;;  %v5279_v6 = vadd.f32 %v9443_v55, %v5144_v21  ;;  %v8047_v8 = vpop.f32.mrb[180].mxu1  ;;  %v5406_v41 = vmax.f32 %v5278_v20, 0.0 }
 0x253   : > { %v4893_v36 = vmax.f32 %v10209_v7, %v7791_v19  ;;  %v3512_v9 = vpop.f32.mrb[181].mxu0  ;;  %v5409_v63 = vmax.f32 %v5281_v23, 0.0  ;;  %v5021_v38 = vmax.f32 %v10210_v37, %v8047_v8  ;;  %v4536_v27 = vpop.f32.mrb[181].mxu1  ;;  %v10222_v23 = vld [vmem:[#allocation72_spill] sm:$0xff] }
 0x254   : > { %v4891_v46 = vmax.f32 %v10211_v13, %v3512_v9  ;;  %v7792_v40 = vpop.f32.mrb[182].mxu0  ;;  %v5407_v42 = vmax.f32 %v5279_v6, 0.0  ;;  %v5019_v44 = vmax.f32 %v10212_v43, %v4536_v27  ;;  %v8048_v51 = vpop.f32.mrb[182].mxu1  ;;  %v10223_v6 = vld [vmem:[#allocation73_spill] sm:$0xff] }
 0x255   : > { %v4894_v10 = vmax.f32 %v10213_v45, %v7792_v40  ;;  %v3515_v47 = vpop.f32.mrb[183].mxu0  ;;  %v7092_v18 = vpack.c.bf16 %v5409_v63, %v5408_v11  ;;  %v5149_v22 = vmax.f32 %v4893_v36, %v5021_v38  ;;  %v5022_v24 = vmax.f32 %v10214_v39, %v8048_v51  ;;  %v4539_v1 = vpop.f32.mrb[183].mxu1  ;;  %v10224_v11 = vld [vmem:[#allocation74_spill] sm:$0xff] }
 0x256   : > { %v4892_v31 = vmax.f32 %v10215_v53, %v3515_v47  ;;  %v7087_v56 = vpack.c.bf16 %v5407_v42, %v5406_v41  ;;  %v5147_v57 = vmax.f32 %v4891_v46, %v5019_v44  ;;  %v5020_v26 = vmax.f32 %v10216_v25, %v4539_v1  ;;  %v10225_v42 = vld [vmem:[#allocation75_spill] sm:$0xff]  ;;  %v10226_v47 = vld [vmem:[#allocation76_spill] sm:$0xff] }
 0x257   : > { %7308 = vst [vmem:[%s9472_s29 + $0xc8] sm:$0xff] %v7092_v18   ;;  %v5284_v62 = vadd.f32 %v9443_v55, %v5149_v22  ;;  %v5150_v48 = vmax.f32 %v4894_v10, %v5022_v24  ;;  %v10227_v22 = vld [vmem:[#allocation77_spill] sm:$0xff]  ;;  %v10229_v25 = vld [vmem:[#allocation79_spill] sm:$0xff] }
 0x258   : > { %7307 = vst [vmem:[%s9472_s29 + $0xc0] sm:$0xff] %v7087_v56   ;;  %v5282_v12 = vadd.f32 %v9443_v55, %v5147_v57  ;;  %v5148_v4 = vmax.f32 %v4892_v31, %v5020_v26  ;;  %v10228_v56 = vld [vmem:[#allocation78_spill] sm:$0xff] }
 0x259   : > { %v5285_v5 = vadd.f32 %v9443_v55, %v5150_v48  ;;  %v5412_v35 = vmax.f32 %v5284_v62, 0.0 }
 0x25a   : > { %v7795_v49 = vpop.f32.mrb[184].mxu0  ;;  %v5283_v28 = vadd.f32 %v9443_v55, %v5148_v4  ;;  %v8051_v32 = vpop.f32.mrb[184].mxu1  ;;  %v5410_v2 = vmax.f32 %v5282_v12, 0.0  ;;  %v10230_v4 = vld [vmem:[#allocation80_spill] sm:$0xff] }
 0x25b   : > { %v4897_v29 = vmax.f32 %v10217_v50, %v7795_v49  ;;  %v3528_v33 = vpop.f32.mrb[185].mxu0  ;;  %v5413_v34 = vmax.f32 %v5285_v5, 0.0  ;;  %v5025_v54 = vmax.f32 %v10218_v52, %v8051_v32  ;;  %v4552_v0 = vpop.f32.mrb[185].mxu1  ;;  %v10231_v49 = vld [vmem:[#allocation81_spill] sm:$0xff] }
 0x25c   : > { %v4895_v59 = vmax.f32 %v10219_v58, %v3528_v33  ;;  %v7796_v14 = vpop.f32.mrb[186].mxu0  ;;  %v5411_v15 = vmax.f32 %v5283_v28, 0.0  ;;  %v5023_v3 = vmax.f32 %v10220_v30, %v4552_v0  ;;  %v8052_v16 = vpop.f32.mrb[186].mxu1  ;;  %v10232_v33 = vld [vmem:[#allocation82_spill] sm:$0xff] }
 0x25d   : > { %v4898_v61 = vmax.f32 %v10221_v60, %v7796_v14  ;;  %v3531_v17 = vpop.f32.mrb[187].mxu0  ;;  %v7102_v20 = vpack.c.bf16 %v5413_v34, %v5412_v35  ;;  %v5153_v21 = vmax.f32 %v4897_v29, %v5025_v54  ;;  %v5026_v19 = vmax.f32 %v10222_v23, %v8052_v16  ;;  %v4555_v36 = vpop.f32.mrb[187].mxu1  ;;  %v9704_v34 = vld [vmem:[%s9941_s2] ss:$0 sm:$0xff] }
 0x25e   : > { %v4896_v7 = vmax.f32 %v10223_v6, %v3531_v17  ;;  %v7097_v8 = vpack.c.bf16 %v5411_v15, %v5410_v2  ;;  %v5151_v9 = vmax.f32 %v4895_v59, %v5023_v3  ;;  %v5024_v63 = vmax.f32 %v10224_v11, %v4555_v36  ;;  %v10233_v15 = vld [vmem:[#allocation83_spill] sm:$0xff]  ;;  %v10234_v17 = vld [vmem:[#allocation84_spill] sm:$0xff] }
 0x25f   : > { %7310 = vst [vmem:[%s9472_s29 + $0xd8] sm:$0xff] %v7102_v20   ;;  %v5288_v37 = vadd.f32 %v9443_v55, %v5153_v21  ;;  %v5154_v38 = vmax.f32 %v4898_v61, %v5026_v19  ;;  %v10235_v21 = vld [vmem:[#allocation85_spill] sm:$0xff]  ;;  %v10237_v11 = vld [vmem:[#allocation87_spill] sm:$0xff] }
 0x260   : > { %7309 = vst [vmem:[%s9472_s29 + $0xd0] sm:$0xff] %v7097_v8   ;;  %v5286_v13 = vadd.f32 %v9443_v55, %v5151_v9  ;;  %v5152_v46 = vmax.f32 %v4896_v7, %v5024_v63  ;;  %v10236_v8 = vld [vmem:[#allocation86_spill] sm:$0xff] }
 0x261   : > { %v5289_v27 = vadd.f32 %v9443_v55, %v5154_v38  ;;  %v5416_v10 = vmax.f32 %v5288_v37, 0.0 }
 0x262   : > { %v7799_v40 = vpop.f32.mrb[188].mxu0  ;;  %v5287_v41 = vadd.f32 %v9443_v55, %v5152_v46  ;;  %v8055_v44 = vpop.f32.mrb[188].mxu1  ;;  %v5414_v31 = vmax.f32 %v5286_v13, 0.0 }
 0x263   : > { %v4901_v43 = vmax.f32 %v10225_v42, %v7799_v40  ;;  %v3544_v45 = vpop.f32.mrb[189].mxu0  ;;  %v5417_v51 = vmax.f32 %v5289_v27, 0.0  ;;  %v5029_v18 = vmax.f32 %v10226_v47, %v8055_v44  ;;  %v4568_v24 = vpop.f32.mrb[189].mxu1  ;;  %v10238_v27 = vld [vmem:[#allocation88_spill] sm:$0xff] }
 0x264   : > { %v4899_v39 = vmax.f32 %v10227_v22, %v3544_v45  ;;  %v7800_v53 = vpop.f32.mrb[190].mxu0  ;;  %v5415_v1 = vmax.f32 %v5287_v41, 0.0  ;;  %v5027_v57 = vmax.f32 %v10228_v56, %v4568_v24  ;;  %v8056_v26 = vpop.f32.mrb[190].mxu1  ;;  %v10239_v41 = vld [vmem:[#allocation89_spill] sm:$0xff] }
 0x265   : > { %v4902_v55 = vmax.f32 %v10229_v25, %v7800_v53  ;;  %v3547_v62 = vpop.f32.mrb[191].mxu0  ;;  %v7112_v48 = vpack.c.bf16 %v5417_v51, %v5416_v10  ;;  %v5157_v12 = vmax.f32 %v4901_v43, %v5029_v18  ;;  %v5030_v5 = vmax.f32 %v10230_v4, %v8056_v26  ;;  %v4571_v50 = vpop.f32.mrb[191].mxu1  ;;  %v10240_v10 = vld [vmem:[#allocation90_spill] sm:$0xff] }
 0x266   : > { %v4900_v28 = vmax.f32 %v10231_v49, %v3547_v62  ;;  %v7107_v29 = vpack.c.bf16 %v5415_v1, %v5414_v31  ;;  %v5155_v32 = vmax.f32 %v4899_v39, %v5027_v57  ;;  %v5028_v35 = vmax.f32 %v10232_v33, %v4571_v50  ;;  %v10241_v1 = vld [vmem:[#allocation91_spill] sm:$0xff]  ;;  %v10242_v62 = vld [vmem:[#allocation92_spill] sm:$0xff] }
 0x267   : > { %7312 = vst [vmem:[%s9472_s29 + $0xe8] sm:$0xff] %v7112_v48   ;;  %v5292_v52 = vadd.f32 %v9704_v34, %v5157_v12  ;;  %v5158_v54 = vmax.f32 %v4902_v55, %v5030_v5  ;;  %v10243_v12 = vld [vmem:[#allocation93_spill] sm:$0xff]  ;;  %v10245_v33 = vld [vmem:[#allocation95_spill] sm:$0xff] }
 0x268   : > { %7311 = vst [vmem:[%s9472_s29 + $0xe0] sm:$0xff] %v7107_v29   ;;  %v5290_v58 = vadd.f32 %v9704_v34, %v5155_v32  ;;  %v5156_v59 = vmax.f32 %v4900_v28, %v5028_v35  ;;  %v10244_v29 = vld [vmem:[#allocation94_spill] sm:$0xff] }
 0x269   : > { %v5293_v0 = vadd.f32 %v9704_v34, %v5158_v54  ;;  %v5420_v61 = vmax.f32 %v5292_v52, 0.0 }
 0x26a   : > { %v7803_v14 = vpop.f32.mrb[192].mxu0  ;;  %v5291_v2 = vadd.f32 %v9704_v34, %v5156_v59  ;;  %v8059_v3 = vpop.f32.mrb[192].mxu1  ;;  %v5418_v7 = vmax.f32 %v5290_v58, 0.0 }
 0x26b   : > { %v4905_v30 = vmax.f32 %v10233_v15, %v7803_v14  ;;  %v3560_v60 = vpop.f32.mrb[193].mxu0  ;;  %v5421_v16 = vmax.f32 %v5293_v0, 0.0  ;;  %v5033_v20 = vmax.f32 %v10234_v17, %v8059_v3  ;;  %v4584_v19 = vpop.f32.mrb[193].mxu1  ;;  %v10246_v0 = vld [vmem:[#allocation96_spill] sm:$0xff] }
 0x26c   : > { %v4903_v23 = vmax.f32 %v10235_v21, %v3560_v60  ;;  %v7804_v6 = vpop.f32.mrb[194].mxu0  ;;  %v5419_v36 = vmax.f32 %v5291_v2, 0.0  ;;  %v5031_v9 = vmax.f32 %v10236_v8, %v4584_v19  ;;  %v8060_v37 = vpop.f32.mrb[194].mxu1  ;;  %v10247_v2 = vld [vmem:[#allocation97_spill] sm:$0xff] }
 0x26d   : > { %v4906_v63 = vmax.f32 %v10237_v11, %v7804_v6  ;;  %v3563_v38 = vpop.f32.mrb[195].mxu0  ;;  %v7122_v13 = vpack.c.bf16 %v5421_v16, %v5420_v61  ;;  %v5161_v46 = vmax.f32 %v4905_v30, %v5033_v20  ;;  %v5034_v40 = vmax.f32 %v10238_v27, %v8060_v37  ;;  %v4587_v43 = vpop.f32.mrb[195].mxu1  ;;  %v10248_v61 = vld [vmem:[#allocation98_spill] sm:$0xff] }
 0x26e   : > { %v4904_v42 = vmax.f32 %v10239_v41, %v3563_v38  ;;  %v7117_v44 = vpack.c.bf16 %v5419_v36, %v5418_v7  ;;  %v5159_v45 = vmax.f32 %v4903_v23, %v5031_v9  ;;  %v5032_v51 = vmax.f32 %v10240_v10, %v4587_v43  ;;  %v10249_v36 = vld [vmem:[#allocation99_spill] sm:$0xff]  ;;  %v10250_v38 = vld [vmem:[#allocation100_spill] sm:$0xff] }
 0x26f   : > { %7314 = vst [vmem:[%s9472_s29 + $0xf8] sm:$0xff] %v7122_v13   ;;  %v5296_v47 = vadd.f32 %v9704_v34, %v5161_v46  ;;  %v5162_v18 = vmax.f32 %v4906_v63, %v5034_v40  ;;  %v10251_v46 = vld [vmem:[#allocation101_spill] sm:$0xff]  ;;  %v10253_v10 = vld [vmem:[#allocation103_spill] sm:$0xff] }
 0x270   : > { %7313 = vst [vmem:[%s9472_s29 + $0xf0] sm:$0xff] %v7117_v44   ;;  %v5294_v22 = vadd.f32 %v9704_v34, %v5159_v45  ;;  %v5160_v39 = vmax.f32 %v4904_v42, %v5032_v51  ;;  %v10252_v44 = vld [vmem:[#allocation102_spill] sm:$0xff] }
 0x271   : > { %v5297_v24 = vadd.f32 %v9704_v34, %v5162_v18  ;;  %v5424_v55 = vmax.f32 %v5296_v47, 0.0 }
 0x272   : > { %v7807_v53 = vpop.f32.mrb[196].mxu0  ;;  %v5295_v31 = vadd.f32 %v9704_v34, %v5160_v39  ;;  %v8063_v57 = vpop.f32.mrb[196].mxu1  ;;  %v5422_v28 = vmax.f32 %v5294_v22, 0.0 }
 0x273   : > { %v4909_v56 = vmax.f32 %v10241_v1, %v7807_v53  ;;  %v3576_v25 = vpop.f32.mrb[197].mxu0  ;;  %v5425_v26 = vmax.f32 %v5297_v24, 0.0  ;;  %v5037_v48 = vmax.f32 %v10242_v62, %v8063_v57  ;;  %v4600_v5 = vpop.f32.mrb[197].mxu1  ;;  %v10254_v24 = vld [vmem:[#allocation104_spill] sm:$0xff] }
 0x274   : > { %v4907_v4 = vmax.f32 %v10243_v12, %v3576_v25  ;;  %v7808_v49 = vpop.f32.mrb[198].mxu0  ;;  %v5423_v50 = vmax.f32 %v5295_v31, 0.0  ;;  %v5035_v32 = vmax.f32 %v10244_v29, %v4600_v5  ;;  %v8064_v52 = vpop.f32.mrb[198].mxu1  ;;  %v10255_v31 = vld [vmem:[#allocation105_spill] sm:$0xff] }
 0x275   : > { %v4910_v35 = vmax.f32 %v10245_v33, %v7808_v49  ;;  %v3579_v54 = vpop.f32.mrb[199].mxu0  ;;  %v7132_v58 = vpack.c.bf16 %v5425_v26, %v5424_v55  ;;  %v5165_v59 = vmax.f32 %v4909_v56, %v5037_v48  ;;  %v5038_v14 = vmax.f32 %v10246_v0, %v8064_v52  ;;  %v4603_v30 = vpop.f32.mrb[199].mxu1  ;;  %v10256_v55 = vld [vmem:[#allocation106_spill] sm:$0xff] }
 0x276   : > { %v4908_v15 = vmax.f32 %v10247_v2, %v3579_v54  ;;  %v7127_v3 = vpack.c.bf16 %v5423_v50, %v5422_v28  ;;  %v5163_v60 = vmax.f32 %v4907_v4, %v5035_v32  ;;  %v5036_v16 = vmax.f32 %v10248_v61, %v4603_v30  ;;  %v10257_v50 = vld [vmem:[#allocation107_spill] sm:$0xff]  ;;  %v10258_v54 = vld [vmem:[#allocation108_spill] sm:$0xff] }
 0x277   : > { %7316 = vst [vmem:[%s9472_s29 + $0x108] sm:$0xff] %v7132_v58   ;;  %v5300_v17 = vadd.f32 %v9704_v34, %v5165_v59  ;;  %v5166_v20 = vmax.f32 %v4910_v35, %v5038_v14  ;;  %v10259_v59 = vld [vmem:[#allocation109_spill] sm:$0xff]  ;;  %v10261_v61 = vld [vmem:[#allocation111_spill] sm:$0xff] }
 0x278   : > { %7315 = vst [vmem:[%s9472_s29 + $0x100] sm:$0xff] %v7127_v3   ;;  %v5298_v21 = vadd.f32 %v9704_v34, %v5163_v60  ;;  %v5164_v23 = vmax.f32 %v4908_v15, %v5036_v16  ;;  %v10260_v3 = vld [vmem:[#allocation110_spill] sm:$0xff] }
 0x279   : > { %v5301_v19 = vadd.f32 %v9704_v34, %v5166_v20  ;;  %v5428_v63 = vmax.f32 %v5300_v17, 0.0 }
 0x27a   : > { %v7811_v6 = vpop.f32.mrb[200].mxu0  ;;  %v5299_v7 = vadd.f32 %v9704_v34, %v5164_v23  ;;  %v8067_v9 = vpop.f32.mrb[200].mxu1  ;;  %v5426_v42 = vmax.f32 %v5298_v21, 0.0 }
 0x27b   : > { %v4913_v8 = vmax.f32 %v10249_v36, %v7811_v6  ;;  %v3592_v11 = vpop.f32.mrb[201].mxu0  ;;  %v5429_v37 = vmax.f32 %v5301_v19, 0.0  ;;  %v5041_v13 = vmax.f32 %v10250_v38, %v8067_v9  ;;  %v4616_v40 = vpop.f32.mrb[201].mxu1  ;;  %v10262_v19 = vld [vmem:[#allocation112_spill] sm:$0xff] }
 0x27c   : > { %v4911_v27 = vmax.f32 %v10251_v46, %v3592_v11  ;;  %v7812_v41 = vpop.f32.mrb[202].mxu0  ;;  %v5427_v43 = vmax.f32 %v5299_v7, 0.0  ;;  %v5039_v45 = vmax.f32 %v10252_v44, %v4616_v40  ;;  %v8068_v47 = vpop.f32.mrb[202].mxu1  ;;  %v10263_v7 = vld [vmem:[#allocation113_spill] sm:$0xff] }
 0x27d   : > { %v4914_v51 = vmax.f32 %v10253_v10, %v7812_v41  ;;  %v3595_v18 = vpop.f32.mrb[203].mxu0  ;;  %v7142_v22 = vpack.c.bf16 %v5429_v37, %v5428_v63  ;;  %v5169_v39 = vmax.f32 %v4913_v8, %v5041_v13  ;;  %v5042_v53 = vmax.f32 %v10254_v24, %v8068_v47  ;;  %v4619_v56 = vpop.f32.mrb[203].mxu1  ;;  %v10264_v63 = vld [vmem:[#allocation114_spill] sm:$0xff] }
 0x27e   : > { %v4912_v1 = vmax.f32 %v10255_v31, %v3595_v18  ;;  %v7137_v57 = vpack.c.bf16 %v5427_v43, %v5426_v42  ;;  %v5167_v25 = vmax.f32 %v4911_v27, %v5039_v45  ;;  %v5040_v26 = vmax.f32 %v10256_v55, %v4619_v56  ;;  %v10265_v43 = vld [vmem:[#allocation115_spill] sm:$0xff]  ;;  %v10266_v18 = vld [vmem:[#allocation116_spill] sm:$0xff] }
 0x27f   : > { %7318 = vst [vmem:[%s9472_s29 + $0x118] sm:$0xff] %v7142_v22   ;;  %v5304_v62 = vadd.f32 %v9704_v34, %v5169_v39  ;;  %v5170_v48 = vmax.f32 %v4914_v51, %v5042_v53  ;;  %v10267_v39 = vld [vmem:[#allocation117_spill] sm:$0xff]  ;;  %v10269_v55 = vld [vmem:[#allocation119_spill] sm:$0xff] }
 0x280   : > { %7317 = vst [vmem:[%s9472_s29 + $0x110] sm:$0xff] %v7137_v57   ;;  %v5302_v12 = vadd.f32 %v9704_v34, %v5167_v25  ;;  %v5168_v4 = vmax.f32 %v4912_v1, %v5040_v26  ;;  %v10268_v57 = vld [vmem:[#allocation118_spill] sm:$0xff] }
 0x281   : > { %v5305_v5 = vadd.f32 %v9704_v34, %v5170_v48  ;;  %v5432_v35 = vmax.f32 %v5304_v62, 0.0 }
 0x282   : > { %v7815_v49 = vpop.f32.mrb[204].mxu0  ;;  %v5303_v28 = vadd.f32 %v9704_v34, %v5168_v4  ;;  %v8071_v32 = vpop.f32.mrb[204].mxu1  ;;  %v5430_v15 = vmax.f32 %v5302_v12, 0.0 }
 0x283   : > { %v4917_v29 = vmax.f32 %v10257_v50, %v7815_v49  ;;  %v3608_v33 = vpop.f32.mrb[205].mxu0  ;;  %v5433_v52 = vmax.f32 %v5305_v5, 0.0  ;;  %v5045_v58 = vmax.f32 %v10258_v54, %v8071_v32  ;;  %v4632_v14 = vpop.f32.mrb[205].mxu1  ;;  %v10270_v5 = vld [vmem:[#allocation120_spill] sm:$0xff] }
 0x284   : > { %v4915_v0 = vmax.f32 %v10259_v59, %v3608_v33  ;;  %v7816_v2 = vpop.f32.mrb[206].mxu0  ;;  %v5431_v30 = vmax.f32 %v5303_v28, 0.0  ;;  %v5043_v60 = vmax.f32 %v10260_v3, %v4632_v14  ;;  %v8072_v17 = vpop.f32.mrb[206].mxu1  ;;  %v10271_v28 = vld [vmem:[#allocation121_spill] sm:$0xff] }
 0x285   : > { %v4918_v16 = vmax.f32 %v10261_v61, %v7816_v2  ;;  %v3611_v20 = vpop.f32.mrb[207].mxu0  ;;  %v7152_v21 = vpack.c.bf16 %v5433_v52, %v5432_v35  ;;  %v5173_v23 = vmax.f32 %v4917_v29, %v5045_v58  ;;  %v5046_v6 = vmax.f32 %v10262_v19, %v8072_v17  ;;  %v4635_v8 = vpop.f32.mrb[207].mxu1  ;;  %v10272_v35 = vld [vmem:[#allocation122_spill] sm:$0xff] }
 0x286   : > { %v4916_v36 = vmax.f32 %v10263_v7, %v3611_v20  ;;  %v7147_v9 = vpack.c.bf16 %v5431_v30, %v5430_v15  ;;  %v5171_v11 = vmax.f32 %v4915_v0, %v5043_v60  ;;  %v5044_v37 = vmax.f32 %v10264_v63, %v4635_v8  ;;  %v10273_v30 = vld [vmem:[#allocation123_spill] sm:$0xff]  ;;  %v10274_v20 = vld [vmem:[#allocation124_spill] sm:$0xff] }
 0x287   : > { %7320 = vst [vmem:[%s9472_s29 + $0x128] sm:$0xff] %v7152_v21   ;;  %v5308_v38 = vadd.f32 %v9704_v34, %v5173_v23  ;;  %v5174_v13 = vmax.f32 %v4918_v16, %v5046_v6  ;;  %v10275_v23 = vld [vmem:[#allocation125_spill] sm:$0xff]  ;;  %v10277_v63 = vld [vmem:[#allocation127_spill] sm:$0xff] }
 0x288   : > { %7319 = vst [vmem:[%s9472_s29 + $0x120] sm:$0xff] %v7147_v9   ;;  %v5306_v46 = vadd.f32 %v9704_v34, %v5171_v11  ;;  %v5172_v27 = vmax.f32 %v4916_v36, %v5044_v37  ;;  %v10276_v9 = vld [vmem:[#allocation126_spill] sm:$0xff] }
 0x289   : > { %v5309_v40 = vadd.f32 %v9704_v34, %v5174_v13  ;;  %v5436_v51 = vmax.f32 %v5308_v38, 0.0 }
 0x28a   : > { %v7819_v41 = vpop.f32.mrb[208].mxu0  ;;  %v5307_v42 = vadd.f32 %v9704_v34, %v5172_v27  ;;  %v8075_v45 = vpop.f32.mrb[208].mxu1  ;;  %v5434_v1 = vmax.f32 %v5306_v46, 0.0 }
 0x28b   : > { %v4921_v44 = vmax.f32 %v10265_v43, %v7819_v41  ;;  %v3624_v10 = vpop.f32.mrb[209].mxu0  ;;  %v5437_v47 = vmax.f32 %v5309_v40, 0.0  ;;  %v5049_v22 = vmax.f32 %v10266_v18, %v8075_v45  ;;  %v4648_v53 = vpop.f32.mrb[209].mxu1  ;;  %v10278_v40 = vld [vmem:[#allocation128_spill] sm:$0xff] }
 0x28c   : > { %v4919_v24 = vmax.f32 %v10267_v39, %v3624_v10  ;;  %v7820_v31 = vpop.f32.mrb[210].mxu0  ;;  %v5435_v56 = vmax.f32 %v5307_v42, 0.0  ;;  %v5047_v25 = vmax.f32 %v10268_v57, %v4648_v53  ;;  %v8076_v62 = vpop.f32.mrb[210].mxu1  ;;  %v10279_v42 = vld [vmem:[#allocation129_spill] sm:$0xff] }
 0x28d   : > { %v4922_v26 = vmax.f32 %v10269_v55, %v7820_v31  ;;  %v3627_v48 = vpop.f32.mrb[211].mxu0  ;;  %v7162_v12 = vpack.c.bf16 %v5437_v47, %v5436_v51  ;;  %v5177_v4 = vmax.f32 %v4921_v44, %v5049_v22  ;;  %v5050_v49 = vmax.f32 %v10270_v5, %v8076_v62  ;;  %v4651_v29 = vpop.f32.mrb[211].mxu1  ;;  %v10280_v51 = vld [vmem:[#allocation130_spill] sm:$0xff] }
 0x28e   : > { %v4920_v50 = vmax.f32 %v10271_v28, %v3627_v48  ;;  %v7157_v32 = vpack.c.bf16 %v5435_v56, %v5434_v1  ;;  %v5175_v33 = vmax.f32 %v4919_v24, %v5047_v25  ;;  %v5048_v52 = vmax.f32 %v10272_v35, %v4651_v29  ;;  %v10281_v56 = vld [vmem:[#allocation131_spill] sm:$0xff]  ;;  %v10282_v48 = vld [vmem:[#allocation132_spill] sm:$0xff] }
 0x28f   : > { %7322 = vst [vmem:[%s9472_s29 + $0x138] sm:$0xff] %v7162_v12   ;;  %v5312_v54 = vadd.f32 %v9704_v34, %v5177_v4  ;;  %v5178_v58 = vmax.f32 %v4922_v26, %v5050_v49  ;;  %v10283_v4 = vld [vmem:[#allocation133_spill] sm:$0xff]  ;;  %v10285_v35 = vld [vmem:[#allocation135_spill] sm:$0xff] }
 0x290   : > { %7321 = vst [vmem:[%s9472_s29 + $0x130] sm:$0xff] %v7157_v32   ;;  %v5310_v59 = vadd.f32 %v9704_v34, %v5175_v33  ;;  %v5176_v0 = vmax.f32 %v4920_v50, %v5048_v52  ;;  %v10284_v32 = vld [vmem:[#allocation134_spill] sm:$0xff] }
 0x291   : > { %v5313_v14 = vadd.f32 %v9704_v34, %v5178_v58  ;;  %v5440_v16 = vmax.f32 %v5312_v54, 0.0 }
 0x292   : > { %v7823_v2 = vpop.f32.mrb[212].mxu0  ;;  %v5311_v15 = vadd.f32 %v9704_v34, %v5176_v0  ;;  %v8079_v60 = vpop.f32.mrb[212].mxu1  ;;  %v5438_v36 = vmax.f32 %v5310_v59, 0.0 }
 0x293   : > { %v4925_v3 = vmax.f32 %v10273_v30, %v7823_v2  ;;  %v3640_v61 = vpop.f32.mrb[213].mxu0  ;;  %v5441_v17 = vmax.f32 %v5313_v14, 0.0  ;;  %v5053_v21 = vmax.f32 %v10274_v20, %v8079_v60  ;;  %v4664_v6 = vpop.f32.mrb[213].mxu1  ;;  %v10286_v14 = vld [vmem:[#allocation136_spill] sm:$0xff] }
 0x294   : > { %v4923_v19 = vmax.f32 %v10275_v23, %v3640_v61  ;;  %v7824_v7 = vpop.f32.mrb[214].mxu0  ;;  %v5439_v8 = vmax.f32 %v5311_v15, 0.0  ;;  %v5051_v11 = vmax.f32 %v10276_v9, %v4664_v6  ;;  %v8080_v38 = vpop.f32.mrb[214].mxu1  ;;  %v10287_v15 = vld [vmem:[#allocation137_spill] sm:$0xff] }
 0x295   : > { %v4926_v37 = vmax.f32 %v10277_v63, %v7824_v7  ;;  %v3643_v13 = vpop.f32.mrb[215].mxu0  ;;  %v7172_v46 = vpack.c.bf16 %v5441_v17, %v5440_v16  ;;  %v5181_v27 = vmax.f32 %v4925_v3, %v5053_v21  ;;  %v5054_v41 = vmax.f32 %v10278_v40, %v8080_v38  ;;  %v4667_v44 = vpop.f32.mrb[215].mxu1  ;;  %v10288_v16 = vld [vmem:[#allocation138_spill] sm:$0xff] }
 0x296   : > { %v4924_v43 = vmax.f32 %v10279_v42, %v3643_v13  ;;  %v7167_v45 = vpack.c.bf16 %v5439_v8, %v5438_v36  ;;  %v5179_v10 = vmax.f32 %v4923_v19, %v5051_v11  ;;  %v5052_v47 = vmax.f32 %v10280_v51, %v4667_v44  ;;  %v10289_v8 = vld [vmem:[#allocation139_spill] sm:$0xff]  ;;  %v10290_v13 = vld [vmem:[#allocation140_spill] sm:$0xff] }
 0x297   : > { %7324 = vst [vmem:[%s9472_s29 + $0x148] sm:$0xff] %v7172_v46   ;;  %v5316_v18 = vadd.f32 %v9704_v34, %v5181_v27  ;;  %v5182_v22 = vmax.f32 %v4926_v37, %v5054_v41  ;;  %v10291_v27 = vld [vmem:[#allocation141_spill] sm:$0xff]  ;;  %v10293_v51 = vld [vmem:[#allocation143_spill] sm:$0xff] }
 0x298   : > { %7323 = vst [vmem:[%s9472_s29 + $0x140] sm:$0xff] %v7167_v45   ;;  %v5314_v39 = vadd.f32 %v9704_v34, %v5179_v10  ;;  %v5180_v24 = vmax.f32 %v4924_v43, %v5052_v47  ;;  %v10292_v45 = vld [vmem:[#allocation142_spill] sm:$0xff] }
 0x299   : > { %v5317_v53 = vadd.f32 %v9704_v34, %v5182_v22  ;;  %v5444_v26 = vmax.f32 %v5316_v18, 0.0 }
 0x29a   : > { %v7827_v31 = vpop.f32.mrb[216].mxu0  ;;  %v5315_v1 = vadd.f32 %v9704_v34, %v5180_v24  ;;  %v8083_v25 = vpop.f32.mrb[216].mxu1  ;;  %v5442_v50 = vmax.f32 %v5314_v39, 0.0 }
 0x29b   : > { %v4929_v57 = vmax.f32 %v10281_v56, %v7827_v31  ;;  %v3656_v55 = vpop.f32.mrb[217].mxu0  ;;  %v5445_v62 = vmax.f32 %v5317_v53, 0.0  ;;  %v5057_v12 = vmax.f32 %v10282_v48, %v8083_v25  ;;  %v4680_v49 = vpop.f32.mrb[217].mxu1  ;;  %v10294_v53 = vld [vmem:[#allocation144_spill] sm:$0xff] }
 0x29c   : > { %v4927_v5 = vmax.f32 %v10283_v4, %v3656_v55  ;;  %v7828_v28 = vpop.f32.mrb[218].mxu0  ;;  %v5443_v29 = vmax.f32 %v5315_v1, 0.0  ;;  %v5055_v33 = vmax.f32 %v10284_v32, %v4680_v49  ;;  %v8084_v54 = vpop.f32.mrb[218].mxu1  ;;  %v10295_v1 = vld [vmem:[#allocation145_spill] sm:$0xff] }
 0x29d   : > { %v4930_v52 = vmax.f32 %v10285_v35, %v7828_v28  ;;  %v3659_v58 = vpop.f32.mrb[219].mxu0  ;;  %v7182_v59 = vpack.c.bf16 %v5445_v62, %v5444_v26  ;;  %v5185_v0 = vmax.f32 %v4929_v57, %v5057_v12  ;;  %v5058_v2 = vmax.f32 %v10286_v14, %v8084_v54  ;;  %v4683_v3 = vpop.f32.mrb[219].mxu1  ;;  %v10296_v26 = vld [vmem:[#allocation146_spill] sm:$0xff] }
 0x29e   : > { %v4928_v30 = vmax.f32 %v10287_v15, %v3659_v58  ;;  %v7177_v60 = vpack.c.bf16 %v5443_v29, %v5442_v50  ;;  %v5183_v61 = vmax.f32 %v4927_v5, %v5055_v33  ;;  %v5056_v17 = vmax.f32 %v10288_v16, %v4683_v3  ;;  %v10297_v29 = vld [vmem:[#allocation147_spill] sm:$0xff]  ;;  %v10298_v58 = vld [vmem:[#allocation148_spill] sm:$0xff] }
 0x29f   : > { %7326 = vst [vmem:[%s9472_s29 + $0x158] sm:$0xff] %v7182_v59   ;;  %v5320_v20 = vadd.f32 %v9704_v34, %v5185_v0  ;;  %v5186_v21 = vmax.f32 %v4930_v52, %v5058_v2  ;;  %v10299_v0 = vld [vmem:[#allocation149_spill] sm:$0xff]  ;;  %v10301_v16 = vld [vmem:[#allocation151_spill] sm:$0xff] }
 0x2a0   : > { %7325 = vst [vmem:[%s9472_s29 + $0x150] sm:$0xff] %v7177_v60   ;;  %v5318_v23 = vadd.f32 %v9704_v34, %v5183_v61  ;;  %v5184_v19 = vmax.f32 %v4928_v30, %v5056_v17  ;;  %v10300_v60 = vld [vmem:[#allocation150_spill] sm:$0xff] }
 0x2a1   : > { %v5321_v6 = vadd.f32 %v9704_v34, %v5186_v21  ;;  %v5448_v37 = vmax.f32 %v5320_v20, 0.0 }
 0x2a2   : > { %v7831_v7 = vpop.f32.mrb[220].mxu0  ;;  %v5319_v36 = vadd.f32 %v9704_v34, %v5184_v19  ;;  %v8087_v11 = vpop.f32.mrb[220].mxu1  ;;  %v5446_v43 = vmax.f32 %v5318_v23, 0.0 }
 0x2a3   : > { %v4933_v9 = vmax.f32 %v10289_v8, %v7831_v7  ;;  %v3672_v63 = vpop.f32.mrb[221].mxu0  ;;  %v5449_v38 = vmax.f32 %v5321_v6, 0.0  ;;  %v5061_v46 = vmax.f32 %v10290_v13, %v8087_v11  ;;  %v4696_v41 = vpop.f32.mrb[221].mxu1  ;;  %v10302_v6 = vld [vmem:[#allocation152_spill] sm:$0xff] }
 0x2a4   : > { %v4931_v40 = vmax.f32 %v10291_v27, %v3672_v63  ;;  %v7832_v42 = vpop.f32.mrb[222].mxu0  ;;  %v5447_v44 = vmax.f32 %v5319_v36, 0.0  ;;  %v5059_v10 = vmax.f32 %v10292_v45, %v4696_v41  ;;  %v8088_v18 = vpop.f32.mrb[222].mxu1  ;;  %v10303_v36 = vld [vmem:[#allocation153_spill] sm:$0xff] }
 0x2a5   : > { %v4934_v47 = vmax.f32 %v10293_v51, %v7832_v42  ;;  %v3675_v22 = vpop.f32.mrb[223].mxu0  ;;  %v7192_v39 = vpack.c.bf16 %v5449_v38, %v5448_v37  ;;  %v5189_v24 = vmax.f32 %v4933_v9, %v5061_v46  ;;  %v5062_v31 = vmax.f32 %v10294_v53, %v8088_v18  ;;  %v4699_v57 = vpop.f32.mrb[223].mxu1  ;;  %v10304_v37 = vld [vmem:[#allocation154_spill] sm:$0xff] }
 0x2a6   : > { %v4932_v56 = vmax.f32 %v10295_v1, %v3675_v22  ;;  %v7187_v25 = vpack.c.bf16 %v5447_v44, %v5446_v43  ;;  %v5187_v55 = vmax.f32 %v4931_v40, %v5059_v10  ;;  %v5060_v62 = vmax.f32 %v10296_v26, %v4699_v57  ;;  %v10305_v44 = vld [vmem:[#allocation155_spill] sm:$0xff]  ;;  %v10306_v22 = vld [vmem:[#allocation156_spill] sm:$0xff] }
 0x2a7   : > { %7328 = vst [vmem:[%s9472_s29 + $0x168] sm:$0xff] %v7192_v39   ;;  %v5324_v48 = vadd.f32 %v9704_v34, %v5189_v24  ;;  %v5190_v12 = vmax.f32 %v4934_v47, %v5062_v31  ;;  %v10307_v24 = vld [vmem:[#allocation157_spill] sm:$0xff]  ;;  %v10309_v26 = vld [vmem:[#allocation159_spill] sm:$0xff] }
 0x2a8   : > { %7327 = vst [vmem:[%s9472_s29 + $0x160] sm:$0xff] %v7187_v25   ;;  %v5322_v4 = vadd.f32 %v9704_v34, %v5187_v55  ;;  %v5188_v5 = vmax.f32 %v4932_v56, %v5060_v62  ;;  %v10308_v25 = vld [vmem:[#allocation158_spill] sm:$0xff] }
 0x2a9   : > { %v5325_v49 = vadd.f32 %v9704_v34, %v5190_v12  ;;  %v5452_v52 = vmax.f32 %v5324_v48, 0.0 }
 0x2aa   : > { %v7835_v28 = vpop.f32.mrb[224].mxu0  ;;  %v5323_v50 = vadd.f32 %v9704_v34, %v5188_v5  ;;  %v8091_v33 = vpop.f32.mrb[224].mxu1  ;;  %v5450_v30 = vmax.f32 %v5322_v4, 0.0 }
 0x2ab   : > { %v4937_v32 = vmax.f32 %v10297_v29, %v7835_v28  ;;  %v3688_v35 = vpop.f32.mrb[225].mxu0  ;;  %v5453_v54 = vmax.f32 %v5325_v49, 0.0  ;;  %v5065_v59 = vmax.f32 %v10298_v58, %v8091_v33  ;;  %v4712_v2 = vpop.f32.mrb[225].mxu1  ;;  %v10310_v49 = vld [vmem:[#allocation160_spill] sm:$0xff] }
 0x2ac   : > { %v4935_v14 = vmax.f32 %v10299_v0, %v3688_v35  ;;  %v7836_v15 = vpop.f32.mrb[226].mxu0  ;;  %v5451_v3 = vmax.f32 %v5323_v50, 0.0  ;;  %v5063_v61 = vmax.f32 %v10300_v60, %v4712_v2  ;;  %v8092_v20 = vpop.f32.mrb[226].mxu1  ;;  %v10311_v50 = vld [vmem:[#allocation161_spill] sm:$0xff] }
 0x2ad   : > { %v4938_v17 = vmax.f32 %v10301_v16, %v7836_v15  ;;  %v3691_v21 = vpop.f32.mrb[227].mxu0  ;;  %v7202_v23 = vpack.c.bf16 %v5453_v54, %v5452_v52  ;;  %v5193_v19 = vmax.f32 %v4937_v32, %v5065_v59  ;;  %v5066_v7 = vmax.f32 %v10302_v6, %v8092_v20  ;;  %v4715_v9 = vpop.f32.mrb[227].mxu1  ;;  %v10312_v52 = vld [vmem:[#allocation162_spill] sm:$0xff] }
 0x2ae   : > { %v4936_v8 = vmax.f32 %v10303_v36, %v3691_v21  ;;  %v7197_v11 = vpack.c.bf16 %v5451_v3, %v5450_v30  ;;  %v5191_v63 = vmax.f32 %v4935_v14, %v5063_v61  ;;  %v5064_v38 = vmax.f32 %v10304_v37, %v4715_v9  ;;  %v10313_v3 = vld [vmem:[#allocation163_spill] sm:$0xff]  ;;  %v10314_v21 = vld [vmem:[#allocation164_spill] sm:$0xff] }
 0x2af   : > { %7330 = vst [vmem:[%s9472_s29 + $0x178] sm:$0xff] %v7202_v23   ;;  %v5328_v13 = vadd.f32 %v9704_v34, %v5193_v19  ;;  %v5194_v46 = vmax.f32 %v4938_v17, %v5066_v7  ;;  %v10315_v19 = vld [vmem:[#allocation165_spill] sm:$0xff]  ;;  %v10317_v37 = vld [vmem:[#allocation167_spill] sm:$0xff] }
 0x2b0   : > { %7329 = vst [vmem:[%s9472_s29 + $0x170] sm:$0xff] %v7197_v11   ;;  %v5326_v27 = vadd.f32 %v9704_v34, %v5191_v63  ;;  %v5192_v40 = vmax.f32 %v4936_v8, %v5064_v38  ;;  %v10316_v11 = vld [vmem:[#allocation166_spill] sm:$0xff] }
 0x2b1   : > { %v5329_v41 = vadd.f32 %v9704_v34, %v5194_v46  ;;  %v5456_v47 = vmax.f32 %v5328_v13, 0.0 }
 0x2b2   : > { %v7839_v42 = vpop.f32.mrb[228].mxu0  ;;  %v5327_v43 = vadd.f32 %v9704_v34, %v5192_v40  ;;  %v8095_v10 = vpop.f32.mrb[228].mxu1  ;;  %v5454_v56 = vmax.f32 %v5326_v27, 0.0 }
 0x2b3   : > { %v4941_v45 = vmax.f32 %v10305_v44, %v7839_v42  ;;  %v3704_v51 = vpop.f32.mrb[229].mxu0  ;;  %v5457_v18 = vmax.f32 %v5329_v41, 0.0  ;;  %v5069_v39 = vmax.f32 %v10306_v22, %v8095_v10  ;;  %v4728_v31 = vpop.f32.mrb[229].mxu1  ;;  %v10318_v41 = vld [vmem:[#allocation168_spill] sm:$0xff] }
 0x2b4   : > { %v4939_v53 = vmax.f32 %v10307_v24, %v3704_v51  ;;  %v7840_v1 = vpop.f32.mrb[230].mxu0  ;;  %v5455_v57 = vmax.f32 %v5327_v43, 0.0  ;;  %v5067_v55 = vmax.f32 %v10308_v25, %v4728_v31  ;;  %v8096_v48 = vpop.f32.mrb[230].mxu1  ;;  %v10319_v43 = vld [vmem:[#allocation169_spill] sm:$0xff] }
 0x2b5   : > { %v4942_v62 = vmax.f32 %v10309_v26, %v7840_v1  ;;  %v3707_v12 = vpop.f32.mrb[231].mxu0  ;;  %v7212_v4 = vpack.c.bf16 %v5457_v18, %v5456_v47  ;;  %v5197_v5 = vmax.f32 %v4941_v45, %v5069_v39  ;;  %v5070_v28 = vmax.f32 %v10310_v49, %v8096_v48  ;;  %v4731_v32 = vpop.f32.mrb[231].mxu1  ;;  %v10320_v47 = vld [vmem:[#allocation170_spill] sm:$0xff] }
 0x2b6   : > { %v4940_v29 = vmax.f32 %v10311_v50, %v3707_v12  ;;  %v7207_v33 = vpack.c.bf16 %v5455_v57, %v5454_v56  ;;  %v5195_v35 = vmax.f32 %v4939_v53, %v5067_v55  ;;  %v5068_v54 = vmax.f32 %v10312_v52, %v4731_v32  ;;  %v10321_v57 = vld [vmem:[#allocation171_spill] sm:$0xff]  ;;  %v10322_v12 = vld [vmem:[#allocation172_spill] sm:$0xff] }
 0x2b7   : > { %7332 = vst [vmem:[%s9472_s29 + $0x188] sm:$0xff] %v7212_v4   ;;  %v5332_v58 = vadd.f32 %v9704_v34, %v5197_v5  ;;  %v5198_v59 = vmax.f32 %v4942_v62, %v5070_v28  ;;  %v10323_v5 = vld [vmem:[#allocation173_spill] sm:$0xff]  ;;  %v10325_v52 = vld [vmem:[#allocation175_spill] sm:$0xff] }
 0x2b8   : > { %7331 = vst [vmem:[%s9472_s29 + $0x180] sm:$0xff] %v7207_v33   ;;  %v5330_v0 = vadd.f32 %v9704_v34, %v5195_v35  ;;  %v5196_v14 = vmax.f32 %v4940_v29, %v5068_v54  ;;  %v10324_v33 = vld [vmem:[#allocation174_spill] sm:$0xff] }
 0x2b9   : > { %v5333_v2 = vadd.f32 %v9704_v34, %v5198_v59  ;;  %v5460_v17 = vmax.f32 %v5332_v58, 0.0 }
 0x2ba   : > { %v7843_v15 = vpop.f32.mrb[232].mxu0  ;;  %v5331_v30 = vadd.f32 %v9704_v34, %v5196_v14  ;;  %v8099_v61 = vpop.f32.mrb[232].mxu1  ;;  %v5458_v8 = vmax.f32 %v5330_v0, 0.0 }
 0x2bb   : > { %v4945_v60 = vmax.f32 %v10313_v3, %v7843_v15  ;;  %v3720_v16 = vpop.f32.mrb[233].mxu0  ;;  %v5461_v20 = vmax.f32 %v5333_v2, 0.0  ;;  %v5073_v23 = vmax.f32 %v10314_v21, %v8099_v61  ;;  %v4744_v7 = vpop.f32.mrb[233].mxu1  ;;  %v10326_v2 = vld [vmem:[#allocation176_spill] sm:$0xff] }
 0x2bc   : > { %v4943_v6 = vmax.f32 %v10315_v19, %v3720_v16  ;;  %v7844_v36 = vpop.f32.mrb[234].mxu0  ;;  %v5459_v9 = vmax.f32 %v5331_v30, 0.0  ;;  %v5071_v63 = vmax.f32 %v10316_v11, %v4744_v7  ;;  %v8100_v13 = vpop.f32.mrb[234].mxu1  ;;  %v10327_v30 = vld [vmem:[#allocation177_spill] sm:$0xff] }
 0x2bd   : > { %v4946_v38 = vmax.f32 %v10317_v37, %v7844_v36  ;;  %v3723_v46 = vpop.f32.mrb[235].mxu0  ;;  %v7222_v27 = vpack.c.bf16 %v5461_v20, %v5460_v17  ;;  %v5201_v40 = vmax.f32 %v4945_v60, %v5073_v23  ;;  %v5074_v42 = vmax.f32 %v10318_v41, %v8100_v13  ;;  %v4747_v45 = vpop.f32.mrb[235].mxu1  ;;  %v10328_v17 = vld [vmem:[#allocation178_spill] sm:$0xff] }
 0x2be   : > { %v4944_v44 = vmax.f32 %v10319_v43, %v3723_v46  ;;  %v7217_v10 = vpack.c.bf16 %v5459_v9, %v5458_v8  ;;  %v5199_v51 = vmax.f32 %v4943_v6, %v5071_v63  ;;  %v5072_v18 = vmax.f32 %v10320_v47, %v4747_v45  ;;  %v10329_v9 = vld [vmem:[#allocation179_spill] sm:$0xff]  ;;  %v10330_v46 = vld [vmem:[#allocation180_spill] sm:$0xff] }
 0x2bf   : > { %7334 = vst [vmem:[%s9472_s29 + $0x198] sm:$0xff] %v7222_v27   ;;  %v5336_v22 = vadd.f32 %v9704_v34, %v5201_v40  ;;  %v5202_v39 = vmax.f32 %v4946_v38, %v5074_v42  ;;  %v10331_v40 = vld [vmem:[#allocation181_spill] sm:$0xff]  ;;  %v10333_v47 = vld [vmem:[#allocation183_spill] sm:$0xff] }
 0x2c0   : > { %7333 = vst [vmem:[%s9472_s29 + $0x190] sm:$0xff] %v7217_v10   ;;  %v5334_v24 = vadd.f32 %v9704_v34, %v5199_v51  ;;  %v5200_v53 = vmax.f32 %v4944_v44, %v5072_v18  ;;  %v10332_v10 = vld [vmem:[#allocation182_spill] sm:$0xff] }
 0x2c1   : > { %v5337_v31 = vadd.f32 %v9704_v34, %v5202_v39  ;;  %v5464_v62 = vmax.f32 %v5336_v22, 0.0 }
 0x2c2   : > { %v7847_v1 = vpop.f32.mrb[236].mxu0  ;;  %v5335_v56 = vadd.f32 %v9704_v34, %v5200_v53  ;;  %v8103_v55 = vpop.f32.mrb[236].mxu1  ;;  %v5462_v29 = vmax.f32 %v5334_v24, 0.0 }
 0x2c3   : > { %v4949_v25 = vmax.f32 %v10321_v57, %v7847_v1  ;;  %v3736_v26 = vpop.f32.mrb[237].mxu0  ;;  %v5465_v48 = vmax.f32 %v5337_v31, 0.0  ;;  %v5077_v4 = vmax.f32 %v10322_v12, %v8103_v55  ;;  %v4760_v28 = vpop.f32.mrb[237].mxu1  ;;  %v10334_v31 = vld [vmem:[#allocation184_spill] sm:$0xff] }
 0x2c4   : > { %v4947_v49 = vmax.f32 %v10323_v5, %v3736_v26  ;;  %v7848_v50 = vpop.f32.mrb[238].mxu0  ;;  %v5463_v32 = vmax.f32 %v5335_v56, 0.0  ;;  %v5075_v35 = vmax.f32 %v10324_v33, %v4760_v28  ;;  %v8104_v58 = vpop.f32.mrb[238].mxu1  ;;  %v10335_v56 = vld [vmem:[#allocation185_spill] sm:$0xff] }
 0x2c5   : > { %v4950_v54 = vmax.f32 %v10325_v52, %v7848_v50  ;;  %v3739_v59 = vpop.f32.mrb[239].mxu0  ;;  %v7232_v0 = vpack.c.bf16 %v5465_v48, %v5464_v62  ;;  %v5205_v14 = vmax.f32 %v4949_v25, %v5077_v4  ;;  %v5078_v15 = vmax.f32 %v10326_v2, %v8104_v58  ;;  %v4763_v60 = vpop.f32.mrb[239].mxu1  ;;  %v10336_v62 = vld [vmem:[#allocation186_spill] sm:$0xff] }
 0x2c6   : > { %v4948_v3 = vmax.f32 %v10327_v30, %v3739_v59  ;;  %v7227_v61 = vpack.c.bf16 %v5463_v32, %v5462_v29  ;;  %v5203_v16 = vmax.f32 %v4947_v49, %v5075_v35  ;;  %v5076_v20 = vmax.f32 %v10328_v17, %v4763_v60  ;;  %v10337_v32 = vld [vmem:[#allocation187_spill] sm:$0xff]  ;;  %v10338_v59 = vld [vmem:[#allocation188_spill] sm:$0xff] }
 0x2c7   : > { %7336 = vst [vmem:[%s9472_s29 + $0x1a8] sm:$0xff] %v7232_v0   ;;  %v5340_v21 = vadd.f32 %v9704_v34, %v5205_v14  ;;  %v5206_v23 = vmax.f32 %v4950_v54, %v5078_v15  ;;  %v10339_v14 = vld [vmem:[#allocation189_spill] sm:$0xff]  ;;  %v10341_v17 = vld [vmem:[#allocation191_spill] sm:$0xff] }
 0x2c8   : > { %7335 = vst [vmem:[%s9472_s29 + $0x1a0] sm:$0xff] %v7227_v61   ;;  %v5338_v19 = vadd.f32 %v9704_v34, %v5203_v16  ;;  %v5204_v6 = vmax.f32 %v4948_v3, %v5076_v20  ;;  %v10340_v61 = vld [vmem:[#allocation190_spill] sm:$0xff] }
 0x2c9   : > { %v5341_v7 = vadd.f32 %v9704_v34, %v5206_v23  ;;  %v5468_v38 = vmax.f32 %v5340_v21, 0.0 }
 0x2ca   : > { %v7851_v36 = vpop.f32.mrb[240].mxu0  ;;  %v5339_v8 = vadd.f32 %v9704_v34, %v5204_v6  ;;  %v8107_v63 = vpop.f32.mrb[240].mxu1  ;;  %v5466_v44 = vmax.f32 %v5338_v19, 0.0 }
 0x2cb   : > { %v4953_v11 = vmax.f32 %v10329_v9, %v7851_v36  ;;  %v3752_v37 = vpop.f32.mrb[241].mxu0  ;;  %v5469_v13 = vmax.f32 %v5341_v7, 0.0  ;;  %v5081_v27 = vmax.f32 %v10330_v46, %v8107_v63  ;;  %v4776_v42 = vpop.f32.mrb[241].mxu1  ;;  %v10342_v7 = vld [vmem:[#allocation192_spill] sm:$0xff] }
 0x2cc   : > { %v4951_v41 = vmax.f32 %v10331_v40, %v3752_v37  ;;  %v7852_v43 = vpop.f32.mrb[242].mxu0  ;;  %v5467_v45 = vmax.f32 %v5339_v8, 0.0  ;;  %v5079_v51 = vmax.f32 %v10332_v10, %v4776_v42  ;;  %v8108_v22 = vpop.f32.mrb[242].mxu1  ;;  %v10343_v8 = vld [vmem:[#allocation193_spill] sm:$0xff] }
 0x2cd   : > { %v4954_v18 = vmax.f32 %v10333_v47, %v7852_v43  ;;  %v3755_v39 = vpop.f32.mrb[243].mxu0  ;;  %v7242_v24 = vpack.c.bf16 %v5469_v13, %v5468_v38  ;;  %v5209_v53 = vmax.f32 %v4953_v11, %v5081_v27  ;;  %v5082_v1 = vmax.f32 %v10334_v31, %v8108_v22  ;;  %v4779_v25 = vpop.f32.mrb[243].mxu1  ;;  %v10344_v38 = vld [vmem:[#allocation194_spill] sm:$0xff] }
 0x2ce   : > { %v4952_v57 = vmax.f32 %v10335_v56, %v3755_v39  ;;  %v7237_v55 = vpack.c.bf16 %v5467_v45, %v5466_v44  ;;  %v5207_v26 = vmax.f32 %v4951_v41, %v5079_v51  ;;  %v5080_v48 = vmax.f32 %v10336_v62, %v4779_v25  ;;  %v10345_v45 = vld [vmem:[#allocation195_spill] sm:$0xff]  ;;  %v10346_v39 = vld [vmem:[#allocation196_spill] sm:$0xff] }
 0x2cf   : > { %7338 = vst [vmem:[%s9472_s29 + $0x1b8] sm:$0xff] %v7242_v24   ;;  %v5344_v12 = vadd.f32 %v9704_v34, %v5209_v53  ;;  %v5210_v4 = vmax.f32 %v4954_v18, %v5082_v1  ;;  %v10347_v53 = vld [vmem:[#allocation197_spill] sm:$0xff]  ;;  %v10349_v62 = vld [vmem:[#allocation199_spill] sm:$0xff] }
 0x2d0   : > { %7337 = vst [vmem:[%s9472_s29 + $0x1b0] sm:$0xff] %v7237_v55   ;;  %v5342_v5 = vadd.f32 %v9704_v34, %v5207_v26  ;;  %v5208_v49 = vmax.f32 %v4952_v57, %v5080_v48  ;;  %v10348_v55 = vld [vmem:[#allocation198_spill] sm:$0xff] }
 0x2d1   : > { %v5345_v28 = vadd.f32 %v9704_v34, %v5210_v4  ;;  %v5472_v54 = vmax.f32 %v5344_v12, 0.0 }
 0x2d2   : > { %v7855_v50 = vpop.f32.mrb[244].mxu0  ;;  %v5343_v29 = vadd.f32 %v9704_v34, %v5208_v49  ;;  %v8111_v35 = vpop.f32.mrb[244].mxu1  ;;  %v5470_v3 = vmax.f32 %v5342_v5, 0.0 }
 0x2d3   : > { %v4957_v33 = vmax.f32 %v10337_v32, %v7855_v50  ;;  %v3768_v52 = vpop.f32.mrb[245].mxu0  ;;  %v5473_v58 = vmax.f32 %v5345_v28, 0.0  ;;  %v5085_v0 = vmax.f32 %v10338_v59, %v8111_v35  ;;  %v4792_v15 = vpop.f32.mrb[245].mxu1  ;;  %v10350_v28 = vld [vmem:[#allocation200_spill] sm:$0xff] }
 0x2d4   : > { %v4955_v2 = vmax.f32 %v10339_v14, %v3768_v52  ;;  %v7856_v30 = vpop.f32.mrb[246].mxu0  ;;  %v5471_v60 = vmax.f32 %v5343_v29, 0.0  ;;  %v5083_v16 = vmax.f32 %v10340_v61, %v4792_v15  ;;  %v8112_v21 = vpop.f32.mrb[246].mxu1  ;;  %v10351_v29 = vld [vmem:[#allocation201_spill] sm:$0xff] }
 0x2d5   : > { %v4958_v20 = vmax.f32 %v10341_v17, %v7856_v30  ;;  %v3771_v23 = vpop.f32.mrb[247].mxu0  ;;  %v7252_v19 = vpack.c.bf16 %v5473_v58, %v5472_v54  ;;  %v5213_v6 = vmax.f32 %v4957_v33, %v5085_v0  ;;  %v5086_v36 = vmax.f32 %v10342_v7, %v8112_v21  ;;  %v4795_v11 = vpop.f32.mrb[247].mxu1  ;;  %v10352_v54 = vld [vmem:[#allocation202_spill] sm:$0xff] }
 0x2d6   : > { %v4956_v9 = vmax.f32 %v10343_v8, %v3771_v23  ;;  %v7247_v63 = vpack.c.bf16 %v5471_v60, %v5470_v3  ;;  %v5211_v37 = vmax.f32 %v4955_v2, %v5083_v16  ;;  %v5084_v13 = vmax.f32 %v10344_v38, %v4795_v11  ;;  %v10353_v60 = vld [vmem:[#allocation203_spill] sm:$0xff]  ;;  %v10354_v23 = vld [vmem:[#allocation204_spill] sm:$0xff] }
 0x2d7   : > { %7340 = vst [vmem:[%s9472_s29 + $0x1c8] sm:$0xff] %v7252_v19   ;;  %v5348_v46 = vadd.f32 %v9704_v34, %v5213_v6  ;;  %v5214_v27 = vmax.f32 %v4958_v20, %v5086_v36  ;;  %v10355_v6 = vld [vmem:[#allocation205_spill] sm:$0xff]  ;;  %v10357_v38 = vld [vmem:[#allocation207_spill] sm:$0xff] }
 0x2d8   : > { %7339 = vst [vmem:[%s9472_s29 + $0x1c0] sm:$0xff] %v7247_v63   ;;  %v5346_v40 = vadd.f32 %v9704_v34, %v5211_v37  ;;  %v5212_v41 = vmax.f32 %v4956_v9, %v5084_v13  ;;  %v10356_v63 = vld [vmem:[#allocation206_spill] sm:$0xff] }
 0x2d9   : > { %v5349_v42 = vadd.f32 %v9704_v34, %v5214_v27  ;;  %v5476_v18 = vmax.f32 %v5348_v46, 0.0 }
 0x2da   : > { %v7859_v43 = vpop.f32.mrb[248].mxu0  ;;  %v5347_v44 = vadd.f32 %v9704_v34, %v5212_v41  ;;  %v8115_v51 = vpop.f32.mrb[248].mxu1  ;;  %v5474_v57 = vmax.f32 %v5346_v40, 0.0  ;;  %v10358_v41 = vld [vmem:[#allocation208_spill] sm:$0xff] }
 0x2db   : > { %v4961_v10 = vmax.f32 %v10345_v45, %v7859_v43  ;;  %v3784_v47 = vpop.f32.mrb[249].mxu0  ;;  %v5477_v22 = vmax.f32 %v5349_v42, 0.0  ;;  %v5089_v24 = vmax.f32 %v10346_v39, %v8115_v51  ;;  %v4808_v1 = vpop.f32.mrb[249].mxu1  ;;  %v10359_v43 = vld [vmem:[#allocation209_spill] sm:$0xff] }
 0x2dc   : > { %v4959_v31 = vmax.f32 %v10347_v53, %v3784_v47  ;;  %v7860_v56 = vpop.f32.mrb[250].mxu0  ;;  %v5475_v25 = vmax.f32 %v5347_v44, 0.0  ;;  %v5087_v26 = vmax.f32 %v10348_v55, %v4808_v1  ;;  %v8116_v12 = vpop.f32.mrb[250].mxu1  ;;  %v10360_v47 = vld [vmem:[#allocation210_spill] sm:$0xff] }
 0x2dd   : > { %v4962_v48 = vmax.f32 %v10349_v62, %v7860_v56  ;;  %v3787_v4 = vpop.f32.mrb[251].mxu0  ;;  %v7262_v5 = vpack.c.bf16 %v5477_v22, %v5476_v18  ;;  %v5217_v49 = vmax.f32 %v4961_v10, %v5089_v24  ;;  %v5090_v50 = vmax.f32 %v10350_v28, %v8116_v12  ;;  %v4811_v33 = vpop.f32.mrb[251].mxu1  ;;  %v8393_v22 = vld [vmem:[%s9941_s2] ss:$0 sm:$0xff] }
 0x2de   : > { %v4960_v32 = vmax.f32 %v10351_v29, %v3787_v4  ;;  %v7257_v35 = vpack.c.bf16 %v5475_v25, %v5474_v57  ;;  %v5215_v52 = vmax.f32 %v4959_v31, %v5087_v26  ;;  %v5088_v58 = vmax.f32 %v10352_v54, %v4811_v33 }
 0x2df   : > { %7342 = vst [vmem:[%s9472_s29 + $0x1d8] sm:$0xff] %v7262_v5   ;;  %v5352_v59 = vadd.f32 %v9704_v34, %v5217_v49  ;;  %v5218_v0 = vmax.f32 %v4962_v48, %v5090_v50 }
 0x2e0   : > { %7341 = vst [vmem:[%s9472_s29 + $0x1d0] sm:$0xff] %v7257_v35   ;;  %v5350_v14 = vadd.f32 %v9704_v34, %v5215_v52  ;;  %v5216_v2 = vmax.f32 %v4960_v32, %v5088_v58 }
 0x2e1   : > { %v5353_v15 = vadd.f32 %v9704_v34, %v5218_v0  ;;  %v5480_v20 = vmax.f32 %v5352_v59, 0.0 }
 0x2e2   : > { %v7863_v30 = vpop.f32.mrb[252].mxu0  ;;  %v5351_v3 = vadd.f32 %v9704_v34, %v5216_v2  ;;  %v8119_v16 = vpop.f32.mrb[252].mxu1  ;;  %v5478_v9 = vmax.f32 %v5350_v14, 0.0 }
 0x2e3   : > { %v4965_v61 = vmax.f32 %v10353_v60, %v7863_v30  ;;  %v3800_v17 = vpop.f32.mrb[253].mxu0  ;;  %v5481_v21 = vmax.f32 %v5353_v15, 0.0  ;;  %v5093_v19 = vmax.f32 %v10354_v23, %v8119_v16  ;;  %v4824_v36 = vpop.f32.mrb[253].mxu1 }
 0x2e4   : > { %v4963_v7 = vmax.f32 %v10355_v6, %v3800_v17  ;;  %v7864_v8 = vpop.f32.mrb[254].mxu0  ;;  %v5479_v11 = vmax.f32 %v5351_v3, 0.0  ;;  %v5091_v37 = vmax.f32 %v10356_v63, %v4824_v36  ;;  %v8120_v13 = vpop.f32.mrb[254].mxu1 }
 0x2e5   : > { %v4966_v34 = vmax.f32 %v10357_v38, %v7864_v8  ;;  %v3803_v46 = vpop.f32.mrb[255].mxu0  ;;  %v7272_v27 = vpack.c.bf16 %v5481_v21, %v5480_v20  ;;  %v5221_v40 = vmax.f32 %v4965_v61, %v5093_v19  ;;  %v5094_v42 = vmax.f32 %v10358_v41, %v8120_v13  ;;  %v4827_v45 = vpop.f32.mrb[255].mxu1 }
 0x2e6   : > { %v4964_v44 = vmax.f32 %v10359_v43, %v3803_v46  ;;  %v7267_v10 = vpack.c.bf16 %v5479_v11, %v5478_v9  ;;  %v5219_v51 = vmax.f32 %v4963_v7, %v5091_v37  ;;  %v5092_v18 = vmax.f32 %v10360_v47, %v4827_v45 }
 0x2e7   : > { %7344 = vst [vmem:[%s9472_s29 + $0x1e8] sm:$0xff] %v7272_v27   ;;  %v5356_v39 = vadd.f32 %v8393_v22, %v5221_v40  ;;  %v5222_v24 = vmax.f32 %v4966_v34, %v5094_v42 }
 0x2e8   : > { %7343 = vst [vmem:[%s9472_s29 + $0x1e0] sm:$0xff] %v7267_v10   ;;  %v5354_v53 = vadd.f32 %v8393_v22, %v5219_v51  ;;  %v5220_v31 = vmax.f32 %v4964_v44, %v5092_v18 }
 0x2e9   : > { %v5357_v1 = vadd.f32 %v8393_v22, %v5222_v24  ;;  %v5484_v57 = vmax.f32 %v5356_v39, 0.0 }
 0x2ea   : > { %v5355_v56 = vadd.f32 %v8393_v22, %v5220_v31  ;;  %v5482_v55 = vmax.f32 %v5354_v53, 0.0 }
 0x2eb   : > { %v5485_v25 = vmax.f32 %v5357_v1, 0.0 }
 0x2ec   : > { %v5483_v26 = vmax.f32 %v5355_v56, 0.0 }
 0x2ed   : > { %v7282_v62 = vpack.c.bf16 %v5485_v25, %v5484_v57 }
 0x2ee   : > { %v7277_v48 = vpack.c.bf16 %v5483_v26, %v5482_v55 }
 0x2ef   : > { %7346 = vst [vmem:[%s9472_s29 + $0x1f8] sm:$0xff] %v7282_v62  }
 0x2f0   : > { %7345 = vst [vmem:[%s9472_s29 + $0x1f0] sm:$0xff] %v7277_v48  }
 0x2f1 PF: > { %s13_s12 = sadd.s32 1, %s8400_s12  }
 0x2f2   : > { %p10_p5 = scmp.ge.s32.totalorder %s13_s12, 4  }
 0x2f4   :  { %12 = sbr.rel (!%p10_p5) target bundleno = 1 (0x1), region = 62 }

// kernel: net_forward.5
= control target key start
LH: loop header
LB: loop body
LE: loop exit
PB: predicated region body
PF: predicated region fallthrough
CT: control target
= control target key end

     0   :  { %v4714_v0 = vmov 0   ;;  %vm1495_vm0 = vcmask 130048   ;;  %s6212_s1 = inlined_call_operand.vmem [shape: bf16[144,128], index: 1, kind: input, shape index: {}]   ;;  %s6213_s0 = inlined_call_operand.vmem [shape: bf16[2048,144], index: 0, kind: input, shape index: {}]   ;;  %s6214_s2 = inlined_call_operand.vmem [shape: f32[1,128], index: 2, kind: input, shape index: {}]   ;;  %s6215_s3 = inlined_call_operand.vmem [shape: bf16[512,128], index: 3, kind: output, shape index: {}]  }
   0x1   :  { %1880 = vmatprep.subr.bf16.mxu0 %v4714_v0  ;;  %4301 = vmatprep.subr.bf16.mxu1 %v4714_v0  ;;  %v4320_v1 = vld [vmem:[%s6212_s1] sm:$0xff]   ;;  %v4321_v2 = vld [vmem:[%s6212_s1 + $0x8] sm:$0xff]   ;;  %v4322_v3 = vld [vmem:[%s6212_s1 + $0x10] sm:$0xff]  }
   0x2   :  { %1881 = vmatpush1.bf16.msra.mxu0 %v4320_v1  ;;  %4310 = vmatpush1.bf16.msra.mxu1 %v4320_v1  ;;  %v4323_v4 = vld [vmem:[%s6212_s1 + $0x18] sm:$0xff]   ;;  %v4331_v5 = vld [vmem:[%s6213_s0 + $0x4] ss:$8 sps:$4 sm:$0xff]   ;;  %v4326_v9 = vld [vmem:[%s6212_s1 + $0x30] sm:$0xff]  }
   0x3   :  { %1882 = vmatprep.subr.bf16.mxu0 %v4714_v0  ;;  %4302 = vmatprep.subr.bf16.mxu1 %v4714_v0  ;;  %v4334_v6 = vld [vmem:[%s6213_s0 + $0x404] ss:$8 sps:$4 sm:$0xff]   ;;  %v4327_v10 = vld [vmem:[%s6212_s1 + $0x38] sm:$0xff]   ;;  %v4329_v12 = vld [vmem:[%s6213_s0] ss:$8 sps:$4 sm:$0xff]  }
   0x4   :  { %3853 = vmatprep.mubr.msk.bf16.mxu0 %vm1495_vm0, %v4331_v5  ;;  %3917 = vmatprep.mubr.msk.bf16.mxu1 %vm1495_vm0, %v4334_v6  ;;  %v4324_v7 = vld [vmem:[%s6212_s1 + $0x20] sm:$0xff]   ;;  %v4325_v8 = vld [vmem:[%s6212_s1 + $0x28] sm:$0xff]   ;;  %v4335_v14 = vld [vmem:[%s6213_s0 + $0x14] ss:$8 sps:$4 sm:$0xff]  }
   0x5   :  { %v4328_v11 = vld [vmem:[%s6212_s1 + $0x40] sm:$0xff]   ;;  %v4337_v15 = vld [vmem:[%s6213_s0 + $0x414] ss:$8 sps:$4 sm:$0xff]   ;;  %v4339_v16 = vld [vmem:[%s6213_s0 + $0x10] ss:$8 sps:$4 sm:$0xff]  }
   0x6   :  { %1883 = vmatpush1.bf16.msra.mxu0 %v4321_v2  ;;  %4311 = vmatpush1.bf16.msra.mxu1 %v4321_v2  ;;  %v4332_v13 = vld [vmem:[%s6213_s0 + $0x400] ss:$8 sps:$4 sm:$0xff]   ;;  %v4340_v17 = vld [vmem:[%s6213_s0 + $0x410] ss:$8 sps:$4 sm:$0xff]   ;;  %v4341_v18 = vld [vmem:[%s6213_s0 + $0x24] ss:$8 sps:$4 sm:$0xff]  }
   0x7   :  { %1884 = vmatprep.subr.bf16.mxu0 %v4714_v0  ;;  %4303 = vmatprep.subr.bf16.mxu1 %v4714_v0  ;;  %v4343_v19 = vld [vmem:[%s6213_s0 + $0x424] ss:$8 sps:$4 sm:$0xff]   ;;  %v4345_v20 = vld [vmem:[%s6213_s0 + $0x20] ss:$8 sps:$4 sm:$0xff]   ;;  %v4347_v22 = vld [vmem:[%s6213_s0 + $0x34] ss:$8 sps:$4 sm:$0xff]  }
   0x8   :  { %v4346_v21 = vld [vmem:[%s6213_s0 + $0x420] ss:$8 sps:$4 sm:$0xff]   ;;  %v4349_v23 = vld [vmem:[%s6213_s0 + $0x434] ss:$8 sps:$4 sm:$0xff]   ;;  %v4351_v24 = vld [vmem:[%s6213_s0 + $0x30] ss:$8 sps:$4 sm:$0xff]  }
   0x9   :  { %v4352_v25 = vld [vmem:[%s6213_s0 + $0x430] ss:$8 sps:$4 sm:$0xff]   ;;  %v4353_v26 = vld [vmem:[%s6213_s0 + $0x44] ss:$8 sps:$4 sm:$0xff]   ;;  %v4357_v28 = vld [vmem:[%s6213_s0 + $0x40] ss:$8 sps:$4 sm:$0xff]  }
   0xa   :  { %1885 = vmatpush1.bf16.msra.mxu0 %v4322_v3  ;;  %4312 = vmatpush1.bf16.msra.mxu1 %v4322_v3  ;;  %v4355_v27 = vld [vmem:[%s6213_s0 + $0x444] ss:$8 sps:$4 sm:$0xff]   ;;  %v4358_v29 = vld [vmem:[%s6213_s0 + $0x440] ss:$8 sps:$4 sm:$0xff]   ;;  %v4359_v30 = vld [vmem:[%s6213_s0 + $0x54] ss:$8 sps:$4 sm:$0xff]  }
   0xb   :  { %1886 = vmatprep.subr.bf16.mxu0 %v4714_v0  ;;  %4304 = vmatprep.subr.bf16.mxu1 %v4714_v0  ;;  %v4361_v31 = vld [vmem:[%s6213_s0 + $0x454] ss:$8 sps:$4 sm:$0xff]   ;;  %v4363_v32 = vld [vmem:[%s6213_s0 + $0x50] ss:$8 sps:$4 sm:$0xff]   ;;  %v4365_v34 = vld [vmem:[%s6213_s0 + $0x64] ss:$8 sps:$4 sm:$0xff]  }
   0xc   :  { %v4364_v33 = vld [vmem:[%s6213_s0 + $0x450] ss:$8 sps:$4 sm:$0xff]   ;;  %v4367_v35 = vld [vmem:[%s6213_s0 + $0x464] ss:$8 sps:$4 sm:$0xff]   ;;  %v4369_v36 = vld [vmem:[%s6213_s0 + $0x60] ss:$8 sps:$4 sm:$0xff]  }
   0xd   :  { %v4370_v37 = vld [vmem:[%s6213_s0 + $0x460] ss:$8 sps:$4 sm:$0xff]   ;;  %v4371_v38 = vld [vmem:[%s6213_s0 + $0x74] ss:$8 sps:$4 sm:$0xff]   ;;  %v4375_v40 = vld [vmem:[%s6213_s0 + $0x70] ss:$8 sps:$4 sm:$0xff]  }
   0xe   :  { %1887 = vmatpush1.bf16.msra.mxu0 %v4323_v4  ;;  %4313 = vmatpush1.bf16.msra.mxu1 %v4323_v4  ;;  %v4373_v39 = vld [vmem:[%s6213_s0 + $0x474] ss:$8 sps:$4 sm:$0xff]   ;;  %v4376_v41 = vld [vmem:[%s6213_s0 + $0x470] ss:$8 sps:$4 sm:$0xff]   ;;  %v4377_v42 = vld [vmem:[%s6213_s0 + $0x84] ss:$8 sps:$4 sm:$0xff]  }
   0xf   :  { %1888 = vmatprep.subr.bf16.mxu0 %v4714_v0  ;;  %4305 = vmatprep.subr.bf16.mxu1 %v4714_v0  ;;  %v4379_v43 = vld [vmem:[%s6213_s0 + $0x484] ss:$8 sps:$4 sm:$0xff]   ;;  %v4381_v44 = vld [vmem:[%s6213_s0 + $0x80] ss:$8 sps:$4 sm:$0xff]   ;;  %v4383_v46 = vld [vmem:[%s6213_s0 + $0x94] ss:$8 sps:$4 sm:$0xff]  }
  0x10   :  { %v4382_v45 = vld [vmem:[%s6213_s0 + $0x480] ss:$8 sps:$4 sm:$0xff]   ;;  %v4385_v47 = vld [vmem:[%s6213_s0 + $0x494] ss:$8 sps:$4 sm:$0xff]   ;;  %v4387_v48 = vld [vmem:[%s6213_s0 + $0x90] ss:$8 sps:$4 sm:$0xff]  }
  0x11   :  { %v4388_v49 = vld [vmem:[%s6213_s0 + $0x490] ss:$8 sps:$4 sm:$0xff]   ;;  %v4389_v50 = vld [vmem:[%s6213_s0 + $0xa4] ss:$8 sps:$4 sm:$0xff]   ;;  %v4393_v52 = vld [vmem:[%s6213_s0 + $0xa0] ss:$8 sps:$4 sm:$0xff]  }
  0x12   :  { %1889 = vmatpush1.bf16.msra.mxu0 %v4324_v7  ;;  %4314 = vmatpush1.bf16.msra.mxu1 %v4324_v7  ;;  %v4391_v51 = vld [vmem:[%s6213_s0 + $0x4a4] ss:$8 sps:$4 sm:$0xff]   ;;  %v4394_v53 = vld [vmem:[%s6213_s0 + $0x4a0] ss:$8 sps:$4 sm:$0xff]   ;;  %v4395_v54 = vld [vmem:[%s6213_s0 + $0xb4] ss:$8 sps:$4 sm:$0xff]  }
  0x13   :  { %1890 = vmatprep.subr.bf16.mxu0 %v4714_v0  ;;  %4306 = vmatprep.subr.bf16.mxu1 %v4714_v0  ;;  %v4397_v55 = vld [vmem:[%s6213_s0 + $0x4b4] ss:$8 sps:$4 sm:$0xff]   ;;  %v4399_v56 = vld [vmem:[%s6213_s0 + $0xb0] ss:$8 sps:$4 sm:$0xff]   ;;  %v4401_v58 = vld [vmem:[%s6213_s0 + $0xc4] ss:$8 sps:$4 sm:$0xff]  }
  0x14   :  { %v4400_v57 = vld [vmem:[%s6213_s0 + $0x4b0] ss:$8 sps:$4 sm:$0xff]   ;;  %v4403_v59 = vld [vmem:[%s6213_s0 + $0x4c4] ss:$8 sps:$4 sm:$0xff]   ;;  %v4405_v60 = vld [vmem:[%s6213_s0 + $0xc0] ss:$8 sps:$4 sm:$0xff]  }
  0x15   :  { %v4406_v61 = vld [vmem:[%s6213_s0 + $0x4c0] ss:$8 sps:$4 sm:$0xff]   ;;  %v4407_v62 = vld [vmem:[%s6213_s0 + $0xd4] ss:$8 sps:$4 sm:$0xff]   ;;  %v4412_v1 = vld [vmem:[%s6213_s0 + $0x4d0] ss:$8 sps:$4 sm:$0xff]  }
  0x16   :  { %1891 = vmatpush1.bf16.msra.mxu0 %v4325_v8  ;;  %4315 = vmatpush1.bf16.msra.mxu1 %v4325_v8  ;;  %v4409_v63 = vld [vmem:[%s6213_s0 + $0x4d4] ss:$8 sps:$4 sm:$0xff]   ;;  %v4413_v2 = vld [vmem:[%s6213_s0 + $0xe4] ss:$8 sps:$4 sm:$0xff]   ;;  %v4417_v4 = vld [vmem:[%s6213_s0 + $0xe0] ss:$8 sps:$4 sm:$0xff]  }
  0x17   :  { %1892 = vmatprep.subr.bf16.mxu0 %v4714_v0  ;;  %4307 = vmatprep.subr.bf16.mxu1 %v4714_v0  ;;  %v4415_v3 = vld [vmem:[%s6213_s0 + $0x4e4] ss:$8 sps:$4 sm:$0xff]   ;;  %v4418_v5 = vld [vmem:[%s6213_s0 + $0x4e0] ss:$8 sps:$4 sm:$0xff]   ;;  %v4419_v6 = vld [vmem:[%s6213_s0 + $0xf4] ss:$8 sps:$4 sm:$0xff]  }
  0x18   :  { %v4421_v7 = vld [vmem:[%s6213_s0 + $0x4f4] ss:$8 sps:$4 sm:$0xff]   ;;  %v4423_v8 = vld [vmem:[%s6213_s0 + $0xf0] ss:$8 sps:$4 sm:$0xff]  }
  0x1a   :  { %1893 = vmatpush1.bf16.msra.mxu0 %v4326_v9  ;;  %4316 = vmatpush1.bf16.msra.mxu1 %v4326_v9  ;;  %v4424_v9 = vld [vmem:[%s6213_s0 + $0x4f0] ss:$8 sps:$4 sm:$0xff]  }
  0x1b   :  { %1894 = vmatprep.subr.bf16.mxu0 %v4714_v0  ;;  %4308 = vmatprep.subr.bf16.mxu1 %v4714_v0 }
  0x1e   :  { %1895 = vmatpush1.bf16.msra.mxu0 %v4327_v10  ;;  %4317 = vmatpush1.bf16.msra.mxu1 %v4327_v10  ;;  %v4425_v10 = vld [vmem:[%s6213_s0 + $0x104] ss:$8 sps:$4 sm:$0xff]  }
  0x1f   :  { %1896 = vmatprep.subr.bf16.mxu0 %v4714_v0  ;;  %4309 = vmatprep.subr.bf16.mxu1 %v4714_v0  ;;  %v4411_v0 = vld [vmem:[%s6213_s0 + $0xd0] ss:$8 sps:$4 sm:$0xff]  }
  0x22   :  { %1897 = vmatpush1.bf16.msra.mxu0 %v4328_v11  ;;  %4318 = vmatpush1.bf16.msra.mxu1 %v4328_v11  ;;  %v4427_v11 = vld [vmem:[%s6213_s0 + $0x504] ss:$8 sps:$4 sm:$0xff]  }
  0x25   :  { %1913 = vmatmul.mubr.bf16.vlgmr.msra.gmra.mrb[0].mxu0 %v4329_v12  ;;  %2425 = vmatmul.mubr.bf16.vlgmr.msra.gmra.mrb[0].mxu1 %v4332_v13  ;;  %v4429_v12 = vld [vmem:[%s6213_s0 + $0x100] ss:$8 sps:$4 sm:$0xff]  }
  0x26   :  { %3854 = vmatprep.mubr.msk.bf16.mxu0 %vm1495_vm0, %v4335_v14  ;;  %3918 = vmatprep.mubr.msk.bf16.mxu1 %vm1495_vm0, %v4337_v15  ;;  %v4430_v13 = vld [vmem:[%s6213_s0 + $0x500] ss:$8 sps:$4 sm:$0xff]   ;;  %v4431_v14 = vld [vmem:[%s6213_s0 + $0x114] ss:$8 sps:$4 sm:$0xff]  }
  0x27   :  { %v4433_v15 = vld [vmem:[%s6213_s0 + $0x514] ss:$8 sps:$4 sm:$0xff]  }
  0x2d   :  { %1921 = vmatmul.mubr.bf16.gmra.mrb[4].mxu0 %v4339_v16  ;;  %2433 = vmatmul.mubr.bf16.gmra.mrb[4].mxu1 %v4340_v17  ;;  %v4435_v16 = vld [vmem:[%s6213_s0 + $0x110] ss:$8 sps:$4 sm:$0xff]  }
  0x2e   :  { %3855 = vmatprep.mubr.msk.bf16.mxu0 %vm1495_vm0, %v4341_v18  ;;  %3919 = vmatprep.mubr.msk.bf16.mxu1 %vm1495_vm0, %v4343_v19  ;;  %v4436_v17 = vld [vmem:[%s6213_s0 + $0x510] ss:$8 sps:$4 sm:$0xff]   ;;  %v4437_v18 = vld [vmem:[%s6213_s0 + $0x124] ss:$8 sps:$4 sm:$0xff]  }
  0x2f   :  { %v4439_v19 = vld [vmem:[%s6213_s0 + $0x524] ss:$8 sps:$4 sm:$0xff]  }
  0x35   :  { %1929 = vmatmul.mubr.bf16.gmra.mrb[8].mxu0 %v4345_v20  ;;  %2441 = vmatmul.mubr.bf16.gmra.mrb[8].mxu1 %v4346_v21  ;;  %v4441_v20 = vld [vmem:[%s6213_s0 + $0x120] ss:$8 sps:$4 sm:$0xff]  }
  0x36   :  { %3856 = vmatprep.mubr.msk.bf16.mxu0 %vm1495_vm0, %v4347_v22  ;;  %3920 = vmatprep.mubr.msk.bf16.mxu1 %vm1495_vm0, %v4349_v23  ;;  %v4442_v21 = vld [vmem:[%s6213_s0 + $0x520] ss:$8 sps:$4 sm:$0xff]   ;;  %v4443_v22 = vld [vmem:[%s6213_s0 + $0x134] ss:$8 sps:$4 sm:$0xff]  }
  0x37   :  { %v4445_v23 = vld [vmem:[%s6213_s0 + $0x534] ss:$8 sps:$4 sm:$0xff]  }
  0x3d   :  { %1937 = vmatmul.mubr.bf16.gmra.mrb[12].mxu0 %v4351_v24  ;;  %2449 = vmatmul.mubr.bf16.gmra.mrb[12].mxu1 %v4352_v25  ;;  %v4447_v24 = vld [vmem:[%s6213_s0 + $0x130] ss:$8 sps:$4 sm:$0xff]  }
  0x3e   :  { %3857 = vmatprep.mubr.msk.bf16.mxu0 %vm1495_vm0, %v4353_v26  ;;  %3921 = vmatprep.mubr.msk.bf16.mxu1 %vm1495_vm0, %v4355_v27  ;;  %v4448_v25 = vld [vmem:[%s6213_s0 + $0x530] ss:$8 sps:$4 sm:$0xff]   ;;  %v4449_v26 = vld [vmem:[%s6213_s0 + $0x144] ss:$8 sps:$4 sm:$0xff]  }
  0x3f   :  { %v4451_v27 = vld [vmem:[%s6213_s0 + $0x544] ss:$8 sps:$4 sm:$0xff]  }
  0x45   :  { %1945 = vmatmul.mubr.bf16.gmra.mrb[16].mxu0 %v4357_v28  ;;  %2457 = vmatmul.mubr.bf16.gmra.mrb[16].mxu1 %v4358_v29  ;;  %v4453_v28 = vld [vmem:[%s6213_s0 + $0x140] ss:$8 sps:$4 sm:$0xff]  }
  0x46   :  { %3858 = vmatprep.mubr.msk.bf16.mxu0 %vm1495_vm0, %v4359_v30  ;;  %3922 = vmatprep.mubr.msk.bf16.mxu1 %vm1495_vm0, %v4361_v31  ;;  %v4454_v29 = vld [vmem:[%s6213_s0 + $0x540] ss:$8 sps:$4 sm:$0xff]   ;;  %v4455_v30 = vld [vmem:[%s6213_s0 + $0x154] ss:$8 sps:$4 sm:$0xff]  }
  0x47   :  { %v4457_v31 = vld [vmem:[%s6213_s0 + $0x554] ss:$8 sps:$4 sm:$0xff]  }
  0x4d   :  { %1953 = vmatmul.mubr.bf16.gmra.mrb[20].mxu0 %v4363_v32  ;;  %2465 = vmatmul.mubr.bf16.gmra.mrb[20].mxu1 %v4364_v33  ;;  %v4459_v32 = vld [vmem:[%s6213_s0 + $0x150] ss:$8 sps:$4 sm:$0xff]  }
  0x4e   :  { %3859 = vmatprep.mubr.msk.bf16.mxu0 %vm1495_vm0, %v4365_v34  ;;  %3923 = vmatprep.mubr.msk.bf16.mxu1 %vm1495_vm0, %v4367_v35  ;;  %v4460_v33 = vld [vmem:[%s6213_s0 + $0x550] ss:$8 sps:$4 sm:$0xff]   ;;  %v4461_v34 = vld [vmem:[%s6213_s0 + $0x164] ss:$8 sps:$4 sm:$0xff]  }
  0x4f   :  { %v4463_v35 = vld [vmem:[%s6213_s0 + $0x564] ss:$8 sps:$4 sm:$0xff]  }
  0x55   :  { %1961 = vmatmul.mubr.bf16.gmra.mrb[24].mxu0 %v4369_v36  ;;  %2473 = vmatmul.mubr.bf16.gmra.mrb[24].mxu1 %v4370_v37  ;;  %v4465_v36 = vld [vmem:[%s6213_s0 + $0x160] ss:$8 sps:$4 sm:$0xff]  }
  0x56   :  { %3860 = vmatprep.mubr.msk.bf16.mxu0 %vm1495_vm0, %v4371_v38  ;;  %3924 = vmatprep.mubr.msk.bf16.mxu1 %vm1495_vm0, %v4373_v39  ;;  %v4466_v37 = vld [vmem:[%s6213_s0 + $0x560] ss:$8 sps:$4 sm:$0xff]   ;;  %v4467_v38 = vld [vmem:[%s6213_s0 + $0x174] ss:$8 sps:$4 sm:$0xff]  }
  0x57   :  { %v4469_v39 = vld [vmem:[%s6213_s0 + $0x574] ss:$8 sps:$4 sm:$0xff]  }
  0x5d   :  { %1969 = vmatmul.mubr.bf16.gmra.mrb[28].mxu0 %v4375_v40  ;;  %2481 = vmatmul.mubr.bf16.gmra.mrb[28].mxu1 %v4376_v41  ;;  %v4471_v40 = vld [vmem:[%s6213_s0 + $0x170] ss:$8 sps:$4 sm:$0xff]  }
  0x5e   :  { %3861 = vmatprep.mubr.msk.bf16.mxu0 %vm1495_vm0, %v4377_v42  ;;  %3925 = vmatprep.mubr.msk.bf16.mxu1 %vm1495_vm0, %v4379_v43  ;;  %v4472_v41 = vld [vmem:[%s6213_s0 + $0x570] ss:$8 sps:$4 sm:$0xff]   ;;  %v4473_v42 = vld [vmem:[%s6213_s0 + $0x184] ss:$8 sps:$4 sm:$0xff]  }
  0x5f   :  { %v4475_v43 = vld [vmem:[%s6213_s0 + $0x584] ss:$8 sps:$4 sm:$0xff]  }
  0x65   :  { %1977 = vmatmul.mubr.bf16.gmra.mrb[32].mxu0 %v4381_v44  ;;  %2489 = vmatmul.mubr.bf16.gmra.mrb[32].mxu1 %v4382_v45  ;;  %v4477_v44 = vld [vmem:[%s6213_s0 + $0x180] ss:$8 sps:$4 sm:$0xff]  }
  0x66   :  { %3862 = vmatprep.mubr.msk.bf16.mxu0 %vm1495_vm0, %v4383_v46  ;;  %3926 = vmatprep.mubr.msk.bf16.mxu1 %vm1495_vm0, %v4385_v47  ;;  %v4478_v45 = vld [vmem:[%s6213_s0 + $0x580] ss:$8 sps:$4 sm:$0xff]   ;;  %v4479_v46 = vld [vmem:[%s6213_s0 + $0x194] ss:$8 sps:$4 sm:$0xff]  }
  0x67   :  { %v4481_v47 = vld [vmem:[%s6213_s0 + $0x594] ss:$8 sps:$4 sm:$0xff]  }
  0x6d   :  { %1985 = vmatmul.mubr.bf16.gmra.mrb[36].mxu0 %v4387_v48  ;;  %2497 = vmatmul.mubr.bf16.gmra.mrb[36].mxu1 %v4388_v49  ;;  %v4483_v48 = vld [vmem:[%s6213_s0 + $0x190] ss:$8 sps:$4 sm:$0xff]  }
  0x6e   :  { %3863 = vmatprep.mubr.msk.bf16.mxu0 %vm1495_vm0, %v4389_v50  ;;  %3927 = vmatprep.mubr.msk.bf16.mxu1 %vm1495_vm0, %v4391_v51  ;;  %v4484_v49 = vld [vmem:[%s6213_s0 + $0x590] ss:$8 sps:$4 sm:$0xff]   ;;  %v4485_v50 = vld [vmem:[%s6213_s0 + $0x1a4] ss:$8 sps:$4 sm:$0xff]  }
  0x6f   :  { %v4487_v51 = vld [vmem:[%s6213_s0 + $0x5a4] ss:$8 sps:$4 sm:$0xff]  }
  0x75   :  { %1993 = vmatmul.mubr.bf16.gmra.mrb[40].mxu0 %v4393_v52  ;;  %2505 = vmatmul.mubr.bf16.gmra.mrb[40].mxu1 %v4394_v53  ;;  %v4489_v52 = vld [vmem:[%s6213_s0 + $0x1a0] ss:$8 sps:$4 sm:$0xff]  }
  0x76   :  { %3864 = vmatprep.mubr.msk.bf16.mxu0 %vm1495_vm0, %v4395_v54  ;;  %3928 = vmatprep.mubr.msk.bf16.mxu1 %vm1495_vm0, %v4397_v55  ;;  %v4490_v53 = vld [vmem:[%s6213_s0 + $0x5a0] ss:$8 sps:$4 sm:$0xff]   ;;  %v4491_v54 = vld [vmem:[%s6213_s0 + $0x1b4] ss:$8 sps:$4 sm:$0xff]  }
  0x77   :  { %v4493_v55 = vld [vmem:[%s6213_s0 + $0x5b4] ss:$8 sps:$4 sm:$0xff]  }
  0x7d   :  { %2001 = vmatmul.mubr.bf16.gmra.mrb[44].mxu0 %v4399_v56  ;;  %2513 = vmatmul.mubr.bf16.gmra.mrb[44].mxu1 %v4400_v57 }
  0x7e   :  { %3865 = vmatprep.mubr.msk.bf16.mxu0 %vm1495_vm0, %v4401_v58  ;;  %3929 = vmatprep.mubr.msk.bf16.mxu1 %vm1495_vm0, %v4403_v59 }
  0x85   :  { %2009 = vmatmul.mubr.bf16.gmra.mrb[48].mxu0 %v4405_v60  ;;  %2521 = vmatmul.mubr.bf16.gmra.mrb[48].mxu1 %v4406_v61  ;;  %v4495_v60 = vld [vmem:[%s6213_s0 + $0x1b0] ss:$8 sps:$4 sm:$0xff]  }
  0x86   :  { %3866 = vmatprep.mubr.msk.bf16.mxu0 %vm1495_vm0, %v4407_v62  ;;  %3930 = vmatprep.mubr.msk.bf16.mxu1 %vm1495_vm0, %v4409_v63  ;;  %v4496_v61 = vld [vmem:[%s6213_s0 + $0x5b0] ss:$8 sps:$4 sm:$0xff]  }
  0x8d   :  { %2017 = vmatmul.mubr.bf16.gmra.mrb[52].mxu0 %v4411_v0  ;;  %2529 = vmatmul.mubr.bf16.gmra.mrb[52].mxu1 %v4412_v1  ;;  %v4497_v0 = vld [vmem:[%s6213_s0 + $0x1c4] ss:$8 sps:$4 sm:$0xff]  }
  0x8e   :  { %3867 = vmatprep.mubr.msk.bf16.mxu0 %vm1495_vm0, %v4413_v2  ;;  %3931 = vmatprep.mubr.msk.bf16.mxu1 %vm1495_vm0, %v4415_v3  ;;  %v4499_v1 = vld [vmem:[%s6213_s0 + $0x5c4] ss:$8 sps:$4 sm:$0xff]  }
  0x95   :  { %2025 = vmatmul.mubr.bf16.gmra.mrb[56].mxu0 %v4417_v4  ;;  %2537 = vmatmul.mubr.bf16.gmra.mrb[56].mxu1 %v4418_v5 }
  0x96   :  { %3868 = vmatprep.mubr.msk.bf16.mxu0 %vm1495_vm0, %v4419_v6  ;;  %3932 = vmatprep.mubr.msk.bf16.mxu1 %vm1495_vm0, %v4421_v7 }
  0x9d   :  { %2033 = vmatmul.mubr.bf16.gmra.mrb[60].mxu0 %v4423_v8  ;;  %2545 = vmatmul.mubr.bf16.gmra.mrb[60].mxu1 %v4424_v9  ;;  %v4501_v8 = vld [vmem:[%s6213_s0 + $0x1c0] ss:$8 sps:$4 sm:$0xff]  }
  0x9e   :  { %3869 = vmatprep.mubr.msk.bf16.mxu0 %vm1495_vm0, %v4425_v10  ;;  %3933 = vmatprep.mubr.msk.bf16.mxu1 %vm1495_vm0, %v4427_v11  ;;  %v4502_v9 = vld [vmem:[%s6213_s0 + $0x5c0] ss:$8 sps:$4 sm:$0xff]  }
  0xa5   :  { %2041 = vmatmul.mubr.bf16.gmra.mrb[64].mxu0 %v4429_v12  ;;  %2553 = vmatmul.mubr.bf16.gmra.mrb[64].mxu1 %v4430_v13  ;;  %v4503_v12 = vld [vmem:[%s6213_s0 + $0x1d4] ss:$8 sps:$4 sm:$0xff]  }
  0xa6   :  { %3870 = vmatprep.mubr.msk.bf16.mxu0 %vm1495_vm0, %v4431_v14  ;;  %3934 = vmatprep.mubr.msk.bf16.mxu1 %vm1495_vm0, %v4433_v15  ;;  %v4505_v13 = vld [vmem:[%s6213_s0 + $0x5d4] ss:$8 sps:$4 sm:$0xff]  }
  0xad   :  { %2049 = vmatmul.mubr.bf16.gmra.mrb[68].mxu0 %v4435_v16  ;;  %2561 = vmatmul.mubr.bf16.gmra.mrb[68].mxu1 %v4436_v17 }
  0xae   :  { %3871 = vmatprep.mubr.msk.bf16.mxu0 %vm1495_vm0, %v4437_v18  ;;  %3935 = vmatprep.mubr.msk.bf16.mxu1 %vm1495_vm0, %v4439_v19 }
  0xb5   :  { %2057 = vmatmul.mubr.bf16.gmra.mrb[72].mxu0 %v4441_v20  ;;  %2569 = vmatmul.mubr.bf16.gmra.mrb[72].mxu1 %v4442_v21  ;;  %v4507_v20 = vld [vmem:[%s6213_s0 + $0x1d0] ss:$8 sps:$4 sm:$0xff]  }
  0xb6   :  { %3872 = vmatprep.mubr.msk.bf16.mxu0 %vm1495_vm0, %v4443_v22  ;;  %3936 = vmatprep.mubr.msk.bf16.mxu1 %vm1495_vm0, %v4445_v23  ;;  %v4508_v21 = vld [vmem:[%s6213_s0 + $0x5d0] ss:$8 sps:$4 sm:$0xff]  }
  0xbd   :  { %2065 = vmatmul.mubr.bf16.gmra.mrb[76].mxu0 %v4447_v24  ;;  %2577 = vmatmul.mubr.bf16.gmra.mrb[76].mxu1 %v4448_v25  ;;  %v4509_v24 = vld [vmem:[%s6213_s0 + $0x1e4] ss:$8 sps:$4 sm:$0xff]  }
  0xbe   :  { %3873 = vmatprep.mubr.msk.bf16.mxu0 %vm1495_vm0, %v4449_v26  ;;  %3937 = vmatprep.mubr.msk.bf16.mxu1 %vm1495_vm0, %v4451_v27  ;;  %v4511_v25 = vld [vmem:[%s6213_s0 + $0x5e4] ss:$8 sps:$4 sm:$0xff]  }
  0xc5   :  { %2073 = vmatmul.mubr.bf16.gmra.mrb[80].mxu0 %v4453_v28  ;;  %2585 = vmatmul.mubr.bf16.gmra.mrb[80].mxu1 %v4454_v29 }
  0xc6   :  { %3874 = vmatprep.mubr.msk.bf16.mxu0 %vm1495_vm0, %v4455_v30  ;;  %3938 = vmatprep.mubr.msk.bf16.mxu1 %vm1495_vm0, %v4457_v31 }
  0xcd   :  { %2081 = vmatmul.mubr.bf16.gmra.mrb[84].mxu0 %v4459_v32  ;;  %2593 = vmatmul.mubr.bf16.gmra.mrb[84].mxu1 %v4460_v33  ;;  %v4513_v32 = vld [vmem:[%s6213_s0 + $0x1e0] ss:$8 sps:$4 sm:$0xff]  }
  0xce   :  { %3875 = vmatprep.mubr.msk.bf16.mxu0 %vm1495_vm0, %v4461_v34  ;;  %3939 = vmatprep.mubr.msk.bf16.mxu1 %vm1495_vm0, %v4463_v35  ;;  %v4514_v33 = vld [vmem:[%s6213_s0 + $0x5e0] ss:$8 sps:$4 sm:$0xff]  }
  0xd5   :  { %2089 = vmatmul.mubr.bf16.gmra.mrb[88].mxu0 %v4465_v36  ;;  %2601 = vmatmul.mubr.bf16.gmra.mrb[88].mxu1 %v4466_v37  ;;  %v4515_v36 = vld [vmem:[%s6213_s0 + $0x1f4] ss:$8 sps:$4 sm:$0xff]  }
  0xd6   :  { %3876 = vmatprep.mubr.msk.bf16.mxu0 %vm1495_vm0, %v4467_v38  ;;  %3940 = vmatprep.mubr.msk.bf16.mxu1 %vm1495_vm0, %v4469_v39  ;;  %v4517_v37 = vld [vmem:[%s6213_s0 + $0x5f4] ss:$8 sps:$4 sm:$0xff]  }
  0xdd   :  { %2097 = vmatmul.mubr.bf16.gmra.mrb[92].mxu0 %v4471_v40  ;;  %2609 = vmatmul.mubr.bf16.gmra.mrb[92].mxu1 %v4472_v41 }
  0xde   :  { %3877 = vmatprep.mubr.msk.bf16.mxu0 %vm1495_vm0, %v4473_v42  ;;  %3941 = vmatprep.mubr.msk.bf16.mxu1 %vm1495_vm0, %v4475_v43 }
  0xe5   :  { %2105 = vmatmul.mubr.bf16.gmra.mrb[96].mxu0 %v4477_v44  ;;  %2617 = vmatmul.mubr.bf16.gmra.mrb[96].mxu1 %v4478_v45  ;;  %v4519_v44 = vld [vmem:[%s6213_s0 + $0x1f0] ss:$8 sps:$4 sm:$0xff]  }
  0xe6   :  { %3878 = vmatprep.mubr.msk.bf16.mxu0 %vm1495_vm0, %v4479_v46  ;;  %3942 = vmatprep.mubr.msk.bf16.mxu1 %vm1495_vm0, %v4481_v47  ;;  %v4520_v45 = vld [vmem:[%s6213_s0 + $0x5f0] ss:$8 sps:$4 sm:$0xff]  }
  0xed   :  { %2113 = vmatmul.mubr.bf16.gmra.mrb[100].mxu0 %v4483_v48  ;;  %2625 = vmatmul.mubr.bf16.gmra.mrb[100].mxu1 %v4484_v49  ;;  %v4521_v48 = vld [vmem:[%s6213_s0 + $0x204] ss:$8 sps:$4 sm:$0xff]  }
  0xee   :  { %3879 = vmatprep.mubr.msk.bf16.mxu0 %vm1495_vm0, %v4485_v50  ;;  %3943 = vmatprep.mubr.msk.bf16.mxu1 %vm1495_vm0, %v4487_v51  ;;  %v4523_v49 = vld [vmem:[%s6213_s0 + $0x604] ss:$8 sps:$4 sm:$0xff]  }
  0xf5   :  { %2121 = vmatmul.mubr.bf16.gmra.mrb[104].mxu0 %v4489_v52  ;;  %2633 = vmatmul.mubr.bf16.gmra.mrb[104].mxu1 %v4490_v53 }
  0xf6   :  { %3880 = vmatprep.mubr.msk.bf16.mxu0 %vm1495_vm0, %v4491_v54  ;;  %3944 = vmatprep.mubr.msk.bf16.mxu1 %vm1495_vm0, %v4493_v55 }
  0xf8   :  { %v5148_v56 = vpop.f32.mrb[0].mxu0  ;;  %v5150_v57 = vpop.f32.mrb[0].mxu1 }
  0xf9   :  { %v1916_v58 = vpop.f32.mrb[1].mxu0  ;;  %v2428_v59 = vpop.f32.mrb[1].mxu1 }
  0xfa   :  { %v5158_v62 = vpop.f32.mrb[2].mxu0  ;;  %v5160_v63 = vpop.f32.mrb[2].mxu1  ;;  %v4525_v58 = vld [vmem:[%s6213_s0 + $0x200] ss:$8 sps:$4 sm:$0xff]  }
  0xfb   :  { %v1919_v2 = vpop.f32.mrb[3].mxu0  ;;  %v2431_v3 = vpop.f32.mrb[3].mxu1  ;;  %v4526_v59 = vld [vmem:[%s6213_s0 + $0x600] ss:$8 sps:$4 sm:$0xff]  }
  0xfd   :  { %2129 = vmatmul.mubr.bf16.gmra.mrb[108].mxu0 %v4495_v60  ;;  %2641 = vmatmul.mubr.bf16.gmra.mrb[108].mxu1 %v4496_v61 }
  0xfe   :  { %3881 = vmatprep.mubr.msk.bf16.mxu0 %vm1495_vm0, %v4497_v0  ;;  %3945 = vmatprep.mubr.msk.bf16.mxu1 %vm1495_vm0, %v4499_v1  ;;  %v4527_v0 = vld [vmem:[%s6213_s0 + $0x214] ss:$8 sps:$4 sm:$0xff]  }
  0xff   :  { %v4529_v1 = vld [vmem:[%s6213_s0 + $0x614] ss:$8 sps:$4 sm:$0xff]  }
 0x100   :  { %v5170_v4 = vpop.f32.mrb[4].mxu0  ;;  %v5172_v5 = vpop.f32.mrb[4].mxu1 }
 0x101   :  { %v1924_v6 = vpop.f32.mrb[5].mxu0  ;;  %v2436_v7 = vpop.f32.mrb[5].mxu1 }
 0x102   :  { %v5180_v10 = vpop.f32.mrb[6].mxu0  ;;  %v5182_v11 = vpop.f32.mrb[6].mxu1 }
 0x103   :  { %v1927_v14 = vpop.f32.mrb[7].mxu0  ;;  %v2439_v15 = vpop.f32.mrb[7].mxu1 }
 0x105   :  { %2137 = vmatmul.mubr.bf16.gmra.mrb[112].mxu0 %v4501_v8  ;;  %2649 = vmatmul.mubr.bf16.gmra.mrb[112].mxu1 %v4502_v9 }
 0x106   :  { %3882 = vmatprep.mubr.msk.bf16.mxu0 %vm1495_vm0, %v4503_v12  ;;  %3946 = vmatprep.mubr.msk.bf16.mxu1 %vm1495_vm0, %v4505_v13  ;;  %v4531_v12 = vld [vmem:[%s6213_s0 + $0x210] ss:$8 sps:$4 sm:$0xff]  }
 0x107   :  { %v4532_v13 = vld [vmem:[%s6213_s0 + $0x610] ss:$8 sps:$4 sm:$0xff]  }
 0x108   :  { %v5192_v16 = vpop.f32.mrb[8].mxu0  ;;  %v5194_v17 = vpop.f32.mrb[8].mxu1 }
 0x109   :  { %v1932_v18 = vpop.f32.mrb[9].mxu0  ;;  %v2444_v19 = vpop.f32.mrb[9].mxu1 }
 0x10a   :  { %v5202_v22 = vpop.f32.mrb[10].mxu0  ;;  %v5204_v23 = vpop.f32.mrb[10].mxu1  ;;  %v4533_v18 = vld [vmem:[%s6213_s0 + $0x224] ss:$8 sps:$4 sm:$0xff]  }
 0x10b   :  { %v1935_v26 = vpop.f32.mrb[11].mxu0  ;;  %v2447_v27 = vpop.f32.mrb[11].mxu1  ;;  %v4535_v19 = vld [vmem:[%s6213_s0 + $0x624] ss:$8 sps:$4 sm:$0xff]  }
 0x10d   :  { %2145 = vmatmul.mubr.bf16.gmra.mrb[116].mxu0 %v4507_v20  ;;  %2657 = vmatmul.mubr.bf16.gmra.mrb[116].mxu1 %v4508_v21 }
 0x10e   :  { %3883 = vmatprep.mubr.msk.bf16.mxu0 %vm1495_vm0, %v4509_v24  ;;  %3947 = vmatprep.mubr.msk.bf16.mxu1 %vm1495_vm0, %v4511_v25 }
 0x110   :  { %v5214_v28 = vpop.f32.mrb[12].mxu0  ;;  %v5216_v29 = vpop.f32.mrb[12].mxu1 }
 0x111   :  { %v1940_v30 = vpop.f32.mrb[13].mxu0  ;;  %v2452_v31 = vpop.f32.mrb[13].mxu1 }
 0x112   :  { %v5224_v34 = vpop.f32.mrb[14].mxu0  ;;  %v5226_v35 = vpop.f32.mrb[14].mxu1  ;;  %v4537_v30 = vld [vmem:[%s6213_s0 + $0x220] ss:$8 sps:$4 sm:$0xff]  }
 0x113   :  { %v1943_v38 = vpop.f32.mrb[15].mxu0  ;;  %v2455_v39 = vpop.f32.mrb[15].mxu1  ;;  %v4538_v31 = vld [vmem:[%s6213_s0 + $0x620] ss:$8 sps:$4 sm:$0xff]  }
 0x115   :  { %2153 = vmatmul.mubr.bf16.gmra.mrb[120].mxu0 %v4513_v32  ;;  %2665 = vmatmul.mubr.bf16.gmra.mrb[120].mxu1 %v4514_v33 }
 0x116   :  { %3884 = vmatprep.mubr.msk.bf16.mxu0 %vm1495_vm0, %v4515_v36  ;;  %3948 = vmatprep.mubr.msk.bf16.mxu1 %vm1495_vm0, %v4517_v37  ;;  %v4539_v36 = vld [vmem:[%s6213_s0 + $0x234] ss:$8 sps:$4 sm:$0xff]  }
 0x117   :  { %v4541_v37 = vld [vmem:[%s6213_s0 + $0x634] ss:$8 sps:$4 sm:$0xff]  }
 0x118   :  { %v5236_v40 = vpop.f32.mrb[16].mxu0  ;;  %v5238_v41 = vpop.f32.mrb[16].mxu1 }
 0x119   :  { %v1948_v42 = vpop.f32.mrb[17].mxu0  ;;  %v2460_v43 = vpop.f32.mrb[17].mxu1 }
 0x11a   :  { %v5246_v46 = vpop.f32.mrb[18].mxu0  ;;  %v5248_v47 = vpop.f32.mrb[18].mxu1 }
 0x11b   :  { %v1951_v50 = vpop.f32.mrb[19].mxu0  ;;  %v2463_v51 = vpop.f32.mrb[19].mxu1 }
 0x11d   :  { %2161 = vmatmul.mubr.bf16.gmra.mrb[124].mxu0 %v4519_v44  ;;  %2673 = vmatmul.mubr.bf16.gmra.mrb[124].mxu1 %v4520_v45 }
 0x11e   :  { %3885 = vmatprep.mubr.msk.bf16.mxu0 %vm1495_vm0, %v4521_v48  ;;  %3949 = vmatprep.mubr.msk.bf16.mxu1 %vm1495_vm0, %v4523_v49  ;;  %v4543_v48 = vld [vmem:[%s6213_s0 + $0x230] ss:$8 sps:$4 sm:$0xff]  }
 0x11f   :  { %v4544_v49 = vld [vmem:[%s6213_s0 + $0x630] ss:$8 sps:$4 sm:$0xff]  }
 0x120   :  { %v5258_v52 = vpop.f32.mrb[20].mxu0  ;;  %v5260_v53 = vpop.f32.mrb[20].mxu1 }
 0x121   :  { %v1956_v54 = vpop.f32.mrb[21].mxu0  ;;  %v2468_v55 = vpop.f32.mrb[21].mxu1 }
 0x122   :  { %v5268_v60 = vpop.f32.mrb[22].mxu0  ;;  %v5270_v61 = vpop.f32.mrb[22].mxu1  ;;  %v4545_v54 = vld [vmem:[%s6213_s0 + $0x244] ss:$8 sps:$4 sm:$0xff]  }
 0x123   :  { %v1959_v2 = vpop.f32.mrb[23].mxu0  ;;  %v2471_v3 = vpop.f32.mrb[23].mxu1  ;;  %v4547_v55 = vld [vmem:[%s6213_s0 + $0x644] ss:$8 sps:$4 sm:$0xff]  }
 0x125   :  { %2169 = vmatmul.mubr.bf16.gmra.mrb[128].mxu0 %v4525_v58  ;;  %2681 = vmatmul.mubr.bf16.gmra.mrb[128].mxu1 %v4526_v59 }
 0x126   :  { %3886 = vmatprep.mubr.msk.bf16.mxu0 %vm1495_vm0, %v4527_v0  ;;  %3950 = vmatprep.mubr.msk.bf16.mxu1 %vm1495_vm0, %v4529_v1 }
 0x128   :  { %v5280_v6 = vpop.f32.mrb[24].mxu0  ;;  %v5282_v7 = vpop.f32.mrb[24].mxu1 }
 0x129   :  { %v1964_v8 = vpop.f32.mrb[25].mxu0  ;;  %v2476_v9 = vpop.f32.mrb[25].mxu1 }
 0x12a   :  { %v5290_v14 = vpop.f32.mrb[26].mxu0  ;;  %v5292_v15 = vpop.f32.mrb[26].mxu1  ;;  %v4549_v8 = vld [vmem:[%s6213_s0 + $0x240] ss:$8 sps:$4 sm:$0xff]  }
 0x12b   :  { %v1967_v20 = vpop.f32.mrb[27].mxu0  ;;  %v2479_v21 = vpop.f32.mrb[27].mxu1  ;;  %v4550_v9 = vld [vmem:[%s6213_s0 + $0x640] ss:$8 sps:$4 sm:$0xff]  }
 0x12d   :  { %2177 = vmatmul.mubr.bf16.gmra.mrb[132].mxu0 %v4531_v12  ;;  %2689 = vmatmul.mubr.bf16.gmra.mrb[132].mxu1 %v4532_v13 }
 0x12e   :  { %3887 = vmatprep.mubr.msk.bf16.mxu0 %vm1495_vm0, %v4533_v18  ;;  %3951 = vmatprep.mubr.msk.bf16.mxu1 %vm1495_vm0, %v4535_v19  ;;  %v4551_v18 = vld [vmem:[%s6213_s0 + $0x254] ss:$8 sps:$4 sm:$0xff]  }
 0x12f   :  { %v4553_v19 = vld [vmem:[%s6213_s0 + $0x654] ss:$8 sps:$4 sm:$0xff]  }
 0x130   :  { %v5302_v24 = vpop.f32.mrb[28].mxu0  ;;  %v5304_v25 = vpop.f32.mrb[28].mxu1 }
 0x131   :  { %v1972_v26 = vpop.f32.mrb[29].mxu0  ;;  %v2484_v27 = vpop.f32.mrb[29].mxu1 }
 0x132   :  { %v5312_v32 = vpop.f32.mrb[30].mxu0  ;;  %v5314_v33 = vpop.f32.mrb[30].mxu1 }
 0x133   :  { %v1975_v38 = vpop.f32.mrb[31].mxu0  ;;  %v2487_v39 = vpop.f32.mrb[31].mxu1 }
 0x135   :  { %2185 = vmatmul.mubr.bf16.gmra.mrb[136].mxu0 %v4537_v30  ;;  %2697 = vmatmul.mubr.bf16.gmra.mrb[136].mxu1 %v4538_v31 }
 0x136   :  { %3888 = vmatprep.mubr.msk.bf16.mxu0 %vm1495_vm0, %v4539_v36  ;;  %3952 = vmatprep.mubr.msk.bf16.mxu1 %vm1495_vm0, %v4541_v37  ;;  %v4555_v36 = vld [vmem:[%s6213_s0 + $0x250] ss:$8 sps:$4 sm:$0xff]  }
 0x137   :  { %v4556_v37 = vld [vmem:[%s6213_s0 + $0x650] ss:$8 sps:$4 sm:$0xff]  }
 0x138   :  { %v5324_v42 = vpop.f32.mrb[32].mxu0  ;;  %v5326_v43 = vpop.f32.mrb[32].mxu1 }
 0x139   :  { %v1980_v44 = vpop.f32.mrb[33].mxu0  ;;  %v2492_v45 = vpop.f32.mrb[33].mxu1 }
 0x13a   :  { %v5334_v50 = vpop.f32.mrb[34].mxu0  ;;  %v5336_v51 = vpop.f32.mrb[34].mxu1  ;;  %v4557_v44 = vld [vmem:[%s6213_s0 + $0x264] ss:$8 sps:$4 sm:$0xff]  }
 0x13b   :  { %v1983_v58 = vpop.f32.mrb[35].mxu0  ;;  %v2495_v59 = vpop.f32.mrb[35].mxu1  ;;  %v4559_v45 = vld [vmem:[%s6213_s0 + $0x664] ss:$8 sps:$4 sm:$0xff]  }
 0x13d   :  { %2193 = vmatmul.mubr.bf16.gmra.mrb[140].mxu0 %v4543_v48  ;;  %2705 = vmatmul.mubr.bf16.gmra.mrb[140].mxu1 %v4544_v49 }
 0x13e   :  { %3889 = vmatprep.mubr.msk.bf16.mxu0 %vm1495_vm0, %v4545_v54  ;;  %3953 = vmatprep.mubr.msk.bf16.mxu1 %vm1495_vm0, %v4547_v55 }
 0x140   :  { %v5346_v0 = vpop.f32.mrb[36].mxu0  ;;  %v5348_v1 = vpop.f32.mrb[36].mxu1 }
 0x141   :  { %v1988_v2 = vpop.f32.mrb[37].mxu0  ;;  %v2500_v3 = vpop.f32.mrb[37].mxu1 }
 0x142   :  { %v5356_v12 = vpop.f32.mrb[38].mxu0  ;;  %v5358_v13 = vpop.f32.mrb[38].mxu1  ;;  %v4561_v2 = vld [vmem:[%s6213_s0 + $0x260] ss:$8 sps:$4 sm:$0xff]  }
 0x143   :  { %v1991_v20 = vpop.f32.mrb[39].mxu0  ;;  %v2503_v21 = vpop.f32.mrb[39].mxu1  ;;  %v4562_v3 = vld [vmem:[%s6213_s0 + $0x660] ss:$8 sps:$4 sm:$0xff]  }
 0x145   :  { %2201 = vmatmul.mubr.bf16.gmra.mrb[144].mxu0 %v4549_v8  ;;  %2713 = vmatmul.mubr.bf16.gmra.mrb[144].mxu1 %v4550_v9 }
 0x146   :  { %3890 = vmatprep.mubr.msk.bf16.mxu0 %vm1495_vm0, %v4551_v18  ;;  %3954 = vmatprep.mubr.msk.bf16.mxu1 %vm1495_vm0, %v4553_v19  ;;  %v4563_v18 = vld [vmem:[%s6213_s0 + $0x274] ss:$8 sps:$4 sm:$0xff]  }
 0x147   :  { %v4565_v19 = vld [vmem:[%s6213_s0 + $0x674] ss:$8 sps:$4 sm:$0xff]  }
 0x148   :  { %v5368_v26 = vpop.f32.mrb[40].mxu0  ;;  %v5370_v27 = vpop.f32.mrb[40].mxu1 }
 0x149   :  { %v1996_v30 = vpop.f32.mrb[41].mxu0  ;;  %v2508_v31 = vpop.f32.mrb[41].mxu1 }
 0x14a   :  { %v5378_v38 = vpop.f32.mrb[42].mxu0  ;;  %v5380_v39 = vpop.f32.mrb[42].mxu1 }
 0x14b   :  { %v1999_v48 = vpop.f32.mrb[43].mxu0  ;;  %v2511_v49 = vpop.f32.mrb[43].mxu1 }
 0x14d   :  { %2209 = vmatmul.mubr.bf16.gmra.mrb[148].mxu0 %v4555_v36  ;;  %2721 = vmatmul.mubr.bf16.gmra.mrb[148].mxu1 %v4556_v37 }
 0x14e   :  { %3891 = vmatprep.mubr.msk.bf16.mxu0 %vm1495_vm0, %v4557_v44  ;;  %3955 = vmatprep.mubr.msk.bf16.mxu1 %vm1495_vm0, %v4559_v45  ;;  %v4567_v44 = vld [vmem:[%s6213_s0 + $0x270] ss:$8 sps:$4 sm:$0xff]  }
 0x14f   :  { %v4568_v45 = vld [vmem:[%s6213_s0 + $0x670] ss:$8 sps:$4 sm:$0xff]  }
 0x150   :  { %v5390_v54 = vpop.f32.mrb[44].mxu0  ;;  %v5392_v55 = vpop.f32.mrb[44].mxu1 }
 0x151   :  { %v2004_v58 = vpop.f32.mrb[45].mxu0  ;;  %v2516_v59 = vpop.f32.mrb[45].mxu1 }
 0x152   :  { %v5400_v8 = vpop.f32.mrb[46].mxu0  ;;  %v5402_v9 = vpop.f32.mrb[46].mxu1  ;;  %v4569_v58 = vld [vmem:[%s6213_s0 + $0x284] ss:$8 sps:$4 sm:$0xff]  }
 0x153   :  { %6216 = vst [vmem:[#allocation2_spill] sm:$0xff] %v5402_v9  ;;  %v2007_v20 = vpop.f32.mrb[47].mxu0  ;;  %v2519_v21 = vpop.f32.mrb[47].mxu1  ;;  %v4571_v59 = vld [vmem:[%s6213_s0 + $0x684] ss:$8 sps:$4 sm:$0xff]  }
 0x155   :  { %2217 = vmatmul.mubr.bf16.gmra.mrb[152].mxu0 %v4561_v2  ;;  %2729 = vmatmul.mubr.bf16.gmra.mrb[152].mxu1 %v4562_v3 }
 0x156   :  { %3892 = vmatprep.mubr.msk.bf16.mxu0 %vm1495_vm0, %v4563_v18  ;;  %3956 = vmatprep.mubr.msk.bf16.mxu1 %vm1495_vm0, %v4565_v19 }
 0x158   :  { %v5412_v30 = vpop.f32.mrb[48].mxu0  ;;  %v5414_v31 = vpop.f32.mrb[48].mxu1 }
 0x159   :  { %6217 = vst [vmem:[#allocation3_spill] sm:$0xff] %v5412_v30  ;;  %6218 = vst [vmem:[#allocation4_spill] sm:$0xff] %v5414_v31  ;;  %v2012_v36 = vpop.f32.mrb[49].mxu0  ;;  %v2524_v37 = vpop.f32.mrb[49].mxu1 }
 0x15a   :  { %v5422_v48 = vpop.f32.mrb[50].mxu0  ;;  %v5424_v49 = vpop.f32.mrb[50].mxu1  ;;  %v4573_v36 = vld [vmem:[%s6213_s0 + $0x280] ss:$8 sps:$4 sm:$0xff]  }
 0x15b   :  { %6219 = vst [vmem:[#allocation5_spill] sm:$0xff] %v5422_v48  ;;  %6220 = vst [vmem:[#allocation6_spill] sm:$0xff] %v5424_v49  ;;  %v2015_v2 = vpop.f32.mrb[51].mxu0  ;;  %v2527_v3 = vpop.f32.mrb[51].mxu1  ;;  %v4574_v37 = vld [vmem:[%s6213_s0 + $0x680] ss:$8 sps:$4 sm:$0xff]  }
 0x15d   :  { %2225 = vmatmul.mubr.bf16.gmra.mrb[156].mxu0 %v4567_v44  ;;  %2737 = vmatmul.mubr.bf16.gmra.mrb[156].mxu1 %v4568_v45 }
 0x15e   :  { %3893 = vmatprep.mubr.msk.bf16.mxu0 %vm1495_vm0, %v4569_v58  ;;  %3957 = vmatprep.mubr.msk.bf16.mxu1 %vm1495_vm0, %v4571_v59  ;;  %v4575_v58 = vld [vmem:[%s6213_s0 + $0x294] ss:$8 sps:$4 sm:$0xff]  }
 0x15f   :  { %v4577_v59 = vld [vmem:[%s6213_s0 + $0x694] ss:$8 sps:$4 sm:$0xff]  }
 0x160   :  { %v5434_v18 = vpop.f32.mrb[52].mxu0  ;;  %v5436_v19 = vpop.f32.mrb[52].mxu1 }
 0x161   :  { %6221 = vst [vmem:[#allocation7_spill] sm:$0xff] %v5434_v18  ;;  %6222 = vst [vmem:[#allocation8_spill] sm:$0xff] %v5436_v19  ;;  %v2020_v20 = vpop.f32.mrb[53].mxu0  ;;  %v2532_v21 = vpop.f32.mrb[53].mxu1  ;;  %v4579_v19 = vld [vmem:[%s6213_s0 + $0x290] ss:$8 sps:$4 sm:$0xff]  }
 0x162   :  { %v5444_v44 = vpop.f32.mrb[54].mxu0  ;;  %v5446_v45 = vpop.f32.mrb[54].mxu1 }
 0x163   :  { %6223 = vst [vmem:[#allocation9_spill] sm:$0xff] %v5444_v44  ;;  %6224 = vst [vmem:[#allocation10_spill] sm:$0xff] %v5446_v45  ;;  %v2023_v2 = vpop.f32.mrb[55].mxu0  ;;  %v2535_v3 = vpop.f32.mrb[55].mxu1 }
 0x164   :  { %v4580_v2 = vld [vmem:[%s6213_s0 + $0x690] ss:$8 sps:$4 sm:$0xff]  }
 0x165   :  { %2233 = vmatmul.mubr.bf16.gmra.mrb[160].mxu0 %v4573_v36  ;;  %2745 = vmatmul.mubr.bf16.gmra.mrb[160].mxu1 %v4574_v37 }
 0x166   :  { %3894 = vmatprep.mubr.msk.bf16.mxu0 %vm1495_vm0, %v4575_v58  ;;  %3958 = vmatprep.mubr.msk.bf16.mxu1 %vm1495_vm0, %v4577_v59  ;;  %v4581_v58 = vld [vmem:[%s6213_s0 + $0x2a4] ss:$8 sps:$4 sm:$0xff]  }
 0x168   :  { %v5456_v20 = vpop.f32.mrb[56].mxu0  ;;  %v5458_v21 = vpop.f32.mrb[56].mxu1 }
 0x169   :  { %6225 = vst [vmem:[#allocation11_spill] sm:$0xff] %v5456_v20  ;;  %6226 = vst [vmem:[#allocation12_spill] sm:$0xff] %v5458_v21  ;;  %v2028_v45 = vpop.f32.mrb[57].mxu0  ;;  %v2540_v44 = vpop.f32.mrb[57].mxu1  ;;  %v4585_v20 = vld [vmem:[%s6213_s0 + $0x2a0] ss:$8 sps:$4 sm:$0xff]  }
 0x16a   :  { %v5466_v36 = vpop.f32.mrb[58].mxu0  ;;  %v5468_v37 = vpop.f32.mrb[58].mxu1  ;;  %v4583_v44 = vld [vmem:[%s6213_s0 + $0x6a4] ss:$8 sps:$4 sm:$0xff]  }
 0x16b   :  { %6227 = vst [vmem:[#allocation13_spill] sm:$0xff] %v5466_v36  ;;  %6228 = vst [vmem:[#allocation14_spill] sm:$0xff] %v5468_v37  ;;  %v2031_v45 = vpop.f32.mrb[59].mxu0  ;;  %v2543_v59 = vpop.f32.mrb[59].mxu1 }
 0x16c   :  { %v4586_v45 = vld [vmem:[%s6213_s0 + $0x6a0] ss:$8 sps:$4 sm:$0xff]  }
 0x16d   :  { %2241 = vmatmul.mubr.bf16.gmra.mrb[164].mxu0 %v4579_v19  ;;  %2753 = vmatmul.mubr.bf16.gmra.mrb[164].mxu1 %v4580_v2 }
 0x16e   :  { %3895 = vmatprep.mubr.msk.bf16.mxu0 %vm1495_vm0, %v4581_v58  ;;  %3959 = vmatprep.mubr.msk.bf16.mxu1 %vm1495_vm0, %v4583_v44  ;;  %v4587_v58 = vld [vmem:[%s6213_s0 + $0x2b4] ss:$8 sps:$4 sm:$0xff]  }
 0x170   :  { %v5478_v3 = vpop.f32.mrb[60].mxu0  ;;  %v5480_v36 = vpop.f32.mrb[60].mxu1 }
 0x171   :  { %6229 = vst [vmem:[#allocation15_spill] sm:$0xff] %v5478_v3  ;;  %6230 = vst [vmem:[#allocation16_spill] sm:$0xff] %v5480_v36  ;;  %v2036_v37 = vpop.f32.mrb[61].mxu0  ;;  %v2548_v21 = vpop.f32.mrb[61].mxu1  ;;  %v4591_v3 = vld [vmem:[%s6213_s0 + $0x2b0] ss:$8 sps:$4 sm:$0xff]  }
 0x172   :  { %v5488_v19 = vpop.f32.mrb[62].mxu0  ;;  %v5490_v2 = vpop.f32.mrb[62].mxu1  ;;  %v4589_v21 = vld [vmem:[%s6213_s0 + $0x6b4] ss:$8 sps:$4 sm:$0xff]  }
 0x173   :  { %6231 = vst [vmem:[#allocation17_spill] sm:$0xff] %v5488_v19  ;;  %6232 = vst [vmem:[#allocation18_spill] sm:$0xff] %v5490_v2  ;;  %v2039_v37 = vpop.f32.mrb[63].mxu0  ;;  %v2551_v44 = vpop.f32.mrb[63].mxu1 }
 0x174   :  { %v4592_v37 = vld [vmem:[%s6213_s0 + $0x6b0] ss:$8 sps:$4 sm:$0xff]  }
 0x175   :  { %2249 = vmatmul.mubr.bf16.gmra.mrb[168].mxu0 %v4585_v20  ;;  %2761 = vmatmul.mubr.bf16.gmra.mrb[168].mxu1 %v4586_v45 }
 0x176   :  { %3896 = vmatprep.mubr.msk.bf16.mxu0 %vm1495_vm0, %v4587_v58  ;;  %3960 = vmatprep.mubr.msk.bf16.mxu1 %vm1495_vm0, %v4589_v21  ;;  %v4593_v58 = vld [vmem:[%s6213_s0 + $0x2c4] ss:$8 sps:$4 sm:$0xff]  }
 0x178   :  { %v5500_v59 = vpop.f32.mrb[64].mxu0  ;;  %v5502_v19 = vpop.f32.mrb[64].mxu1 }
 0x179   :  { %6233 = vst [vmem:[#allocation19_spill] sm:$0xff] %v5500_v59  ;;  %6234 = vst [vmem:[#allocation20_spill] sm:$0xff] %v5502_v19  ;;  %v2044_v2 = vpop.f32.mrb[65].mxu0  ;;  %v2556_v36 = vpop.f32.mrb[65].mxu1  ;;  %v4597_v59 = vld [vmem:[%s6213_s0 + $0x2c0] ss:$8 sps:$4 sm:$0xff]  }
 0x17a   :  { %v5510_v20 = vpop.f32.mrb[66].mxu0  ;;  %v5512_v45 = vpop.f32.mrb[66].mxu1  ;;  %v4595_v36 = vld [vmem:[%s6213_s0 + $0x6c4] ss:$8 sps:$4 sm:$0xff]  }
 0x17b   :  { %6235 = vst [vmem:[#allocation21_spill] sm:$0xff] %v5510_v20  ;;  %6236 = vst [vmem:[#allocation22_spill] sm:$0xff] %v5512_v45  ;;  %v2047_v2 = vpop.f32.mrb[67].mxu0  ;;  %v2559_v21 = vpop.f32.mrb[67].mxu1 }
 0x17c   :  { %v4598_v2 = vld [vmem:[%s6213_s0 + $0x6c0] ss:$8 sps:$4 sm:$0xff]  }
 0x17d   :  { %2257 = vmatmul.mubr.bf16.gmra.mrb[172].mxu0 %v4591_v3  ;;  %2769 = vmatmul.mubr.bf16.gmra.mrb[172].mxu1 %v4592_v37 }
 0x17e   :  { %3897 = vmatprep.mubr.msk.bf16.mxu0 %vm1495_vm0, %v4593_v58  ;;  %3961 = vmatprep.mubr.msk.bf16.mxu1 %vm1495_vm0, %v4595_v36  ;;  %v4599_v58 = vld [vmem:[%s6213_s0 + $0x2d4] ss:$8 sps:$4 sm:$0xff]  }
 0x180   :  { %v5522_v44 = vpop.f32.mrb[68].mxu0  ;;  %v5524_v20 = vpop.f32.mrb[68].mxu1 }
 0x181   :  { %6237 = vst [vmem:[#allocation23_spill] sm:$0xff] %v5522_v44  ;;  %6238 = vst [vmem:[#allocation24_spill] sm:$0xff] %v5524_v20  ;;  %v2052_v45 = vpop.f32.mrb[69].mxu0  ;;  %v2564_v19 = vpop.f32.mrb[69].mxu1  ;;  %v4603_v44 = vld [vmem:[%s6213_s0 + $0x2d0] ss:$8 sps:$4 sm:$0xff]  }
 0x182   :  { %v5532_v3 = vpop.f32.mrb[70].mxu0  ;;  %v5534_v37 = vpop.f32.mrb[70].mxu1  ;;  %v4601_v19 = vld [vmem:[%s6213_s0 + $0x6d4] ss:$8 sps:$4 sm:$0xff]  }
 0x183   :  { %6239 = vst [vmem:[#allocation25_spill] sm:$0xff] %v5532_v3  ;;  %6240 = vst [vmem:[#allocation26_spill] sm:$0xff] %v5534_v37  ;;  %v2055_v45 = vpop.f32.mrb[71].mxu0  ;;  %v2567_v36 = vpop.f32.mrb[71].mxu1 }
 0x184   :  { %v4604_v45 = vld [vmem:[%s6213_s0 + $0x6d0] ss:$8 sps:$4 sm:$0xff]  }
 0x185   :  { %2265 = vmatmul.mubr.bf16.gmra.mrb[176].mxu0 %v4597_v59  ;;  %2777 = vmatmul.mubr.bf16.gmra.mrb[176].mxu1 %v4598_v2 }
 0x186   :  { %3898 = vmatprep.mubr.msk.bf16.mxu0 %vm1495_vm0, %v4599_v58  ;;  %3962 = vmatprep.mubr.msk.bf16.mxu1 %vm1495_vm0, %v4601_v19  ;;  %v4605_v58 = vld [vmem:[%s6213_s0 + $0x2e4] ss:$8 sps:$4 sm:$0xff]  }
 0x188   :  { %v5544_v21 = vpop.f32.mrb[72].mxu0  ;;  %v5546_v3 = vpop.f32.mrb[72].mxu1 }
 0x189   :  { %6241 = vst [vmem:[#allocation27_spill] sm:$0xff] %v5544_v21  ;;  %6242 = vst [vmem:[#allocation28_spill] sm:$0xff] %v5546_v3  ;;  %v2060_v37 = vpop.f32.mrb[73].mxu0  ;;  %v2572_v20 = vpop.f32.mrb[73].mxu1  ;;  %v4609_v21 = vld [vmem:[%s6213_s0 + $0x2e0] ss:$8 sps:$4 sm:$0xff]  }
 0x18a   :  { %v5554_v59 = vpop.f32.mrb[74].mxu0  ;;  %v5556_v2 = vpop.f32.mrb[74].mxu1  ;;  %v4607_v20 = vld [vmem:[%s6213_s0 + $0x6e4] ss:$8 sps:$4 sm:$0xff]  }
 0x18b   :  { %6243 = vst [vmem:[#allocation29_spill] sm:$0xff] %v5554_v59  ;;  %6244 = vst [vmem:[#allocation30_spill] sm:$0xff] %v5556_v2  ;;  %v2063_v37 = vpop.f32.mrb[75].mxu0  ;;  %v2575_v19 = vpop.f32.mrb[75].mxu1 }
 0x18c   :  { %v4610_v37 = vld [vmem:[%s6213_s0 + $0x6e0] ss:$8 sps:$4 sm:$0xff]  }
 0x18d   :  { %2273 = vmatmul.mubr.bf16.gmra.mrb[180].mxu0 %v4603_v44  ;;  %2785 = vmatmul.mubr.bf16.gmra.mrb[180].mxu1 %v4604_v45 }
 0x18e   :  { %3899 = vmatprep.mubr.msk.bf16.mxu0 %vm1495_vm0, %v4605_v58  ;;  %3963 = vmatprep.mubr.msk.bf16.mxu1 %vm1495_vm0, %v4607_v20  ;;  %v4611_v58 = vld [vmem:[%s6213_s0 + $0x2f4] ss:$8 sps:$4 sm:$0xff]  }
 0x190   :  { %v5566_v36 = vpop.f32.mrb[76].mxu0  ;;  %v5568_v59 = vpop.f32.mrb[76].mxu1 }
 0x191   :  { %6245 = vst [vmem:[#allocation31_spill] sm:$0xff] %v5566_v36  ;;  %6246 = vst [vmem:[#allocation32_spill] sm:$0xff] %v5568_v59  ;;  %v2068_v2 = vpop.f32.mrb[77].mxu0  ;;  %v2580_v3 = vpop.f32.mrb[77].mxu1  ;;  %v4615_v36 = vld [vmem:[%s6213_s0 + $0x2f0] ss:$8 sps:$4 sm:$0xff]  }
 0x192   :  { %v5576_v44 = vpop.f32.mrb[78].mxu0  ;;  %v5578_v45 = vpop.f32.mrb[78].mxu1  ;;  %v4613_v3 = vld [vmem:[%s6213_s0 + $0x6f4] ss:$8 sps:$4 sm:$0xff]  }
 0x193   :  { %6247 = vst [vmem:[#allocation33_spill] sm:$0xff] %v5576_v44  ;;  %6248 = vst [vmem:[#allocation34_spill] sm:$0xff] %v5578_v45  ;;  %v2071_v2 = vpop.f32.mrb[79].mxu0  ;;  %v2583_v20 = vpop.f32.mrb[79].mxu1 }
 0x194   :  { %v4616_v2 = vld [vmem:[%s6213_s0 + $0x6f0] ss:$8 sps:$4 sm:$0xff]  }
 0x195   :  { %2281 = vmatmul.mubr.bf16.gmra.mrb[184].mxu0 %v4609_v21  ;;  %2793 = vmatmul.mubr.bf16.gmra.mrb[184].mxu1 %v4610_v37 }
 0x196   :  { %3900 = vmatprep.mubr.msk.bf16.mxu0 %vm1495_vm0, %v4611_v58  ;;  %3964 = vmatprep.mubr.msk.bf16.mxu1 %vm1495_vm0, %v4613_v3  ;;  %v4617_v58 = vld [vmem:[%s6213_s0 + $0x304] ss:$8 sps:$4 sm:$0xff]  }
 0x198   :  { %v5588_v19 = vpop.f32.mrb[80].mxu0  ;;  %v5590_v44 = vpop.f32.mrb[80].mxu1 }
 0x199   :  { %6249 = vst [vmem:[#allocation35_spill] sm:$0xff] %v5588_v19  ;;  %6250 = vst [vmem:[#allocation36_spill] sm:$0xff] %v5590_v44  ;;  %v2076_v45 = vpop.f32.mrb[81].mxu0  ;;  %v2588_v59 = vpop.f32.mrb[81].mxu1  ;;  %v4621_v19 = vld [vmem:[%s6213_s0 + $0x300] ss:$8 sps:$4 sm:$0xff]  }
 0x19a   :  { %v5598_v21 = vpop.f32.mrb[82].mxu0  ;;  %v5600_v37 = vpop.f32.mrb[82].mxu1  ;;  %v4619_v59 = vld [vmem:[%s6213_s0 + $0x704] ss:$8 sps:$4 sm:$0xff]  }
 0x19b   :  { %6251 = vst [vmem:[#allocation37_spill] sm:$0xff] %v5598_v21  ;;  %6252 = vst [vmem:[#allocation38_spill] sm:$0xff] %v5600_v37  ;;  %v2079_v45 = vpop.f32.mrb[83].mxu0  ;;  %v2591_v3 = vpop.f32.mrb[83].mxu1 }
 0x19c   :  { %v4622_v45 = vld [vmem:[%s6213_s0 + $0x700] ss:$8 sps:$4 sm:$0xff]  }
 0x19d   :  { %2289 = vmatmul.mubr.bf16.gmra.mrb[188].mxu0 %v4615_v36  ;;  %2801 = vmatmul.mubr.bf16.gmra.mrb[188].mxu1 %v4616_v2 }
 0x19e   :  { %3901 = vmatprep.mubr.msk.bf16.mxu0 %vm1495_vm0, %v4617_v58  ;;  %3965 = vmatprep.mubr.msk.bf16.mxu1 %vm1495_vm0, %v4619_v59  ;;  %v4623_v58 = vld [vmem:[%s6213_s0 + $0x314] ss:$8 sps:$4 sm:$0xff]  }
 0x1a0   :  { %v5610_v20 = vpop.f32.mrb[84].mxu0  ;;  %v5612_v21 = vpop.f32.mrb[84].mxu1 }
 0x1a1   :  { %6253 = vst [vmem:[#allocation39_spill] sm:$0xff] %v5610_v20  ;;  %6254 = vst [vmem:[#allocation40_spill] sm:$0xff] %v5612_v21  ;;  %v2084_v37 = vpop.f32.mrb[85].mxu0  ;;  %v2596_v44 = vpop.f32.mrb[85].mxu1  ;;  %v4627_v20 = vld [vmem:[%s6213_s0 + $0x310] ss:$8 sps:$4 sm:$0xff]  }
 0x1a2   :  { %v5620_v36 = vpop.f32.mrb[86].mxu0  ;;  %v5622_v2 = vpop.f32.mrb[86].mxu1  ;;  %v4625_v44 = vld [vmem:[%s6213_s0 + $0x714] ss:$8 sps:$4 sm:$0xff]  }
 0x1a3   :  { %6255 = vst [vmem:[#allocation41_spill] sm:$0xff] %v5620_v36  ;;  %6256 = vst [vmem:[#allocation42_spill] sm:$0xff] %v5622_v2  ;;  %v2087_v37 = vpop.f32.mrb[87].mxu0  ;;  %v2599_v59 = vpop.f32.mrb[87].mxu1 }
 0x1a4   :  { %v4628_v37 = vld [vmem:[%s6213_s0 + $0x710] ss:$8 sps:$4 sm:$0xff]  }
 0x1a5   :  { %2297 = vmatmul.mubr.bf16.gmra.mrb[192].mxu0 %v4621_v19  ;;  %2809 = vmatmul.mubr.bf16.gmra.mrb[192].mxu1 %v4622_v45 }
 0x1a6   :  { %3902 = vmatprep.mubr.msk.bf16.mxu0 %vm1495_vm0, %v4623_v58  ;;  %3966 = vmatprep.mubr.msk.bf16.mxu1 %vm1495_vm0, %v4625_v44  ;;  %v4629_v58 = vld [vmem:[%s6213_s0 + $0x324] ss:$8 sps:$4 sm:$0xff]  }
 0x1a8   :  { %v5632_v3 = vpop.f32.mrb[88].mxu0  ;;  %v5634_v36 = vpop.f32.mrb[88].mxu1 }
 0x1a9   :  { %6257 = vst [vmem:[#allocation43_spill] sm:$0xff] %v5632_v3  ;;  %6258 = vst [vmem:[#allocation44_spill] sm:$0xff] %v5634_v36  ;;  %v2092_v2 = vpop.f32.mrb[89].mxu0  ;;  %v2604_v21 = vpop.f32.mrb[89].mxu1  ;;  %v4633_v3 = vld [vmem:[%s6213_s0 + $0x320] ss:$8 sps:$4 sm:$0xff]  }
 0x1aa   :  { %v5642_v19 = vpop.f32.mrb[90].mxu0  ;;  %v5644_v45 = vpop.f32.mrb[90].mxu1  ;;  %v4631_v21 = vld [vmem:[%s6213_s0 + $0x724] ss:$8 sps:$4 sm:$0xff]  }
 0x1ab   :  { %6259 = vst [vmem:[#allocation45_spill] sm:$0xff] %v5642_v19  ;;  %6260 = vst [vmem:[#allocation46_spill] sm:$0xff] %v5644_v45  ;;  %v2095_v2 = vpop.f32.mrb[91].mxu0  ;;  %v2607_v44 = vpop.f32.mrb[91].mxu1 }
 0x1ac   :  { %v4634_v2 = vld [vmem:[%s6213_s0 + $0x720] ss:$8 sps:$4 sm:$0xff]  }
 0x1ad   :  { %2305 = vmatmul.mubr.bf16.gmra.mrb[196].mxu0 %v4627_v20  ;;  %2817 = vmatmul.mubr.bf16.gmra.mrb[196].mxu1 %v4628_v37 }
 0x1ae   :  { %3903 = vmatprep.mubr.msk.bf16.mxu0 %vm1495_vm0, %v4629_v58  ;;  %3967 = vmatprep.mubr.msk.bf16.mxu1 %vm1495_vm0, %v4631_v21  ;;  %v4635_v58 = vld [vmem:[%s6213_s0 + $0x334] ss:$8 sps:$4 sm:$0xff]  }
 0x1b0   :  { %v5654_v59 = vpop.f32.mrb[92].mxu0  ;;  %v5656_v19 = vpop.f32.mrb[92].mxu1 }
 0x1b1   :  { %6261 = vst [vmem:[#allocation47_spill] sm:$0xff] %v5654_v59  ;;  %6262 = vst [vmem:[#allocation48_spill] sm:$0xff] %v5656_v19  ;;  %v2100_v45 = vpop.f32.mrb[93].mxu0  ;;  %v2612_v36 = vpop.f32.mrb[93].mxu1  ;;  %v4639_v59 = vld [vmem:[%s6213_s0 + $0x330] ss:$8 sps:$4 sm:$0xff]  }
 0x1b2   :  { %v5664_v20 = vpop.f32.mrb[94].mxu0  ;;  %v5666_v37 = vpop.f32.mrb[94].mxu1  ;;  %v4637_v36 = vld [vmem:[%s6213_s0 + $0x734] ss:$8 sps:$4 sm:$0xff]  }
 0x1b3   :  { %6263 = vst [vmem:[#allocation49_spill] sm:$0xff] %v5664_v20  ;;  %6264 = vst [vmem:[#allocation50_spill] sm:$0xff] %v5666_v37  ;;  %v2103_v45 = vpop.f32.mrb[95].mxu0  ;;  %v2615_v21 = vpop.f32.mrb[95].mxu1 }
 0x1b4   :  { %v4640_v45 = vld [vmem:[%s6213_s0 + $0x730] ss:$8 sps:$4 sm:$0xff]  }
 0x1b5   :  { %2313 = vmatmul.mubr.bf16.gmra.mrb[200].mxu0 %v4633_v3  ;;  %2825 = vmatmul.mubr.bf16.gmra.mrb[200].mxu1 %v4634_v2 }
 0x1b6   :  { %3904 = vmatprep.mubr.msk.bf16.mxu0 %vm1495_vm0, %v4635_v58  ;;  %3968 = vmatprep.mubr.msk.bf16.mxu1 %vm1495_vm0, %v4637_v36  ;;  %v4641_v58 = vld [vmem:[%s6213_s0 + $0x344] ss:$8 sps:$4 sm:$0xff]  }
 0x1b8   :  { %v5676_v44 = vpop.f32.mrb[96].mxu0  ;;  %v5678_v20 = vpop.f32.mrb[96].mxu1 }
 0x1b9   :  { %6265 = vst [vmem:[#allocation51_spill] sm:$0xff] %v5676_v44  ;;  %6266 = vst [vmem:[#allocation52_spill] sm:$0xff] %v5678_v20  ;;  %v2108_v37 = vpop.f32.mrb[97].mxu0  ;;  %v2620_v19 = vpop.f32.mrb[97].mxu1  ;;  %v4645_v44 = vld [vmem:[%s6213_s0 + $0x340] ss:$8 sps:$4 sm:$0xff]  }
 0x1ba   :  { %v5686_v3 = vpop.f32.mrb[98].mxu0  ;;  %v5688_v2 = vpop.f32.mrb[98].mxu1  ;;  %v4643_v19 = vld [vmem:[%s6213_s0 + $0x744] ss:$8 sps:$4 sm:$0xff]  }
 0x1bb   :  { %6267 = vst [vmem:[#allocation53_spill] sm:$0xff] %v5686_v3  ;;  %6268 = vst [vmem:[#allocation54_spill] sm:$0xff] %v5688_v2  ;;  %v2111_v37 = vpop.f32.mrb[99].mxu0  ;;  %v2623_v36 = vpop.f32.mrb[99].mxu1 }
 0x1bc   :  { %v4646_v37 = vld [vmem:[%s6213_s0 + $0x740] ss:$8 sps:$4 sm:$0xff]  }
 0x1bd   :  { %2321 = vmatmul.mubr.bf16.gmra.mrb[204].mxu0 %v4639_v59  ;;  %2833 = vmatmul.mubr.bf16.gmra.mrb[204].mxu1 %v4640_v45 }
 0x1be   :  { %3905 = vmatprep.mubr.msk.bf16.mxu0 %vm1495_vm0, %v4641_v58  ;;  %3969 = vmatprep.mubr.msk.bf16.mxu1 %vm1495_vm0, %v4643_v19  ;;  %v4647_v58 = vld [vmem:[%s6213_s0 + $0x354] ss:$8 sps:$4 sm:$0xff]  }
 0x1c0   :  { %v5698_v21 = vpop.f32.mrb[100].mxu0  ;;  %v5700_v3 = vpop.f32.mrb[100].mxu1 }
 0x1c1   :  { %6269 = vst [vmem:[#allocation55_spill] sm:$0xff] %v5698_v21  ;;  %6270 = vst [vmem:[#allocation56_spill] sm:$0xff] %v5700_v3  ;;  %v2116_v2 = vpop.f32.mrb[101].mxu0  ;;  %v2628_v20 = vpop.f32.mrb[101].mxu1  ;;  %v4651_v21 = vld [vmem:[%s6213_s0 + $0x350] ss:$8 sps:$4 sm:$0xff]  }
 0x1c2   :  { %v5708_v59 = vpop.f32.mrb[102].mxu0  ;;  %v5710_v45 = vpop.f32.mrb[102].mxu1  ;;  %v4649_v20 = vld [vmem:[%s6213_s0 + $0x754] ss:$8 sps:$4 sm:$0xff]  }
 0x1c3   :  { %6271 = vst [vmem:[#allocation57_spill] sm:$0xff] %v5708_v59  ;;  %6272 = vst [vmem:[#allocation58_spill] sm:$0xff] %v5710_v45  ;;  %v2119_v2 = vpop.f32.mrb[103].mxu0  ;;  %v2631_v19 = vpop.f32.mrb[103].mxu1 }
 0x1c4   :  { %v4652_v2 = vld [vmem:[%s6213_s0 + $0x750] ss:$8 sps:$4 sm:$0xff]  }
 0x1c5   :  { %2329 = vmatmul.mubr.bf16.gmra.mrb[208].mxu0 %v4645_v44  ;;  %2841 = vmatmul.mubr.bf16.gmra.mrb[208].mxu1 %v4646_v37 }
 0x1c6   :  { %3906 = vmatprep.mubr.msk.bf16.mxu0 %vm1495_vm0, %v4647_v58  ;;  %3970 = vmatprep.mubr.msk.bf16.mxu1 %vm1495_vm0, %v4649_v20  ;;  %v4653_v58 = vld [vmem:[%s6213_s0 + $0x364] ss:$8 sps:$4 sm:$0xff]  }
 0x1c8   :  { %v5720_v36 = vpop.f32.mrb[104].mxu0  ;;  %v5722_v59 = vpop.f32.mrb[104].mxu1 }
 0x1c9   :  { %6273 = vst [vmem:[#allocation59_spill] sm:$0xff] %v5720_v36  ;;  %6274 = vst [vmem:[#allocation60_spill] sm:$0xff] %v5722_v59  ;;  %v2124_v45 = vpop.f32.mrb[105].mxu0  ;;  %v2636_v3 = vpop.f32.mrb[105].mxu1  ;;  %v4657_v36 = vld [vmem:[%s6213_s0 + $0x360] ss:$8 sps:$4 sm:$0xff]  }
 0x1ca   :  { %v5730_v44 = vpop.f32.mrb[106].mxu0  ;;  %v5732_v37 = vpop.f32.mrb[106].mxu1  ;;  %v4655_v3 = vld [vmem:[%s6213_s0 + $0x764] ss:$8 sps:$4 sm:$0xff]  }
 0x1cb   :  { %6275 = vst [vmem:[#allocation61_spill] sm:$0xff] %v5730_v44  ;;  %6276 = vst [vmem:[#allocation62_spill] sm:$0xff] %v5732_v37  ;;  %v2127_v45 = vpop.f32.mrb[107].mxu0  ;;  %v2639_v20 = vpop.f32.mrb[107].mxu1 }
 0x1cc   :  { %v4658_v45 = vld [vmem:[%s6213_s0 + $0x760] ss:$8 sps:$4 sm:$0xff]  }
 0x1cd   :  { %2337 = vmatmul.mubr.bf16.gmra.mrb[212].mxu0 %v4651_v21  ;;  %2849 = vmatmul.mubr.bf16.gmra.mrb[212].mxu1 %v4652_v2 }
 0x1ce   :  { %3907 = vmatprep.mubr.msk.bf16.mxu0 %vm1495_vm0, %v4653_v58  ;;  %3971 = vmatprep.mubr.msk.bf16.mxu1 %vm1495_vm0, %v4655_v3  ;;  %v4659_v58 = vld [vmem:[%s6213_s0 + $0x374] ss:$8 sps:$4 sm:$0xff]  }
 0x1d0   :  { %v5742_v19 = vpop.f32.mrb[108].mxu0  ;;  %v5744_v44 = vpop.f32.mrb[108].mxu1 }
 0x1d1   :  { %6277 = vst [vmem:[#allocation63_spill] sm:$0xff] %v5742_v19  ;;  %6278 = vst [vmem:[#allocation64_spill] sm:$0xff] %v5744_v44  ;;  %v2132_v37 = vpop.f32.mrb[109].mxu0  ;;  %v2644_v59 = vpop.f32.mrb[109].mxu1  ;;  %v4663_v19 = vld [vmem:[%s6213_s0 + $0x370] ss:$8 sps:$4 sm:$0xff]  }
 0x1d2   :  { %v5752_v21 = vpop.f32.mrb[110].mxu0  ;;  %v5754_v2 = vpop.f32.mrb[110].mxu1  ;;  %v4661_v59 = vld [vmem:[%s6213_s0 + $0x774] ss:$8 sps:$4 sm:$0xff]  }
 0x1d3   :  { %6279 = vst [vmem:[#allocation65_spill] sm:$0xff] %v5752_v21  ;;  %6280 = vst [vmem:[#allocation66_spill] sm:$0xff] %v5754_v2  ;;  %v2135_v37 = vpop.f32.mrb[111].mxu0  ;;  %v2647_v3 = vpop.f32.mrb[111].mxu1 }
 0x1d4   :  { %v4664_v37 = vld [vmem:[%s6213_s0 + $0x770] ss:$8 sps:$4 sm:$0xff]  }
 0x1d5   :  { %2345 = vmatmul.mubr.bf16.gmra.mrb[216].mxu0 %v4657_v36  ;;  %2857 = vmatmul.mubr.bf16.gmra.mrb[216].mxu1 %v4658_v45 }
 0x1d6   :  { %3908 = vmatprep.mubr.msk.bf16.mxu0 %vm1495_vm0, %v4659_v58  ;;  %3972 = vmatprep.mubr.msk.bf16.mxu1 %vm1495_vm0, %v4661_v59  ;;  %v4665_v58 = vld [vmem:[%s6213_s0 + $0x384] ss:$8 sps:$4 sm:$0xff]  }
 0x1d8   :  { %v5764_v20 = vpop.f32.mrb[112].mxu0  ;;  %v5766_v21 = vpop.f32.mrb[112].mxu1 }
 0x1d9   :  { %6281 = vst [vmem:[#allocation67_spill] sm:$0xff] %v5764_v20  ;;  %6282 = vst [vmem:[#allocation68_spill] sm:$0xff] %v5766_v21  ;;  %v2140_v2 = vpop.f32.mrb[113].mxu0  ;;  %v2652_v44 = vpop.f32.mrb[113].mxu1  ;;  %v4669_v20 = vld [vmem:[%s6213_s0 + $0x380] ss:$8 sps:$4 sm:$0xff]  }
 0x1da   :  { %v5774_v36 = vpop.f32.mrb[114].mxu0  ;;  %v5776_v45 = vpop.f32.mrb[114].mxu1  ;;  %v4667_v44 = vld [vmem:[%s6213_s0 + $0x784] ss:$8 sps:$4 sm:$0xff]  }
 0x1db   :  { %6283 = vst [vmem:[#allocation69_spill] sm:$0xff] %v5774_v36  ;;  %6284 = vst [vmem:[#allocation70_spill] sm:$0xff] %v5776_v45  ;;  %v2143_v2 = vpop.f32.mrb[115].mxu0  ;;  %v2655_v59 = vpop.f32.mrb[115].mxu1 }
 0x1dc   :  { %v4670_v2 = vld [vmem:[%s6213_s0 + $0x780] ss:$8 sps:$4 sm:$0xff]  }
 0x1dd   :  { %2353 = vmatmul.mubr.bf16.gmra.mrb[220].mxu0 %v4663_v19  ;;  %2865 = vmatmul.mubr.bf16.gmra.mrb[220].mxu1 %v4664_v37 }
 0x1de   :  { %3909 = vmatprep.mubr.msk.bf16.mxu0 %vm1495_vm0, %v4665_v58  ;;  %3973 = vmatprep.mubr.msk.bf16.mxu1 %vm1495_vm0, %v4667_v44  ;;  %v4671_v58 = vld [vmem:[%s6213_s0 + $0x394] ss:$8 sps:$4 sm:$0xff]  }
 0x1e0   :  { %v5786_v3 = vpop.f32.mrb[116].mxu0  ;;  %v5788_v36 = vpop.f32.mrb[116].mxu1 }
 0x1e1   :  { %6285 = vst [vmem:[#allocation71_spill] sm:$0xff] %v5786_v3  ;;  %6286 = vst [vmem:[#allocation72_spill] sm:$0xff] %v5788_v36  ;;  %v2148_v45 = vpop.f32.mrb[117].mxu0  ;;  %v2660_v21 = vpop.f32.mrb[117].mxu1  ;;  %v4675_v3 = vld [vmem:[%s6213_s0 + $0x390] ss:$8 sps:$4 sm:$0xff]  }
 0x1e2   :  { %v5796_v19 = vpop.f32.mrb[118].mxu0  ;;  %v5798_v37 = vpop.f32.mrb[118].mxu1  ;;  %v4673_v21 = vld [vmem:[%s6213_s0 + $0x794] ss:$8 sps:$4 sm:$0xff]  }
 0x1e3   :  { %6287 = vst [vmem:[#allocation73_spill] sm:$0xff] %v5796_v19  ;;  %6288 = vst [vmem:[#allocation74_spill] sm:$0xff] %v5798_v37  ;;  %v2151_v45 = vpop.f32.mrb[119].mxu0  ;;  %v2663_v44 = vpop.f32.mrb[119].mxu1 }
 0x1e4   :  { %v4676_v45 = vld [vmem:[%s6213_s0 + $0x790] ss:$8 sps:$4 sm:$0xff]  }
 0x1e5   :  { %2361 = vmatmul.mubr.bf16.gmra.mrb[224].mxu0 %v4669_v20  ;;  %2873 = vmatmul.mubr.bf16.gmra.mrb[224].mxu1 %v4670_v2 }
 0x1e6   :  { %3910 = vmatprep.mubr.msk.bf16.mxu0 %vm1495_vm0, %v4671_v58  ;;  %3974 = vmatprep.mubr.msk.bf16.mxu1 %vm1495_vm0, %v4673_v21  ;;  %v4677_v58 = vld [vmem:[%s6213_s0 + $0x3a4] ss:$8 sps:$4 sm:$0xff]  }
 0x1e8   :  { %v5808_v59 = vpop.f32.mrb[120].mxu0  ;;  %v5810_v19 = vpop.f32.mrb[120].mxu1 }
 0x1e9   :  { %6289 = vst [vmem:[#allocation75_spill] sm:$0xff] %v5808_v59  ;;  %6290 = vst [vmem:[#allocation76_spill] sm:$0xff] %v5810_v19  ;;  %v2156_v37 = vpop.f32.mrb[121].mxu0  ;;  %v2668_v36 = vpop.f32.mrb[121].mxu1  ;;  %v4681_v59 = vld [vmem:[%s6213_s0 + $0x3a0] ss:$8 sps:$4 sm:$0xff]  }
 0x1ea   :  { %v5818_v20 = vpop.f32.mrb[122].mxu0  ;;  %v5820_v2 = vpop.f32.mrb[122].mxu1  ;;  %v4679_v36 = vld [vmem:[%s6213_s0 + $0x7a4] ss:$8 sps:$4 sm:$0xff]  }
 0x1eb   :  { %6291 = vst [vmem:[#allocation77_spill] sm:$0xff] %v5818_v20  ;;  %6292 = vst [vmem:[#allocation78_spill] sm:$0xff] %v5820_v2  ;;  %v2159_v37 = vpop.f32.mrb[123].mxu0  ;;  %v2671_v21 = vpop.f32.mrb[123].mxu1 }
 0x1ec   :  { %v4682_v37 = vld [vmem:[%s6213_s0 + $0x7a0] ss:$8 sps:$4 sm:$0xff]  }
 0x1ed   :  { %2369 = vmatmul.mubr.bf16.gmra.mrb[228].mxu0 %v4675_v3  ;;  %2881 = vmatmul.mubr.bf16.gmra.mrb[228].mxu1 %v4676_v45 }
 0x1ee   :  { %3911 = vmatprep.mubr.msk.bf16.mxu0 %vm1495_vm0, %v4677_v58  ;;  %3975 = vmatprep.mubr.msk.bf16.mxu1 %vm1495_vm0, %v4679_v36  ;;  %v4683_v58 = vld [vmem:[%s6213_s0 + $0x3b4] ss:$8 sps:$4 sm:$0xff]  }
 0x1f0   :  { %v5830_v44 = vpop.f32.mrb[124].mxu0  ;;  %v5832_v20 = vpop.f32.mrb[124].mxu1 }
 0x1f1   :  { %6293 = vst [vmem:[#allocation79_spill] sm:$0xff] %v5830_v44  ;;  %6294 = vst [vmem:[#allocation80_spill] sm:$0xff] %v5832_v20  ;;  %v2164_v2 = vpop.f32.mrb[125].mxu0  ;;  %v2676_v19 = vpop.f32.mrb[125].mxu1 }
 0x1f2   :  { %v5840_v3 = vpop.f32.mrb[126].mxu0  ;;  %v5842_v45 = vpop.f32.mrb[126].mxu1  ;;  %v4685_v19 = vld [vmem:[%s6213_s0 + $0x7b4] ss:$8 sps:$4 sm:$0xff]  }
 0x1f3   :  { %6295 = vst [vmem:[#allocation81_spill] sm:$0xff] %v5840_v3  ;;  %6296 = vst [vmem:[#allocation82_spill] sm:$0xff] %v5842_v45  ;;  %v2167_v2 = vpop.f32.mrb[127].mxu0  ;;  %v2679_v36 = vpop.f32.mrb[127].mxu1  ;;  %v5855_v45 = vld [vmem:[%s6214_s2] ss:$0 sm:$0xff] }
 0x1f4   :  { %v4689_v36 = vld [vmem:[%s6213_s0 + $0x3c4] ss:$8 sps:$4 sm:$0xff]  }
 0x1f5   :  { %2377 = vmatmul.mubr.bf16.gmra.mrb[232].mxu0 %v4681_v59  ;;  %2889 = vmatmul.mubr.bf16.gmra.mrb[232].mxu1 %v4682_v37  ;;  %v4687_v59 = vld [vmem:[%s6213_s0 + $0x3b0] ss:$8 sps:$4 sm:$0xff]  }
 0x1f6   :  { %3912 = vmatprep.mubr.msk.bf16.mxu0 %vm1495_vm0, %v4683_v58  ;;  %3976 = vmatprep.mubr.msk.bf16.mxu1 %vm1495_vm0, %v4685_v19  ;;  %v4688_v37 = vld [vmem:[%s6213_s0 + $0x7b0] ss:$8 sps:$4 sm:$0xff]  }
 0x1f8   :  { %v2170_v21 = vpop.f32.mrb[128].mxu0  ;;  %v2682_v3 = vpop.f32.mrb[128].mxu1 }
 0x1f9   :  { %v2937_v20 = vmax.f32 %v5148_v56, %v2170_v21  ;;  %v3001_v44 = vmax.f32 %v5150_v57, %v2682_v3  ;;  %v2172_v18 = vpop.f32.mrb[129].mxu0  ;;  %v2684_v2 = vpop.f32.mrb[129].mxu1  ;;  %v4691_v56 = vld [vmem:[%s6213_s0 + $0x7c4] ss:$8 sps:$4 sm:$0xff]  }
 0x1fa   :  { %v2173_v58 = vpop.f32.mrb[130].mxu0  ;;  %v2685_v19 = vpop.f32.mrb[130].mxu1 }
 0x1fb   :  { %v3065_v57 = vmax.f32 %v2937_v20, %v3001_v44  ;;  %v2938_v18 = vmax.f32 %v5158_v62, %v2173_v58  ;;  %v3002_v3 = vmax.f32 %v5160_v63, %v2685_v19  ;;  %v2175_v21 = vpop.f32.mrb[131].mxu0  ;;  %v2687_v2 = vpop.f32.mrb[131].mxu1  ;;  %v4693_v62 = vld [vmem:[%s6213_s0 + $0x3c0] ss:$8 sps:$4 sm:$0xff]  }
 0x1fc   :  { %v4694_v19 = vld [vmem:[%s6213_s0 + $0x7c0] ss:$8 sps:$4 sm:$0xff]  }
 0x1fd   :  { %v3136_v49 = vadd.f32 %v5855_v45, %v3065_v57  ;;  %v3066_v48 = vmax.f32 %v2938_v18, %v3002_v3  ;;  %2385 = vmatmul.mubr.bf16.gmra.mrb[236].mxu0 %v4687_v59  ;;  %2897 = vmatmul.mubr.bf16.gmra.mrb[236].mxu1 %v4688_v37 }
 0x1fe   :  { %3913 = vmatprep.mubr.msk.bf16.mxu0 %vm1495_vm0, %v4689_v36  ;;  %3977 = vmatprep.mubr.msk.bf16.mxu1 %vm1495_vm0, %v4691_v56  ;;  %v4695_v56 = vld [vmem:[%s6213_s0 + $0x3d4] ss:$8 sps:$4 sm:$0xff]  }
 0x1ff   :  { %v3137_v31 = vadd.f32 %v5855_v45, %v3066_v48  ;;  %v3200_v63 = vmax.f32 %v3136_v49, 0.0 }
 0x200   :  { %v2178_v30 = vpop.f32.mrb[132].mxu0  ;;  %v2690_v9 = vpop.f32.mrb[132].mxu1 }
 0x201   :  { %v3201_v20 = vmax.f32 %v3137_v31, 0.0  ;;  %v2939_v44 = vmax.f32 %v5170_v4, %v2178_v30  ;;  %v3003_v58 = vmax.f32 %v5172_v5, %v2690_v9  ;;  %v2180_v59 = vpop.f32.mrb[133].mxu0  ;;  %v2692_v37 = vpop.f32.mrb[133].mxu1  ;;  %v4697_v31 = vld [vmem:[%s6213_s0 + $0x7d4] ss:$8 sps:$4 sm:$0xff]  }
 0x202   :  { %v2181_v36 = vpop.f32.mrb[134].mxu0  ;;  %v2693_v48 = vpop.f32.mrb[134].mxu1  ;;  %v4700_v37 = vld [vmem:[%s6213_s0 + $0x7d0] ss:$8 sps:$4 sm:$0xff]  }
 0x203   :  { %v4113_v49 = vpack.c.bf16 %v3201_v20, %v3200_v63  ;;  %v3067_v4 = vmax.f32 %v2939_v44, %v3003_v58  ;;  %v2940_v5 = vmax.f32 %v5180_v10, %v2181_v36  ;;  %v3004_v9 = vmax.f32 %v5182_v11, %v2693_v48  ;;  %v2183_v30 = vpop.f32.mrb[135].mxu0  ;;  %v2695_v57 = vpop.f32.mrb[135].mxu1  ;;  %v4699_v11 = vld [vmem:[%s6213_s0 + $0x3d0] ss:$8 sps:$4 sm:$0xff]   ;;  %v4701_v48 = vld [vmem:[%s6213_s0 + $0x3e4] ss:$8 sps:$4 sm:$0xff]  }
 0x205   :  { %4114 = vst [vmem:[%s6215_s3] sm:$0xff] %v4113_v49   ;;  %v3138_v18 = vadd.f32 %v5855_v45, %v3067_v4  ;;  %v3068_v3 = vmax.f32 %v2940_v5, %v3004_v9  ;;  %2393 = vmatmul.mubr.bf16.gmra.mrb[240].mxu0 %v4693_v62  ;;  %2905 = vmatmul.mubr.bf16.gmra.mrb[240].mxu1 %v4694_v19 }
 0x206   :  { %3914 = vmatprep.mubr.msk.bf16.mxu0 %vm1495_vm0, %v4695_v56  ;;  %3978 = vmatprep.mubr.msk.bf16.mxu1 %vm1495_vm0, %v4697_v31  ;;  %v4703_v56 = vld [vmem:[%s6213_s0 + $0x7e4] ss:$8 sps:$4 sm:$0xff]  }
 0x207   :  { %v3139_v21 = vadd.f32 %v5855_v45, %v3068_v3  ;;  %v3202_v63 = vmax.f32 %v3138_v18, 0.0 }
 0x208   :  { %v2186_v10 = vpop.f32.mrb[136].mxu0  ;;  %v2698_v2 = vpop.f32.mrb[136].mxu1 }
 0x209   :  { %v3203_v20 = vmax.f32 %v3139_v21, 0.0  ;;  %v2941_v44 = vmax.f32 %v5192_v16, %v2186_v10  ;;  %v3005_v58 = vmax.f32 %v5194_v17, %v2698_v2  ;;  %v2188_v62 = vpop.f32.mrb[137].mxu0  ;;  %v2700_v59 = vpop.f32.mrb[137].mxu1 }
 0x20a   :  { %v2189_v19 = vpop.f32.mrb[138].mxu0  ;;  %v2701_v36 = vpop.f32.mrb[138].mxu1  ;;  %v4707_v62 = vld [vmem:[%s6213_s0 + $0x3f4] ss:$8 sps:$4 sm:$0xff]  }
 0x20b   :  { %v4118_v31 = vpack.c.bf16 %v3203_v20, %v3202_v63  ;;  %v3069_v16 = vmax.f32 %v2941_v44, %v3005_v58  ;;  %v2942_v17 = vmax.f32 %v5202_v22, %v2189_v19  ;;  %v3006_v49 = vmax.f32 %v5204_v23, %v2701_v36  ;;  %v2191_v4 = vpop.f32.mrb[139].mxu0  ;;  %v2703_v5 = vpop.f32.mrb[139].mxu1  ;;  %v4705_v23 = vld [vmem:[%s6213_s0 + $0x3e0] ss:$8 sps:$4 sm:$0xff]   ;;  %v4709_v59 = vld [vmem:[%s6213_s0 + $0x7f4] ss:$8 sps:$4 sm:$0xff]  }
 0x20c   :  { %v4706_v20 = vld [vmem:[%s6213_s0 + $0x7e0] ss:$8 sps:$4 sm:$0xff]  }
 0x20d   :  { %4270 = vst [vmem:[%s6215_s3 + $0x8] sm:$0xff] %v4118_v31   ;;  %v3140_v9 = vadd.f32 %v5855_v45, %v3069_v16  ;;  %v3070_v30 = vmax.f32 %v2942_v17, %v3006_v49  ;;  %2401 = vmatmul.mubr.bf16.gmra.mrb[244].mxu0 %v4699_v11  ;;  %2913 = vmatmul.mubr.bf16.gmra.mrb[244].mxu1 %v4700_v37 }
 0x20e   :  { %3915 = vmatprep.mubr.msk.bf16.mxu0 %vm1495_vm0, %v4701_v48  ;;  %3979 = vmatprep.mubr.msk.bf16.mxu1 %vm1495_vm0, %v4703_v56 }
 0x20f   :  { %v3141_v57 = vadd.f32 %v5855_v45, %v3070_v30  ;;  %v3204_v3 = vmax.f32 %v3140_v9, 0.0 }
 0x210   :  { %v2194_v22 = vpop.f32.mrb[140].mxu0  ;;  %v2706_v18 = vpop.f32.mrb[140].mxu1 }
 0x211   :  { %v3205_v21 = vmax.f32 %v3141_v57, 0.0  ;;  %v2943_v10 = vmax.f32 %v5214_v28, %v2194_v22  ;;  %v3007_v2 = vmax.f32 %v5216_v29, %v2706_v18  ;;  %v2196_v11 = vpop.f32.mrb[141].mxu0  ;;  %v2708_v63 = vpop.f32.mrb[141].mxu1  ;;  %v4712_v22 = vld [vmem:[%s6213_s0 + $0x7f0] ss:$8 sps:$4 sm:$0xff]  }
 0x212   :  { %v2197_v44 = vpop.f32.mrb[142].mxu0  ;;  %v2709_v58 = vpop.f32.mrb[142].mxu1 }
 0x213   :  { %v4123_v37 = vpack.c.bf16 %v3205_v21, %v3204_v3  ;;  %v3071_v28 = vmax.f32 %v2943_v10, %v3007_v2  ;;  %v2944_v29 = vmax.f32 %v5224_v34, %v2197_v44  ;;  %v3008_v19 = vmax.f32 %v5226_v35, %v2709_v58  ;;  %v2199_v36 = vpop.f32.mrb[143].mxu0  ;;  %v2711_v48 = vpop.f32.mrb[143].mxu1  ;;  %v4711_v35 = vld [vmem:[%s6213_s0 + $0x3f0] ss:$8 sps:$4 sm:$0xff]  }
 0x215   :  { %4271 = vst [vmem:[%s6215_s3 + $0x10] sm:$0xff] %v4123_v37   ;;  %v3142_v56 = vadd.f32 %v5855_v45, %v3071_v28  ;;  %v3072_v31 = vmax.f32 %v2944_v29, %v3008_v19  ;;  %2409 = vmatmul.mubr.bf16.gmra.mrb[248].mxu0 %v4705_v23  ;;  %2921 = vmatmul.mubr.bf16.gmra.mrb[248].mxu1 %v4706_v20 }
 0x216   :  { %3916 = vmatprep.mubr.msk.bf16.mxu0 %vm1495_vm0, %v4707_v62  ;;  %3980 = vmatprep.mubr.msk.bf16.mxu1 %vm1495_vm0, %v4709_v59 }
 0x217   :  { %v3143_v16 = vadd.f32 %v5855_v45, %v3072_v31  ;;  %v3206_v49 = vmax.f32 %v3142_v56, 0.0 }
 0x218   :  { %v2202_v34 = vpop.f32.mrb[144].mxu0  ;;  %v2714_v17 = vpop.f32.mrb[144].mxu1 }
 0x219   :  { %v3207_v4 = vmax.f32 %v3143_v16, 0.0  ;;  %v2945_v5 = vmax.f32 %v5236_v40, %v2202_v34  ;;  %v3009_v9 = vmax.f32 %v5238_v41, %v2714_v17  ;;  %v2204_v30 = vpop.f32.mrb[145].mxu0  ;;  %v2716_v57 = vpop.f32.mrb[145].mxu1 }
 0x21a   :  { %v2205_v18 = vpop.f32.mrb[146].mxu0  ;;  %v2717_v23 = vpop.f32.mrb[146].mxu1 }
 0x21b   :  { %v4128_v3 = vpack.c.bf16 %v3207_v4, %v3206_v49  ;;  %v3073_v21 = vmax.f32 %v2945_v5, %v3009_v9  ;;  %v2946_v10 = vmax.f32 %v5246_v46, %v2205_v18  ;;  %v3010_v2 = vmax.f32 %v5248_v47, %v2717_v23  ;;  %v2207_v11 = vpop.f32.mrb[147].mxu0  ;;  %v2719_v63 = vpop.f32.mrb[147].mxu1 }
 0x21d   :  { %4272 = vst [vmem:[%s6215_s3 + $0x18] sm:$0xff] %v4128_v3   ;;  %v3144_v40 = vadd.f32 %v5855_v45, %v3073_v21  ;;  %v3074_v41 = vmax.f32 %v2946_v10, %v3010_v2  ;;  %2417 = vmatmul.mubr.bf16.gmra.mrb[252].mxu0 %v4711_v35  ;;  %2929 = vmatmul.mubr.bf16.gmra.mrb[252].mxu1 %v4712_v22 }
 0x21f   :  { %v3145_v20 = vadd.f32 %v5855_v45, %v3074_v41  ;;  %v3208_v62 = vmax.f32 %v3144_v40, 0.0 }
 0x220   :  { %v2210_v44 = vpop.f32.mrb[148].mxu0  ;;  %v2722_v58 = vpop.f32.mrb[148].mxu1 }
 0x221   :  { %v3209_v59 = vmax.f32 %v3145_v20, 0.0  ;;  %v2947_v46 = vmax.f32 %v5258_v52, %v2210_v44  ;;  %v3011_v47 = vmax.f32 %v5260_v53, %v2722_v58  ;;  %v2212_v37 = vpop.f32.mrb[149].mxu0  ;;  %v2724_v28 = vpop.f32.mrb[149].mxu1 }
 0x222   :  { %v2213_v29 = vpop.f32.mrb[150].mxu0  ;;  %v2725_v19 = vpop.f32.mrb[150].mxu1 }
 0x223   :  { %v4133_v36 = vpack.c.bf16 %v3209_v59, %v3208_v62  ;;  %v3075_v48 = vmax.f32 %v2947_v46, %v3011_v47  ;;  %v2948_v56 = vmax.f32 %v5268_v60, %v2213_v29  ;;  %v3012_v31 = vmax.f32 %v5270_v61, %v2725_v19  ;;  %v2215_v16 = vpop.f32.mrb[151].mxu0  ;;  %v2727_v34 = vpop.f32.mrb[151].mxu1 }
 0x225   :  { %4273 = vst [vmem:[%s6215_s3 + $0x20] sm:$0xff] %v4133_v36   ;;  %v3146_v52 = vadd.f32 %v5855_v45, %v3075_v48  ;;  %v3076_v17 = vmax.f32 %v2948_v56, %v3012_v31 }
 0x227   :  { %v3147_v53 = vadd.f32 %v5855_v45, %v3076_v17  ;;  %v3210_v4 = vmax.f32 %v3146_v52, 0.0 }
 0x228   :  { %v2218_v35 = vpop.f32.mrb[152].mxu0  ;;  %v2730_v49 = vpop.f32.mrb[152].mxu1 }
 0x229   :  { %v3211_v5 = vmax.f32 %v3147_v53, 0.0  ;;  %v2949_v9 = vmax.f32 %v5280_v6, %v2218_v35  ;;  %v3013_v60 = vmax.f32 %v5282_v7, %v2730_v49  ;;  %v2220_v61 = vpop.f32.mrb[153].mxu0  ;;  %v2732_v30 = vpop.f32.mrb[153].mxu1 }
 0x22a   :  { %v2221_v57 = vpop.f32.mrb[154].mxu0  ;;  %v2733_v22 = vpop.f32.mrb[154].mxu1 }
 0x22b   :  { %v4138_v18 = vpack.c.bf16 %v3211_v5, %v3210_v4  ;;  %v3077_v23 = vmax.f32 %v2949_v9, %v3013_v60  ;;  %v2950_v3 = vmax.f32 %v5290_v14, %v2221_v57  ;;  %v3014_v21 = vmax.f32 %v5292_v15, %v2733_v22  ;;  %v2223_v10 = vpop.f32.mrb[155].mxu0  ;;  %v2735_v2 = vpop.f32.mrb[155].mxu1 }
 0x22d   :  { %4274 = vst [vmem:[%s6215_s3 + $0x28] sm:$0xff] %v4138_v18   ;;  %v3148_v6 = vadd.f32 %v5855_v45, %v3077_v23  ;;  %v3078_v11 = vmax.f32 %v2950_v3, %v3014_v21 }
 0x22f   :  { %v3149_v7 = vadd.f32 %v5855_v45, %v3078_v11  ;;  %v3212_v41 = vmax.f32 %v3148_v6, 0.0 }
 0x230   :  { %v2226_v63 = vpop.f32.mrb[156].mxu0  ;;  %v2738_v40 = vpop.f32.mrb[156].mxu1 }
 0x231   :  { %v3213_v20 = vmax.f32 %v3149_v7, 0.0  ;;  %v2951_v44 = vmax.f32 %v5302_v24, %v2226_v63  ;;  %v3015_v14 = vmax.f32 %v5304_v25, %v2738_v40  ;;  %v2228_v15 = vpop.f32.mrb[157].mxu0  ;;  %v2740_v58 = vpop.f32.mrb[157].mxu1 }
 0x232   :  { %v2229_v62 = vpop.f32.mrb[158].mxu0  ;;  %v2741_v59 = vpop.f32.mrb[158].mxu1 }
 0x233   :  { %v4143_v46 = vpack.c.bf16 %v3213_v20, %v3212_v41  ;;  %v3079_v47 = vmax.f32 %v2951_v44, %v3015_v14  ;;  %v2952_v37 = vmax.f32 %v5312_v32, %v2229_v62  ;;  %v3016_v28 = vmax.f32 %v5314_v33, %v2741_v59  ;;  %v2231_v29 = vpop.f32.mrb[159].mxu0  ;;  %v2743_v19 = vpop.f32.mrb[159].mxu1 }
 0x235   :  { %4275 = vst [vmem:[%s6215_s3 + $0x30] sm:$0xff] %v4143_v46   ;;  %v3150_v24 = vadd.f32 %v5855_v45, %v3079_v47  ;;  %v3080_v36 = vmax.f32 %v2952_v37, %v3016_v28 }
 0x237   :  { %v3151_v25 = vadd.f32 %v5855_v45, %v3080_v36  ;;  %v3214_v31 = vmax.f32 %v3150_v24, 0.0 }
 0x238   :  { %v2234_v48 = vpop.f32.mrb[160].mxu0  ;;  %v2746_v56 = vpop.f32.mrb[160].mxu1 }
 0x239   :  { %v3215_v16 = vmax.f32 %v3151_v25, 0.0  ;;  %v2953_v34 = vmax.f32 %v5324_v42, %v2234_v48  ;;  %v3017_v32 = vmax.f32 %v5326_v43, %v2746_v56  ;;  %v2236_v33 = vpop.f32.mrb[161].mxu0  ;;  %v2748_v52 = vpop.f32.mrb[161].mxu1 }
 0x23a   :  { %v2237_v17 = vpop.f32.mrb[162].mxu0  ;;  %v2749_v53 = vpop.f32.mrb[162].mxu1 }
 0x23b   :  { %v4148_v35 = vpack.c.bf16 %v3215_v16, %v3214_v31  ;;  %v3081_v49 = vmax.f32 %v2953_v34, %v3017_v32  ;;  %v2954_v4 = vmax.f32 %v5334_v50, %v2237_v17  ;;  %v3018_v5 = vmax.f32 %v5336_v51, %v2749_v53  ;;  %v2239_v9 = vpop.f32.mrb[163].mxu0  ;;  %v2751_v60 = vpop.f32.mrb[163].mxu1 }
 0x23d   :  { %4276 = vst [vmem:[%s6215_s3 + $0x38] sm:$0xff] %v4148_v35   ;;  %v3152_v42 = vadd.f32 %v5855_v45, %v3081_v49  ;;  %v3082_v61 = vmax.f32 %v2954_v4, %v3018_v5  ;;  %v6297_v35 = vld [vmem:[#allocation2_spill] sm:$0xff] }
 0x23f   :  { %v3153_v43 = vadd.f32 %v5855_v45, %v3082_v61  ;;  %v3216_v22 = vmax.f32 %v3152_v42, 0.0 }
 0x240   :  { %v2242_v30 = vpop.f32.mrb[164].mxu0  ;;  %v2754_v57 = vpop.f32.mrb[164].mxu1 }
 0x241   :  { %v3217_v18 = vmax.f32 %v3153_v43, 0.0  ;;  %v2955_v23 = vmax.f32 %v5346_v0, %v2242_v30  ;;  %v3019_v50 = vmax.f32 %v5348_v1, %v2754_v57  ;;  %v2244_v51 = vpop.f32.mrb[165].mxu0  ;;  %v2756_v3 = vpop.f32.mrb[165].mxu1  ;;  %v6298_v30 = vld [vmem:[#allocation3_spill] sm:$0xff] }
 0x242   :  { %v2245_v21 = vpop.f32.mrb[166].mxu0  ;;  %v2757_v10 = vpop.f32.mrb[166].mxu1 }
 0x243   :  { %v4153_v2 = vpack.c.bf16 %v3217_v18, %v3216_v22  ;;  %v3083_v6 = vmax.f32 %v2955_v23, %v3019_v50  ;;  %v2956_v11 = vmax.f32 %v5356_v12, %v2245_v21  ;;  %v3020_v7 = vmax.f32 %v5358_v13, %v2757_v10  ;;  %v2247_v63 = vpop.f32.mrb[167].mxu0  ;;  %v2759_v40 = vpop.f32.mrb[167].mxu1  ;;  %v6300_v10 = vld [vmem:[#allocation5_spill] sm:$0xff] }
 0x245   :  { %4277 = vst [vmem:[%s6215_s3 + $0x40] sm:$0xff] %v4153_v2   ;;  %v3154_v0 = vadd.f32 %v5855_v45, %v3083_v6  ;;  %v3084_v41 = vmax.f32 %v2956_v11, %v3020_v7  ;;  %v6301_v6 = vld [vmem:[#allocation6_spill] sm:$0xff] }
 0x247   :  { %v3155_v1 = vadd.f32 %v5855_v45, %v3084_v41  ;;  %v3218_v14 = vmax.f32 %v3154_v0, 0.0 }
 0x248   :  { %v2250_v20 = vpop.f32.mrb[168].mxu0  ;;  %v2762_v44 = vpop.f32.mrb[168].mxu1 }
 0x249   :  { %v3219_v15 = vmax.f32 %v3155_v1, 0.0  ;;  %v2957_v58 = vmax.f32 %v5368_v26, %v2250_v20  ;;  %v3021_v12 = vmax.f32 %v5370_v27, %v2762_v44  ;;  %v2252_v13 = vpop.f32.mrb[169].mxu0  ;;  %v2764_v62 = vpop.f32.mrb[169].mxu1 }
 0x24a   :  { %v2253_v59 = vpop.f32.mrb[170].mxu0  ;;  %v2765_v46 = vpop.f32.mrb[170].mxu1 }
 0x24b   :  { %v4158_v47 = vpack.c.bf16 %v3219_v15, %v3218_v14  ;;  %v3085_v37 = vmax.f32 %v2957_v58, %v3021_v12  ;;  %v2958_v28 = vmax.f32 %v5378_v38, %v2253_v59  ;;  %v3022_v29 = vmax.f32 %v5380_v39, %v2765_v46  ;;  %v2255_v19 = vpop.f32.mrb[171].mxu0  ;;  %v2767_v24 = vpop.f32.mrb[171].mxu1  ;;  %v6302_v15 = vld [vmem:[#allocation7_spill] sm:$0xff]  ;;  %v6303_v12 = vld [vmem:[#allocation8_spill] sm:$0xff] }
 0x24c   :  { %v6305_v24 = vld [vmem:[#allocation10_spill] sm:$0xff] }
 0x24d   :  { %4278 = vst [vmem:[%s6215_s3 + $0x48] sm:$0xff] %v4158_v47   ;;  %v3156_v26 = vadd.f32 %v5855_v45, %v3085_v37  ;;  %v3086_v36 = vmax.f32 %v2958_v28, %v3022_v29  ;;  %v6304_v29 = vld [vmem:[#allocation9_spill] sm:$0xff] }
 0x24f   :  { %v3157_v27 = vadd.f32 %v5855_v45, %v3086_v36  ;;  %v3220_v56 = vmax.f32 %v3156_v26, 0.0 }
 0x250   :  { %v2258_v25 = vpop.f32.mrb[172].mxu0  ;;  %v2770_v48 = vpop.f32.mrb[172].mxu1 }
 0x251   :  { %v3221_v31 = vmax.f32 %v3157_v27, 0.0  ;;  %v2959_v16 = vmax.f32 %v5390_v54, %v2258_v25  ;;  %v3023_v38 = vmax.f32 %v5392_v55, %v2770_v48  ;;  %v2260_v39 = vpop.f32.mrb[173].mxu0  ;;  %v2772_v34 = vpop.f32.mrb[173].mxu1 }
 0x252   :  { %v2261_v32 = vpop.f32.mrb[174].mxu0  ;;  %v2773_v33 = vpop.f32.mrb[174].mxu1  ;;  %v6306_v34 = vld [vmem:[#allocation11_spill] sm:$0xff] }
 0x253   :  { %v4163_v52 = vpack.c.bf16 %v3221_v31, %v3220_v56  ;;  %v3087_v17 = vmax.f32 %v2959_v16, %v3023_v38  ;;  %v2960_v53 = vmax.f32 %v5400_v8, %v2261_v32  ;;  %v3024_v49 = vmax.f32 %v6297_v35, %v2773_v33  ;;  %v2263_v4 = vpop.f32.mrb[175].mxu0  ;;  %v2775_v5 = vpop.f32.mrb[175].mxu1  ;;  %v6299_v8 = vld [vmem:[#allocation4_spill] sm:$0xff] }
 0x254   :  { %v6307_v33 = vld [vmem:[#allocation12_spill] sm:$0xff] }
 0x255   :  { %4279 = vst [vmem:[%s6215_s3 + $0x50] sm:$0xff] %v4163_v52   ;;  %v3158_v54 = vadd.f32 %v5855_v45, %v3087_v17  ;;  %v3088_v9 = vmax.f32 %v2960_v53, %v3024_v49 }
 0x257   :  { %v3159_v55 = vadd.f32 %v5855_v45, %v3088_v9  ;;  %v3222_v61 = vmax.f32 %v3158_v54, 0.0  ;;  %v6308_v54 = vld [vmem:[#allocation13_spill] sm:$0xff] }
 0x258   :  { %v2266_v60 = vpop.f32.mrb[176].mxu0  ;;  %v2778_v42 = vpop.f32.mrb[176].mxu1 }
 0x259   :  { %v3223_v43 = vmax.f32 %v3159_v55, 0.0  ;;  %v2961_v57 = vmax.f32 %v6298_v30, %v2266_v60  ;;  %v3025_v22 = vmax.f32 %v6299_v8, %v2778_v42  ;;  %v2268_v18 = vpop.f32.mrb[177].mxu0  ;;  %v2780_v23 = vpop.f32.mrb[177].mxu1  ;;  %v6309_v55 = vld [vmem:[#allocation14_spill] sm:$0xff] }
 0x25a   :  { %v2269_v50 = vpop.f32.mrb[178].mxu0  ;;  %v2781_v51 = vpop.f32.mrb[178].mxu1 }
 0x25b   :  { %v4168_v3 = vpack.c.bf16 %v3223_v43, %v3222_v61  ;;  %v3089_v21 = vmax.f32 %v2961_v57, %v3025_v22  ;;  %v2962_v2 = vmax.f32 %v6300_v10, %v2269_v50  ;;  %v3026_v11 = vmax.f32 %v6301_v6, %v2781_v51  ;;  %v2271_v7 = vpop.f32.mrb[179].mxu0  ;;  %v2783_v63 = vpop.f32.mrb[179].mxu1  ;;  %v6310_v50 = vld [vmem:[#allocation15_spill] sm:$0xff] }
 0x25d   :  { %4280 = vst [vmem:[%s6215_s3 + $0x58] sm:$0xff] %v4168_v3   ;;  %v3160_v40 = vadd.f32 %v5855_v45, %v3089_v21  ;;  %v3090_v0 = vmax.f32 %v2962_v2, %v3026_v11  ;;  %v6311_v3 = vld [vmem:[#allocation16_spill] sm:$0xff] }
 0x25f   :  { %v3161_v41 = vadd.f32 %v5855_v45, %v3090_v0  ;;  %v3224_v44 = vmax.f32 %v3160_v40, 0.0  ;;  %v6312_v40 = vld [vmem:[#allocation17_spill] sm:$0xff] }
 0x260   :  { %v2274_v1 = vpop.f32.mrb[180].mxu0  ;;  %v2786_v20 = vpop.f32.mrb[180].mxu1 }
 0x261   :  { %v3225_v14 = vmax.f32 %v3161_v41, 0.0  ;;  %v2963_v58 = vmax.f32 %v6302_v15, %v2274_v1  ;;  %v3027_v13 = vmax.f32 %v6303_v12, %v2786_v20  ;;  %v2276_v62 = vpop.f32.mrb[181].mxu0  ;;  %v2788_v59 = vpop.f32.mrb[181].mxu1  ;;  %v6313_v41 = vld [vmem:[#allocation18_spill] sm:$0xff] }
 0x262   :  { %v2277_v46 = vpop.f32.mrb[182].mxu0  ;;  %v2789_v47 = vpop.f32.mrb[182].mxu1 }
 0x263   :  { %v4173_v37 = vpack.c.bf16 %v3225_v14, %v3224_v44  ;;  %v3091_v28 = vmax.f32 %v2963_v58, %v3027_v13  ;;  %v2964_v19 = vmax.f32 %v6304_v29, %v2277_v46  ;;  %v3028_v26 = vmax.f32 %v6305_v24, %v2789_v47  ;;  %v2279_v36 = vpop.f32.mrb[183].mxu0  ;;  %v2791_v27 = vpop.f32.mrb[183].mxu1  ;;  %v6314_v46 = vld [vmem:[#allocation19_spill] sm:$0xff] }
 0x265   :  { %4281 = vst [vmem:[%s6215_s3 + $0x60] sm:$0xff] %v4173_v37   ;;  %v3162_v25 = vadd.f32 %v5855_v45, %v3091_v28  ;;  %v3092_v48 = vmax.f32 %v2964_v19, %v3028_v26  ;;  %v6315_v37 = vld [vmem:[#allocation20_spill] sm:$0xff] }
 0x267   :  { %v3163_v56 = vadd.f32 %v5855_v45, %v3092_v48  ;;  %v3226_v38 = vmax.f32 %v3162_v25, 0.0  ;;  %v6316_v25 = vld [vmem:[#allocation21_spill] sm:$0xff] }
 0x268   :  { %v2282_v31 = vpop.f32.mrb[184].mxu0  ;;  %v2794_v16 = vpop.f32.mrb[184].mxu1 }
 0x269   :  { %v3227_v39 = vmax.f32 %v3163_v56, 0.0  ;;  %v2965_v32 = vmax.f32 %v6306_v34, %v2282_v31  ;;  %v3029_v52 = vmax.f32 %v6307_v33, %v2794_v16  ;;  %v2284_v17 = vpop.f32.mrb[185].mxu0  ;;  %v2796_v53 = vpop.f32.mrb[185].mxu1  ;;  %v6317_v56 = vld [vmem:[#allocation22_spill] sm:$0xff] }
 0x26a   :  { %v2285_v35 = vpop.f32.mrb[186].mxu0  ;;  %v2797_v49 = vpop.f32.mrb[186].mxu1 }
 0x26b   :  { %v4178_v4 = vpack.c.bf16 %v3227_v39, %v3226_v38  ;;  %v3093_v5 = vmax.f32 %v2965_v32, %v3029_v52  ;;  %v2966_v9 = vmax.f32 %v6308_v54, %v2285_v35  ;;  %v3030_v60 = vmax.f32 %v6309_v55, %v2797_v49  ;;  %v2287_v42 = vpop.f32.mrb[187].mxu0  ;;  %v2799_v61 = vpop.f32.mrb[187].mxu1  ;;  %v6318_v35 = vld [vmem:[#allocation23_spill] sm:$0xff] }
 0x26d   :  { %4282 = vst [vmem:[%s6215_s3 + $0x68] sm:$0xff] %v4178_v4   ;;  %v3164_v43 = vadd.f32 %v5855_v45, %v3093_v5  ;;  %v3094_v30 = vmax.f32 %v2966_v9, %v3030_v60  ;;  %v6319_v4 = vld [vmem:[#allocation24_spill] sm:$0xff] }
 0x26f   :  { %v3165_v57 = vadd.f32 %v5855_v45, %v3094_v30  ;;  %v3228_v18 = vmax.f32 %v3164_v43, 0.0  ;;  %v6320_v43 = vld [vmem:[#allocation25_spill] sm:$0xff] }
 0x270   :  { %v2290_v8 = vpop.f32.mrb[188].mxu0  ;;  %v2802_v22 = vpop.f32.mrb[188].mxu1 }
 0x271   :  { %v3229_v23 = vmax.f32 %v3165_v57, 0.0  ;;  %v2967_v51 = vmax.f32 %v6310_v50, %v2290_v8  ;;  %v3031_v21 = vmax.f32 %v6311_v3, %v2802_v22  ;;  %v2292_v10 = vpop.f32.mrb[189].mxu0  ;;  %v2804_v2 = vpop.f32.mrb[189].mxu1  ;;  %v6321_v57 = vld [vmem:[#allocation26_spill] sm:$0xff] }
 0x272   :  { %v2293_v6 = vpop.f32.mrb[190].mxu0  ;;  %v2805_v11 = vpop.f32.mrb[190].mxu1 }
 0x273   :  { %v4183_v7 = vpack.c.bf16 %v3229_v23, %v3228_v18  ;;  %v3095_v63 = vmax.f32 %v2967_v51, %v3031_v21  ;;  %v2968_v0 = vmax.f32 %v6312_v40, %v2293_v6  ;;  %v3032_v1 = vmax.f32 %v6313_v41, %v2805_v11  ;;  %v2295_v20 = vpop.f32.mrb[191].mxu0  ;;  %v2807_v44 = vpop.f32.mrb[191].mxu1  ;;  %v6322_v6 = vld [vmem:[#allocation27_spill] sm:$0xff] }
 0x275   :  { %4283 = vst [vmem:[%s6215_s3 + $0x70] sm:$0xff] %v4183_v7   ;;  %v3166_v14 = vadd.f32 %v5855_v45, %v3095_v63  ;;  %v3096_v15 = vmax.f32 %v2968_v0, %v3032_v1  ;;  %v6323_v7 = vld [vmem:[#allocation28_spill] sm:$0xff] }
 0x277   :  { %v3167_v58 = vadd.f32 %v5855_v45, %v3096_v15  ;;  %v3230_v62 = vmax.f32 %v3166_v14, 0.0  ;;  %v6324_v14 = vld [vmem:[#allocation29_spill] sm:$0xff] }
 0x278   :  { %v2298_v12 = vpop.f32.mrb[192].mxu0  ;;  %v2810_v13 = vpop.f32.mrb[192].mxu1 }
 0x279   :  { %v3231_v59 = vmax.f32 %v3167_v58, 0.0  ;;  %v2969_v47 = vmax.f32 %v6314_v46, %v2298_v12  ;;  %v3033_v28 = vmax.f32 %v6315_v37, %v2810_v13  ;;  %v2300_v29 = vpop.f32.mrb[193].mxu0  ;;  %v2812_v19 = vpop.f32.mrb[193].mxu1  ;;  %v6325_v58 = vld [vmem:[#allocation30_spill] sm:$0xff] }
 0x27a   :  { %v2301_v24 = vpop.f32.mrb[194].mxu0  ;;  %v2813_v26 = vpop.f32.mrb[194].mxu1 }
 0x27b   :  { %v4188_v36 = vpack.c.bf16 %v3231_v59, %v3230_v62  ;;  %v3097_v27 = vmax.f32 %v2969_v47, %v3033_v28  ;;  %v2970_v48 = vmax.f32 %v6316_v25, %v2301_v24  ;;  %v3034_v31 = vmax.f32 %v6317_v56, %v2813_v26  ;;  %v2303_v16 = vpop.f32.mrb[195].mxu0  ;;  %v2815_v38 = vpop.f32.mrb[195].mxu1  ;;  %v6326_v24 = vld [vmem:[#allocation31_spill] sm:$0xff] }
 0x27d   :  { %4284 = vst [vmem:[%s6215_s3 + $0x78] sm:$0xff] %v4188_v36   ;;  %v3168_v39 = vadd.f32 %v5855_v45, %v3097_v27  ;;  %v3098_v34 = vmax.f32 %v2970_v48, %v3034_v31  ;;  %v6327_v36 = vld [vmem:[#allocation32_spill] sm:$0xff] }
 0x27f   :  { %v3169_v32 = vadd.f32 %v5855_v45, %v3098_v34  ;;  %v3232_v17 = vmax.f32 %v3168_v39, 0.0  ;;  %v6328_v39 = vld [vmem:[#allocation33_spill] sm:$0xff] }
 0x280   :  { %v2306_v33 = vpop.f32.mrb[196].mxu0  ;;  %v2818_v52 = vpop.f32.mrb[196].mxu1 }
 0x281   :  { %v3233_v53 = vmax.f32 %v3169_v32, 0.0  ;;  %v2971_v49 = vmax.f32 %v6318_v35, %v2306_v33  ;;  %v3035_v5 = vmax.f32 %v6319_v4, %v2818_v52  ;;  %v2308_v54 = vpop.f32.mrb[197].mxu0  ;;  %v2820_v9 = vpop.f32.mrb[197].mxu1  ;;  %v6329_v32 = vld [vmem:[#allocation34_spill] sm:$0xff] }
 0x282   :  { %v2309_v55 = vpop.f32.mrb[198].mxu0  ;;  %v2821_v60 = vpop.f32.mrb[198].mxu1 }
 0x283   :  { %v4193_v42 = vpack.c.bf16 %v3233_v53, %v3232_v17  ;;  %v3099_v61 = vmax.f32 %v2971_v49, %v3035_v5  ;;  %v2972_v30 = vmax.f32 %v6320_v43, %v2309_v55  ;;  %v3036_v8 = vmax.f32 %v6321_v57, %v2821_v60  ;;  %v2311_v22 = vpop.f32.mrb[199].mxu0  ;;  %v2823_v18 = vpop.f32.mrb[199].mxu1  ;;  %v6330_v55 = vld [vmem:[#allocation35_spill] sm:$0xff] }
 0x285   :  { %4285 = vst [vmem:[%s6215_s3 + $0x80] sm:$0xff] %v4193_v42   ;;  %v3170_v23 = vadd.f32 %v5855_v45, %v3099_v61  ;;  %v3100_v50 = vmax.f32 %v2972_v30, %v3036_v8  ;;  %v6331_v42 = vld [vmem:[#allocation36_spill] sm:$0xff] }
 0x287   :  { %v3171_v51 = vadd.f32 %v5855_v45, %v3100_v50  ;;  %v3234_v10 = vmax.f32 %v3170_v23, 0.0  ;;  %v6332_v23 = vld [vmem:[#allocation37_spill] sm:$0xff] }
 0x288   :  { %v2314_v3 = vpop.f32.mrb[200].mxu0  ;;  %v2826_v21 = vpop.f32.mrb[200].mxu1 }
 0x289   :  { %v3235_v2 = vmax.f32 %v3171_v51, 0.0  ;;  %v2973_v11 = vmax.f32 %v6322_v6, %v2314_v3  ;;  %v3037_v63 = vmax.f32 %v6323_v7, %v2826_v21  ;;  %v2316_v40 = vpop.f32.mrb[201].mxu0  ;;  %v2828_v0 = vpop.f32.mrb[201].mxu1  ;;  %v6333_v51 = vld [vmem:[#allocation38_spill] sm:$0xff] }
 0x28a   :  { %v2317_v41 = vpop.f32.mrb[202].mxu0  ;;  %v2829_v1 = vpop.f32.mrb[202].mxu1 }
 0x28b   :  { %v4198_v20 = vpack.c.bf16 %v3235_v2, %v3234_v10  ;;  %v3101_v44 = vmax.f32 %v2973_v11, %v3037_v63  ;;  %v2974_v15 = vmax.f32 %v6324_v14, %v2317_v41  ;;  %v3038_v12 = vmax.f32 %v6325_v58, %v2829_v1  ;;  %v2319_v13 = vpop.f32.mrb[203].mxu0  ;;  %v2831_v62 = vpop.f32.mrb[203].mxu1  ;;  %v6334_v41 = vld [vmem:[#allocation39_spill] sm:$0xff] }
 0x28d   :  { %4286 = vst [vmem:[%s6215_s3 + $0x88] sm:$0xff] %v4198_v20   ;;  %v3172_v59 = vadd.f32 %v5855_v45, %v3101_v44  ;;  %v3102_v46 = vmax.f32 %v2974_v15, %v3038_v12  ;;  %v6335_v20 = vld [vmem:[#allocation40_spill] sm:$0xff] }
 0x28f   :  { %v3173_v47 = vadd.f32 %v5855_v45, %v3102_v46  ;;  %v3236_v29 = vmax.f32 %v3172_v59, 0.0  ;;  %v6336_v59 = vld [vmem:[#allocation41_spill] sm:$0xff] }
 0x290   :  { %v2322_v37 = vpop.f32.mrb[204].mxu0  ;;  %v2834_v28 = vpop.f32.mrb[204].mxu1 }
 0x291   :  { %v3237_v19 = vmax.f32 %v3173_v47, 0.0  ;;  %v2975_v26 = vmax.f32 %v6326_v24, %v2322_v37  ;;  %v3039_v27 = vmax.f32 %v6327_v36, %v2834_v28  ;;  %v2324_v25 = vpop.f32.mrb[205].mxu0  ;;  %v2836_v48 = vpop.f32.mrb[205].mxu1  ;;  %v6337_v47 = vld [vmem:[#allocation42_spill] sm:$0xff] }
 0x292   :  { %v2325_v56 = vpop.f32.mrb[206].mxu0  ;;  %v2837_v31 = vpop.f32.mrb[206].mxu1 }
 0x293   :  { %v4203_v16 = vpack.c.bf16 %v3237_v19, %v3236_v29  ;;  %v3103_v38 = vmax.f32 %v2975_v26, %v3039_v27  ;;  %v2976_v34 = vmax.f32 %v6328_v39, %v2325_v56  ;;  %v3040_v33 = vmax.f32 %v6329_v32, %v2837_v31  ;;  %v2327_v52 = vpop.f32.mrb[207].mxu0  ;;  %v2839_v17 = vpop.f32.mrb[207].mxu1  ;;  %v6338_v56 = vld [vmem:[#allocation43_spill] sm:$0xff] }
 0x295   :  { %4287 = vst [vmem:[%s6215_s3 + $0x90] sm:$0xff] %v4203_v16   ;;  %v3174_v53 = vadd.f32 %v5855_v45, %v3103_v38  ;;  %v3104_v35 = vmax.f32 %v2976_v34, %v3040_v33  ;;  %v6339_v16 = vld [vmem:[#allocation44_spill] sm:$0xff] }
 0x297   :  { %v3175_v49 = vadd.f32 %v5855_v45, %v3104_v35  ;;  %v3238_v54 = vmax.f32 %v3174_v53, 0.0  ;;  %v6340_v53 = vld [vmem:[#allocation45_spill] sm:$0xff] }
 0x298   :  { %v2330_v4 = vpop.f32.mrb[208].mxu0  ;;  %v2842_v5 = vpop.f32.mrb[208].mxu1 }
 0x299   :  { %v3239_v9 = vmax.f32 %v3175_v49, 0.0  ;;  %v2977_v60 = vmax.f32 %v6330_v55, %v2330_v4  ;;  %v3041_v61 = vmax.f32 %v6331_v42, %v2842_v5  ;;  %v2332_v43 = vpop.f32.mrb[209].mxu0  ;;  %v2844_v30 = vpop.f32.mrb[209].mxu1  ;;  %v6341_v49 = vld [vmem:[#allocation46_spill] sm:$0xff] }
 0x29a   :  { %v2333_v57 = vpop.f32.mrb[210].mxu0  ;;  %v2845_v8 = vpop.f32.mrb[210].mxu1 }
 0x29b   :  { %v4208_v22 = vpack.c.bf16 %v3239_v9, %v3238_v54  ;;  %v3105_v18 = vmax.f32 %v2977_v60, %v3041_v61  ;;  %v2978_v50 = vmax.f32 %v6332_v23, %v2333_v57  ;;  %v3042_v3 = vmax.f32 %v6333_v51, %v2845_v8  ;;  %v2335_v21 = vpop.f32.mrb[211].mxu0  ;;  %v2847_v10 = vpop.f32.mrb[211].mxu1  ;;  %v6342_v57 = vld [vmem:[#allocation47_spill] sm:$0xff] }
 0x29d   :  { %4288 = vst [vmem:[%s6215_s3 + $0x98] sm:$0xff] %v4208_v22   ;;  %v3176_v2 = vadd.f32 %v5855_v45, %v3105_v18  ;;  %v3106_v6 = vmax.f32 %v2978_v50, %v3042_v3  ;;  %v6343_v22 = vld [vmem:[#allocation48_spill] sm:$0xff] }
 0x29f   :  { %v3177_v11 = vadd.f32 %v5855_v45, %v3106_v6  ;;  %v3240_v40 = vmax.f32 %v3176_v2, 0.0  ;;  %v6344_v2 = vld [vmem:[#allocation49_spill] sm:$0xff] }
 0x2a0   :  { %v2338_v7 = vpop.f32.mrb[212].mxu0  ;;  %v2850_v63 = vpop.f32.mrb[212].mxu1 }
 0x2a1   :  { %v3241_v0 = vmax.f32 %v3177_v11, 0.0  ;;  %v2979_v1 = vmax.f32 %v6334_v41, %v2338_v7  ;;  %v3043_v44 = vmax.f32 %v6335_v20, %v2850_v63  ;;  %v2340_v14 = vpop.f32.mrb[213].mxu0  ;;  %v2852_v15 = vpop.f32.mrb[213].mxu1  ;;  %v6345_v11 = vld [vmem:[#allocation50_spill] sm:$0xff] }
 0x2a2   :  { %v2341_v58 = vpop.f32.mrb[214].mxu0  ;;  %v2853_v12 = vpop.f32.mrb[214].mxu1 }
 0x2a3   :  { %v4213_v13 = vpack.c.bf16 %v3241_v0, %v3240_v40  ;;  %v3107_v62 = vmax.f32 %v2979_v1, %v3043_v44  ;;  %v2980_v46 = vmax.f32 %v6336_v59, %v2341_v58  ;;  %v3044_v37 = vmax.f32 %v6337_v47, %v2853_v12  ;;  %v2343_v28 = vpop.f32.mrb[215].mxu0  ;;  %v2855_v29 = vpop.f32.mrb[215].mxu1  ;;  %v6346_v58 = vld [vmem:[#allocation51_spill] sm:$0xff] }
 0x2a5   :  { %4289 = vst [vmem:[%s6215_s3 + $0xa0] sm:$0xff] %v4213_v13   ;;  %v3178_v19 = vadd.f32 %v5855_v45, %v3107_v62  ;;  %v3108_v24 = vmax.f32 %v2980_v46, %v3044_v37  ;;  %v6347_v13 = vld [vmem:[#allocation52_spill] sm:$0xff] }
 0x2a7   :  { %v3179_v26 = vadd.f32 %v5855_v45, %v3108_v24  ;;  %v3242_v25 = vmax.f32 %v3178_v19, 0.0  ;;  %v6348_v19 = vld [vmem:[#allocation53_spill] sm:$0xff] }
 0x2a8   :  { %v2346_v36 = vpop.f32.mrb[216].mxu0  ;;  %v2858_v27 = vpop.f32.mrb[216].mxu1 }
 0x2a9   :  { %v3243_v48 = vmax.f32 %v3179_v26, 0.0  ;;  %v2981_v31 = vmax.f32 %v6338_v56, %v2346_v36  ;;  %v3045_v38 = vmax.f32 %v6339_v16, %v2858_v27  ;;  %v2348_v39 = vpop.f32.mrb[217].mxu0  ;;  %v2860_v34 = vpop.f32.mrb[217].mxu1  ;;  %v6349_v26 = vld [vmem:[#allocation54_spill] sm:$0xff] }
 0x2aa   :  { %v2349_v32 = vpop.f32.mrb[218].mxu0  ;;  %v2861_v33 = vpop.f32.mrb[218].mxu1 }
 0x2ab   :  { %v4218_v52 = vpack.c.bf16 %v3243_v48, %v3242_v25  ;;  %v3109_v17 = vmax.f32 %v2981_v31, %v3045_v38  ;;  %v2982_v35 = vmax.f32 %v6340_v53, %v2349_v32  ;;  %v3046_v4 = vmax.f32 %v6341_v49, %v2861_v33  ;;  %v2351_v5 = vpop.f32.mrb[219].mxu0  ;;  %v2863_v54 = vpop.f32.mrb[219].mxu1  ;;  %v6142_v25 = vld [vmem:[%s6214_s2] ss:$0 sm:$0xff]  ;;  %v6350_v32 = vld [vmem:[#allocation55_spill] sm:$0xff] }
 0x2ad   :  { %4290 = vst [vmem:[%s6215_s3 + $0xa8] sm:$0xff] %v4218_v52   ;;  %v3180_v9 = vadd.f32 %v5855_v45, %v3109_v17  ;;  %v3110_v55 = vmax.f32 %v2982_v35, %v3046_v4  ;;  %v6351_v52 = vld [vmem:[#allocation56_spill] sm:$0xff] }
 0x2af   :  { %v3181_v60 = vadd.f32 %v5855_v45, %v3110_v55  ;;  %v3244_v43 = vmax.f32 %v3180_v9, 0.0  ;;  %v6352_v9 = vld [vmem:[#allocation57_spill] sm:$0xff] }
 0x2b0   :  { %v2354_v42 = vpop.f32.mrb[220].mxu0  ;;  %v2866_v61 = vpop.f32.mrb[220].mxu1 }
 0x2b1   :  { %v3245_v30 = vmax.f32 %v3181_v60, 0.0  ;;  %v2983_v8 = vmax.f32 %v6342_v57, %v2354_v42  ;;  %v3047_v18 = vmax.f32 %v6343_v22, %v2866_v61  ;;  %v2356_v23 = vpop.f32.mrb[221].mxu0  ;;  %v2868_v50 = vpop.f32.mrb[221].mxu1  ;;  %v6353_v60 = vld [vmem:[#allocation58_spill] sm:$0xff] }
 0x2b2   :  { %v2357_v51 = vpop.f32.mrb[222].mxu0  ;;  %v2869_v3 = vpop.f32.mrb[222].mxu1 }
 0x2b3   :  { %v4223_v21 = vpack.c.bf16 %v3245_v30, %v3244_v43  ;;  %v3111_v10 = vmax.f32 %v2983_v8, %v3047_v18  ;;  %v2984_v6 = vmax.f32 %v6344_v2, %v2357_v51  ;;  %v3048_v7 = vmax.f32 %v6345_v11, %v2869_v3  ;;  %v2359_v63 = vpop.f32.mrb[223].mxu0  ;;  %v2871_v40 = vpop.f32.mrb[223].mxu1  ;;  %v6354_v51 = vld [vmem:[#allocation59_spill] sm:$0xff] }
 0x2b5   :  { %4291 = vst [vmem:[%s6215_s3 + $0xb0] sm:$0xff] %v4223_v21   ;;  %v3182_v0 = vadd.f32 %v5855_v45, %v3111_v10  ;;  %v3112_v41 = vmax.f32 %v2984_v6, %v3048_v7  ;;  %v6355_v21 = vld [vmem:[#allocation60_spill] sm:$0xff] }
 0x2b7   :  { %v3183_v1 = vadd.f32 %v5855_v45, %v3112_v41  ;;  %v3246_v14 = vmax.f32 %v3182_v0, 0.0  ;;  %v6356_v0 = vld [vmem:[#allocation61_spill] sm:$0xff] }
 0x2b8   :  { %v2362_v20 = vpop.f32.mrb[224].mxu0  ;;  %v2874_v44 = vpop.f32.mrb[224].mxu1 }
 0x2b9   :  { %v3247_v15 = vmax.f32 %v3183_v1, 0.0  ;;  %v2985_v12 = vmax.f32 %v6346_v58, %v2362_v20  ;;  %v3049_v62 = vmax.f32 %v6347_v13, %v2874_v44  ;;  %v2364_v59 = vpop.f32.mrb[225].mxu0  ;;  %v2876_v46 = vpop.f32.mrb[225].mxu1  ;;  %v6357_v1 = vld [vmem:[#allocation62_spill] sm:$0xff] }
 0x2ba   :  { %v2365_v47 = vpop.f32.mrb[226].mxu0  ;;  %v2877_v37 = vpop.f32.mrb[226].mxu1 }
 0x2bb   :  { %v4228_v28 = vpack.c.bf16 %v3247_v15, %v3246_v14  ;;  %v3113_v29 = vmax.f32 %v2985_v12, %v3049_v62  ;;  %v2986_v24 = vmax.f32 %v6348_v19, %v2365_v47  ;;  %v3050_v36 = vmax.f32 %v6349_v26, %v2877_v37  ;;  %v2367_v27 = vpop.f32.mrb[227].mxu0  ;;  %v2879_v45 = vpop.f32.mrb[227].mxu1  ;;  %v6358_v47 = vld [vmem:[#allocation63_spill] sm:$0xff] }
 0x2bd   :  { %4292 = vst [vmem:[%s6215_s3 + $0xb8] sm:$0xff] %v4228_v28   ;;  %v3184_v48 = vadd.f32 %v6142_v25, %v3113_v29  ;;  %v3114_v56 = vmax.f32 %v2986_v24, %v3050_v36  ;;  %v6359_v28 = vld [vmem:[#allocation64_spill] sm:$0xff] }
 0x2bf   :  { %v3185_v31 = vadd.f32 %v6142_v25, %v3114_v56  ;;  %v3248_v39 = vmax.f32 %v3184_v48, 0.0  ;;  %v6360_v48 = vld [vmem:[#allocation65_spill] sm:$0xff] }
 0x2c0   :  { %v2370_v16 = vpop.f32.mrb[228].mxu0  ;;  %v2882_v38 = vpop.f32.mrb[228].mxu1 }
 0x2c1   :  { %v3249_v34 = vmax.f32 %v3185_v31, 0.0  ;;  %v2987_v33 = vmax.f32 %v6350_v32, %v2370_v16  ;;  %v3051_v17 = vmax.f32 %v6351_v52, %v2882_v38  ;;  %v2372_v53 = vpop.f32.mrb[229].mxu0  ;;  %v2884_v35 = vpop.f32.mrb[229].mxu1  ;;  %v6361_v31 = vld [vmem:[#allocation66_spill] sm:$0xff] }
 0x2c2   :  { %v2373_v49 = vpop.f32.mrb[230].mxu0  ;;  %v2885_v4 = vpop.f32.mrb[230].mxu1 }
 0x2c3   :  { %v4233_v5 = vpack.c.bf16 %v3249_v34, %v3248_v39  ;;  %v3115_v54 = vmax.f32 %v2987_v33, %v3051_v17  ;;  %v2988_v55 = vmax.f32 %v6352_v9, %v2373_v49  ;;  %v3052_v42 = vmax.f32 %v6353_v60, %v2885_v4  ;;  %v2375_v61 = vpop.f32.mrb[231].mxu0  ;;  %v2887_v43 = vpop.f32.mrb[231].mxu1  ;;  %v6362_v49 = vld [vmem:[#allocation67_spill] sm:$0xff] }
 0x2c5   :  { %4293 = vst [vmem:[%s6215_s3 + $0xc0] sm:$0xff] %v4233_v5   ;;  %v3186_v30 = vadd.f32 %v6142_v25, %v3115_v54  ;;  %v3116_v57 = vmax.f32 %v2988_v55, %v3052_v42  ;;  %v6363_v5 = vld [vmem:[#allocation68_spill] sm:$0xff] }
 0x2c7   :  { %v3187_v8 = vadd.f32 %v6142_v25, %v3116_v57  ;;  %v3250_v23 = vmax.f32 %v3186_v30, 0.0  ;;  %v6364_v30 = vld [vmem:[#allocation69_spill] sm:$0xff] }
 0x2c8   :  { %v2378_v22 = vpop.f32.mrb[232].mxu0  ;;  %v2890_v18 = vpop.f32.mrb[232].mxu1 }
 0x2c9   :  { %v3251_v50 = vmax.f32 %v3187_v8, 0.0  ;;  %v2989_v3 = vmax.f32 %v6354_v51, %v2378_v22  ;;  %v3053_v10 = vmax.f32 %v6355_v21, %v2890_v18  ;;  %v2380_v2 = vpop.f32.mrb[233].mxu0  ;;  %v2892_v6 = vpop.f32.mrb[233].mxu1  ;;  %v6365_v8 = vld [vmem:[#allocation70_spill] sm:$0xff] }
 0x2ca   :  { %v2381_v11 = vpop.f32.mrb[234].mxu0  ;;  %v2893_v7 = vpop.f32.mrb[234].mxu1 }
 0x2cb   :  { %v4238_v63 = vpack.c.bf16 %v3251_v50, %v3250_v23  ;;  %v3117_v40 = vmax.f32 %v2989_v3, %v3053_v10  ;;  %v2990_v41 = vmax.f32 %v6356_v0, %v2381_v11  ;;  %v3054_v20 = vmax.f32 %v6357_v1, %v2893_v7  ;;  %v2383_v44 = vpop.f32.mrb[235].mxu0  ;;  %v2895_v14 = vpop.f32.mrb[235].mxu1  ;;  %v6366_v11 = vld [vmem:[#allocation71_spill] sm:$0xff] }
 0x2cd   :  { %4294 = vst [vmem:[%s6215_s3 + $0xc8] sm:$0xff] %v4238_v63   ;;  %v3188_v15 = vadd.f32 %v6142_v25, %v3117_v40  ;;  %v3118_v58 = vmax.f32 %v2990_v41, %v3054_v20  ;;  %v6367_v63 = vld [vmem:[#allocation72_spill] sm:$0xff] }
 0x2cf   :  { %v3189_v12 = vadd.f32 %v6142_v25, %v3118_v58  ;;  %v3252_v59 = vmax.f32 %v3188_v15, 0.0  ;;  %v6368_v15 = vld [vmem:[#allocation73_spill] sm:$0xff] }
 0x2d0   :  { %v2386_v13 = vpop.f32.mrb[236].mxu0  ;;  %v2898_v62 = vpop.f32.mrb[236].mxu1 }
 0x2d1   :  { %v3253_v46 = vmax.f32 %v3189_v12, 0.0  ;;  %v2991_v37 = vmax.f32 %v6358_v47, %v2386_v13  ;;  %v3055_v29 = vmax.f32 %v6359_v28, %v2898_v62  ;;  %v2388_v19 = vpop.f32.mrb[237].mxu0  ;;  %v2900_v24 = vpop.f32.mrb[237].mxu1  ;;  %v6369_v12 = vld [vmem:[#allocation74_spill] sm:$0xff] }
 0x2d2   :  { %v2389_v26 = vpop.f32.mrb[238].mxu0  ;;  %v2901_v36 = vpop.f32.mrb[238].mxu1 }
 0x2d3   :  { %v4243_v27 = vpack.c.bf16 %v3253_v46, %v3252_v59  ;;  %v3119_v45 = vmax.f32 %v2991_v37, %v3055_v29  ;;  %v2992_v56 = vmax.f32 %v6360_v48, %v2389_v26  ;;  %v3056_v16 = vmax.f32 %v6361_v31, %v2901_v36  ;;  %v2391_v38 = vpop.f32.mrb[239].mxu0  ;;  %v2903_v39 = vpop.f32.mrb[239].mxu1  ;;  %v6370_v26 = vld [vmem:[#allocation75_spill] sm:$0xff] }
 0x2d5   :  { %4295 = vst [vmem:[%s6215_s3 + $0xd0] sm:$0xff] %v4243_v27   ;;  %v3190_v34 = vadd.f32 %v6142_v25, %v3119_v45  ;;  %v3120_v32 = vmax.f32 %v2992_v56, %v3056_v16  ;;  %v6371_v27 = vld [vmem:[#allocation76_spill] sm:$0xff] }
 0x2d7   :  { %v3191_v33 = vadd.f32 %v6142_v25, %v3120_v32  ;;  %v3254_v53 = vmax.f32 %v3190_v34, 0.0  ;;  %v6372_v34 = vld [vmem:[#allocation77_spill] sm:$0xff] }
 0x2d8   :  { %v2394_v52 = vpop.f32.mrb[240].mxu0  ;;  %v2906_v17 = vpop.f32.mrb[240].mxu1 }
 0x2d9   :  { %v3255_v35 = vmax.f32 %v3191_v33, 0.0  ;;  %v2993_v4 = vmax.f32 %v6362_v49, %v2394_v52  ;;  %v3057_v54 = vmax.f32 %v6363_v5, %v2906_v17  ;;  %v2396_v9 = vpop.f32.mrb[241].mxu0  ;;  %v2908_v55 = vpop.f32.mrb[241].mxu1  ;;  %v6373_v33 = vld [vmem:[#allocation78_spill] sm:$0xff] }
 0x2da   :  { %v2397_v60 = vpop.f32.mrb[242].mxu0  ;;  %v2909_v42 = vpop.f32.mrb[242].mxu1 }
 0x2db   :  { %v4248_v61 = vpack.c.bf16 %v3255_v35, %v3254_v53  ;;  %v3121_v43 = vmax.f32 %v2993_v4, %v3057_v54  ;;  %v2994_v57 = vmax.f32 %v6364_v30, %v2397_v60  ;;  %v3058_v22 = vmax.f32 %v6365_v8, %v2909_v42  ;;  %v2399_v18 = vpop.f32.mrb[243].mxu0  ;;  %v2911_v23 = vpop.f32.mrb[243].mxu1  ;;  %v6374_v60 = vld [vmem:[#allocation79_spill] sm:$0xff] }
 0x2dd   :  { %4296 = vst [vmem:[%s6215_s3 + $0xd8] sm:$0xff] %v4248_v61   ;;  %v3192_v50 = vadd.f32 %v6142_v25, %v3121_v43  ;;  %v3122_v51 = vmax.f32 %v2994_v57, %v3058_v22  ;;  %v6375_v61 = vld [vmem:[#allocation80_spill] sm:$0xff] }
 0x2df   :  { %v3193_v3 = vadd.f32 %v6142_v25, %v3122_v51  ;;  %v3256_v2 = vmax.f32 %v3192_v50, 0.0  ;;  %v6376_v50 = vld [vmem:[#allocation81_spill] sm:$0xff] }
 0x2e0   :  { %v2402_v21 = vpop.f32.mrb[244].mxu0  ;;  %v2914_v10 = vpop.f32.mrb[244].mxu1 }
 0x2e1   :  { %v3257_v6 = vmax.f32 %v3193_v3, 0.0  ;;  %v2995_v7 = vmax.f32 %v6366_v11, %v2402_v21  ;;  %v3059_v40 = vmax.f32 %v6367_v63, %v2914_v10  ;;  %v2404_v0 = vpop.f32.mrb[245].mxu0  ;;  %v2916_v41 = vpop.f32.mrb[245].mxu1  ;;  %v6377_v3 = vld [vmem:[#allocation82_spill] sm:$0xff] }
 0x2e2   :  { %v2405_v1 = vpop.f32.mrb[246].mxu0  ;;  %v2917_v20 = vpop.f32.mrb[246].mxu1 }
 0x2e3   :  { %v4253_v44 = vpack.c.bf16 %v3257_v6, %v3256_v2  ;;  %v3123_v14 = vmax.f32 %v2995_v7, %v3059_v40  ;;  %v2996_v58 = vmax.f32 %v6368_v15, %v2405_v1  ;;  %v3060_v13 = vmax.f32 %v6369_v12, %v2917_v20  ;;  %v2407_v62 = vpop.f32.mrb[247].mxu0  ;;  %v2919_v59 = vpop.f32.mrb[247].mxu1 }
 0x2e5   :  { %4297 = vst [vmem:[%s6215_s3 + $0xe0] sm:$0xff] %v4253_v44   ;;  %v3194_v46 = vadd.f32 %v6142_v25, %v3123_v14  ;;  %v3124_v47 = vmax.f32 %v2996_v58, %v3060_v13 }
 0x2e7   :  { %v3195_v37 = vadd.f32 %v6142_v25, %v3124_v47  ;;  %v3258_v19 = vmax.f32 %v3194_v46, 0.0 }
 0x2e8   :  { %v2410_v28 = vpop.f32.mrb[248].mxu0  ;;  %v2922_v29 = vpop.f32.mrb[248].mxu1 }
 0x2e9   :  { %v3259_v24 = vmax.f32 %v3195_v37, 0.0  ;;  %v2997_v36 = vmax.f32 %v6370_v26, %v2410_v28  ;;  %v3061_v45 = vmax.f32 %v6371_v27, %v2922_v29  ;;  %v2412_v48 = vpop.f32.mrb[249].mxu0  ;;  %v2924_v56 = vpop.f32.mrb[249].mxu1 }
 0x2ea   :  { %v2413_v31 = vpop.f32.mrb[250].mxu0  ;;  %v2925_v16 = vpop.f32.mrb[250].mxu1 }
 0x2eb   :  { %v4258_v38 = vpack.c.bf16 %v3259_v24, %v3258_v19  ;;  %v3125_v39 = vmax.f32 %v2997_v36, %v3061_v45  ;;  %v2998_v32 = vmax.f32 %v6372_v34, %v2413_v31  ;;  %v3062_v52 = vmax.f32 %v6373_v33, %v2925_v16  ;;  %v2415_v17 = vpop.f32.mrb[251].mxu0  ;;  %v2927_v53 = vpop.f32.mrb[251].mxu1 }
 0x2ed   :  { %4298 = vst [vmem:[%s6215_s3 + $0xe8] sm:$0xff] %v4258_v38   ;;  %v3196_v35 = vadd.f32 %v6142_v25, %v3125_v39  ;;  %v3126_v49 = vmax.f32 %v2998_v32, %v3062_v52 }
 0x2ef   :  { %v3197_v4 = vadd.f32 %v6142_v25, %v3126_v49  ;;  %v3260_v9 = vmax.f32 %v3196_v35, 0.0 }
 0x2f0   :  { %v2418_v5 = vpop.f32.mrb[252].mxu0  ;;  %v2930_v54 = vpop.f32.mrb[252].mxu1 }
 0x2f1   :  { %v3261_v55 = vmax.f32 %v3197_v4, 0.0  ;;  %v2999_v42 = vmax.f32 %v6374_v60, %v2418_v5  ;;  %v3063_v43 = vmax.f32 %v6375_v61, %v2930_v54  ;;  %v2420_v30 = vpop.f32.mrb[253].mxu0  ;;  %v2932_v57 = vpop.f32.mrb[253].mxu1 }
 0x2f2   :  { %v2421_v8 = vpop.f32.mrb[254].mxu0  ;;  %v2933_v22 = vpop.f32.mrb[254].mxu1 }
 0x2f3   :  { %v4263_v18 = vpack.c.bf16 %v3261_v55, %v3260_v9  ;;  %v3127_v23 = vmax.f32 %v2999_v42, %v3063_v43  ;;  %v3000_v51 = vmax.f32 %v6376_v50, %v2421_v8  ;;  %v3064_v21 = vmax.f32 %v6377_v3, %v2933_v22  ;;  %v2423_v10 = vpop.f32.mrb[255].mxu0  ;;  %v2935_v2 = vpop.f32.mrb[255].mxu1 }
 0x2f5   :  { %4299 = vst [vmem:[%s6215_s3 + $0xf0] sm:$0xff] %v4263_v18   ;;  %v3198_v6 = vadd.f32 %v6142_v25, %v3127_v23  ;;  %v3128_v11 = vmax.f32 %v3000_v51, %v3064_v21 }
 0x2f7   :  { %v3199_v7 = vadd.f32 %v6142_v25, %v3128_v11  ;;  %v3262_v63 = vmax.f32 %v3198_v6, 0.0 }
 0x2f9   :  { %v3263_v40 = vmax.f32 %v3199_v7, 0.0 }
 0x2fb   :  { %v4268_v0 = vpack.c.bf16 %v3263_v40, %v3262_v63 }
 0x2fd   :  { %4300 = vst [vmem:[%s6215_s3 + $0xf8] sm:$0xff] %v4268_v0  }

// kernel: net_forward.6
= control target key start
LH: loop header
LB: loop body
LE: loop exit
PB: predicated region body
PF: predicated region fallthrough
CT: control target
= control target key end

     0   :  { %v2120_v0 = vmov 0   ;;  %vm767_vm0 = vcmask 261120   ;;  %s2823_s1 = inlined_call_operand.vmem [shape: bf16[288,128], index: 1, kind: input, shape index: {}]   ;;  %s2824_s0 = inlined_call_operand.vmem [shape: bf16[512,288], index: 0, kind: input, shape index: {}]   ;;  %s2825_s2 = inlined_call_operand.vmem [shape: f32[1,128], index: 2, kind: input, shape index: {}]   ;;  %s2826_s3 = inlined_call_operand.vmem [shape: bf16[128,128], index: 3, kind: output, shape index: {}]  }
   0x1   :  { %864 = vmatprep.subr.bf16.mxu0 %v2120_v0  ;;  %1941 = vmatprep.subr.bf16.mxu1 %v2120_v0  ;;  %v1974_v1 = vld [vmem:[%s2823_s1] sm:$0xff]   ;;  %v1975_v2 = vld [vmem:[%s2823_s1 + $0x8] sm:$0xff]   ;;  %v1976_v3 = vld [vmem:[%s2823_s1 + $0x10] sm:$0xff]  }
   0x2   :  { %865 = vmatpush1.bf16.msra.mxu0 %v1974_v1  ;;  %1957 = vmatpush1.bf16.msra.mxu1 %v1974_v1  ;;  %v1977_v4 = vld [vmem:[%s2823_s1 + $0x18] sm:$0xff]   ;;  %v1978_v5 = vld [vmem:[%s2823_s1 + $0x20] sm:$0xff]   ;;  %v1979_v7 = vld [vmem:[%s2823_s1 + $0x28] sm:$0xff]  }
   0x3   :  { %866 = vmatprep.subr.bf16.mxu0 %v2120_v0  ;;  %1942 = vmatprep.subr.bf16.mxu1 %v2120_v0  ;;  %v1992_v6 = vld [vmem:[%s2824_s0 + $0x4] ss:$12 sps:$4 sm:$0xff]   ;;  %v1981_v10 = vld [vmem:[%s2823_s1 + $0x38] sm:$0xff]   ;;  %v1983_v12 = vld [vmem:[%s2823_s1 + $0x48] sm:$0xff]  }
   0x4   :  { %v1995_v8 = vld [vmem:[%s2824_s0 + $0x244] ss:$12 sps:$4 sm:$0xff]   ;;  %896 = vmatprep.mubr.bf16.mxu0 %v1992_v6  ;;  %v1985_v14 = vld [vmem:[%s2823_s1 + $0x58] sm:$0xff]   ;;  %v1987_v16 = vld [vmem:[%s2823_s1 + $0x68] sm:$0xff]  }
   0x5   :  { %1088 = vmatprep.mubr.bf16.mxu1 %v1995_v8  ;;  %v1980_v9 = vld [vmem:[%s2823_s1 + $0x30] sm:$0xff]   ;;  %v1982_v11 = vld [vmem:[%s2823_s1 + $0x40] sm:$0xff]   ;;  %v1989_v18 = vld [vmem:[%s2823_s1 + $0x78] sm:$0xff]  }
   0x6   :  { %867 = vmatpush1.bf16.msra.mxu0 %v1975_v2  ;;  %1958 = vmatpush1.bf16.msra.mxu1 %v1975_v2  ;;  %v1984_v13 = vld [vmem:[%s2823_s1 + $0x50] sm:$0xff]   ;;  %v1986_v15 = vld [vmem:[%s2823_s1 + $0x60] sm:$0xff]   ;;  %v1997_v22 = vld [vmem:[%s2824_s0 + $0x1c] ss:$12 sps:$4 sm:$0xff]  }
   0x7   :  { %868 = vmatprep.subr.bf16.mxu0 %v2120_v0  ;;  %1943 = vmatprep.subr.bf16.mxu1 %v2120_v0  ;;  %v1988_v17 = vld [vmem:[%s2823_s1 + $0x70] sm:$0xff]   ;;  %v1996_v19 = vld [vmem:[%s2823_s1 + $0x80] sm:$0xff]   ;;  %v1999_v23 = vld [vmem:[%s2824_s0 + $0x25c] ss:$12 sps:$4 sm:$0xff]  }
   0x8   :  { %v1990_v20 = vld [vmem:[%s2824_s0] ss:$12 sps:$4 sm:$0xff]   ;;  %v2001_v25 = vld [vmem:[%s2824_s0 + $0x18] ss:$12 sps:$4 sm:$0xff]   ;;  %v2007_v29 = vld [vmem:[%s2824_s0 + $0x30] ss:$12 sps:$4 sm:$0xff]  }
   0x9   :  { %v1993_v21 = vld [vmem:[%s2824_s0 + $0x240] ss:$12 sps:$4 sm:$0xff]   ;;  %v2002_v26 = vld [vmem:[%s2824_s0 + $0x258] ss:$12 sps:$4 sm:$0xff]   ;;  %v2008_v30 = vld [vmem:[%s2824_s0 + $0x270] ss:$12 sps:$4 sm:$0xff]  }
   0xa   :  { %869 = vmatpush1.bf16.msra.mxu0 %v1976_v3  ;;  %1959 = vmatpush1.bf16.msra.mxu1 %v1976_v3  ;;  %v2021_v24 = vld [vmem:[%s2823_s1 + $0x88] sm:$0xff]   ;;  %v2003_v27 = vld [vmem:[%s2824_s0 + $0x34] ss:$12 sps:$4 sm:$0xff]   ;;  %v2015_v35 = vld [vmem:[%s2824_s0 + $0x64] ss:$12 sps:$4 sm:$0xff]  }
   0xb   :  { %870 = vmatprep.subr.bf16.mxu0 %v2120_v0  ;;  %1944 = vmatprep.subr.bf16.mxu1 %v2120_v0  ;;  %v2005_v28 = vld [vmem:[%s2824_s0 + $0x274] ss:$12 sps:$4 sm:$0xff]   ;;  %v2009_v31 = vld [vmem:[%s2824_s0 + $0x4c] ss:$12 sps:$4 sm:$0xff]   ;;  %v2017_v36 = vld [vmem:[%s2824_s0 + $0x2a4] ss:$12 sps:$4 sm:$0xff]  }
   0xc   :  { %v2011_v32 = vld [vmem:[%s2824_s0 + $0x28c] ss:$12 sps:$4 sm:$0xff]   ;;  %v2013_v33 = vld [vmem:[%s2824_s0 + $0x48] ss:$12 sps:$4 sm:$0xff]   ;;  %v2032_v45 = vld [vmem:[%s2824_s0 + $0x90] ss:$12 sps:$4 sm:$0xff]  }
   0xd   :  { %v2014_v34 = vld [vmem:[%s2824_s0 + $0x288] ss:$12 sps:$4 sm:$0xff]   ;;  %v2019_v37 = vld [vmem:[%s2824_s0 + $0x60] ss:$12 sps:$4 sm:$0xff]   ;;  %v2026_v41 = vld [vmem:[%s2824_s0 + $0x78] ss:$12 sps:$4 sm:$0xff]  }
   0xe   :  { %871 = vmatpush1.bf16.msra.mxu0 %v1977_v4  ;;  %1960 = vmatpush1.bf16.msra.mxu1 %v1977_v4  ;;  %v2020_v38 = vld [vmem:[%s2824_s0 + $0x2a0] ss:$12 sps:$4 sm:$0xff]   ;;  %v2022_v39 = vld [vmem:[%s2824_s0 + $0x7c] ss:$12 sps:$4 sm:$0xff]   ;;  %v2027_v42 = vld [vmem:[%s2824_s0 + $0x2b8] ss:$12 sps:$4 sm:$0xff]  }
   0xf   :  { %872 = vmatprep.subr.bf16.mxu0 %v2120_v0  ;;  %1945 = vmatprep.subr.bf16.mxu1 %v2120_v0  ;;  %v2024_v40 = vld [vmem:[%s2824_s0 + $0x2bc] ss:$12 sps:$4 sm:$0xff]   ;;  %v2028_v43 = vld [vmem:[%s2824_s0 + $0x94] ss:$12 sps:$4 sm:$0xff]   ;;  %v2034_v47 = vld [vmem:[%s2824_s0 + $0xac] ss:$12 sps:$4 sm:$0xff]  }
  0x10   :  { %v2030_v44 = vld [vmem:[%s2824_s0 + $0x2d4] ss:$12 sps:$4 sm:$0xff]   ;;  %v2033_v46 = vld [vmem:[%s2824_s0 + $0x2d0] ss:$12 sps:$4 sm:$0xff]   ;;  %v2036_v48 = vld [vmem:[%s2824_s0 + $0x2ec] ss:$12 sps:$4 sm:$0xff]  }
  0x11   :  { %v2038_v49 = vld [vmem:[%s2824_s0 + $0xa8] ss:$12 sps:$4 sm:$0xff]   ;;  %v2040_v51 = vld [vmem:[%s2824_s0 + $0xc4] ss:$12 sps:$4 sm:$0xff]   ;;  %v2043_v53 = vld [vmem:[%s2824_s0 + $0xc0] ss:$12 sps:$4 sm:$0xff]  }
  0x12   :  { %873 = vmatpush1.bf16.msra.mxu0 %v1978_v5  ;;  %1961 = vmatpush1.bf16.msra.mxu1 %v1978_v5  ;;  %v2039_v50 = vld [vmem:[%s2824_s0 + $0x2e8] ss:$12 sps:$4 sm:$0xff]   ;;  %v2044_v54 = vld [vmem:[%s2824_s0 + $0x20] ss:$12 sps:$4 sm:$0xff]   ;;  %v2047_v56 = vld [vmem:[%s2824_s0 + $0x38] ss:$12 sps:$4 sm:$0xff]  }
  0x13   :  { %874 = vmatprep.subr.bf16.mxu0 %v2120_v0  ;;  %1946 = vmatprep.subr.bf16.mxu1 %v2120_v0  ;;  %v2042_v52 = vld [vmem:[%s2824_s0 + $0x8] ss:$12 sps:$4 sm:$0xff]   ;;  %v2048_v57 = vld [vmem:[%s2824_s0 + $0xd8] ss:$12 sps:$4 sm:$0xff]   ;;  %v2049_v58 = vld [vmem:[%s2824_s0 + $0x50] ss:$12 sps:$4 sm:$0xff]  }
  0x14   :  { %v2045_v55 = vld [vmem:[%s2824_s0 + $0xdc] ss:$12 sps:$4 sm:$0xff]   ;;  %v2050_v59 = vld [vmem:[%s2824_s0 + $0xf4] ss:$12 sps:$4 sm:$0xff]   ;;  %v2055_v63 = vld [vmem:[%s2824_s0 + $0x10c] ss:$12 sps:$4 sm:$0xff]  }
  0x15   :  { %v2052_v60 = vld [vmem:[%s2824_s0 + $0x68] ss:$12 sps:$4 sm:$0xff]   ;;  %v2053_v61 = vld [vmem:[%s2824_s0 + $0xf0] ss:$12 sps:$4 sm:$0xff]   ;;  %v2054_v62 = vld [vmem:[%s2824_s0 + $0x80] ss:$12 sps:$4 sm:$0xff]  }
  0x16   :  { %875 = vmatpush1.bf16.msra.mxu0 %v1979_v7  ;;  %1962 = vmatpush1.bf16.msra.mxu1 %v1979_v7  ;;  %v2058_v1 = vld [vmem:[%s2824_s0 + $0x108] ss:$12 sps:$4 sm:$0xff]   ;;  %v2059_v2 = vld [vmem:[%s2824_s0 + $0xb0] ss:$12 sps:$4 sm:$0xff]   ;;  %v2063_v5 = vld [vmem:[%s2824_s0 + $0x120] ss:$12 sps:$4 sm:$0xff]  }
  0x17   :  { %876 = vmatprep.subr.bf16.mxu0 %v2120_v0  ;;  %1947 = vmatprep.subr.bf16.mxu1 %v2120_v0  ;;  %v2060_v3 = vld [vmem:[%s2824_s0 + $0x124] ss:$12 sps:$4 sm:$0xff]   ;;  %v2062_v4 = vld [vmem:[%s2824_s0 + $0xc8] ss:$12 sps:$4 sm:$0xff]   ;;  %v2064_v6 = vld [vmem:[%s2824_s0 + $0xe0] ss:$12 sps:$4 sm:$0xff]  }
  0x18   :  { %v2065_v7 = vld [vmem:[%s2824_s0 + $0x13c] ss:$12 sps:$4 sm:$0xff]   ;;  %v2067_v8 = vld [vmem:[%s2824_s0 + $0xf8] ss:$12 sps:$4 sm:$0xff]  }
  0x1a   :  { %877 = vmatpush1.bf16.msra.mxu0 %v1980_v9  ;;  %1963 = vmatpush1.bf16.msra.mxu1 %v1980_v9  ;;  %v2068_v9 = vld [vmem:[%s2824_s0 + $0x138] ss:$12 sps:$4 sm:$0xff]  }
  0x1b   :  { %878 = vmatprep.subr.bf16.mxu0 %v2120_v0  ;;  %1948 = vmatprep.subr.bf16.mxu1 %v2120_v0 }
  0x1e   :  { %879 = vmatpush1.bf16.msra.mxu0 %v1981_v10  ;;  %1964 = vmatpush1.bf16.msra.mxu1 %v1981_v10  ;;  %v2069_v10 = vld [vmem:[%s2824_s0 + $0x110] ss:$12 sps:$4 sm:$0xff]  }
  0x1f   :  { %880 = vmatprep.subr.bf16.mxu0 %v2120_v0  ;;  %1949 = vmatprep.subr.bf16.mxu1 %v2120_v0 }
  0x22   :  { %881 = vmatpush1.bf16.msra.mxu0 %v1982_v11  ;;  %1965 = vmatpush1.bf16.msra.mxu1 %v1982_v11  ;;  %v2070_v11 = vld [vmem:[%s2824_s0 + $0x154] ss:$12 sps:$4 sm:$0xff]  }
  0x23   :  { %882 = vmatprep.subr.bf16.mxu0 %v2120_v0  ;;  %1950 = vmatprep.subr.bf16.mxu1 %v2120_v0 }
  0x26   :  { %883 = vmatpush1.bf16.msra.mxu0 %v1983_v12  ;;  %1966 = vmatpush1.bf16.msra.mxu1 %v1983_v12  ;;  %v2072_v12 = vld [vmem:[%s2824_s0 + $0x128] ss:$12 sps:$4 sm:$0xff]  }
  0x27   :  { %884 = vmatprep.subr.bf16.mxu0 %v2120_v0  ;;  %1951 = vmatprep.subr.bf16.mxu1 %v2120_v0 }
  0x2a   :  { %885 = vmatpush1.bf16.msra.mxu0 %v1984_v13  ;;  %1967 = vmatpush1.bf16.msra.mxu1 %v1984_v13  ;;  %v2073_v13 = vld [vmem:[%s2824_s0 + $0x150] ss:$12 sps:$4 sm:$0xff]  }
  0x2b   :  { %886 = vmatprep.subr.bf16.mxu0 %v2120_v0  ;;  %1952 = vmatprep.subr.bf16.mxu1 %v2120_v0 }
  0x2e   :  { %887 = vmatpush1.bf16.msra.mxu0 %v1985_v14  ;;  %1968 = vmatpush1.bf16.msra.mxu1 %v1985_v14  ;;  %v2074_v14 = vld [vmem:[%s2824_s0 + $0x140] ss:$12 sps:$4 sm:$0xff]  }
  0x2f   :  { %888 = vmatprep.subr.bf16.mxu0 %v2120_v0  ;;  %1953 = vmatprep.subr.bf16.mxu1 %v2120_v0 }
  0x32   :  { %889 = vmatpush1.bf16.msra.mxu0 %v1986_v15  ;;  %1969 = vmatpush1.bf16.msra.mxu1 %v1986_v15  ;;  %v2075_v15 = vld [vmem:[%s2824_s0 + $0x16c] ss:$12 sps:$4 sm:$0xff]  }
  0x33   :  { %890 = vmatprep.subr.bf16.mxu0 %v2120_v0  ;;  %1954 = vmatprep.subr.bf16.mxu1 %v2120_v0 }
  0x36   :  { %891 = vmatpush1.bf16.msra.mxu0 %v1987_v16  ;;  %1970 = vmatpush1.bf16.msra.mxu1 %v1987_v16  ;;  %v2077_v16 = vld [vmem:[%s2824_s0 + $0x158] ss:$12 sps:$4 sm:$0xff]  }
  0x37   :  { %892 = vmatprep.subr.bf16.mxu0 %v2120_v0  ;;  %1955 = vmatprep.subr.bf16.mxu1 %v2120_v0 }
  0x3a   :  { %893 = vmatpush1.bf16.msra.mxu0 %v1988_v17  ;;  %1971 = vmatpush1.bf16.msra.mxu1 %v1988_v17  ;;  %v2078_v17 = vld [vmem:[%s2824_s0 + $0x168] ss:$12 sps:$4 sm:$0xff]  }
  0x3b   :  { %894 = vmatprep.subr.bf16.mxu0 %v2120_v0  ;;  %1956 = vmatprep.subr.bf16.mxu1 %v2120_v0  ;;  %v2057_v0 = vld [vmem:[%s2824_s0 + $0x98] ss:$12 sps:$4 sm:$0xff]  }
  0x3e   :  { %895 = vmatpush1.bf16.msra.mxu0 %v1989_v18  ;;  %1972 = vmatpush1.bf16.msra.mxu1 %v1989_v18  ;;  %v2079_v18 = vld [vmem:[%s2824_s0 + $0x170] ss:$12 sps:$4 sm:$0xff]  }
  0x3f   :  { %1873 = vmatprep.subr.bf16.mxu1 %v1996_v19 }
  0x41   :  { %897 = vmatmul.mubr.bf16.vlgmr.msra.gmra.mrb[0].mxu0 %v1990_v20  ;;  %1089 = vmatmul.mubr.bf16.vlgmr.msra.gmra.mrb[0].mxu1 %v1993_v21  ;;  %v2082_v20 = vld [vmem:[%s2824_s0 + $0x188] ss:$12 sps:$4 sm:$0xff]   ;;  %v2083_v21 = vld [vmem:[%s2824_s0 + $0x180] ss:$12 sps:$4 sm:$0xff]  }
  0x42   :  { %1874 = vmatpush3.bf16.msra.mxu1 %v1996_v19  ;;  %904 = vmatprep.mubr.bf16.mxu0 %v1997_v22  ;;  %v2080_v19 = vld [vmem:[%s2824_s0 + $0x184] ss:$12 sps:$4 sm:$0xff]   ;;  %v2084_v22 = vld [vmem:[%s2824_s0 + $0x1a0] ss:$12 sps:$4 sm:$0xff]  }
  0x43   :  { %1096 = vmatprep.mubr.bf16.mxu1 %v1999_v23  ;;  %1875 = vmatprep.subr.bf16.mxu1 %v2021_v24  ;;  %v2085_v23 = vld [vmem:[%s2824_s0 + $0x19c] ss:$12 sps:$4 sm:$0xff]  }
  0x46   :  { %1876 = vmatpush3.bf16.msra.mxu1 %v2021_v24  ;;  %v2087_v24 = vld [vmem:[%s2824_s0 + $0x1b8] ss:$12 sps:$4 sm:$0xff]  }
  0x49   :  { %905 = vmatmul.mubr.bf16.gmra.mrb[4].mxu0 %v2001_v25  ;;  %1097 = vmatmul.mubr.bf16.gmra.mrb[4].mxu1 %v2002_v26  ;;  %v2088_v25 = vld [vmem:[%s2824_s0 + $0x198] ss:$12 sps:$4 sm:$0xff]   ;;  %v2089_v26 = vld [vmem:[%s2824_s0 + $0x1d0] ss:$12 sps:$4 sm:$0xff]  }
  0x4a   :  { %912 = vmatprep.mubr.bf16.mxu0 %v2003_v27  ;;  %1104 = vmatprep.mubr.bf16.mxu1 %v2005_v28  ;;  %v2090_v27 = vld [vmem:[%s2824_s0 + $0x1b4] ss:$12 sps:$4 sm:$0xff]  }
  0x4b   :  { %v2092_v28 = vld [vmem:[%s2824_s0 + $0x1e8] ss:$12 sps:$4 sm:$0xff]  }
  0x51   :  { %913 = vmatmul.mubr.bf16.gmra.mrb[8].mxu0 %v2007_v29  ;;  %1105 = vmatmul.mubr.bf16.gmra.mrb[8].mxu1 %v2008_v30  ;;  %v2093_v29 = vld [vmem:[%s2824_s0 + $0x1b0] ss:$12 sps:$4 sm:$0xff]   ;;  %v2094_v30 = vld [vmem:[%s2824_s0 + $0x200] ss:$12 sps:$4 sm:$0xff]  }
  0x52   :  { %920 = vmatprep.mubr.bf16.mxu0 %v2009_v31  ;;  %1112 = vmatprep.mubr.bf16.mxu1 %v2011_v32  ;;  %v2095_v31 = vld [vmem:[%s2824_s0 + $0x1cc] ss:$12 sps:$4 sm:$0xff]  }
  0x53   :  { %v2097_v32 = vld [vmem:[%s2824_s0 + $0x218] ss:$12 sps:$4 sm:$0xff]  }
  0x59   :  { %921 = vmatmul.mubr.bf16.gmra.mrb[12].mxu0 %v2013_v33  ;;  %1113 = vmatmul.mubr.bf16.gmra.mrb[12].mxu1 %v2014_v34  ;;  %v2098_v33 = vld [vmem:[%s2824_s0 + $0x1c8] ss:$12 sps:$4 sm:$0xff]   ;;  %v2099_v34 = vld [vmem:[%s2824_s0 + $0x230] ss:$12 sps:$4 sm:$0xff]  }
  0x5a   :  { %928 = vmatprep.mubr.bf16.mxu0 %v2015_v35  ;;  %1120 = vmatprep.mubr.bf16.mxu1 %v2017_v36  ;;  %v2100_v35 = vld [vmem:[%s2824_s0 + $0x1e4] ss:$12 sps:$4 sm:$0xff]   ;;  %v2102_v36 = vld [vmem:[%s2824_s0 + $0x248] ss:$12 sps:$4 sm:$0xff]  }
  0x61   :  { %929 = vmatmul.mubr.bf16.gmra.mrb[16].mxu0 %v2019_v37  ;;  %1121 = vmatmul.mubr.bf16.gmra.mrb[16].mxu1 %v2020_v38  ;;  %v2103_v37 = vld [vmem:[%s2824_s0 + $0x1e0] ss:$12 sps:$4 sm:$0xff]  }
  0x62   :  { %936 = vmatprep.mubr.bf16.mxu0 %v2022_v39  ;;  %1128 = vmatprep.mubr.bf16.mxu1 %v2024_v40  ;;  %v2104_v38 = vld [vmem:[%s2824_s0 + $0x260] ss:$12 sps:$4 sm:$0xff]   ;;  %v2105_v39 = vld [vmem:[%s2824_s0 + $0x1fc] ss:$12 sps:$4 sm:$0xff]   ;;  %v2107_v40 = vld [vmem:[%s2824_s0 + $0x278] ss:$12 sps:$4 sm:$0xff]  }
  0x69   :  { %937 = vmatmul.mubr.bf16.gmra.mrb[20].mxu0 %v2026_v41  ;;  %1129 = vmatmul.mubr.bf16.gmra.mrb[20].mxu1 %v2027_v42  ;;  %v2108_v41 = vld [vmem:[%s2824_s0 + $0x1f8] ss:$12 sps:$4 sm:$0xff]   ;;  %v2109_v42 = vld [vmem:[%s2824_s0 + $0x290] ss:$12 sps:$4 sm:$0xff]  }
  0x6a   :  { %944 = vmatprep.mubr.bf16.mxu0 %v2028_v43  ;;  %1136 = vmatprep.mubr.bf16.mxu1 %v2030_v44  ;;  %v2110_v43 = vld [vmem:[%s2824_s0 + $0x214] ss:$12 sps:$4 sm:$0xff]  }
  0x6b   :  { %v2112_v44 = vld [vmem:[%s2824_s0 + $0x2a8] ss:$12 sps:$4 sm:$0xff]  }
  0x71   :  { %945 = vmatmul.mubr.bf16.gmra.mrb[24].mxu0 %v2032_v45  ;;  %1137 = vmatmul.mubr.bf16.gmra.mrb[24].mxu1 %v2033_v46  ;;  %v2113_v45 = vld [vmem:[%s2824_s0 + $0x210] ss:$12 sps:$4 sm:$0xff]   ;;  %v2114_v46 = vld [vmem:[%s2824_s0 + $0x2c0] ss:$12 sps:$4 sm:$0xff]  }
  0x72   :  { %952 = vmatprep.mubr.bf16.mxu0 %v2034_v47  ;;  %1144 = vmatprep.mubr.bf16.mxu1 %v2036_v48  ;;  %v2115_v47 = vld [vmem:[%s2824_s0 + $0x22c] ss:$12 sps:$4 sm:$0xff]  }
  0x73   :  { %v2117_v48 = vld [vmem:[%s2824_s0 + $0x2d8] ss:$12 sps:$4 sm:$0xff]  }
  0x79   :  { %953 = vmatmul.mubr.bf16.gmra.mrb[28].mxu0 %v2038_v49  ;;  %1145 = vmatmul.mubr.bf16.gmra.mrb[28].mxu1 %v2039_v50  ;;  %v2118_v49 = vld [vmem:[%s2824_s0 + $0x228] ss:$12 sps:$4 sm:$0xff]   ;;  %v2119_v50 = vld [vmem:[%s2824_s0 + $0x2f0] ss:$12 sps:$4 sm:$0xff]  }
  0x7a   :  { %960 = vmatprep.mubr.bf16.mxu0 %v2040_v51  ;;  %1877 = vmatprep.mubr.msk.bf16.mxu1 %vm767_vm0, %v2042_v52 }
  0x81   :  { %961 = vmatmul.mubr.bf16.gmra.mrb[32].mxu0 %v2043_v53  ;;  %1878 = vmatmul.mubr.msk.bf16.vlgmr.msra.gmra.mrb[32].mxu1 %vm767_vm0, %v2044_v54 }
  0x82   :  { %968 = vmatprep.mubr.bf16.mxu0 %v2045_v55  ;;  %1881 = vmatprep.mubr.msk.bf16.mxu1 %vm767_vm0, %v2047_v56 }
  0x89   :  { %969 = vmatmul.mubr.bf16.gmra.mrb[36].mxu0 %v2048_v57  ;;  %1882 = vmatmul.mubr.msk.bf16.gmra.mrb[36].mxu1 %vm767_vm0, %v2049_v58 }
  0x8a   :  { %976 = vmatprep.mubr.bf16.mxu0 %v2050_v59  ;;  %1885 = vmatprep.mubr.msk.bf16.mxu1 %vm767_vm0, %v2052_v60 }
  0x91   :  { %977 = vmatmul.mubr.bf16.gmra.mrb[40].mxu0 %v2053_v61  ;;  %1886 = vmatmul.mubr.msk.bf16.gmra.mrb[40].mxu1 %vm767_vm0, %v2054_v62 }
  0x92   :  { %984 = vmatprep.mubr.bf16.mxu0 %v2055_v63  ;;  %1889 = vmatprep.mubr.msk.bf16.mxu1 %vm767_vm0, %v2057_v0 }
  0x99   :  { %985 = vmatmul.mubr.bf16.gmra.mrb[44].mxu0 %v2058_v1  ;;  %1890 = vmatmul.mubr.msk.bf16.gmra.mrb[44].mxu1 %vm767_vm0, %v2059_v2 }
  0x9a   :  { %992 = vmatprep.mubr.bf16.mxu0 %v2060_v3  ;;  %1893 = vmatprep.mubr.msk.bf16.mxu1 %vm767_vm0, %v2062_v4 }
  0xa1   :  { %993 = vmatmul.mubr.bf16.gmra.mrb[48].mxu0 %v2063_v5  ;;  %1894 = vmatmul.mubr.msk.bf16.gmra.mrb[48].mxu1 %vm767_vm0, %v2064_v6 }
  0xa2   :  { %1000 = vmatprep.mubr.bf16.mxu0 %v2065_v7  ;;  %1897 = vmatprep.mubr.msk.bf16.mxu1 %vm767_vm0, %v2067_v8 }
  0xa9   :  { %1001 = vmatmul.mubr.bf16.gmra.mrb[52].mxu0 %v2068_v9  ;;  %1898 = vmatmul.mubr.msk.bf16.gmra.mrb[52].mxu1 %vm767_vm0, %v2069_v10 }
  0xaa   :  { %1008 = vmatprep.mubr.bf16.mxu0 %v2070_v11  ;;  %1901 = vmatprep.mubr.msk.bf16.mxu1 %vm767_vm0, %v2072_v12 }
  0xb1   :  { %1009 = vmatmul.mubr.bf16.gmra.mrb[56].mxu0 %v2073_v13  ;;  %1902 = vmatmul.mubr.msk.bf16.gmra.mrb[56].mxu1 %vm767_vm0, %v2074_v14 }
  0xb2   :  { %1016 = vmatprep.mubr.bf16.mxu0 %v2075_v15  ;;  %1905 = vmatprep.mubr.msk.bf16.mxu1 %vm767_vm0, %v2077_v16 }
  0xb9   :  { %1017 = vmatmul.mubr.bf16.gmra.mrb[60].mxu0 %v2078_v17  ;;  %1906 = vmatmul.mubr.msk.bf16.gmra.mrb[60].mxu1 %vm767_vm0, %v2079_v18 }
  0xba   :  { %1024 = vmatprep.mubr.bf16.mxu0 %v2080_v19  ;;  %1909 = vmatprep.mubr.msk.bf16.mxu1 %vm767_vm0, %v2082_v20 }
  0xc1   :  { %1025 = vmatmul.mubr.bf16.gmra.mrb[64].mxu0 %v2083_v21  ;;  %1910 = vmatmul.mubr.msk.bf16.gmra.mrb[64].mxu1 %vm767_vm0, %v2084_v22 }
  0xc2   :  { %1032 = vmatprep.mubr.bf16.mxu0 %v2085_v23  ;;  %1913 = vmatprep.mubr.msk.bf16.mxu1 %vm767_vm0, %v2087_v24 }
  0xc9   :  { %1033 = vmatmul.mubr.bf16.gmra.mrb[68].mxu0 %v2088_v25  ;;  %1914 = vmatmul.mubr.msk.bf16.gmra.mrb[68].mxu1 %vm767_vm0, %v2089_v26 }
  0xca   :  { %1040 = vmatprep.mubr.bf16.mxu0 %v2090_v27  ;;  %1917 = vmatprep.mubr.msk.bf16.mxu1 %vm767_vm0, %v2092_v28 }
  0xd1   :  { %1041 = vmatmul.mubr.bf16.gmra.mrb[72].mxu0 %v2093_v29  ;;  %1918 = vmatmul.mubr.msk.bf16.gmra.mrb[72].mxu1 %vm767_vm0, %v2094_v30 }
  0xd2   :  { %1048 = vmatprep.mubr.bf16.mxu0 %v2095_v31  ;;  %1921 = vmatprep.mubr.msk.bf16.mxu1 %vm767_vm0, %v2097_v32 }
  0xd9   :  { %1049 = vmatmul.mubr.bf16.gmra.mrb[76].mxu0 %v2098_v33  ;;  %1922 = vmatmul.mubr.msk.bf16.gmra.mrb[76].mxu1 %vm767_vm0, %v2099_v34 }
  0xda   :  { %1056 = vmatprep.mubr.bf16.mxu0 %v2100_v35  ;;  %1925 = vmatprep.mubr.msk.bf16.mxu1 %vm767_vm0, %v2102_v36 }
  0xe1   :  { %1057 = vmatmul.mubr.bf16.gmra.mrb[80].mxu0 %v2103_v37  ;;  %1926 = vmatmul.mubr.msk.bf16.gmra.mrb[80].mxu1 %vm767_vm0, %v2104_v38 }
  0xe2   :  { %1064 = vmatprep.mubr.bf16.mxu0 %v2105_v39  ;;  %1929 = vmatprep.mubr.msk.bf16.mxu1 %vm767_vm0, %v2107_v40 }
  0xe9   :  { %1065 = vmatmul.mubr.bf16.gmra.mrb[84].mxu0 %v2108_v41  ;;  %1930 = vmatmul.mubr.msk.bf16.gmra.mrb[84].mxu1 %vm767_vm0, %v2109_v42 }
  0xea   :  { %1072 = vmatprep.mubr.bf16.mxu0 %v2110_v43  ;;  %1933 = vmatprep.mubr.msk.bf16.mxu1 %vm767_vm0, %v2112_v44 }
  0xf1   :  { %1073 = vmatmul.mubr.bf16.gmra.mrb[88].mxu0 %v2113_v45  ;;  %1934 = vmatmul.mubr.msk.bf16.gmra.mrb[88].mxu1 %vm767_vm0, %v2114_v46 }
  0xf2   :  { %1080 = vmatprep.mubr.bf16.mxu0 %v2115_v47  ;;  %1937 = vmatprep.mubr.msk.bf16.mxu1 %vm767_vm0, %v2117_v48 }
  0xf9   :  { %1081 = vmatmul.mubr.bf16.gmra.mrb[92].mxu0 %v2118_v49  ;;  %1938 = vmatmul.mubr.msk.bf16.gmra.mrb[92].mxu1 %vm767_vm0, %v2119_v50 }
 0x114   :  { %v2547_v51 = vpop.f32.mrb[0].mxu0  ;;  %v2549_v52 = vpop.f32.mrb[0].mxu1 }
 0x115   :  { %v900_v53 = vpop.f32.mrb[1].mxu0  ;;  %v1092_v54 = vpop.f32.mrb[1].mxu1 }
 0x116   :  { %v2551_v55 = vpop.f32.mrb[2].mxu0  ;;  %v2553_v56 = vpop.f32.mrb[2].mxu1 }
 0x117   :  { %v903_v57 = vpop.f32.mrb[3].mxu0  ;;  %v1095_v58 = vpop.f32.mrb[3].mxu1 }
 0x11c   :  { %v906_v59 = vpop.f32.mrb[4].mxu0  ;;  %v2555_v60 = vpop.f32.mrb[4].mxu1 }
 0x11d   :  { %v908_v61 = vpop.f32.mrb[5].mxu0  ;;  %v1100_v62 = vpop.f32.mrb[5].mxu1 }
 0x11e   :  { %v909_v63 = vpop.f32.mrb[6].mxu0  ;;  %v2557_v0 = vpop.f32.mrb[6].mxu1 }
 0x11f   :  { %v911_v1 = vpop.f32.mrb[7].mxu0  ;;  %v1103_v2 = vpop.f32.mrb[7].mxu1 }
 0x124   :  { %v2559_v3 = vpop.f32.mrb[8].mxu0  ;;  %v2561_v4 = vpop.f32.mrb[8].mxu1 }
 0x125   :  { %v916_v5 = vpop.f32.mrb[9].mxu0  ;;  %v1108_v6 = vpop.f32.mrb[9].mxu1 }
 0x126   :  { %v2563_v7 = vpop.f32.mrb[10].mxu0  ;;  %v2565_v8 = vpop.f32.mrb[10].mxu1 }
 0x127   :  { %v919_v9 = vpop.f32.mrb[11].mxu0  ;;  %v1111_v10 = vpop.f32.mrb[11].mxu1 }
 0x12c   :  { %v922_v11 = vpop.f32.mrb[12].mxu0  ;;  %v2567_v12 = vpop.f32.mrb[12].mxu1 }
 0x12d   :  { %v924_v13 = vpop.f32.mrb[13].mxu0  ;;  %v1116_v14 = vpop.f32.mrb[13].mxu1 }
 0x12e   :  { %v925_v15 = vpop.f32.mrb[14].mxu0  ;;  %v2569_v16 = vpop.f32.mrb[14].mxu1 }
 0x12f   :  { %v927_v17 = vpop.f32.mrb[15].mxu0  ;;  %v1119_v18 = vpop.f32.mrb[15].mxu1 }
 0x134   :  { %v930_v19 = vpop.f32.mrb[16].mxu0  ;;  %v2571_v20 = vpop.f32.mrb[16].mxu1 }
 0x135   :  { %v932_v21 = vpop.f32.mrb[17].mxu0  ;;  %v1124_v22 = vpop.f32.mrb[17].mxu1 }
 0x136   :  { %v2573_v23 = vpop.f32.mrb[18].mxu0  ;;  %v2575_v24 = vpop.f32.mrb[18].mxu1 }
 0x137   :  { %v935_v25 = vpop.f32.mrb[19].mxu0  ;;  %v1127_v26 = vpop.f32.mrb[19].mxu1 }
 0x13c   :  { %v938_v27 = vpop.f32.mrb[20].mxu0  ;;  %v2577_v28 = vpop.f32.mrb[20].mxu1 }
 0x13d   :  { %v940_v29 = vpop.f32.mrb[21].mxu0  ;;  %v1132_v30 = vpop.f32.mrb[21].mxu1 }
 0x13e   :  { %v941_v31 = vpop.f32.mrb[22].mxu0  ;;  %v2579_v32 = vpop.f32.mrb[22].mxu1 }
 0x13f   :  { %v943_v33 = vpop.f32.mrb[23].mxu0  ;;  %v1135_v34 = vpop.f32.mrb[23].mxu1 }
 0x144   :  { %v946_v35 = vpop.f32.mrb[24].mxu0  ;;  %v2581_v36 = vpop.f32.mrb[24].mxu1 }
 0x145   :  { %2836 = vst [vmem:[#allocation2_spill] sm:$0xff] %v2581_v36  ;;  %v948_v37 = vpop.f32.mrb[25].mxu0  ;;  %v1140_v38 = vpop.f32.mrb[25].mxu1 }
 0x146   :  { %v949_v39 = vpop.f32.mrb[26].mxu0  ;;  %v2583_v40 = vpop.f32.mrb[26].mxu1 }
 0x147   :  { %2837 = vst [vmem:[#allocation3_spill] sm:$0xff] %v2583_v40  ;;  %v951_v41 = vpop.f32.mrb[27].mxu0  ;;  %v1143_v42 = vpop.f32.mrb[27].mxu1 }
 0x14c   :  { %v954_v43 = vpop.f32.mrb[28].mxu0  ;;  %v2585_v44 = vpop.f32.mrb[28].mxu1 }
 0x14d   :  { %2838 = vst [vmem:[#allocation4_spill] sm:$0xff] %v2585_v44  ;;  %v956_v45 = vpop.f32.mrb[29].mxu0  ;;  %v1148_v46 = vpop.f32.mrb[29].mxu1 }
 0x14e   :  { %v957_v47 = vpop.f32.mrb[30].mxu0  ;;  %v2587_v48 = vpop.f32.mrb[30].mxu1 }
 0x14f   :  { %2839 = vst [vmem:[#allocation5_spill] sm:$0xff] %v2587_v48  ;;  %v959_v49 = vpop.f32.mrb[31].mxu0  ;;  %v1151_v50 = vpop.f32.mrb[31].mxu1 }
 0x154   :  { %v962_v53 = vpop.f32.mrb[32].mxu0  ;;  %v1879_v54 = vpop.f32.mrb[32].mxu1 }
 0x155   :  { %v2589_v57 = vadd.f32 %v1879_v54, %v906_v59  ;;  %v964_v58 = vpop.f32.mrb[33].mxu0  ;;  %v1187_v61 = vpop.f32.mrb[33].mxu1 }
 0x156   :  { %v2592_v62 = vadd.f32 %v1187_v61, %v2547_v51  ;;  %v965_v1 = vpop.f32.mrb[34].mxu0  ;;  %v1880_v2 = vpop.f32.mrb[34].mxu1 }
 0x157   :  { %v2594_v5 = vadd.f32 %v1880_v2, %v909_v63  ;;  %v967_v6 = vpop.f32.mrb[35].mxu0  ;;  %v1190_v9 = vpop.f32.mrb[35].mxu1 }
 0x158   :  { %v2597_v10 = vadd.f32 %v1190_v9, %v2551_v55 }
 0x15c   :  { %v970_v13 = vpop.f32.mrb[36].mxu0  ;;  %v1883_v14 = vpop.f32.mrb[36].mxu1 }
 0x15d   :  { %v2599_v17 = vadd.f32 %v1883_v14, %v922_v11  ;;  %v972_v59 = vpop.f32.mrb[37].mxu0  ;;  %v1203_v18 = vpop.f32.mrb[37].mxu1 }
 0x15e   :  { %v2602_v21 = vadd.f32 %v1203_v18, %v2559_v3  ;;  %v973_v51 = vpop.f32.mrb[38].mxu0  ;;  %v1884_v22 = vpop.f32.mrb[38].mxu1 }
 0x15f   :  { %v2604_v25 = vadd.f32 %v1884_v22, %v925_v15  ;;  %v975_v63 = vpop.f32.mrb[39].mxu0  ;;  %v1206_v26 = vpop.f32.mrb[39].mxu1 }
 0x160   :  { %v2607_v29 = vadd.f32 %v1206_v26, %v2563_v7 }
 0x164   :  { %v978_v55 = vpop.f32.mrb[40].mxu0  ;;  %v1887_v30 = vpop.f32.mrb[40].mxu1 }
 0x165   :  { %v2609_v33 = vadd.f32 %v1887_v30, %v938_v27  ;;  %v980_v11 = vpop.f32.mrb[41].mxu0  ;;  %v1219_v34 = vpop.f32.mrb[41].mxu1 }
 0x166   :  { %v2611_v37 = vadd.f32 %v1219_v34, %v930_v19  ;;  %v981_v38 = vpop.f32.mrb[42].mxu0  ;;  %v1888_v3 = vpop.f32.mrb[42].mxu1 }
 0x167   :  { %v2613_v41 = vadd.f32 %v1888_v3, %v941_v31  ;;  %v983_v42 = vpop.f32.mrb[43].mxu0  ;;  %v1222_v15 = vpop.f32.mrb[43].mxu1 }
 0x168   :  { %v2616_v45 = vadd.f32 %v1222_v15, %v2573_v23 }
 0x16c   :  { %v986_v46 = vpop.f32.mrb[44].mxu0  ;;  %v1891_v7 = vpop.f32.mrb[44].mxu1 }
 0x16d   :  { %v2618_v49 = vadd.f32 %v1891_v7, %v954_v43  ;;  %v988_v50 = vpop.f32.mrb[45].mxu0  ;;  %v1235_v27 = vpop.f32.mrb[45].mxu1 }
 0x16e   :  { %v2620_v54 = vadd.f32 %v1235_v27, %v946_v35  ;;  %v989_v58 = vpop.f32.mrb[46].mxu0  ;;  %v1892_v19 = vpop.f32.mrb[46].mxu1 }
 0x16f   :  { %2840 = vst [vmem:[#allocation6_spill] sm:$0xff] %v2618_v49  ;;  %v2622_v61 = vadd.f32 %v1892_v19, %v957_v47  ;;  %v991_v2 = vpop.f32.mrb[47].mxu0  ;;  %v1238_v31 = vpop.f32.mrb[47].mxu1 }
 0x170   :  { %2841 = vst [vmem:[#allocation7_spill] sm:$0xff] %v2620_v54  ;;  %v2624_v6 = vadd.f32 %v1238_v31, %v949_v39 }
 0x171   :  { %2842 = vst [vmem:[#allocation8_spill] sm:$0xff] %v2622_v61 }
 0x172   :  { %2843 = vst [vmem:[#allocation9_spill] sm:$0xff] %v2624_v6 }
 0x174   :  { %v994_v9 = vpop.f32.mrb[48].mxu0  ;;  %v1895_v14 = vpop.f32.mrb[48].mxu1 }
 0x175   :  { %v2626_v23 = vadd.f32 %v1895_v14, %v970_v13  ;;  %v996_v59 = vpop.f32.mrb[49].mxu0  ;;  %v1251_v18 = vpop.f32.mrb[49].mxu1 }
 0x176   :  { %v2628_v43 = vadd.f32 %v1251_v18, %v962_v53  ;;  %v997_v22 = vpop.f32.mrb[50].mxu0  ;;  %v1896_v63 = vpop.f32.mrb[50].mxu1 }
 0x177   :  { %v2632_v26 = vadd.f32 %v1896_v63, %v973_v51  ;;  %v999_v47 = vpop.f32.mrb[51].mxu0  ;;  %v1254_v30 = vpop.f32.mrb[51].mxu1 }
 0x178   :  { %v2636_v11 = vadd.f32 %v1254_v30, %v965_v1 }
 0x17c   :  { %v1002_v34 = vpop.f32.mrb[52].mxu0  ;;  %v1899_v3 = vpop.f32.mrb[52].mxu1 }
 0x17d   :  { %v2642_v42 = vadd.f32 %v1899_v3, %v986_v46  ;;  %v1004_v15 = vpop.f32.mrb[53].mxu0  ;;  %v1267_v51 = vpop.f32.mrb[53].mxu1 }
 0x17e   :  { %v2644_v7 = vadd.f32 %v1267_v51, %v978_v55  ;;  %v1005_v50 = vpop.f32.mrb[54].mxu0  ;;  %v1900_v27 = vpop.f32.mrb[54].mxu1 }
 0x17f   :  { %v2648_v19 = vadd.f32 %v1900_v27, %v989_v58  ;;  %v1007_v2 = vpop.f32.mrb[55].mxu0  ;;  %v1270_v31 = vpop.f32.mrb[55].mxu1 }
 0x180   :  { %v2652_v59 = vadd.f32 %v1270_v31, %v981_v38 }
 0x184   :  { %v1010_v18 = vpop.f32.mrb[56].mxu0  ;;  %v1903_v63 = vpop.f32.mrb[56].mxu1 }
 0x185   :  { %v2658_v47 = vadd.f32 %v1903_v63, %v1002_v34  ;;  %v1012_v30 = vpop.f32.mrb[57].mxu0  ;;  %v1283_v58 = vpop.f32.mrb[57].mxu1 }
 0x186   :  { %v2660_v3 = vadd.f32 %v1283_v58, %v994_v9  ;;  %v1013_v15 = vpop.f32.mrb[58].mxu0  ;;  %v1904_v51 = vpop.f32.mrb[58].mxu1 }
 0x187   :  { %v2664_v27 = vadd.f32 %v1904_v51, %v1005_v50  ;;  %v1015_v2 = vpop.f32.mrb[59].mxu0  ;;  %v1286_v31 = vpop.f32.mrb[59].mxu1 }
 0x188   :  { %v2668_v46 = vadd.f32 %v1286_v31, %v997_v22 }
 0x18a   :  { %2844 = vst [vmem:[#allocation10_spill] sm:$0xff] %v2668_v46 }
 0x18c   :  { %v1018_v63 = vpop.f32.mrb[60].mxu0  ;;  %v1907_v30 = vpop.f32.mrb[60].mxu1 }
 0x18d   :  { %v2674_v58 = vadd.f32 %v1907_v30, %v1018_v63  ;;  %v1020_v38 = vpop.f32.mrb[61].mxu0  ;;  %v1299_v50 = vpop.f32.mrb[61].mxu1 }
 0x18e   :  { %v2676_v51 = vadd.f32 %v1299_v50, %v1010_v18  ;;  %v1021_v2 = vpop.f32.mrb[62].mxu0  ;;  %v1908_v14 = vpop.f32.mrb[62].mxu1 }
 0x18f   :  { %2845 = vst [vmem:[#allocation11_spill] sm:$0xff] %v2674_v58  ;;  %v2680_v31 = vadd.f32 %v1908_v14, %v1021_v2  ;;  %v1023_v55 = vpop.f32.mrb[63].mxu0  ;;  %v1302_v34 = vpop.f32.mrb[63].mxu1 }
 0x190   :  { %2846 = vst [vmem:[#allocation12_spill] sm:$0xff] %v2676_v51  ;;  %v2684_v1 = vadd.f32 %v1302_v34, %v1013_v15 }
 0x191   :  { %2847 = vst [vmem:[#allocation13_spill] sm:$0xff] %v2680_v31 }
 0x192   :  { %2848 = vst [vmem:[#allocation14_spill] sm:$0xff] %v2684_v1 }
 0x194   :  { %v1026_v63 = vpop.f32.mrb[64].mxu0  ;;  %v1911_v30 = vpop.f32.mrb[64].mxu1 }
 0x195   :  { %v1028_v50 = vpop.f32.mrb[65].mxu0  ;;  %v1315_v53 = vpop.f32.mrb[65].mxu1 }
 0x196   :  { %v1316_v22 = vadd.f32 %v1315_v53, %v1026_v63  ;;  %v1029_v14 = vpop.f32.mrb[66].mxu0  ;;  %v1912_v2 = vpop.f32.mrb[66].mxu1 }
 0x197   :  { %v1031_v55 = vpop.f32.mrb[67].mxu0  ;;  %v1318_v13 = vpop.f32.mrb[67].mxu1 }
 0x198   :  { %v1319_v39 = vadd.f32 %v1318_v13, %v1029_v14 }
 0x19c   :  { %v1034_v35 = vpop.f32.mrb[68].mxu0  ;;  %v1915_v9 = vpop.f32.mrb[68].mxu1 }
 0x19d   :  { %v1324_v15 = vadd.f32 %v1911_v30, %v1034_v35  ;;  %v1036_v34 = vpop.f32.mrb[69].mxu0  ;;  %v1331_v51 = vpop.f32.mrb[69].mxu1 }
 0x19e   :  { %v1037_v54 = vpop.f32.mrb[70].mxu0  ;;  %v1916_v38 = vpop.f32.mrb[70].mxu1 }
 0x19f   :  { %v1327_v31 = vadd.f32 %v1912_v2, %v1037_v54  ;;  %v1039_v61 = vpop.f32.mrb[71].mxu0  ;;  %v1334_v18 = vpop.f32.mrb[71].mxu1 }
 0x1a4   :  { %v1042_v1 = vpop.f32.mrb[72].mxu0  ;;  %v1919_v6 = vpop.f32.mrb[72].mxu1 }
 0x1a5   :  { %v2690_v50 = vadd.f32 %v1331_v51, %v1042_v1  ;;  %v1044_v53 = vpop.f32.mrb[73].mxu0  ;;  %v1347_v63 = vpop.f32.mrb[73].mxu1 }
 0x1a6   :  { %v1045_v58 = vpop.f32.mrb[74].mxu0  ;;  %v1920_v55 = vpop.f32.mrb[74].mxu1 }
 0x1a7   :  { %v2692_v49 = vadd.f32 %v1334_v18, %v1045_v58  ;;  %v1047_v13 = vpop.f32.mrb[75].mxu0  ;;  %v1350_v14 = vpop.f32.mrb[75].mxu1 }
 0x1ac   :  { %v1050_v35 = vpop.f32.mrb[76].mxu0  ;;  %v2694_v30 = vpop.f32.mrb[76].mxu1 }
 0x1ad   :  { %2849 = vst [vmem:[#allocation15_spill] sm:$0xff] %v2694_v30  ;;  %v1340_v34 = vadd.f32 %v1915_v9, %v1050_v35  ;;  %v1052_v40 = vpop.f32.mrb[77].mxu0  ;;  %v2696_v54 = vpop.f32.mrb[77].mxu1 }
 0x1ae   :  { %v1053_v61 = vpop.f32.mrb[78].mxu0  ;;  %v2698_v2 = vpop.f32.mrb[78].mxu1 }
 0x1af   :  { %v1343_v1 = vadd.f32 %v1916_v38, %v1053_v61  ;;  %v1055_v51 = vpop.f32.mrb[79].mxu0  ;;  %v2700_v53 = vpop.f32.mrb[79].mxu1 }
 0x1b4   :  { %v1058_v48 = vpop.f32.mrb[80].mxu0  ;;  %v1927_v36 = vpop.f32.mrb[80].mxu1 }
 0x1b5   :  { %v2702_v58 = vadd.f32 %v1347_v63, %v1058_v48  ;;  %v1388_v18 = vadd.f32 %v1927_v36, %v2555_v60  ;;  %v1060_v13 = vpop.f32.mrb[81].mxu0  ;;  %v1379_v44 = vpop.f32.mrb[81].mxu1  ;;  %v2712_v48 = vld [vmem:[%s2825_s2] ss:$0 sm:$0xff] }
 0x1b6   :  { %v1380_v9 = vadd.f32 %v1379_v44, %v2549_v52  ;;  %v1061_v40 = vpop.f32.mrb[82].mxu0  ;;  %v1928_v35 = vpop.f32.mrb[82].mxu1  ;;  %v2850_v52 = vmax.f32 %v2589_v57, %v2626_v23  ;;  %v2852_v13 = vmax.f32 %v2594_v5, %v2632_v26 }
 0x1b7   :  { %v1460_v30 = vmax.f32 %v1324_v15, %v1388_v18  ;;  %v2706_v46 = vadd.f32 %v1350_v14, %v1061_v40  ;;  %v1391_v38 = vadd.f32 %v1928_v35, %v2557_v0  ;;  %v1063_v61 = vpop.f32.mrb[83].mxu0  ;;  %v1382_v51 = vpop.f32.mrb[83].mxu1  ;;  %v2851_v15 = vmax.f32 %v2592_v62, %v2628_v43 }
 0x1b8   :  { %v1458_v63 = vmax.f32 %v1316_v22, %v1380_v9  ;;  %v1383_v60 = vadd.f32 %v1382_v51, %v2553_v56  ;;  %v2853_v56 = vmax.f32 %v2597_v10, %v2636_v11 }
 0x1b9   :  { %v1476_v36 = vmax.f32 %v2850_v52, %v1460_v30  ;;  %v1461_v44 = vmax.f32 %v1327_v31, %v1391_v38 }
 0x1ba   :  { %v1474_v14 = vmax.f32 %v2851_v15, %v1458_v63  ;;  %v1459_v0 = vmax.f32 %v1319_v39, %v1383_v60 }
 0x1bb   :  { %v1499_v18 = vadd.f32 %v2712_v48, %v1476_v36  ;;  %v1477_v40 = vmax.f32 %v2852_v13, %v1461_v44 }
 0x1bc   :  { %v1497_v22 = vadd.f32 %v2712_v48, %v1474_v14  ;;  %v1475_v9 = vmax.f32 %v2853_v56, %v1459_v0  ;;  %v1066_v57 = vpop.f32.mrb[84].mxu0  ;;  %v1931_v23 = vpop.f32.mrb[84].mxu1  ;;  %v2854_v14 = vmax.f32 %v2599_v17, %v2642_v42 }
 0x1bd   :  { %v1500_v31 = vadd.f32 %v2712_v48, %v1477_v40  ;;  %v1356_v30 = vadd.f32 %v1919_v6, %v1066_v57  ;;  %v1404_v62 = vadd.f32 %v1931_v23, %v2567_v12  ;;  %v1068_v43 = vpop.f32.mrb[85].mxu0  ;;  %v1395_v39 = vpop.f32.mrb[85].mxu1  ;;  %v1515_v35 = vmax.f32 %v1499_v18, 0.0 }
 0x1be   :  { %v1498_v38 = vadd.f32 %v2712_v48, %v1475_v9  ;;  %v1396_v5 = vadd.f32 %v1395_v39, %v2561_v4  ;;  %v1069_v26 = vpop.f32.mrb[86].mxu0  ;;  %v1932_v61 = vpop.f32.mrb[86].mxu1  ;;  %v1513_v36 = vmax.f32 %v1497_v22, 0.0 }
 0x1bf   :  { %v1516_v51 = vmax.f32 %v1500_v31, 0.0  ;;  %v1464_v63 = vmax.f32 %v1340_v34, %v1404_v62  ;;  %v1359_v10 = vadd.f32 %v1920_v55, %v1069_v26  ;;  %v1407_v11 = vadd.f32 %v1932_v61, %v2569_v16  ;;  %v1071_v60 = vpop.f32.mrb[87].mxu0  ;;  %v1398_v52 = vpop.f32.mrb[87].mxu1 }
 0x1c0   :  { %v1514_v6 = vmax.f32 %v1498_v38, 0.0  ;;  %v1462_v12 = vmax.f32 %v2690_v50, %v1396_v5  ;;  %v1399_v44 = vadd.f32 %v1398_v52, %v2565_v8  ;;  %v2855_v55 = vmax.f32 %v2602_v21, %v2644_v7  ;;  %v2863_v52 = vld [vmem:[#allocation15_spill] sm:$0xff] }
 0x1c1   :  { %v1800_v15 = vpack.c.bf16 %v1516_v51, %v1515_v35  ;;  %v1480_v4 = vmax.f32 %v2854_v14, %v1464_v63  ;;  %v1465_v0 = vmax.f32 %v1343_v1, %v1407_v11  ;;  %v2856_v8 = vmax.f32 %v2604_v25, %v2648_v19  ;;  %v2865_v14 = vld [vmem:[#allocation2_spill] sm:$0xff] }
 0x1c2   :  { %v1795_v18 = vpack.c.bf16 %v1514_v6, %v1513_v36  ;;  %v1478_v34 = vmax.f32 %v2855_v55, %v1462_v12  ;;  %v1463_v16 = vmax.f32 %v2692_v49, %v1399_v44  ;;  %v2857_v21 = vmax.f32 %v2607_v29, %v2652_v59  ;;  %v2864_v6 = vld [vmem:[#allocation4_spill] sm:$0xff] }
 0x1c3   :  { %1832 = vst [vmem:[%s2826_s3 + $0x8] sm:$0xff] %v1800_v15   ;;  %v1503_v50 = vadd.f32 %v2712_v48, %v1480_v4  ;;  %v1481_v13 = vmax.f32 %v2856_v8, %v1465_v0 }
 0x1c4   :  { %1796 = vst [vmem:[%s2826_s3] sm:$0xff] %v1795_v18   ;;  %v1501_v17 = vadd.f32 %v2712_v48, %v1478_v34  ;;  %v1479_v49 = vmax.f32 %v2857_v21, %v1463_v16  ;;  %v1074_v42 = vpop.f32.mrb[88].mxu0  ;;  %v1935_v7 = vpop.f32.mrb[88].mxu1  ;;  %v2866_v16 = vld [vmem:[#allocation5_spill] sm:$0xff] }
 0x1c5   :  { %v1504_v1 = vadd.f32 %v2712_v48, %v1481_v13  ;;  %v1364_v40 = vadd.f32 %v2696_v54, %v1074_v42  ;;  %v1420_v22 = vadd.f32 %v1935_v7, %v2577_v28  ;;  %v1076_v25 = vpop.f32.mrb[89].mxu0  ;;  %v1411_v19 = vpop.f32.mrb[89].mxu1  ;;  %v1519_v56 = vmax.f32 %v1503_v50, 0.0  ;;  %v2867_v42 = vld [vmem:[#allocation3_spill] sm:$0xff] }
 0x1c6   :  { %v1502_v9 = vadd.f32 %v2712_v48, %v1479_v49  ;;  %v1412_v57 = vadd.f32 %v1411_v19, %v2571_v20  ;;  %v1077_v23 = vpop.f32.mrb[90].mxu0  ;;  %v1936_v31 = vpop.f32.mrb[90].mxu1  ;;  %v1517_v54 = vmax.f32 %v1501_v17, 0.0  ;;  %v2858_v20 = vmax.f32 %v2609_v33, %v2658_v47  ;;  %v2869_v25 = vld [vmem:[#allocation11_spill] sm:$0xff] }
 0x1c7   :  { %v1520_v62 = vmax.f32 %v1504_v1, 0.0  ;;  %v1468_v29 = vmax.f32 %v1356_v30, %v1420_v22  ;;  %v1367_v59 = vadd.f32 %v2700_v53, %v1077_v23  ;;  %v1423_v43 = vadd.f32 %v1936_v31, %v2579_v32  ;;  %v1079_v39 = vpop.f32.mrb[91].mxu0  ;;  %v1414_v35 = vpop.f32.mrb[91].mxu1  ;;  %v2868_v22 = vld [vmem:[#allocation6_spill] sm:$0xff]  ;;  %v2871_v23 = vld [vmem:[#allocation7_spill] sm:$0xff]  ;;  %v2872_v31 = vld [vmem:[#allocation12_spill] sm:$0xff] }
 0x1c8   :  { %v1518_v38 = vmax.f32 %v1502_v9, 0.0  ;;  %v1466_v28 = vmax.f32 %v2702_v58, %v1412_v57  ;;  %v1415_v5 = vadd.f32 %v1414_v35, %v2575_v24  ;;  %v2859_v53 = vmax.f32 %v2611_v37, %v2660_v3  ;;  %v2861_v37 = vld [vmem:[#allocation10_spill] sm:$0xff]  ;;  %v2875_v39 = vld [vmem:[#allocation13_spill] sm:$0xff] }
 0x1c9   :  { %v1810_v26 = vpack.c.bf16 %v1520_v62, %v1519_v56  ;;  %v1484_v61 = vmax.f32 %v2858_v20, %v1468_v29  ;;  %v1469_v51 = vmax.f32 %v1359_v10, %v1423_v43  ;;  %v2860_v24 = vmax.f32 %v2613_v41, %v2664_v27  ;;  %v2874_v43 = vld [vmem:[#allocation8_spill] sm:$0xff] }
 0x1ca   :  { %v1805_v63 = vpack.c.bf16 %v1518_v38, %v1517_v54  ;;  %v1482_v30 = vmax.f32 %v2859_v53, %v1466_v28  ;;  %v1467_v32 = vmax.f32 %v2706_v46, %v1415_v5  ;;  %v2862_v47 = vmax.f32 %v2616_v45, %v2861_v37  ;;  %v2877_v28 = vld [vmem:[#allocation9_spill] sm:$0xff]  ;;  %v2878_v5 = vld [vmem:[#allocation14_spill] sm:$0xff] }
 0x1cb   :  { %1834 = vst [vmem:[%s2826_s3 + $0x18] sm:$0xff] %v1810_v26   ;;  %v1507_v58 = vadd.f32 %v2712_v48, %v1484_v61  ;;  %v1485_v11 = vmax.f32 %v2860_v24, %v1469_v51  ;;  %v2870_v19 = vmax.f32 %v2868_v22, %v2869_v25  ;;  %v2873_v62 = vmax.f32 %v2871_v23, %v2872_v31 }
 0x1cc   :  { %1833 = vst [vmem:[%s2826_s3 + $0x10] sm:$0xff] %v1805_v63   ;;  %v1505_v33 = vadd.f32 %v2712_v48, %v1482_v30  ;;  %v1483_v46 = vmax.f32 %v2862_v47, %v1467_v32  ;;  %v1082_v3 = vpop.f32.mrb[92].mxu0  ;;  %v1939_v10 = vpop.f32.mrb[92].mxu1  ;;  %v2876_v35 = vmax.f32 %v2874_v43, %v2875_v39  ;;  %v2879_v26 = vmax.f32 %v2877_v28, %v2878_v5 }
 0x1cd   :  { %v1508_v60 = vadd.f32 %v2712_v48, %v1485_v11  ;;  %v1372_v36 = vadd.f32 %v2863_v52, %v1082_v3  ;;  %v1436_v12 = vadd.f32 %v1939_v10, %v2864_v6  ;;  %v1084_v41 = vpop.f32.mrb[93].mxu0  ;;  %v1427_v27 = vpop.f32.mrb[93].mxu1  ;;  %v1523_v44 = vmax.f32 %v1507_v58, 0.0 }
 0x1ce   :  { %v1506_v15 = vadd.f32 %v2712_v48, %v1483_v46  ;;  %v1428_v4 = vadd.f32 %v1427_v27, %v2865_v14  ;;  %v1085_v0 = vpop.f32.mrb[94].mxu0  ;;  %v1940_v18 = vpop.f32.mrb[94].mxu1  ;;  %v1521_v17 = vmax.f32 %v1505_v33, 0.0 }
 0x1cf   :  { %v1524_v55 = vmax.f32 %v1508_v60, 0.0  ;;  %v1472_v45 = vmax.f32 %v1372_v36, %v1436_v12  ;;  %v1375_v34 = vadd.f32 %v2698_v2, %v1085_v0  ;;  %v1439_v50 = vadd.f32 %v1940_v18, %v2866_v16  ;;  %v1087_v8 = vpop.f32.mrb[95].mxu0  ;;  %v1430_v13 = vpop.f32.mrb[95].mxu1 }
 0x1d0   :  { %v1522_v21 = vmax.f32 %v1506_v15, 0.0  ;;  %v1470_v49 = vmax.f32 %v1364_v40, %v1428_v4  ;;  %v1431_v7 = vadd.f32 %v1430_v13, %v2867_v42 }
 0x1d1   :  { %v1820_v1 = vpack.c.bf16 %v1524_v55, %v1523_v44  ;;  %v1488_v56 = vmax.f32 %v2870_v19, %v1472_v45  ;;  %v1473_v9 = vmax.f32 %v1375_v34, %v1439_v50 }
 0x1d2   :  { %v1815_v57 = vpack.c.bf16 %v1522_v21, %v1521_v17  ;;  %v1486_v2 = vmax.f32 %v2873_v62, %v1470_v49  ;;  %v1471_v29 = vmax.f32 %v1367_v59, %v1431_v7 }
 0x1d3   :  { %1836 = vst [vmem:[%s2826_s3 + $0x28] sm:$0xff] %v1820_v1   ;;  %v1511_v40 = vadd.f32 %v2712_v48, %v1488_v56  ;;  %v1489_v54 = vmax.f32 %v2876_v35, %v1473_v9 }
 0x1d4   :  { %1835 = vst [vmem:[%s2826_s3 + $0x20] sm:$0xff] %v1815_v57   ;;  %v1509_v38 = vadd.f32 %v2712_v48, %v1486_v2  ;;  %v1487_v59 = vmax.f32 %v2879_v26, %v1471_v29 }
 0x1d5   :  { %v1512_v20 = vadd.f32 %v2712_v48, %v1489_v54  ;;  %v1527_v51 = vmax.f32 %v1511_v40, 0.0 }
 0x1d6   :  { %v1510_v61 = vadd.f32 %v2712_v48, %v1487_v59  ;;  %v1525_v53 = vmax.f32 %v1509_v38, 0.0 }
 0x1d7   :  { %v1528_v63 = vmax.f32 %v1512_v20, 0.0 }
 0x1d8   :  { %v1526_v30 = vmax.f32 %v1510_v61, 0.0 }
 0x1d9   :  { %v1830_v32 = vpack.c.bf16 %v1528_v63, %v1527_v51 }
 0x1da   :  { %v1825_v58 = vpack.c.bf16 %v1526_v30, %v1525_v53 }
 0x1db   :  { %1838 = vst [vmem:[%s2826_s3 + $0x38] sm:$0xff] %v1830_v32  }
 0x1dc   :  { %1837 = vst [vmem:[%s2826_s3 + $0x30] sm:$0xff] %v1825_v58  }

// kernel: net_forward.7
= control target key start
LH: loop header
LB: loop body
LE: loop exit
PB: predicated region body
PF: predicated region fallthrough
CT: control target
= control target key end

     0   :  { %s6886_s0 = inlined_call_operand.vmem [shape: bf16[8,2048], index: 0, kind: input, shape index: {}]   ;;  %s6887_s1 = inlined_call_operand.vmem [shape: bf16[2048,512], index: 1, kind: input, shape index: {}]   ;;  %s6888_s2 = inlined_call_operand.vmem [shape: f32[1,512], index: 2, kind: input, shape index: {}]   ;;  %s6889_s3 = inlined_call_operand.hbm [shape: f32[8,512], index: 3, kind: output, shape index: {}]  }
   0x1   :  { %v4440_v0 = vld [vmem:[%s6887_s1 + $0x4] ss:$16 sps:$4 sm:$0xff]   ;;  %v4442_v1 = vld [vmem:[%s6887_s1 + $0xc] ss:$16 sps:$4 sm:$0xff]   ;;  %v4444_v2 = vld [vmem:[%s6887_s1] ss:$16 sps:$4 sm:$0xff]  }
   0x2   :  { %3173 = vmatprep.subr.bf16.mxu0 %v4440_v0  ;;  %v4445_v3 = vld [vmem:[%s6887_s1 + $0x8] ss:$16 sps:$4 sm:$0xff]   ;;  %3501 = vmatprep.subr.bf16.mxu1 %v4442_v1  ;;  %v4446_v4 = vld [vmem:[%s6887_s1 + $0x24] ss:$16 sps:$4 sm:$0xff]   ;;  %v4448_v5 = vld [vmem:[%s6887_s1 + $0x2c] ss:$16 sps:$4 sm:$0xff]  }
   0x3   :  { %3174 = vmatpush1.bf16.msra.mxu0 %v4444_v2  ;;  %3502 = vmatpush1.bf16.msra.mxu1 %v4445_v3  ;;  %v4450_v6 = vld [vmem:[%s6887_s1 + $0x20] ss:$16 sps:$4 sm:$0xff]   ;;  %v4451_v7 = vld [vmem:[%s6887_s1 + $0x28] ss:$16 sps:$4 sm:$0xff]   ;;  %v4452_v8 = vld [vmem:[%s6887_s1 + $0x44] ss:$16 sps:$4 sm:$0xff]  }
   0x4   :  { %3175 = vmatprep.subr.bf16.mxu0 %v4446_v4  ;;  %3503 = vmatprep.subr.bf16.mxu1 %v4448_v5  ;;  %v4454_v9 = vld [vmem:[%s6887_s1 + $0x4c] ss:$16 sps:$4 sm:$0xff]   ;;  %v4456_v10 = vld [vmem:[%s6887_s1 + $0x40] ss:$16 sps:$4 sm:$0xff]   ;;  %v4457_v11 = vld [vmem:[%s6887_s1 + $0x48] ss:$16 sps:$4 sm:$0xff]  }
   0x5   :  { %v4458_v12 = vld [vmem:[%s6887_s1 + $0x64] ss:$16 sps:$4 sm:$0xff]   ;;  %v4460_v13 = vld [vmem:[%s6887_s1 + $0x6c] ss:$16 sps:$4 sm:$0xff]   ;;  %v4462_v14 = vld [vmem:[%s6887_s1 + $0x60] ss:$16 sps:$4 sm:$0xff]  }
   0x6   :  { %v4463_v15 = vld [vmem:[%s6887_s1 + $0x68] ss:$16 sps:$4 sm:$0xff]   ;;  %v4464_v16 = vld [vmem:[%s6887_s1 + $0x84] ss:$16 sps:$4 sm:$0xff]   ;;  %v4466_v17 = vld [vmem:[%s6887_s1 + $0x8c] ss:$16 sps:$4 sm:$0xff]  }
   0x7   :  { %3176 = vmatpush1.bf16.msra.mxu0 %v4450_v6  ;;  %3504 = vmatpush1.bf16.msra.mxu1 %v4451_v7  ;;  %v4468_v18 = vld [vmem:[%s6887_s1 + $0x80] ss:$16 sps:$4 sm:$0xff]   ;;  %v4469_v19 = vld [vmem:[%s6887_s1 + $0x88] ss:$16 sps:$4 sm:$0xff]   ;;  %v4470_v20 = vld [vmem:[%s6887_s1 + $0xa4] ss:$16 sps:$4 sm:$0xff]  }
   0x8   :  { %3177 = vmatprep.subr.bf16.mxu0 %v4452_v8  ;;  %3505 = vmatprep.subr.bf16.mxu1 %v4454_v9  ;;  %v4472_v21 = vld [vmem:[%s6887_s1 + $0xac] ss:$16 sps:$4 sm:$0xff]   ;;  %v4474_v22 = vld [vmem:[%s6887_s1 + $0xa0] ss:$16 sps:$4 sm:$0xff]   ;;  %v4475_v23 = vld [vmem:[%s6887_s1 + $0xa8] ss:$16 sps:$4 sm:$0xff]  }
   0x9   :  { %v4476_v24 = vld [vmem:[%s6887_s1 + $0xc4] ss:$16 sps:$4 sm:$0xff]   ;;  %v4478_v25 = vld [vmem:[%s6887_s1 + $0xcc] ss:$16 sps:$4 sm:$0xff]   ;;  %v4480_v26 = vld [vmem:[%s6887_s1 + $0xc0] ss:$16 sps:$4 sm:$0xff]  }
   0xa   :  { %v4481_v27 = vld [vmem:[%s6887_s1 + $0xc8] ss:$16 sps:$4 sm:$0xff]   ;;  %v4482_v28 = vld [vmem:[%s6887_s1 + $0xe4] ss:$16 sps:$4 sm:$0xff]   ;;  %v4484_v29 = vld [vmem:[%s6887_s1 + $0xec] ss:$16 sps:$4 sm:$0xff]  }
   0xb   :  { %3178 = vmatpush1.bf16.msra.mxu0 %v4456_v10  ;;  %3506 = vmatpush1.bf16.msra.mxu1 %v4457_v11  ;;  %v4486_v30 = vld [vmem:[%s6887_s1 + $0xe0] ss:$16 sps:$4 sm:$0xff]   ;;  %v4487_v31 = vld [vmem:[%s6887_s1 + $0xe8] ss:$16 sps:$4 sm:$0xff]   ;;  %v4488_v32 = vld [vmem:[%s6887_s1 + $0x104] ss:$16 sps:$4 sm:$0xff]  }
   0xc   :  { %3179 = vmatprep.subr.bf16.mxu0 %v4458_v12  ;;  %3507 = vmatprep.subr.bf16.mxu1 %v4460_v13  ;;  %v4490_v33 = vld [vmem:[%s6887_s1 + $0x10c] ss:$16 sps:$4 sm:$0xff]   ;;  %v4492_v34 = vld [vmem:[%s6887_s1 + $0x100] ss:$16 sps:$4 sm:$0xff]   ;;  %v4493_v35 = vld [vmem:[%s6887_s1 + $0x108] ss:$16 sps:$4 sm:$0xff]  }
   0xd   :  { %v4494_v36 = vld [vmem:[%s6887_s1 + $0x124] ss:$16 sps:$4 sm:$0xff]   ;;  %v4496_v37 = vld [vmem:[%s6887_s1 + $0x12c] ss:$16 sps:$4 sm:$0xff]   ;;  %v4498_v38 = vld [vmem:[%s6887_s1 + $0x120] ss:$16 sps:$4 sm:$0xff]  }
   0xe   :  { %v4499_v39 = vld [vmem:[%s6887_s1 + $0x128] ss:$16 sps:$4 sm:$0xff]   ;;  %v4500_v40 = vld [vmem:[%s6887_s1 + $0x144] ss:$16 sps:$4 sm:$0xff]   ;;  %v4502_v41 = vld [vmem:[%s6887_s1 + $0x14c] ss:$16 sps:$4 sm:$0xff]  }
   0xf   :  { %3180 = vmatpush1.bf16.msra.mxu0 %v4462_v14  ;;  %3508 = vmatpush1.bf16.msra.mxu1 %v4463_v15  ;;  %v4504_v42 = vld [vmem:[%s6887_s1 + $0x140] ss:$16 sps:$4 sm:$0xff]   ;;  %v4505_v43 = vld [vmem:[%s6887_s1 + $0x148] ss:$16 sps:$4 sm:$0xff]   ;;  %v4506_v44 = vld [vmem:[%s6887_s1 + $0x164] ss:$16 sps:$4 sm:$0xff]  }
  0x10   :  { %3181 = vmatprep.subr.bf16.mxu0 %v4464_v16  ;;  %3509 = vmatprep.subr.bf16.mxu1 %v4466_v17  ;;  %v4508_v45 = vld [vmem:[%s6887_s1 + $0x16c] ss:$16 sps:$4 sm:$0xff]   ;;  %v15_v46 = vld [vmem:[%s6886_s0] sm:$0xff]  ;;  %v4511_v49 = vld [vmem:[%s6887_s1 + $0x168] ss:$16 sps:$4 sm:$0xff]  }
  0x11   :  { %v4510_v47 = vld [vmem:[%s6887_s1 + $0x160] ss:$16 sps:$4 sm:$0xff]   ;;  %v3852_v48 = vcombine.high %v15_v46, %v15_v46  ;;  %v4512_v50 = vld [vmem:[%s6887_s1 + $0x184] ss:$16 sps:$4 sm:$0xff]   ;;  %v4514_v51 = vld [vmem:[%s6887_s1 + $0x18c] ss:$16 sps:$4 sm:$0xff]   ;;  %v3851_v4 = vcombine.low %v15_v46, %v15_v46 }
  0x12   :  { %v4516_v52 = vld [vmem:[%s6887_s1 + $0x180] ss:$16 sps:$4 sm:$0xff]   ;;  %v4517_v53 = vld [vmem:[%s6887_s1 + $0x188] ss:$16 sps:$4 sm:$0xff]   ;;  %v4518_v54 = vld [vmem:[%s6887_s1 + $0x1a4] ss:$16 sps:$4 sm:$0xff]  }
  0x13   :  { %3182 = vmatpush1.bf16.msra.mxu0 %v4468_v18  ;;  %3510 = vmatpush1.bf16.msra.mxu1 %v4469_v19  ;;  %v4520_v55 = vld [vmem:[%s6887_s1 + $0x1ac] ss:$16 sps:$4 sm:$0xff]   ;;  %v4522_v56 = vld [vmem:[%s6887_s1 + $0x1a0] ss:$16 sps:$4 sm:$0xff]   ;;  %v4523_v57 = vld [vmem:[%s6887_s1 + $0x1a8] ss:$16 sps:$4 sm:$0xff]  }
  0x14   :  { %3183 = vmatprep.subr.bf16.mxu0 %v4470_v20  ;;  %3511 = vmatprep.subr.bf16.mxu1 %v4472_v21  ;;  %v4524_v58 = vld [vmem:[%s6887_s1 + $0x1c4] ss:$16 sps:$4 sm:$0xff]   ;;  %v4526_v59 = vld [vmem:[%s6887_s1 + $0x1cc] ss:$16 sps:$4 sm:$0xff]   ;;  %v4528_v60 = vld [vmem:[%s6887_s1 + $0x1c0] ss:$16 sps:$4 sm:$0xff]  }
  0x15   :  { %3205 = vmatprep.mubr.bf16.mxu0 %v3852_v48  ;;  %3533 = vmatprep.mubr.bf16.mxu1 %v3852_v48  ;;  %v4529_v61 = vld [vmem:[%s6887_s1 + $0x1c8] ss:$16 sps:$4 sm:$0xff]   ;;  %v4530_v62 = vld [vmem:[%s6887_s1 + $0x1e4] ss:$16 sps:$4 sm:$0xff]   ;;  %v4532_v63 = vld [vmem:[%s6887_s1 + $0x1ec] ss:$16 sps:$4 sm:$0xff]  }
  0x16   :  { %v4534_v0 = vld [vmem:[%s6887_s1 + $0x1e0] ss:$16 sps:$4 sm:$0xff]   ;;  %v4535_v1 = vld [vmem:[%s6887_s1 + $0x1e8] ss:$16 sps:$4 sm:$0xff]   ;;  %v4540_v2 = vld [vmem:[%s6887_s1 + $0x204] ss:$16 sps:$4 sm:$0xff]  }
  0x17   :  { %3184 = vmatpush1.bf16.msra.mxu0 %v4474_v22  ;;  %3512 = vmatpush1.bf16.msra.mxu1 %v4475_v23  ;;  %v4543_v3 = vld [vmem:[%s6887_s1 + $0x20c] ss:$16 sps:$4 sm:$0xff]   ;;  %v4538_v5 = vld [vmem:[%s6887_s1 + $0x200] ss:$16 sps:$4 sm:$0xff]   ;;  %v4541_v6 = vld [vmem:[%s6887_s1 + $0x208] ss:$16 sps:$4 sm:$0xff]  }
  0x18   :  { %3185 = vmatprep.subr.bf16.mxu0 %v4476_v24  ;;  %3513 = vmatprep.subr.bf16.mxu1 %v4478_v25  ;;  %v4546_v7 = vld [vmem:[%s6887_s1 + $0x224] ss:$16 sps:$4 sm:$0xff]   ;;  %v4549_v8 = vld [vmem:[%s6887_s1 + $0x22c] ss:$16 sps:$4 sm:$0xff]   ;;  %v4544_v9 = vld [vmem:[%s6887_s1 + $0x220] ss:$16 sps:$4 sm:$0xff]  }
  0x19   :  { %v4547_v10 = vld [vmem:[%s6887_s1 + $0x228] ss:$16 sps:$4 sm:$0xff]   ;;  %v4552_v11 = vld [vmem:[%s6887_s1 + $0x244] ss:$16 sps:$4 sm:$0xff]   ;;  %v4555_v12 = vld [vmem:[%s6887_s1 + $0x24c] ss:$16 sps:$4 sm:$0xff]  }
  0x1a   :  { %v4550_v13 = vld [vmem:[%s6887_s1 + $0x240] ss:$16 sps:$4 sm:$0xff]   ;;  %v4553_v14 = vld [vmem:[%s6887_s1 + $0x248] ss:$16 sps:$4 sm:$0xff]   ;;  %v4558_v15 = vld [vmem:[%s6887_s1 + $0x264] ss:$16 sps:$4 sm:$0xff]  }
  0x1b   :  { %3186 = vmatpush1.bf16.msra.mxu0 %v4480_v26  ;;  %3514 = vmatpush1.bf16.msra.mxu1 %v4481_v27  ;;  %v4561_v16 = vld [vmem:[%s6887_s1 + $0x26c] ss:$16 sps:$4 sm:$0xff]   ;;  %v4556_v17 = vld [vmem:[%s6887_s1 + $0x260] ss:$16 sps:$4 sm:$0xff]   ;;  %v4559_v18 = vld [vmem:[%s6887_s1 + $0x268] ss:$16 sps:$4 sm:$0xff]  }
  0x1c   :  { %3187 = vmatprep.subr.bf16.mxu0 %v4482_v28  ;;  %3515 = vmatprep.subr.bf16.mxu1 %v4484_v29  ;;  %v4564_v19 = vld [vmem:[%s6887_s1 + $0x284] ss:$16 sps:$4 sm:$0xff]   ;;  %v4567_v20 = vld [vmem:[%s6887_s1 + $0x28c] ss:$16 sps:$4 sm:$0xff]   ;;  %v4562_v21 = vld [vmem:[%s6887_s1 + $0x280] ss:$16 sps:$4 sm:$0xff]  }
  0x1d   :  { %v4565_v22 = vld [vmem:[%s6887_s1 + $0x288] ss:$16 sps:$4 sm:$0xff]   ;;  %v4570_v23 = vld [vmem:[%s6887_s1 + $0x2a4] ss:$16 sps:$4 sm:$0xff]   ;;  %v4573_v24 = vld [vmem:[%s6887_s1 + $0x2ac] ss:$16 sps:$4 sm:$0xff]  }
  0x1e   :  { %v4568_v25 = vld [vmem:[%s6887_s1 + $0x2a0] ss:$16 sps:$4 sm:$0xff]   ;;  %v4571_v26 = vld [vmem:[%s6887_s1 + $0x2a8] ss:$16 sps:$4 sm:$0xff]   ;;  %v4576_v27 = vld [vmem:[%s6887_s1 + $0x2c4] ss:$16 sps:$4 sm:$0xff]  }
  0x1f   :  { %3188 = vmatpush1.bf16.msra.mxu0 %v4486_v30  ;;  %3516 = vmatpush1.bf16.msra.mxu1 %v4487_v31  ;;  %v4579_v28 = vld [vmem:[%s6887_s1 + $0x2cc] ss:$16 sps:$4 sm:$0xff]   ;;  %v4574_v31 = vld [vmem:[%s6887_s1 + $0x2c0] ss:$16 sps:$4 sm:$0xff]   ;;  %v4601_v48 = vld [vmem:[%s6887_s1 + $0x348] ss:$16 sps:$4 sm:$0xff]  }
  0x20   :  { %3189 = vmatprep.subr.bf16.mxu0 %v4488_v32  ;;  %3517 = vmatprep.subr.bf16.mxu1 %v4490_v33  ;;  %v5545_v29 = vld [vmem:[%s6886_s0 + $0x8] sm:$0xff]  ;;  %v4582_v33 = vld [vmem:[%s6887_s1 + $0x2e4] ss:$16 sps:$4 sm:$0xff]  }
  0x21   :  { %v3854_v30 = vcombine.high %v5545_v29, %v5545_v29  ;;  %v4577_v32 = vld [vmem:[%s6887_s1 + $0x2c8] ss:$16 sps:$4 sm:$0xff]   ;;  %v4603_v46 = vld [vmem:[%s6887_s1 + $0x34c] ss:$16 sps:$4 sm:$0xff]  }
  0x23   :  { %3190 = vmatpush1.bf16.msra.mxu0 %v4492_v34  ;;  %3518 = vmatpush1.bf16.msra.mxu1 %v4493_v35  ;;  %v4585_v34 = vld [vmem:[%s6887_s1 + $0x2ec] ss:$16 sps:$4 sm:$0xff]   ;;  %v4580_v35 = vld [vmem:[%s6887_s1 + $0x2e0] ss:$16 sps:$4 sm:$0xff]  }
  0x24   :  { %3191 = vmatprep.subr.bf16.mxu0 %v4494_v36  ;;  %3519 = vmatprep.subr.bf16.mxu1 %v4496_v37  ;;  %v4583_v36 = vld [vmem:[%s6887_s1 + $0x2e8] ss:$16 sps:$4 sm:$0xff]   ;;  %v4588_v37 = vld [vmem:[%s6887_s1 + $0x304] ss:$16 sps:$4 sm:$0xff]  }
  0x27   :  { %3192 = vmatpush1.bf16.msra.mxu0 %v4498_v38  ;;  %3520 = vmatpush1.bf16.msra.mxu1 %v4499_v39  ;;  %v4591_v38 = vld [vmem:[%s6887_s1 + $0x30c] ss:$16 sps:$4 sm:$0xff]   ;;  %v4586_v39 = vld [vmem:[%s6887_s1 + $0x300] ss:$16 sps:$4 sm:$0xff]  }
  0x28   :  { %3193 = vmatprep.subr.bf16.mxu0 %v4500_v40  ;;  %3521 = vmatprep.subr.bf16.mxu1 %v4502_v41  ;;  %v4589_v40 = vld [vmem:[%s6887_s1 + $0x308] ss:$16 sps:$4 sm:$0xff]   ;;  %v4594_v41 = vld [vmem:[%s6887_s1 + $0x324] ss:$16 sps:$4 sm:$0xff]  }
  0x2b   :  { %3194 = vmatpush1.bf16.msra.mxu0 %v4504_v42  ;;  %3522 = vmatpush1.bf16.msra.mxu1 %v4505_v43  ;;  %v4597_v42 = vld [vmem:[%s6887_s1 + $0x32c] ss:$16 sps:$4 sm:$0xff]   ;;  %v4592_v43 = vld [vmem:[%s6887_s1 + $0x320] ss:$16 sps:$4 sm:$0xff]  }
  0x2c   :  { %3195 = vmatprep.subr.bf16.mxu0 %v4506_v44  ;;  %3523 = vmatprep.subr.bf16.mxu1 %v4508_v45  ;;  %v4595_v44 = vld [vmem:[%s6887_s1 + $0x328] ss:$16 sps:$4 sm:$0xff]   ;;  %v4600_v45 = vld [vmem:[%s6887_s1 + $0x344] ss:$16 sps:$4 sm:$0xff]  }
  0x2f   :  { %3196 = vmatpush1.bf16.msra.mxu0 %v4510_v47  ;;  %3524 = vmatpush1.bf16.msra.mxu1 %v4511_v49  ;;  %v4598_v47 = vld [vmem:[%s6887_s1 + $0x340] ss:$16 sps:$4 sm:$0xff]   ;;  %v4606_v49 = vld [vmem:[%s6887_s1 + $0x364] ss:$16 sps:$4 sm:$0xff]  }
  0x30   :  { %3197 = vmatprep.subr.bf16.mxu0 %v4512_v50  ;;  %3525 = vmatprep.subr.bf16.mxu1 %v4514_v51  ;;  %v4609_v50 = vld [vmem:[%s6887_s1 + $0x36c] ss:$16 sps:$4 sm:$0xff]   ;;  %v4604_v51 = vld [vmem:[%s6887_s1 + $0x360] ss:$16 sps:$4 sm:$0xff]  }
  0x33   :  { %3198 = vmatpush1.bf16.msra.mxu0 %v4516_v52  ;;  %3526 = vmatpush1.bf16.msra.mxu1 %v4517_v53  ;;  %v4607_v52 = vld [vmem:[%s6887_s1 + $0x368] ss:$16 sps:$4 sm:$0xff]   ;;  %v4612_v53 = vld [vmem:[%s6887_s1 + $0x384] ss:$16 sps:$4 sm:$0xff]  }
  0x34   :  { %3199 = vmatprep.subr.bf16.mxu0 %v4518_v54  ;;  %3527 = vmatprep.subr.bf16.mxu1 %v4520_v55  ;;  %v4615_v54 = vld [vmem:[%s6887_s1 + $0x38c] ss:$16 sps:$4 sm:$0xff]   ;;  %v4610_v55 = vld [vmem:[%s6887_s1 + $0x380] ss:$16 sps:$4 sm:$0xff]  }
  0x37   :  { %3200 = vmatpush1.bf16.msra.mxu0 %v4522_v56  ;;  %3528 = vmatpush1.bf16.msra.mxu1 %v4523_v57  ;;  %v4613_v56 = vld [vmem:[%s6887_s1 + $0x388] ss:$16 sps:$4 sm:$0xff]   ;;  %v4618_v57 = vld [vmem:[%s6887_s1 + $0x3a4] ss:$16 sps:$4 sm:$0xff]  }
  0x38   :  { %3201 = vmatprep.subr.bf16.mxu0 %v4524_v58  ;;  %3529 = vmatprep.subr.bf16.mxu1 %v4526_v59  ;;  %v4621_v58 = vld [vmem:[%s6887_s1 + $0x3ac] ss:$16 sps:$4 sm:$0xff]   ;;  %v4616_v59 = vld [vmem:[%s6887_s1 + $0x3a0] ss:$16 sps:$4 sm:$0xff]  }
  0x3b   :  { %3202 = vmatpush1.bf16.msra.mxu0 %v4528_v60  ;;  %3530 = vmatpush1.bf16.msra.mxu1 %v4529_v61  ;;  %v4619_v60 = vld [vmem:[%s6887_s1 + $0x3a8] ss:$16 sps:$4 sm:$0xff]   ;;  %v4624_v61 = vld [vmem:[%s6887_s1 + $0x3c4] ss:$16 sps:$4 sm:$0xff]  }
  0x3c   :  { %3203 = vmatprep.subr.bf16.mxu0 %v4530_v62  ;;  %3531 = vmatprep.subr.bf16.mxu1 %v4532_v63  ;;  %v4627_v62 = vld [vmem:[%s6887_s1 + $0x3cc] ss:$16 sps:$4 sm:$0xff]   ;;  %v4622_v63 = vld [vmem:[%s6887_s1 + $0x3c0] ss:$16 sps:$4 sm:$0xff]  }
  0x3f   :  { %3204 = vmatpush1.bf16.msra.mxu0 %v4534_v0  ;;  %3532 = vmatpush1.bf16.msra.mxu1 %v4535_v1  ;;  %v4625_v0 = vld [vmem:[%s6887_s1 + $0x3c8] ss:$16 sps:$4 sm:$0xff]   ;;  %v4630_v1 = vld [vmem:[%s6887_s1 + $0x3e4] ss:$16 sps:$4 sm:$0xff]  }
  0x40   :  { %3214 = vmatprep.subr.bf16.mxu0 %v4540_v2  ;;  %3542 = vmatprep.subr.bf16.mxu1 %v4543_v3  ;;  %v4633_v2 = vld [vmem:[%s6887_s1 + $0x3ec] ss:$16 sps:$4 sm:$0xff]   ;;  %v4628_v3 = vld [vmem:[%s6887_s1 + $0x3e0] ss:$16 sps:$4 sm:$0xff]  }
  0x42   :  { %3206 = vmatmul.mubr.bf16.vlgmr.msra.gmra.mrb[0].mxu0 %v3851_v4  ;;  %3534 = vmatmul.mubr.bf16.vlgmr.msra.gmra.mrb[0].mxu1 %v3851_v4  ;;  %v4631_v4 = vld [vmem:[%s6887_s1 + $0x3e8] ss:$16 sps:$4 sm:$0xff]  }
  0x43   :  { %3215 = vmatpush1.bf16.msra.mxu0 %v4538_v5  ;;  %3543 = vmatpush1.bf16.msra.mxu1 %v4541_v6  ;;  %v4638_v5 = vld [vmem:[%s6887_s1 + $0x404] ss:$16 sps:$4 sm:$0xff]   ;;  %v4641_v6 = vld [vmem:[%s6887_s1 + $0x40c] ss:$16 sps:$4 sm:$0xff]  }
  0x44   :  { %3216 = vmatprep.subr.bf16.mxu0 %v4546_v7  ;;  %3544 = vmatprep.subr.bf16.mxu1 %v4549_v8  ;;  %v3853_v7 = vcombine.low %v5545_v29, %v5545_v29  ;;  %v4636_v8 = vld [vmem:[%s6887_s1 + $0x400] ss:$16 sps:$4 sm:$0xff]   ;;  %v4671_v29 = vld [vmem:[%s6887_s1 + $0x4ac] ss:$16 sps:$4 sm:$0xff]  }
  0x45   :  { %3246 = vmatprep.mubr.bf16.mxu0 %v3854_v30  ;;  %3574 = vmatprep.mubr.bf16.mxu1 %v3854_v30  ;;  %v4666_v30 = vld [vmem:[%s6887_s1 + $0x4a0] ss:$16 sps:$4 sm:$0xff]  }
  0x47   :  { %3217 = vmatpush1.bf16.msra.mxu0 %v4544_v9  ;;  %3545 = vmatpush1.bf16.msra.mxu1 %v4547_v10  ;;  %v4639_v9 = vld [vmem:[%s6887_s1 + $0x408] ss:$16 sps:$4 sm:$0xff]   ;;  %v4644_v10 = vld [vmem:[%s6887_s1 + $0x424] ss:$16 sps:$4 sm:$0xff]  }
  0x48   :  { %3218 = vmatprep.subr.bf16.mxu0 %v4552_v11  ;;  %3546 = vmatprep.subr.bf16.mxu1 %v4555_v12  ;;  %v5683_v11 = vld [vmem:[%s6886_s0 + $0x10] sm:$0xff]  ;;  %v4647_v12 = vld [vmem:[%s6887_s1 + $0x42c] ss:$16 sps:$4 sm:$0xff]  }
  0x4b   :  { %3219 = vmatpush1.bf16.msra.mxu0 %v4550_v13  ;;  %3547 = vmatpush1.bf16.msra.mxu1 %v4553_v14  ;;  %v3856_v13 = vcombine.high %v5683_v11, %v5683_v11  ;;  %v4642_v14 = vld [vmem:[%s6887_s1 + $0x420] ss:$16 sps:$4 sm:$0xff]  }
  0x4c   :  { %3220 = vmatprep.subr.bf16.mxu0 %v4558_v15  ;;  %3548 = vmatprep.subr.bf16.mxu1 %v4561_v16  ;;  %v4645_v15 = vld [vmem:[%s6887_s1 + $0x428] ss:$16 sps:$4 sm:$0xff]   ;;  %v4650_v16 = vld [vmem:[%s6887_s1 + $0x444] ss:$16 sps:$4 sm:$0xff]  }
  0x4f   :  { %3221 = vmatpush1.bf16.msra.mxu0 %v4556_v17  ;;  %3549 = vmatpush1.bf16.msra.mxu1 %v4559_v18  ;;  %v4653_v17 = vld [vmem:[%s6887_s1 + $0x44c] ss:$16 sps:$4 sm:$0xff]   ;;  %v4648_v18 = vld [vmem:[%s6887_s1 + $0x440] ss:$16 sps:$4 sm:$0xff]  }
  0x50   :  { %3222 = vmatprep.subr.bf16.mxu0 %v4564_v19  ;;  %3550 = vmatprep.subr.bf16.mxu1 %v4567_v20  ;;  %v4651_v19 = vld [vmem:[%s6887_s1 + $0x448] ss:$16 sps:$4 sm:$0xff]   ;;  %v4656_v20 = vld [vmem:[%s6887_s1 + $0x464] ss:$16 sps:$4 sm:$0xff]  }
  0x53   :  { %3223 = vmatpush1.bf16.msra.mxu0 %v4562_v21  ;;  %3551 = vmatpush1.bf16.msra.mxu1 %v4565_v22  ;;  %v4659_v21 = vld [vmem:[%s6887_s1 + $0x46c] ss:$16 sps:$4 sm:$0xff]   ;;  %v4654_v22 = vld [vmem:[%s6887_s1 + $0x460] ss:$16 sps:$4 sm:$0xff]  }
  0x54   :  { %3224 = vmatprep.subr.bf16.mxu0 %v4570_v23  ;;  %3552 = vmatprep.subr.bf16.mxu1 %v4573_v24  ;;  %v4657_v23 = vld [vmem:[%s6887_s1 + $0x468] ss:$16 sps:$4 sm:$0xff]   ;;  %v4662_v24 = vld [vmem:[%s6887_s1 + $0x484] ss:$16 sps:$4 sm:$0xff]  }
  0x57   :  { %3225 = vmatpush1.bf16.msra.mxu0 %v4568_v25  ;;  %3553 = vmatpush1.bf16.msra.mxu1 %v4571_v26  ;;  %v4665_v25 = vld [vmem:[%s6887_s1 + $0x48c] ss:$16 sps:$4 sm:$0xff]   ;;  %v4660_v26 = vld [vmem:[%s6887_s1 + $0x480] ss:$16 sps:$4 sm:$0xff]  }
  0x58   :  { %3226 = vmatprep.subr.bf16.mxu0 %v4576_v27  ;;  %3554 = vmatprep.subr.bf16.mxu1 %v4579_v28  ;;  %v4663_v27 = vld [vmem:[%s6887_s1 + $0x488] ss:$16 sps:$4 sm:$0xff]   ;;  %v4668_v28 = vld [vmem:[%s6887_s1 + $0x4a4] ss:$16 sps:$4 sm:$0xff]  }
  0x5b   :  { %3227 = vmatpush1.bf16.msra.mxu0 %v4574_v31  ;;  %3555 = vmatpush1.bf16.msra.mxu1 %v4577_v32  ;;  %v4669_v31 = vld [vmem:[%s6887_s1 + $0x4a8] ss:$16 sps:$4 sm:$0xff]   ;;  %v4674_v32 = vld [vmem:[%s6887_s1 + $0x4c4] ss:$16 sps:$4 sm:$0xff]  }
  0x5c   :  { %3228 = vmatprep.subr.bf16.mxu0 %v4582_v33  ;;  %3556 = vmatprep.subr.bf16.mxu1 %v4585_v34  ;;  %v4677_v33 = vld [vmem:[%s6887_s1 + $0x4cc] ss:$16 sps:$4 sm:$0xff]   ;;  %v4672_v34 = vld [vmem:[%s6887_s1 + $0x4c0] ss:$16 sps:$4 sm:$0xff]  }
  0x5f   :  { %3229 = vmatpush1.bf16.msra.mxu0 %v4580_v35  ;;  %3557 = vmatpush1.bf16.msra.mxu1 %v4583_v36  ;;  %v4675_v35 = vld [vmem:[%s6887_s1 + $0x4c8] ss:$16 sps:$4 sm:$0xff]   ;;  %v4680_v36 = vld [vmem:[%s6887_s1 + $0x4e4] ss:$16 sps:$4 sm:$0xff]  }
  0x60   :  { %3230 = vmatprep.subr.bf16.mxu0 %v4588_v37  ;;  %3558 = vmatprep.subr.bf16.mxu1 %v4591_v38  ;;  %v4683_v37 = vld [vmem:[%s6887_s1 + $0x4ec] ss:$16 sps:$4 sm:$0xff]   ;;  %v4678_v38 = vld [vmem:[%s6887_s1 + $0x4e0] ss:$16 sps:$4 sm:$0xff]  }
  0x63   :  { %3231 = vmatpush1.bf16.msra.mxu0 %v4586_v39  ;;  %3559 = vmatpush1.bf16.msra.mxu1 %v4589_v40  ;;  %v4681_v39 = vld [vmem:[%s6887_s1 + $0x4e8] ss:$16 sps:$4 sm:$0xff]   ;;  %v4686_v40 = vld [vmem:[%s6887_s1 + $0x504] ss:$16 sps:$4 sm:$0xff]  }
  0x64   :  { %3232 = vmatprep.subr.bf16.mxu0 %v4594_v41  ;;  %3560 = vmatprep.subr.bf16.mxu1 %v4597_v42  ;;  %v4689_v41 = vld [vmem:[%s6887_s1 + $0x50c] ss:$16 sps:$4 sm:$0xff]   ;;  %v4684_v42 = vld [vmem:[%s6887_s1 + $0x500] ss:$16 sps:$4 sm:$0xff]  }
  0x67   :  { %3233 = vmatpush1.bf16.msra.mxu0 %v4592_v43  ;;  %3561 = vmatpush1.bf16.msra.mxu1 %v4595_v44  ;;  %v4687_v43 = vld [vmem:[%s6887_s1 + $0x508] ss:$16 sps:$4 sm:$0xff]   ;;  %v4692_v44 = vld [vmem:[%s6887_s1 + $0x524] ss:$16 sps:$4 sm:$0xff]  }
  0x68   :  { %3234 = vmatprep.subr.bf16.mxu0 %v4600_v45  ;;  %3562 = vmatprep.subr.bf16.mxu1 %v4603_v46  ;;  %v4695_v45 = vld [vmem:[%s6887_s1 + $0x52c] ss:$16 sps:$4 sm:$0xff]   ;;  %v4690_v46 = vld [vmem:[%s6887_s1 + $0x520] ss:$16 sps:$4 sm:$0xff]  }
  0x6b   :  { %3235 = vmatpush1.bf16.msra.mxu0 %v4598_v47  ;;  %3563 = vmatpush1.bf16.msra.mxu1 %v4601_v48  ;;  %v4693_v47 = vld [vmem:[%s6887_s1 + $0x528] ss:$16 sps:$4 sm:$0xff]   ;;  %v4698_v48 = vld [vmem:[%s6887_s1 + $0x544] ss:$16 sps:$4 sm:$0xff]  }
  0x6c   :  { %3236 = vmatprep.subr.bf16.mxu0 %v4606_v49  ;;  %3564 = vmatprep.subr.bf16.mxu1 %v4609_v50  ;;  %v4701_v49 = vld [vmem:[%s6887_s1 + $0x54c] ss:$16 sps:$4 sm:$0xff]   ;;  %v4696_v50 = vld [vmem:[%s6887_s1 + $0x540] ss:$16 sps:$4 sm:$0xff]  }
  0x6f   :  { %3237 = vmatpush1.bf16.msra.mxu0 %v4604_v51  ;;  %3565 = vmatpush1.bf16.msra.mxu1 %v4607_v52  ;;  %v4699_v51 = vld [vmem:[%s6887_s1 + $0x548] ss:$16 sps:$4 sm:$0xff]   ;;  %v4704_v52 = vld [vmem:[%s6887_s1 + $0x564] ss:$16 sps:$4 sm:$0xff]  }
  0x70   :  { %3238 = vmatprep.subr.bf16.mxu0 %v4612_v53  ;;  %3566 = vmatprep.subr.bf16.mxu1 %v4615_v54  ;;  %v4707_v53 = vld [vmem:[%s6887_s1 + $0x56c] ss:$16 sps:$4 sm:$0xff]   ;;  %v4702_v54 = vld [vmem:[%s6887_s1 + $0x560] ss:$16 sps:$4 sm:$0xff]  }
  0x73   :  { %3239 = vmatpush1.bf16.msra.mxu0 %v4610_v55  ;;  %3567 = vmatpush1.bf16.msra.mxu1 %v4613_v56  ;;  %v4705_v55 = vld [vmem:[%s6887_s1 + $0x568] ss:$16 sps:$4 sm:$0xff]   ;;  %v4710_v56 = vld [vmem:[%s6887_s1 + $0x584] ss:$16 sps:$4 sm:$0xff]  }
  0x74   :  { %3240 = vmatprep.subr.bf16.mxu0 %v4618_v57  ;;  %3568 = vmatprep.subr.bf16.mxu1 %v4621_v58  ;;  %v4713_v57 = vld [vmem:[%s6887_s1 + $0x58c] ss:$16 sps:$4 sm:$0xff]   ;;  %v4708_v58 = vld [vmem:[%s6887_s1 + $0x580] ss:$16 sps:$4 sm:$0xff]  }
  0x77   :  { %3241 = vmatpush1.bf16.msra.mxu0 %v4616_v59  ;;  %3569 = vmatpush1.bf16.msra.mxu1 %v4619_v60  ;;  %v4711_v59 = vld [vmem:[%s6887_s1 + $0x588] ss:$16 sps:$4 sm:$0xff]   ;;  %v4716_v60 = vld [vmem:[%s6887_s1 + $0x5a4] ss:$16 sps:$4 sm:$0xff]  }
  0x78   :  { %3242 = vmatprep.subr.bf16.mxu0 %v4624_v61  ;;  %3570 = vmatprep.subr.bf16.mxu1 %v4627_v62  ;;  %v4719_v61 = vld [vmem:[%s6887_s1 + $0x5ac] ss:$16 sps:$4 sm:$0xff]   ;;  %v4714_v62 = vld [vmem:[%s6887_s1 + $0x5a0] ss:$16 sps:$4 sm:$0xff]  }
  0x7b   :  { %3243 = vmatpush1.bf16.msra.mxu0 %v4622_v63  ;;  %3571 = vmatpush1.bf16.msra.mxu1 %v4625_v0  ;;  %v4717_v63 = vld [vmem:[%s6887_s1 + $0x5a8] ss:$16 sps:$4 sm:$0xff]   ;;  %v4722_v0 = vld [vmem:[%s6887_s1 + $0x5c4] ss:$16 sps:$4 sm:$0xff]  }
  0x7c   :  { %3244 = vmatprep.subr.bf16.mxu0 %v4630_v1  ;;  %3572 = vmatprep.subr.bf16.mxu1 %v4633_v2  ;;  %v4725_v1 = vld [vmem:[%s6887_s1 + $0x5cc] ss:$16 sps:$4 sm:$0xff]   ;;  %v4720_v2 = vld [vmem:[%s6887_s1 + $0x5c0] ss:$16 sps:$4 sm:$0xff]  }
  0x7f   :  { %3245 = vmatpush1.bf16.msra.mxu0 %v4628_v3  ;;  %3573 = vmatpush1.bf16.msra.mxu1 %v4631_v4  ;;  %v4723_v3 = vld [vmem:[%s6887_s1 + $0x5c8] ss:$16 sps:$4 sm:$0xff]   ;;  %v4728_v4 = vld [vmem:[%s6887_s1 + $0x5e4] ss:$16 sps:$4 sm:$0xff]  }
  0x80   :  { %3255 = vmatprep.subr.bf16.mxu0 %v4638_v5  ;;  %3583 = vmatprep.subr.bf16.mxu1 %v4641_v6  ;;  %v4731_v5 = vld [vmem:[%s6887_s1 + $0x5ec] ss:$16 sps:$4 sm:$0xff]   ;;  %v4726_v6 = vld [vmem:[%s6887_s1 + $0x5e0] ss:$16 sps:$4 sm:$0xff]  }
  0x82   :  { %3247 = vmatmul.mubr.bf16.vlgmr.msra.gmra.mrb[0].mxu0 %v3853_v7  ;;  %3575 = vmatmul.mubr.bf16.vlgmr.msra.gmra.mrb[0].mxu1 %v3853_v7  ;;  %v4729_v7 = vld [vmem:[%s6887_s1 + $0x5e8] ss:$16 sps:$4 sm:$0xff]  }
  0x83   :  { %3256 = vmatpush1.bf16.msra.mxu0 %v4636_v8  ;;  %3584 = vmatpush1.bf16.msra.mxu1 %v4639_v9  ;;  %v4736_v8 = vld [vmem:[%s6887_s1 + $0x604] ss:$16 sps:$4 sm:$0xff]   ;;  %v4739_v9 = vld [vmem:[%s6887_s1 + $0x60c] ss:$16 sps:$4 sm:$0xff]  }
  0x84   :  { %3257 = vmatprep.subr.bf16.mxu0 %v4644_v10  ;;  %3585 = vmatprep.subr.bf16.mxu1 %v4647_v12  ;;  %v4734_v10 = vld [vmem:[%s6887_s1 + $0x600] ss:$16 sps:$4 sm:$0xff]   ;;  %v3855_v12 = vcombine.low %v5683_v11, %v5683_v11  ;;  %v4745_v11 = vld [vmem:[%s6887_s1 + $0x62c] ss:$16 sps:$4 sm:$0xff]  }
  0x85   :  { %3287 = vmatprep.mubr.bf16.mxu0 %v3856_v13  ;;  %3615 = vmatprep.mubr.bf16.mxu1 %v3856_v13  ;;  %v4737_v13 = vld [vmem:[%s6887_s1 + $0x608] ss:$16 sps:$4 sm:$0xff]  }
  0x87   :  { %3258 = vmatpush1.bf16.msra.mxu0 %v4642_v14  ;;  %3586 = vmatpush1.bf16.msra.mxu1 %v4645_v15  ;;  %v5881_v14 = vld [vmem:[%s6886_s0 + $0x18] sm:$0xff]  ;;  %v4742_v15 = vld [vmem:[%s6887_s1 + $0x624] ss:$16 sps:$4 sm:$0xff]  }
  0x88   :  { %3259 = vmatprep.subr.bf16.mxu0 %v4650_v16  ;;  %3587 = vmatprep.subr.bf16.mxu1 %v4653_v17  ;;  %v3858_v16 = vcombine.high %v5881_v14, %v5881_v14  ;;  %v4740_v17 = vld [vmem:[%s6887_s1 + $0x620] ss:$16 sps:$4 sm:$0xff]  }
  0x8b   :  { %3260 = vmatpush1.bf16.msra.mxu0 %v4648_v18  ;;  %3588 = vmatpush1.bf16.msra.mxu1 %v4651_v19  ;;  %v4743_v18 = vld [vmem:[%s6887_s1 + $0x628] ss:$16 sps:$4 sm:$0xff]   ;;  %v4748_v19 = vld [vmem:[%s6887_s1 + $0x644] ss:$16 sps:$4 sm:$0xff]  }
  0x8c   :  { %3261 = vmatprep.subr.bf16.mxu0 %v4656_v20  ;;  %3589 = vmatprep.subr.bf16.mxu1 %v4659_v21  ;;  %v4751_v20 = vld [vmem:[%s6887_s1 + $0x64c] ss:$16 sps:$4 sm:$0xff]   ;;  %v4746_v21 = vld [vmem:[%s6887_s1 + $0x640] ss:$16 sps:$4 sm:$0xff]  }
  0x8f   :  { %3262 = vmatpush1.bf16.msra.mxu0 %v4654_v22  ;;  %3590 = vmatpush1.bf16.msra.mxu1 %v4657_v23  ;;  %v4749_v22 = vld [vmem:[%s6887_s1 + $0x648] ss:$16 sps:$4 sm:$0xff]   ;;  %v4754_v23 = vld [vmem:[%s6887_s1 + $0x664] ss:$16 sps:$4 sm:$0xff]  }
  0x90   :  { %3263 = vmatprep.subr.bf16.mxu0 %v4662_v24  ;;  %3591 = vmatprep.subr.bf16.mxu1 %v4665_v25  ;;  %v4757_v24 = vld [vmem:[%s6887_s1 + $0x66c] ss:$16 sps:$4 sm:$0xff]   ;;  %v4752_v25 = vld [vmem:[%s6887_s1 + $0x660] ss:$16 sps:$4 sm:$0xff]  }
  0x93   :  { %3264 = vmatpush1.bf16.msra.mxu0 %v4660_v26  ;;  %3592 = vmatpush1.bf16.msra.mxu1 %v4663_v27  ;;  %v4755_v26 = vld [vmem:[%s6887_s1 + $0x668] ss:$16 sps:$4 sm:$0xff]   ;;  %v4760_v27 = vld [vmem:[%s6887_s1 + $0x684] ss:$16 sps:$4 sm:$0xff]  }
  0x94   :  { %3265 = vmatprep.subr.bf16.mxu0 %v4668_v28  ;;  %3593 = vmatprep.subr.bf16.mxu1 %v4671_v29  ;;  %v4763_v28 = vld [vmem:[%s6887_s1 + $0x68c] ss:$16 sps:$4 sm:$0xff]   ;;  %v4758_v29 = vld [vmem:[%s6887_s1 + $0x680] ss:$16 sps:$4 sm:$0xff]  }
  0x97   :  { %3266 = vmatpush1.bf16.msra.mxu0 %v4666_v30  ;;  %3594 = vmatpush1.bf16.msra.mxu1 %v4669_v31  ;;  %v4761_v30 = vld [vmem:[%s6887_s1 + $0x688] ss:$16 sps:$4 sm:$0xff]   ;;  %v4766_v31 = vld [vmem:[%s6887_s1 + $0x6a4] ss:$16 sps:$4 sm:$0xff]  }
  0x98   :  { %3267 = vmatprep.subr.bf16.mxu0 %v4674_v32  ;;  %3595 = vmatprep.subr.bf16.mxu1 %v4677_v33  ;;  %v4769_v32 = vld [vmem:[%s6887_s1 + $0x6ac] ss:$16 sps:$4 sm:$0xff]   ;;  %v4764_v33 = vld [vmem:[%s6887_s1 + $0x6a0] ss:$16 sps:$4 sm:$0xff]  }
  0x9b   :  { %3268 = vmatpush1.bf16.msra.mxu0 %v4672_v34  ;;  %3596 = vmatpush1.bf16.msra.mxu1 %v4675_v35  ;;  %v4767_v34 = vld [vmem:[%s6887_s1 + $0x6a8] ss:$16 sps:$4 sm:$0xff]   ;;  %v4772_v35 = vld [vmem:[%s6887_s1 + $0x6c4] ss:$16 sps:$4 sm:$0xff]  }
  0x9c   :  { %3269 = vmatprep.subr.bf16.mxu0 %v4680_v36  ;;  %3597 = vmatprep.subr.bf16.mxu1 %v4683_v37  ;;  %v4775_v36 = vld [vmem:[%s6887_s1 + $0x6cc] ss:$16 sps:$4 sm:$0xff]   ;;  %v4770_v37 = vld [vmem:[%s6887_s1 + $0x6c0] ss:$16 sps:$4 sm:$0xff]  }
  0x9f   :  { %3270 = vmatpush1.bf16.msra.mxu0 %v4678_v38  ;;  %3598 = vmatpush1.bf16.msra.mxu1 %v4681_v39  ;;  %v4773_v38 = vld [vmem:[%s6887_s1 + $0x6c8] ss:$16 sps:$4 sm:$0xff]   ;;  %v4778_v39 = vld [vmem:[%s6887_s1 + $0x6e4] ss:$16 sps:$4 sm:$0xff]  }
  0xa0   :  { %3271 = vmatprep.subr.bf16.mxu0 %v4686_v40  ;;  %3599 = vmatprep.subr.bf16.mxu1 %v4689_v41  ;;  %v4781_v40 = vld [vmem:[%s6887_s1 + $0x6ec] ss:$16 sps:$4 sm:$0xff]   ;;  %v4776_v41 = vld [vmem:[%s6887_s1 + $0x6e0] ss:$16 sps:$4 sm:$0xff]  }
  0xa3   :  { %3272 = vmatpush1.bf16.msra.mxu0 %v4684_v42  ;;  %3600 = vmatpush1.bf16.msra.mxu1 %v4687_v43  ;;  %v4779_v42 = vld [vmem:[%s6887_s1 + $0x6e8] ss:$16 sps:$4 sm:$0xff]   ;;  %v4784_v43 = vld [vmem:[%s6887_s1 + $0x704] ss:$16 sps:$4 sm:$0xff]  }
  0xa4   :  { %3273 = vmatprep.subr.bf16.mxu0 %v4692_v44  ;;  %3601 = vmatprep.subr.bf16.mxu1 %v4695_v45  ;;  %v4787_v44 = vld [vmem:[%s6887_s1 + $0x70c] ss:$16 sps:$4 sm:$0xff]   ;;  %v4782_v45 = vld [vmem:[%s6887_s1 + $0x700] ss:$16 sps:$4 sm:$0xff]  }
  0xa7   :  { %3274 = vmatpush1.bf16.msra.mxu0 %v4690_v46  ;;  %3602 = vmatpush1.bf16.msra.mxu1 %v4693_v47  ;;  %v4785_v46 = vld [vmem:[%s6887_s1 + $0x708] ss:$16 sps:$4 sm:$0xff]   ;;  %v4790_v47 = vld [vmem:[%s6887_s1 + $0x724] ss:$16 sps:$4 sm:$0xff]  }
  0xa8   :  { %3275 = vmatprep.subr.bf16.mxu0 %v4698_v48  ;;  %3603 = vmatprep.subr.bf16.mxu1 %v4701_v49  ;;  %v4793_v48 = vld [vmem:[%s6887_s1 + $0x72c] ss:$16 sps:$4 sm:$0xff]   ;;  %v4788_v49 = vld [vmem:[%s6887_s1 + $0x720] ss:$16 sps:$4 sm:$0xff]  }
  0xab   :  { %3276 = vmatpush1.bf16.msra.mxu0 %v4696_v50  ;;  %3604 = vmatpush1.bf16.msra.mxu1 %v4699_v51  ;;  %v4791_v50 = vld [vmem:[%s6887_s1 + $0x728] ss:$16 sps:$4 sm:$0xff]   ;;  %v4796_v51 = vld [vmem:[%s6887_s1 + $0x744] ss:$16 sps:$4 sm:$0xff]  }
  0xac   :  { %3277 = vmatprep.subr.bf16.mxu0 %v4704_v52  ;;  %3605 = vmatprep.subr.bf16.mxu1 %v4707_v53  ;;  %v4799_v52 = vld [vmem:[%s6887_s1 + $0x74c] ss:$16 sps:$4 sm:$0xff]   ;;  %v4794_v53 = vld [vmem:[%s6887_s1 + $0x740] ss:$16 sps:$4 sm:$0xff]  }
  0xaf   :  { %3278 = vmatpush1.bf16.msra.mxu0 %v4702_v54  ;;  %3606 = vmatpush1.bf16.msra.mxu1 %v4705_v55  ;;  %v4797_v54 = vld [vmem:[%s6887_s1 + $0x748] ss:$16 sps:$4 sm:$0xff]   ;;  %v4802_v55 = vld [vmem:[%s6887_s1 + $0x764] ss:$16 sps:$4 sm:$0xff]  }
  0xb0   :  { %3279 = vmatprep.subr.bf16.mxu0 %v4710_v56  ;;  %3607 = vmatprep.subr.bf16.mxu1 %v4713_v57  ;;  %v4805_v56 = vld [vmem:[%s6887_s1 + $0x76c] ss:$16 sps:$4 sm:$0xff]   ;;  %v4800_v57 = vld [vmem:[%s6887_s1 + $0x760] ss:$16 sps:$4 sm:$0xff]  }
  0xb3   :  { %3280 = vmatpush1.bf16.msra.mxu0 %v4708_v58  ;;  %3608 = vmatpush1.bf16.msra.mxu1 %v4711_v59  ;;  %v4803_v58 = vld [vmem:[%s6887_s1 + $0x768] ss:$16 sps:$4 sm:$0xff]   ;;  %v4808_v59 = vld [vmem:[%s6887_s1 + $0x784] ss:$16 sps:$4 sm:$0xff]  }
  0xb4   :  { %3281 = vmatprep.subr.bf16.mxu0 %v4716_v60  ;;  %3609 = vmatprep.subr.bf16.mxu1 %v4719_v61  ;;  %v4811_v60 = vld [vmem:[%s6887_s1 + $0x78c] ss:$16 sps:$4 sm:$0xff]   ;;  %v4806_v61 = vld [vmem:[%s6887_s1 + $0x780] ss:$16 sps:$4 sm:$0xff]  }
  0xb7   :  { %3282 = vmatpush1.bf16.msra.mxu0 %v4714_v62  ;;  %3610 = vmatpush1.bf16.msra.mxu1 %v4717_v63  ;;  %v4809_v62 = vld [vmem:[%s6887_s1 + $0x788] ss:$16 sps:$4 sm:$0xff]   ;;  %v4814_v63 = vld [vmem:[%s6887_s1 + $0x7a4] ss:$16 sps:$4 sm:$0xff]  }
  0xb8   :  { %3283 = vmatprep.subr.bf16.mxu0 %v4722_v0  ;;  %3611 = vmatprep.subr.bf16.mxu1 %v4725_v1  ;;  %v4817_v0 = vld [vmem:[%s6887_s1 + $0x7ac] ss:$16 sps:$4 sm:$0xff]   ;;  %v4812_v1 = vld [vmem:[%s6887_s1 + $0x7a0] ss:$16 sps:$4 sm:$0xff]  }
  0xbb   :  { %3284 = vmatpush1.bf16.msra.mxu0 %v4720_v2  ;;  %3612 = vmatpush1.bf16.msra.mxu1 %v4723_v3  ;;  %v4815_v2 = vld [vmem:[%s6887_s1 + $0x7a8] ss:$16 sps:$4 sm:$0xff]   ;;  %v4820_v3 = vld [vmem:[%s6887_s1 + $0x7c4] ss:$16 sps:$4 sm:$0xff]  }
  0xbc   :  { %3285 = vmatprep.subr.bf16.mxu0 %v4728_v4  ;;  %3613 = vmatprep.subr.bf16.mxu1 %v4731_v5  ;;  %v4823_v4 = vld [vmem:[%s6887_s1 + $0x7cc] ss:$16 sps:$4 sm:$0xff]   ;;  %v4818_v5 = vld [vmem:[%s6887_s1 + $0x7c0] ss:$16 sps:$4 sm:$0xff]  }
  0xbf   :  { %3286 = vmatpush1.bf16.msra.mxu0 %v4726_v6  ;;  %3614 = vmatpush1.bf16.msra.mxu1 %v4729_v7  ;;  %v4821_v6 = vld [vmem:[%s6887_s1 + $0x7c8] ss:$16 sps:$4 sm:$0xff]   ;;  %v4826_v7 = vld [vmem:[%s6887_s1 + $0x7e4] ss:$16 sps:$4 sm:$0xff]  }
  0xc0   :  { %3296 = vmatprep.subr.bf16.mxu0 %v4736_v8  ;;  %3624 = vmatprep.subr.bf16.mxu1 %v4739_v9  ;;  %v4829_v8 = vld [vmem:[%s6887_s1 + $0x7ec] ss:$16 sps:$4 sm:$0xff]   ;;  %v4824_v9 = vld [vmem:[%s6887_s1 + $0x7e0] ss:$16 sps:$4 sm:$0xff]  }
  0xc2   :  { %3288 = vmatmul.mubr.bf16.vlgmr.msra.gmra.mrb[0].mxu0 %v3855_v12  ;;  %3616 = vmatmul.mubr.bf16.vlgmr.msra.gmra.mrb[0].mxu1 %v3855_v12  ;;  %v4834_v12 = vld [vmem:[%s6887_s1 + $0x804] ss:$16 sps:$4 sm:$0xff]  }
  0xc3   :  { %3297 = vmatpush1.bf16.msra.mxu0 %v4734_v10  ;;  %3625 = vmatpush1.bf16.msra.mxu1 %v4737_v13  ;;  %v4827_v10 = vld [vmem:[%s6887_s1 + $0x7e8] ss:$16 sps:$4 sm:$0xff]   ;;  %v4837_v13 = vld [vmem:[%s6887_s1 + $0x80c] ss:$16 sps:$4 sm:$0xff]  }
  0xc4   :  { %3298 = vmatprep.subr.bf16.mxu0 %v4742_v15  ;;  %3626 = vmatprep.subr.bf16.mxu1 %v4745_v11  ;;  %v4832_v15 = vld [vmem:[%s6887_s1 + $0x800] ss:$16 sps:$4 sm:$0xff]   ;;  %v3857_v11 = vcombine.low %v5881_v14, %v5881_v14  ;;  %v4843_v14 = vld [vmem:[%s6887_s1 + $0x82c] ss:$16 sps:$4 sm:$0xff]  }
  0xc5   :  { %3328 = vmatprep.mubr.bf16.mxu0 %v3858_v16  ;;  %3656 = vmatprep.mubr.bf16.mxu1 %v3858_v16  ;;  %v6079_v16 = vld [vmem:[%s6886_s0 + $0x20] sm:$0xff] }
  0xc7   :  { %3299 = vmatpush1.bf16.msra.mxu0 %v4740_v17  ;;  %3627 = vmatpush1.bf16.msra.mxu1 %v4743_v18  ;;  %v4835_v17 = vld [vmem:[%s6887_s1 + $0x808] ss:$16 sps:$4 sm:$0xff]   ;;  %v4840_v18 = vld [vmem:[%s6887_s1 + $0x824] ss:$16 sps:$4 sm:$0xff]  }
  0xc8   :  { %3300 = vmatprep.subr.bf16.mxu0 %v4748_v19  ;;  %3628 = vmatprep.subr.bf16.mxu1 %v4751_v20  ;;  %v3860_v19 = vcombine.high %v6079_v16, %v6079_v16  ;;  %v4838_v20 = vld [vmem:[%s6887_s1 + $0x820] ss:$16 sps:$4 sm:$0xff]  }
  0xcb   :  { %3301 = vmatpush1.bf16.msra.mxu0 %v4746_v21  ;;  %3629 = vmatpush1.bf16.msra.mxu1 %v4749_v22  ;;  %v4841_v21 = vld [vmem:[%s6887_s1 + $0x828] ss:$16 sps:$4 sm:$0xff]   ;;  %v4846_v22 = vld [vmem:[%s6887_s1 + $0x844] ss:$16 sps:$4 sm:$0xff]  }
  0xcc   :  { %3302 = vmatprep.subr.bf16.mxu0 %v4754_v23  ;;  %3630 = vmatprep.subr.bf16.mxu1 %v4757_v24  ;;  %v4849_v23 = vld [vmem:[%s6887_s1 + $0x84c] ss:$16 sps:$4 sm:$0xff]   ;;  %v4844_v24 = vld [vmem:[%s6887_s1 + $0x840] ss:$16 sps:$4 sm:$0xff]  }
  0xcf   :  { %3303 = vmatpush1.bf16.msra.mxu0 %v4752_v25  ;;  %3631 = vmatpush1.bf16.msra.mxu1 %v4755_v26  ;;  %v4847_v25 = vld [vmem:[%s6887_s1 + $0x848] ss:$16 sps:$4 sm:$0xff]   ;;  %v4852_v26 = vld [vmem:[%s6887_s1 + $0x864] ss:$16 sps:$4 sm:$0xff]  }
  0xd0   :  { %3304 = vmatprep.subr.bf16.mxu0 %v4760_v27  ;;  %3632 = vmatprep.subr.bf16.mxu1 %v4763_v28  ;;  %v4855_v27 = vld [vmem:[%s6887_s1 + $0x86c] ss:$16 sps:$4 sm:$0xff]   ;;  %v4850_v28 = vld [vmem:[%s6887_s1 + $0x860] ss:$16 sps:$4 sm:$0xff]  }
  0xd3   :  { %3305 = vmatpush1.bf16.msra.mxu0 %v4758_v29  ;;  %3633 = vmatpush1.bf16.msra.mxu1 %v4761_v30  ;;  %v4853_v29 = vld [vmem:[%s6887_s1 + $0x868] ss:$16 sps:$4 sm:$0xff]   ;;  %v4858_v30 = vld [vmem:[%s6887_s1 + $0x884] ss:$16 sps:$4 sm:$0xff]  }
  0xd4   :  { %3306 = vmatprep.subr.bf16.mxu0 %v4766_v31  ;;  %3634 = vmatprep.subr.bf16.mxu1 %v4769_v32  ;;  %v4861_v31 = vld [vmem:[%s6887_s1 + $0x88c] ss:$16 sps:$4 sm:$0xff]   ;;  %v4856_v32 = vld [vmem:[%s6887_s1 + $0x880] ss:$16 sps:$4 sm:$0xff]  }
  0xd7   :  { %3307 = vmatpush1.bf16.msra.mxu0 %v4764_v33  ;;  %3635 = vmatpush1.bf16.msra.mxu1 %v4767_v34  ;;  %v4859_v33 = vld [vmem:[%s6887_s1 + $0x888] ss:$16 sps:$4 sm:$0xff]   ;;  %v4864_v34 = vld [vmem:[%s6887_s1 + $0x8a4] ss:$16 sps:$4 sm:$0xff]  }
  0xd8   :  { %3308 = vmatprep.subr.bf16.mxu0 %v4772_v35  ;;  %3636 = vmatprep.subr.bf16.mxu1 %v4775_v36  ;;  %v4867_v35 = vld [vmem:[%s6887_s1 + $0x8ac] ss:$16 sps:$4 sm:$0xff]   ;;  %v4862_v36 = vld [vmem:[%s6887_s1 + $0x8a0] ss:$16 sps:$4 sm:$0xff]  }
  0xdb   :  { %3309 = vmatpush1.bf16.msra.mxu0 %v4770_v37  ;;  %3637 = vmatpush1.bf16.msra.mxu1 %v4773_v38  ;;  %v4865_v37 = vld [vmem:[%s6887_s1 + $0x8a8] ss:$16 sps:$4 sm:$0xff]   ;;  %v4870_v38 = vld [vmem:[%s6887_s1 + $0x8c4] ss:$16 sps:$4 sm:$0xff]  }
  0xdc   :  { %3310 = vmatprep.subr.bf16.mxu0 %v4778_v39  ;;  %3638 = vmatprep.subr.bf16.mxu1 %v4781_v40  ;;  %v4873_v39 = vld [vmem:[%s6887_s1 + $0x8cc] ss:$16 sps:$4 sm:$0xff]   ;;  %v4868_v40 = vld [vmem:[%s6887_s1 + $0x8c0] ss:$16 sps:$4 sm:$0xff]  }
  0xdf   :  { %3311 = vmatpush1.bf16.msra.mxu0 %v4776_v41  ;;  %3639 = vmatpush1.bf16.msra.mxu1 %v4779_v42  ;;  %v4871_v41 = vld [vmem:[%s6887_s1 + $0x8c8] ss:$16 sps:$4 sm:$0xff]   ;;  %v4876_v42 = vld [vmem:[%s6887_s1 + $0x8e4] ss:$16 sps:$4 sm:$0xff]  }
  0xe0   :  { %3312 = vmatprep.subr.bf16.mxu0 %v4784_v43  ;;  %3640 = vmatprep.subr.bf16.mxu1 %v4787_v44  ;;  %v4879_v43 = vld [vmem:[%s6887_s1 + $0x8ec] ss:$16 sps:$4 sm:$0xff]   ;;  %v4874_v44 = vld [vmem:[%s6887_s1 + $0x8e0] ss:$16 sps:$4 sm:$0xff]  }
  0xe3   :  { %3313 = vmatpush1.bf16.msra.mxu0 %v4782_v45  ;;  %3641 = vmatpush1.bf16.msra.mxu1 %v4785_v46  ;;  %v4877_v45 = vld [vmem:[%s6887_s1 + $0x8e8] ss:$16 sps:$4 sm:$0xff]   ;;  %v4882_v46 = vld [vmem:[%s6887_s1 + $0x904] ss:$16 sps:$4 sm:$0xff]  }
  0xe4   :  { %3314 = vmatprep.subr.bf16.mxu0 %v4790_v47  ;;  %3642 = vmatprep.subr.bf16.mxu1 %v4793_v48  ;;  %v4885_v47 = vld [vmem:[%s6887_s1 + $0x90c] ss:$16 sps:$4 sm:$0xff]   ;;  %v4880_v48 = vld [vmem:[%s6887_s1 + $0x900] ss:$16 sps:$4 sm:$0xff]  }
  0xe7   :  { %3315 = vmatpush1.bf16.msra.mxu0 %v4788_v49  ;;  %3643 = vmatpush1.bf16.msra.mxu1 %v4791_v50  ;;  %v4883_v49 = vld [vmem:[%s6887_s1 + $0x908] ss:$16 sps:$4 sm:$0xff]   ;;  %v4888_v50 = vld [vmem:[%s6887_s1 + $0x924] ss:$16 sps:$4 sm:$0xff]  }
  0xe8   :  { %3316 = vmatprep.subr.bf16.mxu0 %v4796_v51  ;;  %3644 = vmatprep.subr.bf16.mxu1 %v4799_v52  ;;  %v4891_v51 = vld [vmem:[%s6887_s1 + $0x92c] ss:$16 sps:$4 sm:$0xff]   ;;  %v4886_v52 = vld [vmem:[%s6887_s1 + $0x920] ss:$16 sps:$4 sm:$0xff]  }
  0xeb   :  { %3317 = vmatpush1.bf16.msra.mxu0 %v4794_v53  ;;  %3645 = vmatpush1.bf16.msra.mxu1 %v4797_v54  ;;  %v4889_v53 = vld [vmem:[%s6887_s1 + $0x928] ss:$16 sps:$4 sm:$0xff]   ;;  %v4894_v54 = vld [vmem:[%s6887_s1 + $0x944] ss:$16 sps:$4 sm:$0xff]  }
  0xec   :  { %3318 = vmatprep.subr.bf16.mxu0 %v4802_v55  ;;  %3646 = vmatprep.subr.bf16.mxu1 %v4805_v56  ;;  %v4897_v55 = vld [vmem:[%s6887_s1 + $0x94c] ss:$16 sps:$4 sm:$0xff]   ;;  %v4892_v56 = vld [vmem:[%s6887_s1 + $0x940] ss:$16 sps:$4 sm:$0xff]  }
  0xef   :  { %3319 = vmatpush1.bf16.msra.mxu0 %v4800_v57  ;;  %3647 = vmatpush1.bf16.msra.mxu1 %v4803_v58  ;;  %v4895_v57 = vld [vmem:[%s6887_s1 + $0x948] ss:$16 sps:$4 sm:$0xff]   ;;  %v4900_v58 = vld [vmem:[%s6887_s1 + $0x964] ss:$16 sps:$4 sm:$0xff]  }
  0xf0   :  { %3320 = vmatprep.subr.bf16.mxu0 %v4808_v59  ;;  %3648 = vmatprep.subr.bf16.mxu1 %v4811_v60  ;;  %v4903_v59 = vld [vmem:[%s6887_s1 + $0x96c] ss:$16 sps:$4 sm:$0xff]   ;;  %v4898_v60 = vld [vmem:[%s6887_s1 + $0x960] ss:$16 sps:$4 sm:$0xff]  }
  0xf3   :  { %3321 = vmatpush1.bf16.msra.mxu0 %v4806_v61  ;;  %3649 = vmatpush1.bf16.msra.mxu1 %v4809_v62  ;;  %v4901_v61 = vld [vmem:[%s6887_s1 + $0x968] ss:$16 sps:$4 sm:$0xff]   ;;  %v4906_v62 = vld [vmem:[%s6887_s1 + $0x984] ss:$16 sps:$4 sm:$0xff]  }
  0xf4   :  { %3322 = vmatprep.subr.bf16.mxu0 %v4814_v63  ;;  %3650 = vmatprep.subr.bf16.mxu1 %v4817_v0  ;;  %v4909_v63 = vld [vmem:[%s6887_s1 + $0x98c] ss:$16 sps:$4 sm:$0xff]   ;;  %v4904_v0 = vld [vmem:[%s6887_s1 + $0x980] ss:$16 sps:$4 sm:$0xff]  }
  0xf7   :  { %3323 = vmatpush1.bf16.msra.mxu0 %v4812_v1  ;;  %3651 = vmatpush1.bf16.msra.mxu1 %v4815_v2  ;;  %v4907_v1 = vld [vmem:[%s6887_s1 + $0x988] ss:$16 sps:$4 sm:$0xff]   ;;  %v4912_v2 = vld [vmem:[%s6887_s1 + $0x9a4] ss:$16 sps:$4 sm:$0xff]  }
  0xf8   :  { %3324 = vmatprep.subr.bf16.mxu0 %v4820_v3  ;;  %3652 = vmatprep.subr.bf16.mxu1 %v4823_v4  ;;  %v4915_v3 = vld [vmem:[%s6887_s1 + $0x9ac] ss:$16 sps:$4 sm:$0xff]   ;;  %v4910_v4 = vld [vmem:[%s6887_s1 + $0x9a0] ss:$16 sps:$4 sm:$0xff]  }
  0xfb   :  { %3325 = vmatpush1.bf16.msra.mxu0 %v4818_v5  ;;  %3653 = vmatpush1.bf16.msra.mxu1 %v4821_v6  ;;  %v4913_v5 = vld [vmem:[%s6887_s1 + $0x9a8] ss:$16 sps:$4 sm:$0xff]   ;;  %v4918_v6 = vld [vmem:[%s6887_s1 + $0x9c4] ss:$16 sps:$4 sm:$0xff]  }
  0xfc   :  { %3326 = vmatprep.subr.bf16.mxu0 %v4826_v7  ;;  %3654 = vmatprep.subr.bf16.mxu1 %v4829_v8  ;;  %v4921_v7 = vld [vmem:[%s6887_s1 + $0x9cc] ss:$16 sps:$4 sm:$0xff]   ;;  %v4916_v8 = vld [vmem:[%s6887_s1 + $0x9c0] ss:$16 sps:$4 sm:$0xff]  }
  0xff   :  { %3327 = vmatpush1.bf16.msra.mxu0 %v4824_v9  ;;  %3655 = vmatpush1.bf16.msra.mxu1 %v4827_v10  ;;  %v4919_v9 = vld [vmem:[%s6887_s1 + $0x9c8] ss:$16 sps:$4 sm:$0xff]   ;;  %v4924_v10 = vld [vmem:[%s6887_s1 + $0x9e4] ss:$16 sps:$4 sm:$0xff]  }
 0x100   :  { %3337 = vmatprep.subr.bf16.mxu0 %v4834_v12  ;;  %3665 = vmatprep.subr.bf16.mxu1 %v4837_v13  ;;  %v4927_v12 = vld [vmem:[%s6887_s1 + $0x9ec] ss:$16 sps:$4 sm:$0xff]   ;;  %v4922_v13 = vld [vmem:[%s6887_s1 + $0x9e0] ss:$16 sps:$4 sm:$0xff]  }
 0x102   :  { %3329 = vmatmul.mubr.bf16.vlgmr.msra.gmra.mrb[0].mxu0 %v3857_v11  ;;  %3657 = vmatmul.mubr.bf16.vlgmr.msra.gmra.mrb[0].mxu1 %v3857_v11  ;;  %v4932_v11 = vld [vmem:[%s6887_s1 + $0xa04] ss:$16 sps:$4 sm:$0xff]  }
 0x103   :  { %3338 = vmatpush1.bf16.msra.mxu0 %v4832_v15  ;;  %3666 = vmatpush1.bf16.msra.mxu1 %v4835_v17  ;;  %v4925_v15 = vld [vmem:[%s6887_s1 + $0x9e8] ss:$16 sps:$4 sm:$0xff]   ;;  %v4935_v17 = vld [vmem:[%s6887_s1 + $0xa0c] ss:$16 sps:$4 sm:$0xff]  }
 0x104   :  { %3339 = vmatprep.subr.bf16.mxu0 %v4840_v18  ;;  %3667 = vmatprep.subr.bf16.mxu1 %v4843_v14  ;;  %v6275_v18 = vld [vmem:[%s6886_s0 + $0x28] sm:$0xff]  ;;  %v3859_v14 = vcombine.low %v6079_v16, %v6079_v16 }
 0x105   :  { %3369 = vmatprep.mubr.bf16.mxu0 %v3860_v19  ;;  %3697 = vmatprep.mubr.bf16.mxu1 %v3860_v19  ;;  %v4930_v19 = vld [vmem:[%s6887_s1 + $0xa00] ss:$16 sps:$4 sm:$0xff]   ;;  %v4941_v16 = vld [vmem:[%s6887_s1 + $0xa2c] ss:$16 sps:$4 sm:$0xff]  }
 0x107   :  { %3340 = vmatpush1.bf16.msra.mxu0 %v4838_v20  ;;  %3668 = vmatpush1.bf16.msra.mxu1 %v4841_v21  ;;  %v4933_v20 = vld [vmem:[%s6887_s1 + $0xa08] ss:$16 sps:$4 sm:$0xff]   ;;  %v4938_v21 = vld [vmem:[%s6887_s1 + $0xa24] ss:$16 sps:$4 sm:$0xff]  }
 0x108   :  { %3341 = vmatprep.subr.bf16.mxu0 %v4846_v22  ;;  %3669 = vmatprep.subr.bf16.mxu1 %v4849_v23  ;;  %v3862_v22 = vcombine.high %v6275_v18, %v6275_v18 }
 0x10b   :  { %3342 = vmatpush1.bf16.msra.mxu0 %v4844_v24  ;;  %3670 = vmatpush1.bf16.msra.mxu1 %v4847_v25 }
 0x10c   :  { %3343 = vmatprep.subr.bf16.mxu0 %v4852_v26  ;;  %3671 = vmatprep.subr.bf16.mxu1 %v4855_v27 }
 0x10f   :  { %3344 = vmatpush1.bf16.msra.mxu0 %v4850_v28  ;;  %3672 = vmatpush1.bf16.msra.mxu1 %v4853_v29 }
 0x110   :  { %3345 = vmatprep.subr.bf16.mxu0 %v4858_v30  ;;  %3673 = vmatprep.subr.bf16.mxu1 %v4861_v31 }
 0x113   :  { %3346 = vmatpush1.bf16.msra.mxu0 %v4856_v32  ;;  %3674 = vmatpush1.bf16.msra.mxu1 %v4859_v33 }
 0x114   :  { %3347 = vmatprep.subr.bf16.mxu0 %v4864_v34  ;;  %3675 = vmatprep.subr.bf16.mxu1 %v4867_v35 }
 0x117   :  { %3348 = vmatpush1.bf16.msra.mxu0 %v4862_v36  ;;  %3676 = vmatpush1.bf16.msra.mxu1 %v4865_v37 }
 0x118   :  { %3349 = vmatprep.subr.bf16.mxu0 %v4870_v38  ;;  %3677 = vmatprep.subr.bf16.mxu1 %v4873_v39 }
 0x11b   :  { %3350 = vmatpush1.bf16.msra.mxu0 %v4868_v40  ;;  %3678 = vmatpush1.bf16.msra.mxu1 %v4871_v41 }
 0x11c   :  { %3351 = vmatprep.subr.bf16.mxu0 %v4876_v42  ;;  %3679 = vmatprep.subr.bf16.mxu1 %v4879_v43 }
 0x11f   :  { %3352 = vmatpush1.bf16.msra.mxu0 %v4874_v44  ;;  %3680 = vmatpush1.bf16.msra.mxu1 %v4877_v45 }
 0x120   :  { %3353 = vmatprep.subr.bf16.mxu0 %v4882_v46  ;;  %3681 = vmatprep.subr.bf16.mxu1 %v4885_v47 }
 0x123   :  { %3354 = vmatpush1.bf16.msra.mxu0 %v4880_v48  ;;  %3682 = vmatpush1.bf16.msra.mxu1 %v4883_v49 }
 0x124   :  { %3355 = vmatprep.subr.bf16.mxu0 %v4888_v50  ;;  %3683 = vmatprep.subr.bf16.mxu1 %v4891_v51 }
 0x127   :  { %3356 = vmatpush1.bf16.msra.mxu0 %v4886_v52  ;;  %3684 = vmatpush1.bf16.msra.mxu1 %v4889_v53 }
 0x128   :  { %3357 = vmatprep.subr.bf16.mxu0 %v4894_v54  ;;  %3685 = vmatprep.subr.bf16.mxu1 %v4897_v55 }
 0x12b   :  { %3358 = vmatpush1.bf16.msra.mxu0 %v4892_v56  ;;  %3686 = vmatpush1.bf16.msra.mxu1 %v4895_v57 }
 0x12c   :  { %3359 = vmatprep.subr.bf16.mxu0 %v4900_v58  ;;  %3687 = vmatprep.subr.bf16.mxu1 %v4903_v59 }
 0x12f   :  { %3360 = vmatpush1.bf16.msra.mxu0 %v4898_v60  ;;  %3688 = vmatpush1.bf16.msra.mxu1 %v4901_v61 }
 0x130   :  { %3361 = vmatprep.subr.bf16.mxu0 %v4906_v62  ;;  %3689 = vmatprep.subr.bf16.mxu1 %v4909_v63 }
 0x133   :  { %3362 = vmatpush1.bf16.msra.mxu0 %v4904_v0  ;;  %3690 = vmatpush1.bf16.msra.mxu1 %v4907_v1 }
 0x134   :  { %3363 = vmatprep.subr.bf16.mxu0 %v4912_v2  ;;  %3691 = vmatprep.subr.bf16.mxu1 %v4915_v3 }
 0x137   :  { %3364 = vmatpush1.bf16.msra.mxu0 %v4910_v4  ;;  %3692 = vmatpush1.bf16.msra.mxu1 %v4913_v5 }
 0x138   :  { %3365 = vmatprep.subr.bf16.mxu0 %v4918_v6  ;;  %3693 = vmatprep.subr.bf16.mxu1 %v4921_v7 }
 0x13b   :  { %3366 = vmatpush1.bf16.msra.mxu0 %v4916_v8  ;;  %3694 = vmatpush1.bf16.msra.mxu1 %v4919_v9 }
 0x13c   :  { %3367 = vmatprep.subr.bf16.mxu0 %v4924_v10  ;;  %3695 = vmatprep.subr.bf16.mxu1 %v4927_v12 }
 0x13f   :  { %3368 = vmatpush1.bf16.msra.mxu0 %v4922_v13  ;;  %3696 = vmatpush1.bf16.msra.mxu1 %v4925_v15 }
 0x140   :  { %3378 = vmatprep.subr.bf16.mxu0 %v4932_v11  ;;  %3706 = vmatprep.subr.bf16.mxu1 %v4935_v17 }
 0x142   :  { %3370 = vmatmul.mubr.bf16.vlgmr.msra.gmra.mrb[0].mxu0 %v3859_v14  ;;  %3698 = vmatmul.mubr.bf16.vlgmr.msra.gmra.mrb[0].mxu1 %v3859_v14 }
 0x143   :  { %8 = vsyncpa [#allocation3], 0  ;;  %3379 = vmatpush1.bf16.msra.mxu0 %v4930_v19  ;;  %3707 = vmatpush1.bf16.msra.mxu1 %v4933_v20  ;;  %v4936_v23 = vld [vmem:[%s6887_s1 + $0xa20] ss:$16 sps:$4 sm:$0xff]   ;;  %v4939_v24 = vld [vmem:[%s6887_s1 + $0xa28] ss:$16 sps:$4 sm:$0xff]  }
 0x144   :  { %3380 = vmatprep.subr.bf16.mxu0 %v4938_v21  ;;  %3708 = vmatprep.subr.bf16.mxu1 %v4941_v16  ;;  %v4944_v25 = vld [vmem:[%s6887_s1 + $0xa44] ss:$16 sps:$4 sm:$0xff]   ;;  %v4947_v26 = vld [vmem:[%s6887_s1 + $0xa4c] ss:$16 sps:$4 sm:$0xff]   ;;  %v4942_v27 = vld [vmem:[%s6887_s1 + $0xa40] ss:$16 sps:$4 sm:$0xff]   ;;  %v3861_v21 = vcombine.low %v6275_v18, %v6275_v18 }
 0x145   :  { %3410 = vmatprep.mubr.bf16.mxu0 %v3862_v22  ;;  %3738 = vmatprep.mubr.bf16.mxu1 %v3862_v22  ;;  %v4945_v28 = vld [vmem:[%s6887_s1 + $0xa48] ss:$16 sps:$4 sm:$0xff]   ;;  %v4950_v29 = vld [vmem:[%s6887_s1 + $0xa64] ss:$16 sps:$4 sm:$0xff]   ;;  %v4953_v30 = vld [vmem:[%s6887_s1 + $0xa6c] ss:$16 sps:$4 sm:$0xff]  }
 0x146   :  { %v4948_v31 = vld [vmem:[%s6887_s1 + $0xa60] ss:$16 sps:$4 sm:$0xff]   ;;  %v4951_v32 = vld [vmem:[%s6887_s1 + $0xa68] ss:$16 sps:$4 sm:$0xff]   ;;  %v4956_v33 = vld [vmem:[%s6887_s1 + $0xa84] ss:$16 sps:$4 sm:$0xff]  }
 0x147   :  { %3381 = vmatpush1.bf16.msra.mxu0 %v4936_v23  ;;  %3709 = vmatpush1.bf16.msra.mxu1 %v4939_v24  ;;  %v4959_v34 = vld [vmem:[%s6887_s1 + $0xa8c] ss:$16 sps:$4 sm:$0xff]   ;;  %v4954_v35 = vld [vmem:[%s6887_s1 + $0xa80] ss:$16 sps:$4 sm:$0xff]   ;;  %v4957_v36 = vld [vmem:[%s6887_s1 + $0xa88] ss:$16 sps:$4 sm:$0xff]  }
 0x148   :  { %3382 = vmatprep.subr.bf16.mxu0 %v4944_v25  ;;  %3710 = vmatprep.subr.bf16.mxu1 %v4947_v26  ;;  %v4962_v37 = vld [vmem:[%s6887_s1 + $0xaa4] ss:$16 sps:$4 sm:$0xff]   ;;  %v4965_v38 = vld [vmem:[%s6887_s1 + $0xaac] ss:$16 sps:$4 sm:$0xff]   ;;  %v4960_v39 = vld [vmem:[%s6887_s1 + $0xaa0] ss:$16 sps:$4 sm:$0xff]  }
 0x149   :  { %v4963_v40 = vld [vmem:[%s6887_s1 + $0xaa8] ss:$16 sps:$4 sm:$0xff]   ;;  %v4968_v41 = vld [vmem:[%s6887_s1 + $0xac4] ss:$16 sps:$4 sm:$0xff]   ;;  %v4971_v42 = vld [vmem:[%s6887_s1 + $0xacc] ss:$16 sps:$4 sm:$0xff]  }
 0x14a   :  { %v4966_v43 = vld [vmem:[%s6887_s1 + $0xac0] ss:$16 sps:$4 sm:$0xff]   ;;  %v4969_v44 = vld [vmem:[%s6887_s1 + $0xac8] ss:$16 sps:$4 sm:$0xff]   ;;  %v4974_v45 = vld [vmem:[%s6887_s1 + $0xae4] ss:$16 sps:$4 sm:$0xff]  }
 0x14b   :  { %3383 = vmatpush1.bf16.msra.mxu0 %v4942_v27  ;;  %3711 = vmatpush1.bf16.msra.mxu1 %v4945_v28  ;;  %v4977_v46 = vld [vmem:[%s6887_s1 + $0xaec] ss:$16 sps:$4 sm:$0xff]   ;;  %v4972_v47 = vld [vmem:[%s6887_s1 + $0xae0] ss:$16 sps:$4 sm:$0xff]   ;;  %v4975_v48 = vld [vmem:[%s6887_s1 + $0xae8] ss:$16 sps:$4 sm:$0xff]  }
 0x14c   :  { %3384 = vmatprep.subr.bf16.mxu0 %v4950_v29  ;;  %3712 = vmatprep.subr.bf16.mxu1 %v4953_v30  ;;  %v4980_v49 = vld [vmem:[%s6887_s1 + $0xb04] ss:$16 sps:$4 sm:$0xff]   ;;  %v4983_v50 = vld [vmem:[%s6887_s1 + $0xb0c] ss:$16 sps:$4 sm:$0xff]   ;;  %v4978_v51 = vld [vmem:[%s6887_s1 + $0xb00] ss:$16 sps:$4 sm:$0xff]  }
 0x14d   :  { %v4981_v52 = vld [vmem:[%s6887_s1 + $0xb08] ss:$16 sps:$4 sm:$0xff]   ;;  %v4986_v53 = vld [vmem:[%s6887_s1 + $0xb24] ss:$16 sps:$4 sm:$0xff]   ;;  %v4989_v54 = vld [vmem:[%s6887_s1 + $0xb2c] ss:$16 sps:$4 sm:$0xff]  }
 0x14e   :  { %v4984_v55 = vld [vmem:[%s6887_s1 + $0xb20] ss:$16 sps:$4 sm:$0xff]   ;;  %v4987_v56 = vld [vmem:[%s6887_s1 + $0xb28] ss:$16 sps:$4 sm:$0xff]   ;;  %v4992_v57 = vld [vmem:[%s6887_s1 + $0xb44] ss:$16 sps:$4 sm:$0xff]  }
 0x14f   :  { %3385 = vmatpush1.bf16.msra.mxu0 %v4948_v31  ;;  %3713 = vmatpush1.bf16.msra.mxu1 %v4951_v32  ;;  %v4995_v58 = vld [vmem:[%s6887_s1 + $0xb4c] ss:$16 sps:$4 sm:$0xff]   ;;  %v4990_v59 = vld [vmem:[%s6887_s1 + $0xb40] ss:$16 sps:$4 sm:$0xff]   ;;  %v4993_v60 = vld [vmem:[%s6887_s1 + $0xb48] ss:$16 sps:$4 sm:$0xff]  }
 0x150   :  { %3386 = vmatprep.subr.bf16.mxu0 %v4956_v33  ;;  %3714 = vmatprep.subr.bf16.mxu1 %v4959_v34  ;;  %v4998_v61 = vld [vmem:[%s6887_s1 + $0xb64] ss:$16 sps:$4 sm:$0xff]   ;;  %v5001_v62 = vld [vmem:[%s6887_s1 + $0xb6c] ss:$16 sps:$4 sm:$0xff]   ;;  %v4996_v63 = vld [vmem:[%s6887_s1 + $0xb60] ss:$16 sps:$4 sm:$0xff]  }
 0x151   :  { %v4999_v0 = vld [vmem:[%s6887_s1 + $0xb68] ss:$16 sps:$4 sm:$0xff]   ;;  %v5004_v1 = vld [vmem:[%s6887_s1 + $0xb84] ss:$16 sps:$4 sm:$0xff]   ;;  %v5007_v2 = vld [vmem:[%s6887_s1 + $0xb8c] ss:$16 sps:$4 sm:$0xff]  }
 0x152   :  { %v5002_v3 = vld [vmem:[%s6887_s1 + $0xb80] ss:$16 sps:$4 sm:$0xff]   ;;  %v5005_v4 = vld [vmem:[%s6887_s1 + $0xb88] ss:$16 sps:$4 sm:$0xff]   ;;  %v5010_v5 = vld [vmem:[%s6887_s1 + $0xba4] ss:$16 sps:$4 sm:$0xff]  }
 0x153   :  { %3387 = vmatpush1.bf16.msra.mxu0 %v4954_v35  ;;  %3715 = vmatpush1.bf16.msra.mxu1 %v4957_v36  ;;  %v5013_v6 = vld [vmem:[%s6887_s1 + $0xbac] ss:$16 sps:$4 sm:$0xff]   ;;  %v5008_v7 = vld [vmem:[%s6887_s1 + $0xba0] ss:$16 sps:$4 sm:$0xff]   ;;  %v5011_v8 = vld [vmem:[%s6887_s1 + $0xba8] ss:$16 sps:$4 sm:$0xff]  }
 0x154   :  { %3388 = vmatprep.subr.bf16.mxu0 %v4962_v37  ;;  %3716 = vmatprep.subr.bf16.mxu1 %v4965_v38  ;;  %v5016_v9 = vld [vmem:[%s6887_s1 + $0xbc4] ss:$16 sps:$4 sm:$0xff]   ;;  %v5019_v10 = vld [vmem:[%s6887_s1 + $0xbcc] ss:$16 sps:$4 sm:$0xff]   ;;  %v5014_v12 = vld [vmem:[%s6887_s1 + $0xbc0] ss:$16 sps:$4 sm:$0xff]  }
 0x155   :  { %v5017_v13 = vld [vmem:[%s6887_s1 + $0xbc8] ss:$16 sps:$4 sm:$0xff]   ;;  %v5022_v15 = vld [vmem:[%s6887_s1 + $0xbe4] ss:$16 sps:$4 sm:$0xff]   ;;  %v5025_v11 = vld [vmem:[%s6887_s1 + $0xbec] ss:$16 sps:$4 sm:$0xff]  }
 0x156   :  { %v5020_v17 = vld [vmem:[%s6887_s1 + $0xbe0] ss:$16 sps:$4 sm:$0xff]   ;;  %v5023_v14 = vld [vmem:[%s6887_s1 + $0xbe8] ss:$16 sps:$4 sm:$0xff]   ;;  %v5030_v19 = vld [vmem:[%s6887_s1 + $0xc04] ss:$16 sps:$4 sm:$0xff]  }
 0x157   :  { %3389 = vmatpush1.bf16.msra.mxu0 %v4960_v39  ;;  %3717 = vmatpush1.bf16.msra.mxu1 %v4963_v40  ;;  %v5033_v20 = vld [vmem:[%s6887_s1 + $0xc0c] ss:$16 sps:$4 sm:$0xff]   ;;  %v6478_v16 = vld [vmem:[%s6886_s0 + $0x30] sm:$0xff]  ;;  %v5031_v23 = vld [vmem:[%s6887_s1 + $0xc08] ss:$16 sps:$4 sm:$0xff]  }
 0x158   :  { %3390 = vmatprep.subr.bf16.mxu0 %v4968_v41  ;;  %3718 = vmatprep.subr.bf16.mxu1 %v4971_v42  ;;  %v5028_v22 = vld [vmem:[%s6887_s1 + $0xc00] ss:$16 sps:$4 sm:$0xff]   ;;  %v5036_v18 = vld [vmem:[%s6887_s1 + $0xc24] ss:$16 sps:$4 sm:$0xff]   ;;  %v5039_v24 = vld [vmem:[%s6887_s1 + $0xc2c] ss:$16 sps:$4 sm:$0xff]   ;;  %v3864_v25 = vcombine.high %v6478_v16, %v6478_v16 }
 0x159   :  { %v5034_v26 = vld [vmem:[%s6887_s1 + $0xc20] ss:$16 sps:$4 sm:$0xff]   ;;  %v5037_v27 = vld [vmem:[%s6887_s1 + $0xc28] ss:$16 sps:$4 sm:$0xff]   ;;  %v5042_v28 = vld [vmem:[%s6887_s1 + $0xc44] ss:$16 sps:$4 sm:$0xff]  }
 0x15a   :  { %v5045_v29 = vld [vmem:[%s6887_s1 + $0xc4c] ss:$16 sps:$4 sm:$0xff]   ;;  %v5040_v30 = vld [vmem:[%s6887_s1 + $0xc40] ss:$16 sps:$4 sm:$0xff]   ;;  %v5043_v31 = vld [vmem:[%s6887_s1 + $0xc48] ss:$16 sps:$4 sm:$0xff]  }
 0x15b   :  { %3391 = vmatpush1.bf16.msra.mxu0 %v4966_v43  ;;  %3719 = vmatpush1.bf16.msra.mxu1 %v4969_v44  ;;  %v5048_v32 = vld [vmem:[%s6887_s1 + $0xc64] ss:$16 sps:$4 sm:$0xff]   ;;  %v5051_v33 = vld [vmem:[%s6887_s1 + $0xc6c] ss:$16 sps:$4 sm:$0xff]   ;;  %v5046_v34 = vld [vmem:[%s6887_s1 + $0xc60] ss:$16 sps:$4 sm:$0xff]  }
 0x15c   :  { %3392 = vmatprep.subr.bf16.mxu0 %v4974_v45  ;;  %3720 = vmatprep.subr.bf16.mxu1 %v4977_v46  ;;  %v5049_v35 = vld [vmem:[%s6887_s1 + $0xc68] ss:$16 sps:$4 sm:$0xff]   ;;  %v5054_v36 = vld [vmem:[%s6887_s1 + $0xc84] ss:$16 sps:$4 sm:$0xff]   ;;  %v5057_v37 = vld [vmem:[%s6887_s1 + $0xc8c] ss:$16 sps:$4 sm:$0xff]  }
 0x15d   :  { %v5052_v38 = vld [vmem:[%s6887_s1 + $0xc80] ss:$16 sps:$4 sm:$0xff]   ;;  %v5055_v39 = vld [vmem:[%s6887_s1 + $0xc88] ss:$16 sps:$4 sm:$0xff]   ;;  %v5060_v40 = vld [vmem:[%s6887_s1 + $0xca4] ss:$16 sps:$4 sm:$0xff]  }
 0x15e   :  { %v5063_v41 = vld [vmem:[%s6887_s1 + $0xcac] ss:$16 sps:$4 sm:$0xff]   ;;  %v5058_v42 = vld [vmem:[%s6887_s1 + $0xca0] ss:$16 sps:$4 sm:$0xff]   ;;  %v5061_v43 = vld [vmem:[%s6887_s1 + $0xca8] ss:$16 sps:$4 sm:$0xff]  }
 0x15f   :  { %3393 = vmatpush1.bf16.msra.mxu0 %v4972_v47  ;;  %3721 = vmatpush1.bf16.msra.mxu1 %v4975_v48  ;;  %v5066_v44 = vld [vmem:[%s6887_s1 + $0xcc4] ss:$16 sps:$4 sm:$0xff]   ;;  %v5069_v45 = vld [vmem:[%s6887_s1 + $0xccc] ss:$16 sps:$4 sm:$0xff]   ;;  %v5064_v46 = vld [vmem:[%s6887_s1 + $0xcc0] ss:$16 sps:$4 sm:$0xff]  }
 0x160   :  { %3394 = vmatprep.subr.bf16.mxu0 %v4980_v49  ;;  %3722 = vmatprep.subr.bf16.mxu1 %v4983_v50  ;;  %v5067_v47 = vld [vmem:[%s6887_s1 + $0xcc8] ss:$16 sps:$4 sm:$0xff]   ;;  %v5072_v48 = vld [vmem:[%s6887_s1 + $0xce4] ss:$16 sps:$4 sm:$0xff]   ;;  %v5075_v49 = vld [vmem:[%s6887_s1 + $0xcec] ss:$16 sps:$4 sm:$0xff]  }
 0x161   :  { %v5070_v50 = vld [vmem:[%s6887_s1 + $0xce0] ss:$16 sps:$4 sm:$0xff]  }
 0x163   :  { %3395 = vmatpush1.bf16.msra.mxu0 %v4978_v51  ;;  %3723 = vmatpush1.bf16.msra.mxu1 %v4981_v52  ;;  %v5073_v51 = vld [vmem:[%s6887_s1 + $0xce8] ss:$16 sps:$4 sm:$0xff]   ;;  %v5078_v52 = vld [vmem:[%s6887_s1 + $0xd04] ss:$16 sps:$4 sm:$0xff]  }
 0x164   :  { %3396 = vmatprep.subr.bf16.mxu0 %v4986_v53  ;;  %3724 = vmatprep.subr.bf16.mxu1 %v4989_v54  ;;  %v5081_v53 = vld [vmem:[%s6887_s1 + $0xd0c] ss:$16 sps:$4 sm:$0xff]   ;;  %v5076_v54 = vld [vmem:[%s6887_s1 + $0xd00] ss:$16 sps:$4 sm:$0xff]  }
 0x167   :  { %3397 = vmatpush1.bf16.msra.mxu0 %v4984_v55  ;;  %3725 = vmatpush1.bf16.msra.mxu1 %v4987_v56  ;;  %v5079_v55 = vld [vmem:[%s6887_s1 + $0xd08] ss:$16 sps:$4 sm:$0xff]   ;;  %v5084_v56 = vld [vmem:[%s6887_s1 + $0xd24] ss:$16 sps:$4 sm:$0xff]  }
 0x168   :  { %3398 = vmatprep.subr.bf16.mxu0 %v4992_v57  ;;  %3726 = vmatprep.subr.bf16.mxu1 %v4995_v58  ;;  %v5087_v57 = vld [vmem:[%s6887_s1 + $0xd2c] ss:$16 sps:$4 sm:$0xff]   ;;  %v5082_v58 = vld [vmem:[%s6887_s1 + $0xd20] ss:$16 sps:$4 sm:$0xff]  }
 0x16b   :  { %3399 = vmatpush1.bf16.msra.mxu0 %v4990_v59  ;;  %3727 = vmatpush1.bf16.msra.mxu1 %v4993_v60  ;;  %v5085_v59 = vld [vmem:[%s6887_s1 + $0xd28] ss:$16 sps:$4 sm:$0xff]   ;;  %v5090_v60 = vld [vmem:[%s6887_s1 + $0xd44] ss:$16 sps:$4 sm:$0xff]  }
 0x16c   :  { %3400 = vmatprep.subr.bf16.mxu0 %v4998_v61  ;;  %3728 = vmatprep.subr.bf16.mxu1 %v5001_v62  ;;  %v5093_v61 = vld [vmem:[%s6887_s1 + $0xd4c] ss:$16 sps:$4 sm:$0xff]   ;;  %v5088_v62 = vld [vmem:[%s6887_s1 + $0xd40] ss:$16 sps:$4 sm:$0xff]  }
 0x16f   :  { %3401 = vmatpush1.bf16.msra.mxu0 %v4996_v63  ;;  %3729 = vmatpush1.bf16.msra.mxu1 %v4999_v0  ;;  %v5091_v63 = vld [vmem:[%s6887_s1 + $0xd48] ss:$16 sps:$4 sm:$0xff]   ;;  %v5096_v0 = vld [vmem:[%s6887_s1 + $0xd64] ss:$16 sps:$4 sm:$0xff]  }
 0x170   :  { %3402 = vmatprep.subr.bf16.mxu0 %v5004_v1  ;;  %3730 = vmatprep.subr.bf16.mxu1 %v5007_v2  ;;  %v5099_v1 = vld [vmem:[%s6887_s1 + $0xd6c] ss:$16 sps:$4 sm:$0xff]   ;;  %v5094_v2 = vld [vmem:[%s6887_s1 + $0xd60] ss:$16 sps:$4 sm:$0xff]  }
 0x173   :  { %3403 = vmatpush1.bf16.msra.mxu0 %v5002_v3  ;;  %3731 = vmatpush1.bf16.msra.mxu1 %v5005_v4  ;;  %v5097_v3 = vld [vmem:[%s6887_s1 + $0xd68] ss:$16 sps:$4 sm:$0xff]   ;;  %v5102_v4 = vld [vmem:[%s6887_s1 + $0xd84] ss:$16 sps:$4 sm:$0xff]  }
 0x174   :  { %3404 = vmatprep.subr.bf16.mxu0 %v5010_v5  ;;  %3732 = vmatprep.subr.bf16.mxu1 %v5013_v6  ;;  %v5105_v5 = vld [vmem:[%s6887_s1 + $0xd8c] ss:$16 sps:$4 sm:$0xff]   ;;  %v5100_v6 = vld [vmem:[%s6887_s1 + $0xd80] ss:$16 sps:$4 sm:$0xff]  }
 0x177   :  { %3405 = vmatpush1.bf16.msra.mxu0 %v5008_v7  ;;  %3733 = vmatpush1.bf16.msra.mxu1 %v5011_v8  ;;  %v5103_v7 = vld [vmem:[%s6887_s1 + $0xd88] ss:$16 sps:$4 sm:$0xff]   ;;  %v5108_v8 = vld [vmem:[%s6887_s1 + $0xda4] ss:$16 sps:$4 sm:$0xff]  }
 0x178   :  { %3406 = vmatprep.subr.bf16.mxu0 %v5016_v9  ;;  %3734 = vmatprep.subr.bf16.mxu1 %v5019_v10  ;;  %v5111_v9 = vld [vmem:[%s6887_s1 + $0xdac] ss:$16 sps:$4 sm:$0xff]   ;;  %v5106_v10 = vld [vmem:[%s6887_s1 + $0xda0] ss:$16 sps:$4 sm:$0xff]  }
 0x17b   :  { %3407 = vmatpush1.bf16.msra.mxu0 %v5014_v12  ;;  %3735 = vmatpush1.bf16.msra.mxu1 %v5017_v13  ;;  %v5109_v12 = vld [vmem:[%s6887_s1 + $0xda8] ss:$16 sps:$4 sm:$0xff]   ;;  %v5114_v13 = vld [vmem:[%s6887_s1 + $0xdc4] ss:$16 sps:$4 sm:$0xff]  }
 0x17c   :  { %3408 = vmatprep.subr.bf16.mxu0 %v5022_v15  ;;  %3736 = vmatprep.subr.bf16.mxu1 %v5025_v11  ;;  %v5117_v15 = vld [vmem:[%s6887_s1 + $0xdcc] ss:$16 sps:$4 sm:$0xff]   ;;  %v5112_v11 = vld [vmem:[%s6887_s1 + $0xdc0] ss:$16 sps:$4 sm:$0xff]  }
 0x17f   :  { %3409 = vmatpush1.bf16.msra.mxu0 %v5020_v17  ;;  %3737 = vmatpush1.bf16.msra.mxu1 %v5023_v14  ;;  %v5115_v17 = vld [vmem:[%s6887_s1 + $0xdc8] ss:$16 sps:$4 sm:$0xff]   ;;  %v5120_v14 = vld [vmem:[%s6887_s1 + $0xde4] ss:$16 sps:$4 sm:$0xff]  }
 0x180   :  { %3419 = vmatprep.subr.bf16.mxu0 %v5030_v19  ;;  %3747 = vmatprep.subr.bf16.mxu1 %v5033_v20  ;;  %v5123_v19 = vld [vmem:[%s6887_s1 + $0xdec] ss:$16 sps:$4 sm:$0xff]   ;;  %v5118_v20 = vld [vmem:[%s6887_s1 + $0xde0] ss:$16 sps:$4 sm:$0xff]  }
 0x182   :  { %3411 = vmatmul.mubr.bf16.vlgmr.msra.gmra.mrb[0].mxu0 %v3861_v21  ;;  %3739 = vmatmul.mubr.bf16.vlgmr.msra.gmra.mrb[0].mxu1 %v3861_v21  ;;  %v5121_v21 = vld [vmem:[%s6887_s1 + $0xde8] ss:$16 sps:$4 sm:$0xff]  }
 0x183   :  { %3420 = vmatpush1.bf16.msra.mxu0 %v5028_v22  ;;  %3748 = vmatpush1.bf16.msra.mxu1 %v5031_v23  ;;  %v5128_v22 = vld [vmem:[%s6887_s1 + $0xe04] ss:$16 sps:$4 sm:$0xff]   ;;  %v5131_v23 = vld [vmem:[%s6887_s1 + $0xe0c] ss:$16 sps:$4 sm:$0xff]  }
 0x184   :  { %3421 = vmatprep.subr.bf16.mxu0 %v5036_v18  ;;  %3749 = vmatprep.subr.bf16.mxu1 %v5039_v24  ;;  %v3863_v18 = vcombine.low %v6478_v16, %v6478_v16  ;;  %v6679_v24 = vld [vmem:[%s6886_s0 + $0x38] sm:$0xff]  ;;  %v5134_v16 = vld [vmem:[%s6887_s1 + $0xe24] ss:$16 sps:$4 sm:$0xff]  }
 0x185   :  { %3451 = vmatprep.mubr.bf16.mxu0 %v3864_v25  ;;  %3779 = vmatprep.mubr.bf16.mxu1 %v3864_v25  ;;  %v5126_v25 = vld [vmem:[%s6887_s1 + $0xe00] ss:$16 sps:$4 sm:$0xff]  }
 0x187   :  { %3422 = vmatpush1.bf16.msra.mxu0 %v5034_v26  ;;  %3750 = vmatpush1.bf16.msra.mxu1 %v5037_v27  ;;  %v5129_v26 = vld [vmem:[%s6887_s1 + $0xe08] ss:$16 sps:$4 sm:$0xff]   ;;  %v5137_v27 = vld [vmem:[%s6887_s1 + $0xe2c] ss:$16 sps:$4 sm:$0xff]  }
 0x188   :  { %3423 = vmatprep.subr.bf16.mxu0 %v5042_v28  ;;  %3751 = vmatprep.subr.bf16.mxu1 %v5045_v29  ;;  %v3866_v28 = vcombine.high %v6679_v24, %v6679_v24  ;;  %v5132_v29 = vld [vmem:[%s6887_s1 + $0xe20] ss:$16 sps:$4 sm:$0xff]  }
 0x18b   :  { %3424 = vmatpush1.bf16.msra.mxu0 %v5040_v30  ;;  %3752 = vmatpush1.bf16.msra.mxu1 %v5043_v31  ;;  %v5135_v30 = vld [vmem:[%s6887_s1 + $0xe28] ss:$16 sps:$4 sm:$0xff]   ;;  %v5140_v31 = vld [vmem:[%s6887_s1 + $0xe44] ss:$16 sps:$4 sm:$0xff]  }
 0x18c   :  { %3425 = vmatprep.subr.bf16.mxu0 %v5048_v32  ;;  %3753 = vmatprep.subr.bf16.mxu1 %v5051_v33  ;;  %v5143_v32 = vld [vmem:[%s6887_s1 + $0xe4c] ss:$16 sps:$4 sm:$0xff]   ;;  %v5138_v33 = vld [vmem:[%s6887_s1 + $0xe40] ss:$16 sps:$4 sm:$0xff]  }
 0x18f   :  { %3426 = vmatpush1.bf16.msra.mxu0 %v5046_v34  ;;  %3754 = vmatpush1.bf16.msra.mxu1 %v5049_v35  ;;  %v5141_v34 = vld [vmem:[%s6887_s1 + $0xe48] ss:$16 sps:$4 sm:$0xff]   ;;  %v5146_v35 = vld [vmem:[%s6887_s1 + $0xe64] ss:$16 sps:$4 sm:$0xff]  }
 0x190   :  { %3427 = vmatprep.subr.bf16.mxu0 %v5054_v36  ;;  %3755 = vmatprep.subr.bf16.mxu1 %v5057_v37  ;;  %v5149_v36 = vld [vmem:[%s6887_s1 + $0xe6c] ss:$16 sps:$4 sm:$0xff]   ;;  %v5144_v37 = vld [vmem:[%s6887_s1 + $0xe60] ss:$16 sps:$4 sm:$0xff]  }
 0x193   :  { %3428 = vmatpush1.bf16.msra.mxu0 %v5052_v38  ;;  %3756 = vmatpush1.bf16.msra.mxu1 %v5055_v39  ;;  %v5147_v38 = vld [vmem:[%s6887_s1 + $0xe68] ss:$16 sps:$4 sm:$0xff]   ;;  %v5152_v39 = vld [vmem:[%s6887_s1 + $0xe84] ss:$16 sps:$4 sm:$0xff]  }
 0x194   :  { %3429 = vmatprep.subr.bf16.mxu0 %v5060_v40  ;;  %3757 = vmatprep.subr.bf16.mxu1 %v5063_v41  ;;  %v5155_v40 = vld [vmem:[%s6887_s1 + $0xe8c] ss:$16 sps:$4 sm:$0xff]   ;;  %v5150_v41 = vld [vmem:[%s6887_s1 + $0xe80] ss:$16 sps:$4 sm:$0xff]  }
 0x197   :  { %3430 = vmatpush1.bf16.msra.mxu0 %v5058_v42  ;;  %3758 = vmatpush1.bf16.msra.mxu1 %v5061_v43  ;;  %v5153_v42 = vld [vmem:[%s6887_s1 + $0xe88] ss:$16 sps:$4 sm:$0xff]   ;;  %v5158_v43 = vld [vmem:[%s6887_s1 + $0xea4] ss:$16 sps:$4 sm:$0xff]  }
 0x198   :  { %3431 = vmatprep.subr.bf16.mxu0 %v5066_v44  ;;  %3759 = vmatprep.subr.bf16.mxu1 %v5069_v45  ;;  %v5161_v44 = vld [vmem:[%s6887_s1 + $0xeac] ss:$16 sps:$4 sm:$0xff]   ;;  %v5156_v45 = vld [vmem:[%s6887_s1 + $0xea0] ss:$16 sps:$4 sm:$0xff]  }
 0x19b   :  { %3432 = vmatpush1.bf16.msra.mxu0 %v5064_v46  ;;  %3760 = vmatpush1.bf16.msra.mxu1 %v5067_v47  ;;  %v5159_v46 = vld [vmem:[%s6887_s1 + $0xea8] ss:$16 sps:$4 sm:$0xff]   ;;  %v5164_v47 = vld [vmem:[%s6887_s1 + $0xec4] ss:$16 sps:$4 sm:$0xff]  }
 0x19c   :  { %3433 = vmatprep.subr.bf16.mxu0 %v5072_v48  ;;  %3761 = vmatprep.subr.bf16.mxu1 %v5075_v49  ;;  %v5167_v48 = vld [vmem:[%s6887_s1 + $0xecc] ss:$16 sps:$4 sm:$0xff]   ;;  %v5162_v49 = vld [vmem:[%s6887_s1 + $0xec0] ss:$16 sps:$4 sm:$0xff]  }
 0x19f   :  { %3434 = vmatpush1.bf16.msra.mxu0 %v5070_v50  ;;  %3762 = vmatpush1.bf16.msra.mxu1 %v5073_v51  ;;  %v5165_v50 = vld [vmem:[%s6887_s1 + $0xec8] ss:$16 sps:$4 sm:$0xff]   ;;  %v5170_v51 = vld [vmem:[%s6887_s1 + $0xee4] ss:$16 sps:$4 sm:$0xff]  }
 0x1a0   :  { %3435 = vmatprep.subr.bf16.mxu0 %v5078_v52  ;;  %3763 = vmatprep.subr.bf16.mxu1 %v5081_v53  ;;  %v5173_v52 = vld [vmem:[%s6887_s1 + $0xeec] ss:$16 sps:$4 sm:$0xff]   ;;  %v5168_v53 = vld [vmem:[%s6887_s1 + $0xee0] ss:$16 sps:$4 sm:$0xff]  }
 0x1a3   :  { %3436 = vmatpush1.bf16.msra.mxu0 %v5076_v54  ;;  %3764 = vmatpush1.bf16.msra.mxu1 %v5079_v55  ;;  %v5171_v54 = vld [vmem:[%s6887_s1 + $0xee8] ss:$16 sps:$4 sm:$0xff]   ;;  %v5176_v55 = vld [vmem:[%s6887_s1 + $0xf04] ss:$16 sps:$4 sm:$0xff]  }
 0x1a4   :  { %3437 = vmatprep.subr.bf16.mxu0 %v5084_v56  ;;  %3765 = vmatprep.subr.bf16.mxu1 %v5087_v57  ;;  %v5179_v56 = vld [vmem:[%s6887_s1 + $0xf0c] ss:$16 sps:$4 sm:$0xff]   ;;  %v5174_v57 = vld [vmem:[%s6887_s1 + $0xf00] ss:$16 sps:$4 sm:$0xff]  }
 0x1a7   :  { %3438 = vmatpush1.bf16.msra.mxu0 %v5082_v58  ;;  %3766 = vmatpush1.bf16.msra.mxu1 %v5085_v59  ;;  %v5177_v58 = vld [vmem:[%s6887_s1 + $0xf08] ss:$16 sps:$4 sm:$0xff]   ;;  %v5182_v59 = vld [vmem:[%s6887_s1 + $0xf24] ss:$16 sps:$4 sm:$0xff]  }
 0x1a8   :  { %3439 = vmatprep.subr.bf16.mxu0 %v5090_v60  ;;  %3767 = vmatprep.subr.bf16.mxu1 %v5093_v61  ;;  %v5185_v60 = vld [vmem:[%s6887_s1 + $0xf2c] ss:$16 sps:$4 sm:$0xff]   ;;  %v5180_v61 = vld [vmem:[%s6887_s1 + $0xf20] ss:$16 sps:$4 sm:$0xff]  }
 0x1ab   :  { %3440 = vmatpush1.bf16.msra.mxu0 %v5088_v62  ;;  %3768 = vmatpush1.bf16.msra.mxu1 %v5091_v63  ;;  %v5183_v62 = vld [vmem:[%s6887_s1 + $0xf28] ss:$16 sps:$4 sm:$0xff]   ;;  %v5188_v63 = vld [vmem:[%s6887_s1 + $0xf44] ss:$16 sps:$4 sm:$0xff]  }
 0x1ac   :  { %3441 = vmatprep.subr.bf16.mxu0 %v5096_v0  ;;  %3769 = vmatprep.subr.bf16.mxu1 %v5099_v1  ;;  %v5191_v0 = vld [vmem:[%s6887_s1 + $0xf4c] ss:$16 sps:$4 sm:$0xff]   ;;  %v5186_v1 = vld [vmem:[%s6887_s1 + $0xf40] ss:$16 sps:$4 sm:$0xff]  }
 0x1af   :  { %3442 = vmatpush1.bf16.msra.mxu0 %v5094_v2  ;;  %3770 = vmatpush1.bf16.msra.mxu1 %v5097_v3  ;;  %v5189_v2 = vld [vmem:[%s6887_s1 + $0xf48] ss:$16 sps:$4 sm:$0xff]   ;;  %v5194_v3 = vld [vmem:[%s6887_s1 + $0xf64] ss:$16 sps:$4 sm:$0xff]  }
 0x1b0   :  { %3443 = vmatprep.subr.bf16.mxu0 %v5102_v4  ;;  %3771 = vmatprep.subr.bf16.mxu1 %v5105_v5  ;;  %v5197_v4 = vld [vmem:[%s6887_s1 + $0xf6c] ss:$16 sps:$4 sm:$0xff]   ;;  %v5192_v5 = vld [vmem:[%s6887_s1 + $0xf60] ss:$16 sps:$4 sm:$0xff]  }
 0x1b3   :  { %3444 = vmatpush1.bf16.msra.mxu0 %v5100_v6  ;;  %3772 = vmatpush1.bf16.msra.mxu1 %v5103_v7  ;;  %v5195_v6 = vld [vmem:[%s6887_s1 + $0xf68] ss:$16 sps:$4 sm:$0xff]   ;;  %v5200_v7 = vld [vmem:[%s6887_s1 + $0xf84] ss:$16 sps:$4 sm:$0xff]  }
 0x1b4   :  { %3445 = vmatprep.subr.bf16.mxu0 %v5108_v8  ;;  %3773 = vmatprep.subr.bf16.mxu1 %v5111_v9  ;;  %v5203_v8 = vld [vmem:[%s6887_s1 + $0xf8c] ss:$16 sps:$4 sm:$0xff]   ;;  %v5198_v9 = vld [vmem:[%s6887_s1 + $0xf80] ss:$16 sps:$4 sm:$0xff]  }
 0x1b7   :  { %3446 = vmatpush1.bf16.msra.mxu0 %v5106_v10  ;;  %3774 = vmatpush1.bf16.msra.mxu1 %v5109_v12  ;;  %v5201_v10 = vld [vmem:[%s6887_s1 + $0xf88] ss:$16 sps:$4 sm:$0xff]   ;;  %v5206_v12 = vld [vmem:[%s6887_s1 + $0xfa4] ss:$16 sps:$4 sm:$0xff]  }
 0x1b8   :  { %3447 = vmatprep.subr.bf16.mxu0 %v5114_v13  ;;  %3775 = vmatprep.subr.bf16.mxu1 %v5117_v15  ;;  %v5209_v13 = vld [vmem:[%s6887_s1 + $0xfac] ss:$16 sps:$4 sm:$0xff]   ;;  %v5204_v15 = vld [vmem:[%s6887_s1 + $0xfa0] ss:$16 sps:$4 sm:$0xff]  }
 0x1bb   :  { %3448 = vmatpush1.bf16.msra.mxu0 %v5112_v11  ;;  %3776 = vmatpush1.bf16.msra.mxu1 %v5115_v17  ;;  %v5207_v11 = vld [vmem:[%s6887_s1 + $0xfa8] ss:$16 sps:$4 sm:$0xff]   ;;  %v5212_v17 = vld [vmem:[%s6887_s1 + $0xfc4] ss:$16 sps:$4 sm:$0xff]  }
 0x1bc   :  { %3449 = vmatprep.subr.bf16.mxu0 %v5120_v14  ;;  %3777 = vmatprep.subr.bf16.mxu1 %v5123_v19  ;;  %v5215_v14 = vld [vmem:[%s6887_s1 + $0xfcc] ss:$16 sps:$4 sm:$0xff]   ;;  %v5210_v19 = vld [vmem:[%s6887_s1 + $0xfc0] ss:$16 sps:$4 sm:$0xff]  }
 0x1bf   :  { %3450 = vmatpush1.bf16.msra.mxu0 %v5118_v20  ;;  %3778 = vmatpush1.bf16.msra.mxu1 %v5121_v21  ;;  %v5213_v20 = vld [vmem:[%s6887_s1 + $0xfc8] ss:$16 sps:$4 sm:$0xff]   ;;  %v5218_v21 = vld [vmem:[%s6887_s1 + $0xfe4] ss:$16 sps:$4 sm:$0xff]  }
 0x1c0   :  { %3460 = vmatprep.subr.bf16.mxu0 %v5128_v22  ;;  %3788 = vmatprep.subr.bf16.mxu1 %v5131_v23  ;;  %v5221_v22 = vld [vmem:[%s6887_s1 + $0xfec] ss:$16 sps:$4 sm:$0xff]   ;;  %v5216_v23 = vld [vmem:[%s6887_s1 + $0xfe0] ss:$16 sps:$4 sm:$0xff]  }
 0x1c2   :  { %3452 = vmatmul.mubr.bf16.vlgmr.msra.gmra.mrb[0].mxu0 %v3863_v18  ;;  %3780 = vmatmul.mubr.bf16.vlgmr.msra.gmra.mrb[0].mxu1 %v3863_v18  ;;  %v5219_v18 = vld [vmem:[%s6887_s1 + $0xfe8] ss:$16 sps:$4 sm:$0xff]   ;;  %s5248_s1 = smov [#allocation2]  }
 0x1c3   :  { %3461 = vmatpush1.bf16.msra.mxu0 %v5126_v25  ;;  %3789 = vmatpush1.bf16.msra.mxu1 %v5129_v26  ;;  %v3865_v25 = vcombine.low %v6679_v24, %v6679_v24  ;;  %v537_v26 = vlaneseq  ;;  %s3843_s23 = sshll.u32 %s5248_s1, 4  ;;  %s3844_s23 = int_to_ptr.vmem [resolvable:$true] %s3843_s23 }
 0x1c4   :  { %3462 = vmatprep.subr.bf16.mxu0 %v5134_v16  ;;  %3790 = vmatprep.subr.bf16.mxu1 %v5137_v27  ;;  %p5229_p1 = scmp.lt.s32.totalorder %s3844_s23, %s3844_s23 }
 0x1c5   :  { %3492 = vmatprep.mubr.bf16.mxu0 %v3866_v28  ;;  %3820 = vmatprep.mubr.bf16.mxu1 %v3866_v28  ;;  %v538_v16 = vshrl.u32 %v537_v26, 7 }
 0x1c7   :  { %3463 = vmatpush1.bf16.msra.mxu0 %v5132_v29  ;;  %3791 = vmatpush1.bf16.msra.mxu1 %v5135_v30  ;;  %v539_v27 = vsub.s32 0, %v538_v16  ;;  %v547_v28 = vsub.s32 2, %v538_v16  ;;  %v535_v29 = vld [vmem:[%s6888_s2] sm:$0xf]  ;;  %v543_v30 = vsub.s32 1, %v538_v16  ;;  %s5224_s2 = scalar_lea.vmem %s3844_s23, 512 }
 0x1c8   :  { %3464 = vmatprep.subr.bf16.mxu0 %v5140_v31  ;;  %3792 = vmatprep.subr.bf16.mxu1 %v5143_v32  ;;  %v551_v31 = vsub.s32 3, %v538_v16  ;;  %p5225_p0 = scmp.ne.s32.totalorder %s3844_s23, %s5224_s2  ;;  %p5230_p2 = scmp.lt.s32.totalorder %s5224_s2, %s5224_s2 }
 0x1c9   :  { %v540_v32 = vrot.slane %v535_v29, %v539_v27 }
 0x1ca   :  { %p5231_p3 = por %p5230_p2, %p5229_p1 }
 0x1cb   :  { %3465 = vmatpush1.bf16.msra.mxu0 %v5138_v33  ;;  %3793 = vmatpush1.bf16.msra.mxu1 %v5141_v34  ;;  %v548_v33 = vrot.slane %v535_v29, %v547_v28  ;;  %v544_v34 = vrot.slane %v535_v29, %v543_v30 }
 0x1cc   :  { %3466 = vmatprep.subr.bf16.mxu0 %v5146_v35  ;;  %3794 = vmatprep.subr.bf16.mxu1 %v5149_v36  ;;  %v552_v35 = vrot.slane %v535_v29, %v551_v31  ;;  %p5232_p4 = pnand %p5231_p3, %p5225_p0 }
 0x1cf   :  { %3467 = vmatpush1.bf16.msra.mxu0 %v5144_v37  ;;  %3795 = vmatpush1.bf16.msra.mxu1 %v5147_v38 }
 0x1d0   :  { %3468 = vmatprep.subr.bf16.mxu0 %v5152_v39  ;;  %3796 = vmatprep.subr.bf16.mxu1 %v5155_v40 }
 0x1d3   :  { %3469 = vmatpush1.bf16.msra.mxu0 %v5150_v41  ;;  %3797 = vmatpush1.bf16.msra.mxu1 %v5153_v42 }
 0x1d4   :  { %3470 = vmatprep.subr.bf16.mxu0 %v5158_v43  ;;  %3798 = vmatprep.subr.bf16.mxu1 %v5161_v44 }
 0x1d7   :  { %3471 = vmatpush1.bf16.msra.mxu0 %v5156_v45  ;;  %3799 = vmatpush1.bf16.msra.mxu1 %v5159_v46 }
 0x1d8   :  { %3472 = vmatprep.subr.bf16.mxu0 %v5164_v47  ;;  %3800 = vmatprep.subr.bf16.mxu1 %v5167_v48 }
 0x1db   :  { %3473 = vmatpush1.bf16.msra.mxu0 %v5162_v49  ;;  %3801 = vmatpush1.bf16.msra.mxu1 %v5165_v50 }
 0x1dc   :  { %3474 = vmatprep.subr.bf16.mxu0 %v5170_v51  ;;  %3802 = vmatprep.subr.bf16.mxu1 %v5173_v52 }
 0x1df   :  { %3475 = vmatpush1.bf16.msra.mxu0 %v5168_v53  ;;  %3803 = vmatpush1.bf16.msra.mxu1 %v5171_v54 }
 0x1e0   :  { %3476 = vmatprep.subr.bf16.mxu0 %v5176_v55  ;;  %3804 = vmatprep.subr.bf16.mxu1 %v5179_v56 }
 0x1e3   :  { %3477 = vmatpush1.bf16.msra.mxu0 %v5174_v57  ;;  %3805 = vmatpush1.bf16.msra.mxu1 %v5177_v58 }
 0x1e4   :  { %3478 = vmatprep.subr.bf16.mxu0 %v5182_v59  ;;  %3806 = vmatprep.subr.bf16.mxu1 %v5185_v60 }
 0x1e7   :  { %3479 = vmatpush1.bf16.msra.mxu0 %v5180_v61  ;;  %3807 = vmatpush1.bf16.msra.mxu1 %v5183_v62 }
 0x1e8   :  { %3480 = vmatprep.subr.bf16.mxu0 %v5188_v63  ;;  %3808 = vmatprep.subr.bf16.mxu1 %v5191_v0 }
 0x1eb   :  { %3481 = vmatpush1.bf16.msra.mxu0 %v5186_v1  ;;  %3809 = vmatpush1.bf16.msra.mxu1 %v5189_v2 }
 0x1ec   :  { %3482 = vmatprep.subr.bf16.mxu0 %v5194_v3  ;;  %3810 = vmatprep.subr.bf16.mxu1 %v5197_v4 }
 0x1ef   :  { %3483 = vmatpush1.bf16.msra.mxu0 %v5192_v5  ;;  %3811 = vmatpush1.bf16.msra.mxu1 %v5195_v6 }
 0x1f0   :  { %3484 = vmatprep.subr.bf16.mxu0 %v5200_v7  ;;  %3812 = vmatprep.subr.bf16.mxu1 %v5203_v8 }
 0x1f3   :  { %3485 = vmatpush1.bf16.msra.mxu0 %v5198_v9  ;;  %3813 = vmatpush1.bf16.msra.mxu1 %v5201_v10 }
 0x1f4   :  { %3486 = vmatprep.subr.bf16.mxu0 %v5206_v12  ;;  %3814 = vmatprep.subr.bf16.mxu1 %v5209_v13 }
 0x1f7   :  { %3487 = vmatpush1.bf16.msra.mxu0 %v5204_v15  ;;  %3815 = vmatpush1.bf16.msra.mxu1 %v5207_v11 }
 0x1f8   :  { %3488 = vmatprep.subr.bf16.mxu0 %v5212_v17  ;;  %3816 = vmatprep.subr.bf16.mxu1 %v5215_v14 }
 0x1fb   :  { %3489 = vmatpush1.bf16.msra.mxu0 %v5210_v19  ;;  %3817 = vmatpush1.bf16.msra.mxu1 %v5213_v20 }
 0x1fc   :  { %3490 = vmatprep.subr.bf16.mxu0 %v5218_v21  ;;  %3818 = vmatprep.subr.bf16.mxu1 %v5221_v22 }
 0x1ff   :  { %3491 = vmatpush1.bf16.msra.mxu0 %v5216_v23  ;;  %3819 = vmatpush1.bf16.msra.mxu1 %v5219_v18 }
 0x202   :  { %3493 = vmatmul.mubr.bf16.vlgmr.msra.gmra.mrb[0].mxu0 %v3865_v25  ;;  %3821 = vmatmul.mubr.bf16.vlgmr.msra.gmra.mrb[0].mxu1 %v3865_v25 }
 0x2d5   :  { %v3494_v36 = vpop.f32.mrb[0].mxu0  ;;  %v3822_v24 = vpop.f32.mrb[0].mxu1 }
 0x2d6   :  { %v4379_v37 = vadd.f32 %v3494_v36, %v540_v32  ;;  %v4381_v38 = vadd.f32 %v3822_v24, %v548_v33  ;;  %v3496_v39 = vpop.f32.mrb[1].mxu0  ;;  %v3824_v40 = vpop.f32.mrb[1].mxu1 }
 0x2d7   :  { %v4380_v41 = vadd.f32 %v3496_v39, %v544_v34  ;;  %v4382_v42 = vadd.f32 %v3824_v40, %v552_v35  ;;  %v3498_v43 = vpop.f32.mrb[2].mxu0  ;;  %v3826_v44 = vpop.f32.mrb[2].mxu1 }
 0x2d8   :  { %v3829_v45 = vmax.f32 %v4379_v37, 0.0  ;;  %v3831_v46 = vmax.f32 %v4381_v38, 0.0  ;;  %v3499_v47 = vpop.f32.mrb[3].mxu0  ;;  %v3827_v48 = vpop.f32.mrb[3].mxu1 }
 0x2d9   :  { %v3830_v49 = vmax.f32 %v4380_v41, 0.0  ;;  %v3832_v50 = vmax.f32 %v4382_v42, 0.0 }
 0x2da   :  { %3833 = vst [vmem:[#allocation2] sm:$0xff] %v3829_v45  ;;  %3835 = vst [vmem:[#allocation2 + $0x10] sm:$0xff] %v3831_v46 }
 0x2db   :  { %3834 = vst [vmem:[#allocation2 + $0x8] sm:$0xff] %v3830_v49  ;;  %3836 = vst [vmem:[#allocation2 + $0x18] sm:$0xff] %v3832_v50 }
 0x2dc   :  { %5235 = shalt.err (!%p5232_p4)
}
 0x2dd   :  { %s5236_s26 = scalar_lea.hbm %s6889_s3, 512 }
 0x2de   :  { %p5237_p5 = scmp.ne.s32.totalorder %s6889_s3, %s5236_s26  ;;  %p5240_p6 = scmp.lt.u32.totalorder %s5236_s26, %s6889_s3 }
 0x2e0   :  { %p5242_p7 = pnand %p5240_p6, %p5237_p5 }
 0x2e2   :  { %5245 = shalt.err (!%p5242_p7)
}
 0x2e3   :  { %3846 = dma.vmem_to_hbm [thread:$0]  %s3844_s23, 512, %s6889_s3, [#allocation3]  }
 0x2e4   :  { %5246 = dma.done.wait [#allocation3], 512  }
 0x2e5   :  { %5247 = vsyncadd [#allocation3], 4294966784 }
 0x2e6   :  { %3850 = vsyncpa [#allocation3], 1 }

</bundles_post_ra>
